<compile_context>
chip_gen: v7x
topology: tpu7x:2x2x1
jax: 0.10.0
libtpu: 0.0.40
codegen_flags: <defaults>
</compile_context>

<pallas_src>
import math
import numpy as np
import jax
import jax.numpy as jnp
from jax import lax
from jax.experimental import pallas as pl
from jax.experimental.pallas import tpu as pltpu

RATES = (6, 12, 18)
R_MAX = max(RATES)
BN_EPS = 1e-5

_MIB = 1024 * 1024
_WS_BUDGET = 28 * _MIB            # working-set budget used to size the h-tile


def _divisors_desc(n):
    return sorted((d for d in range(1, n + 1) if n % d == 0), reverse=True)


def _vmem_limit(estimate):
    # Scoped-VMEM cap derived from the actual estimate; 64 MiB upper bound is
    # v7x-physical-safe, 32 MiB floor matches the conservative default.
    return int(min(64 * _MIB, max(32 * _MIB, 2 * estimate)))


def _est_branches(th, hp, wpc, wc, cin, cout):
    # Per-grid-step VMEM estimate for Kernel A (bf16 blocks double-buffered).
    bf, f4 = 2, 4
    img = hp * wpc * cin * bf * 2                 # resident padded image
    wts = 27 * cin * cout * bf * 2                # (3,3,3,Cin,Cout) weights
    outb = th * wc * 3 * cout * bf * 2            # concat branch tile
    slab = (th + 2 * R_MAX) * wc * cin * bf       # one live column slab
    live = th * wc * cout * f4 * 2                # f32 accumulator + y
    return img + wts + outb + slab + live


def _est_out1x1(th, wc, cout):
    bf, f4 = 2, 4
    return (th * wc * 3 * cout * bf * 2 + 3 * cout * cout * bf * 2
            + th * wc * cout * f4 * 2 + th * wc * cout * f4)


def _pick_tile_h(h, est_fn):
    divs = _divisors_desc(h)
    for th in divs:
        if est_fn(th) <= _WS_BUDGET:
            return th
    # TODO(synk): even TH=1 exceeds the budget (huge Cin/W); needs the
    # halo-slab-DMA / Cin-blocked Kernel A variant for such shapes.
    return divs[-1]


# --------------------------------------------------------------------------
# Kernel A: all three dilated 3x3 convs + bias + ReLU (bf16 MXU, f32 acc)
#           -> channel-concatenated bf16 branch activations
#           -> f32 per-tile BN partial statistics (per-branch sum / sum-sq).
# --------------------------------------------------------------------------
def aspp_branches(xp, w3, b3, H, W, Wc, TH):
    N, Hp, Wpc, Cin = xp.shape
    Cout = w3.shape[-1]
    HT = H // TH
    R = R_MAX

    def kernel(x_ref, w_ref, b_ref, o_ref, st_ref):
        h0 = pl.multiple_of(pl.program_id(1) * TH, TH)
        sums, sqs = [], []
        for ri, rate in enumerate(RATES):
            acc = jnp.zeros((TH * Wc, Cout), jnp.float32)
            for kx in range(3):
                col = (R - rate) + kx * rate              # static column offset
                # one (TH+2R, Wc, Cin) column slab live at a time
                slab = x_ref[0, pl.ds(h0, TH + 2 * R), col:col + Wc, :]
                for ky in range(3):
                    row = (R - rate) + ky * rate          # cheap leading-dim slice
                    xs = slab[row:row + TH].reshape(TH * Wc, Cin)
                    acc = acc + jnp.dot(xs, w_ref[ri, ky, kx],
                                        preferred_element_type=jnp.float32)
            y = jnp.maximum(acc + b_ref[ri], 0.0)          # f32 bias + ReLU
            y3 = y.reshape(TH, Wc, Cout)
            # channel-concatenated bf16 store (lane-dense when Cout % 128 == 0)
            o_ref[0, :, :, ri * Cout:(ri + 1) * Cout] = y3.astype(o_ref.dtype)
            # BN partial stats reduced immediately (mask W padding; y dies here)
            yv = y if Wc == W else y3[:, :W, :].reshape(TH * W, Cout)
            sums.append(jnp.sum(yv, axis=0, keepdims=True))
            sqs.append(jnp.sum(yv * yv, axis=0, keepdims=True))
        st_ref[0, 0] = jnp.stack([jnp.concatenate(sums, axis=0),
                                  jnp.concatenate(sqs, axis=0)])   # (2,3,Cout)

    est = _est_branches(TH, Hp, Wpc, Wc, Cin, Cout)
    return pl.pallas_call(
        kernel,
        out_shape=(
            jax.ShapeDtypeStruct((N, H, Wc, 3 * Cout), jnp.bfloat16),
            jax.ShapeDtypeStruct((N, HT, 2, 3, Cout), jnp.float32),
        ),
        grid=(N, HT),
        in_specs=[
            # Full padded image per batch element: block index ignores the
            # h-tile axis, so it is DMA'd once per n and stays VMEM-resident.
            pl.BlockSpec((1, Hp, Wpc, Cin), lambda n, h: (n, 0, 0, 0)),
            pl.BlockSpec((3, 3, 3, Cin, Cout), lambda n, h: (0, 0, 0, 0, 0)),
            pl.BlockSpec((3, 1, Cout), lambda n, h: (0, 0, 0)),
        ],
        out_specs=(
            pl.BlockSpec((1, TH, Wc, 3 * Cout), lambda n, h: (n, h, 0, 0)),
            pl.BlockSpec((1, 1, 2, 3, Cout), lambda n, h: (n, h, 0, 0, 0)),
        ),
        compiler_params=pltpu.CompilerParams(
            dimension_semantics=("parallel", "parallel"),
            vmem_limit_bytes=_vmem_limit(est)),
    )(xp, w3, b3)


# --------------------------------------------------------------------------
# Kernel B: 1x1 output conv with BN pre-folded into the (3*Cout, Cout) weight
#           -> single bf16 matmul + f32 bias per tile (its own tile height).
# --------------------------------------------------------------------------
def output_conv_1x1(y_cat, w_fold, b_fold, TH):
    N, H, Wc, C3 = y_cat.shape
    Cout = w_fold.shape[-1]
    HT = H // TH

    def kernel(y_ref, w_ref, b_ref, o_ref):
        acc = jnp.dot(y_ref[0].reshape(TH * Wc, C3), w_ref[...],
                      preferred_element_type=jnp.float32)
        o_ref[0] = (acc + b_ref[...]).reshape(TH, Wc, Cout)

    est = _est_out1x1(TH, Wc, Cout)
    return pl.pallas_call(
        kernel,
        out_shape=jax.ShapeDtypeStruct((N, H, Wc, Cout), jnp.float32),
        grid=(N, HT),
        in_specs=[
            pl.BlockSpec((1, TH, Wc, C3), lambda n, h: (n, h, 0, 0)),
            pl.BlockSpec((C3, Cout), lambda n, h: (0, 0)),
            pl.BlockSpec((1, Cout), lambda n, h: (0, 0)),
        ],
        out_specs=pl.BlockSpec((1, TH, Wc, Cout), lambda n, h: (n, h, 0, 0)),
        compiler_params=pltpu.CompilerParams(
            dimension_semantics=("parallel", "parallel"),
            vmem_limit_bytes=_vmem_limit(est)),
    )(y_cat, w_fold, b_fold)


# --------------------------------------------------------------------------
# Full ASPP forward (NCHW in / NCHW out, matching the PyTorch module)
# --------------------------------------------------------------------------
def aspp_forward(x_nchw, params):
    # TODO(synk): drop the NCHW<->NHWC transposes if the surrounding model can
    # produce / consume NHWC directly (each is a full HBM pass).
    x = jnp.transpose(x_nchw, (0, 2, 3, 1))                # NCHW -> NHWC
    N, H, W, Cin = x.shape
    Cout = params["b_out"].shape[0]
    R = R_MAX

    extra = (-W) % 8                                       # keep W-merge layout-preserving
    Wc = W + extra
    Hp, Wpc = H + 2 * R, Wc + 2 * R

    # single padded bf16 input copy at the max rate (cast fuses into the pad)
    xp = jnp.pad(x.astype(jnp.bfloat16), ((0, 0), (R, R), (R, R + extra), (0, 0)))

    w3 = jnp.stack(params["w3"]).astype(jnp.bfloat16)      # (3,3,3,Cin,Cout)
    b3 = jnp.stack(params["b3"]).reshape(3, 1, Cout)       # f32

    th_a = _pick_tile_h(H, lambda th: _est_branches(th, Hp, Wpc, Wc, Cin, Cout))
    y_cat, part = aspp_branches(xp, w3, b3, H, W, Wc, th_a)

    # BatchNorm2d in training mode (batch stats over N,H,W; gamma=1, beta=0):
    # tiny (3, Cout) glue reduction over the kernel-emitted partial sums.
    cnt = float(N * H * W)
    tot = jnp.sum(part, axis=(0, 1))                       # (2, 3, Cout)
    mean = tot[0] / cnt
    var = jnp.maximum(tot[1] / cnt - mean * mean, 0.0)
    inv = lax.rsqrt(var + BN_EPS)
    scale = inv.reshape(3 * Cout)                          # gamma = 1
    shift = (-mean * inv).reshape(3 * Cout)                # beta  = 0

    # Fold BN scale/shift into the 1x1 output conv (tiny (3C, C) glue ops).
    w_out = params["w_out"]                                # (3*Cout, Cout) f32
    w_fold = (w_out * scale[:, None]).astype(jnp.bfloat16)
    b_fold = (params["b_out"] + shift @ w_out).reshape(1, Cout)

    th_b = _pick_tile_h(H, lambda th: _est_out1x1(th, Wc, Cout))
    out = output_conv_1x1(y_cat, w_fold, b_fold, th_b)     # (N,H,Wc,Cout) f32
    if extra:
        out = out[:, :, :W, :]
    return jnp.transpose(out, (0, 3, 1, 2))                # NHWC -> NCHW


# --------------------------------------------------------------------------
# Pure-JAX f32 reference (for correctness check)
# --------------------------------------------------------------------------
def aspp_reference(x_nchw, params):
    x = jnp.transpose(x_nchw, (0, 2, 3, 1))
    outs = []
    for i, r in enumerate(RATES):
        y = lax.conv_general_dilated(
            x, params["w3"][i], window_strides=(1, 1),
            padding=[(r, r), (r, r)], rhs_dilation=(r, r),
            dimension_numbers=("NHWC", "HWIO", "NHWC"))
        y = jnp.maximum(y + params["b3"][i].reshape(1, 1, 1, -1), 0.0)
        mean = jnp.mean(y, axis=(0, 1, 2))
        var = jnp.var(y, axis=(0, 1, 2))
        outs.append((y - mean) / jnp.sqrt(var + BN_EPS))
    cat = jnp.concatenate(outs, axis=-1)
    out = jnp.einsum("nhwc,cd->nhwd", cat, params["w_out"]) \
        + params["b_out"].reshape(1, 1, 1, -1)
    return jnp.transpose(out, (0, 3, 1, 2))


# --------------------------------------------------------------------------
# Deterministic parameter init (kaiming-normal conv weights, like _init_weights)
# --------------------------------------------------------------------------
def make_params(key, in_dims, out_dims):
    ks = jax.random.split(key, 8)
    fan3 = in_dims * 9
    w3 = [jax.random.normal(ks[i], (3, 3, in_dims, out_dims), jnp.float32)
          * math.sqrt(2.0 / fan3) for i in range(3)]
    b3 = [jax.random.uniform(ks[3 + i], (out_dims,), jnp.float32,
                             -1.0 / math.sqrt(fan3), 1.0 / math.sqrt(fan3))
          for i in range(3)]
    fan1 = 3 * out_dims
    w_out = jax.random.normal(ks[6], (3 * out_dims, out_dims), jnp.float32) \
        * math.sqrt(2.0 / fan1)
    b_out = jax.random.uniform(ks[7], (out_dims,), jnp.float32,
                               -1.0 / math.sqrt(fan1), 1.0 / math.sqrt(fan1))
    return {"w3": w3, "b3": b3, "w_out": w_out, "b_out": b_out}


if __name__ == "__main__":
    key = jax.random.PRNGKey(0)
    k_x, k_p = jax.random.split(key)

    # NOTE: tune tile sizes against production channel counts (Cin/Cout >= 128);
    # the 4-channel harness only exercises correctness.
    N, C_IN, C_OUT, H, W = 2, 4, 4, 16, 16
    x = jax.random.normal(k_x, (N, C_IN, H, W), jnp.float32)
    params = make_params(k_p, C_IN, C_OUT)

    out = jax.block_until_ready(jax.jit(aspp_forward)(x, params))
    ref = jax.block_until_ready(aspp_reference(x, params))

    assert out.shape == (N, C_OUT, H, W)
    # bf16 matmul inputs / bf16 branch activations (f32 accumulation) vs f32
    # reference -> use a bf16-appropriate tolerance.
    np.testing.assert_allclose(np.asarray(out), np.asarray(ref),
                               rtol=2e-2, atol=5e-2)
    print("KERNEL_OK")
</pallas_src>

<mosaic_0001>
module attributes {stable_mosaic.version = 11 : i64} {
  func.func @kernel(%arg0: i32, %arg1: i32, %arg2: memref<1x52x52x4xbf16, #tpu.memory_space<vmem>>, %arg3: memref<3x3x3x4x4xbf16, #tpu.memory_space<vmem>>, %arg4: memref<3x1x4xf32, #tpu.memory_space<vmem>>, %arg5: memref<1x16x16x12xbf16, #tpu.memory_space<vmem>>, %arg6: memref<1x1x2x3x4xf32, #tpu.memory_space<vmem>>) attributes {dimension_semantics = [#tpu.dimension_semantics<parallel>, #tpu.dimension_semantics<parallel>], iteration_bounds = array<i64: 2, 1>, scalar_prefetch = 0 : i64, scratch_operands = 0 : i64, tpu.core_type = #tpu.core_type<tc>, window_params = [{transform_indices = @transform_0, window_bounds = array<i64: 1, 52, 52, 4>}, {pipeline_mode = #tpu.pipeline_mode<synchronous>, transform_indices = @transform_1, window_bounds = array<i64: 3, 3, 3, 4, 4>}, {pipeline_mode = #tpu.pipeline_mode<synchronous>, transform_indices = @transform_2, window_bounds = array<i64: 3, 1, 4>}, {transform_indices = @transform_3, window_bounds = array<i64: 1, 16, 16, 12>}, {transform_indices = @transform_4, window_bounds = array<i64: 1, 1, 2, 3, 4>}]} {
    %c16_i32 = arith.constant 16 : i32
    %0 = arith.muli %arg1, %c16_i32 : i32
    %1 = tpu.assume_multiple %0, 16 : i32
    %cst = arith.constant 0.000000e+00 : f32
    %2 = vector.broadcast %cst : f32 to vector<256x4xf32>
    %c0 = arith.constant 0 : index
    %3 = arith.index_cast %1 : i32 to index
    %c12 = arith.constant 12 : index
    %c0_0 = arith.constant 0 : index
    %4 = vector.load %arg2[%c0, %3, %c12, %c0_0] : memref<1x52x52x4xbf16, #tpu.memory_space<vmem>>, vector<1x52x16x4xbf16>
    %5 = vector.shape_cast %4 : vector<1x52x16x4xbf16> to vector<52x16x4xbf16>
    %6 = vector.extract_strided_slice %5 {offsets = [12, 0, 0], sizes = [16, 16, 4], strides = [1, 1, 1]} : vector<52x16x4xbf16> to vector<16x16x4xbf16>
    %7 = vector.shape_cast %6 : vector<16x16x4xbf16> to vector<256x4xbf16>
    %c0_1 = arith.constant 0 : index
    %c0_2 = arith.constant 0 : index
    %c0_3 = arith.constant 0 : index
    %c0_4 = arith.constant 0 : index
    %c0_5 = arith.constant 0 : index
    %8 = vector.load %arg3[%c0_1, %c0_2, %c0_3, %c0_4, %c0_5] : memref<3x3x3x4x4xbf16, #tpu.memory_space<vmem>>, vector<1x1x1x4x4xbf16>
    %9 = vector.shape_cast %8 : vector<1x1x1x4x4xbf16> to vector<4x4xbf16>
    %cst_6 = arith.constant dense<0.000000e+00> : vector<256x4xf32>
    %10 = tpu.matmul %7, %9, %cst_6 {dimension_numbers = #tpu.dot_dimension_numbers<[1], [0], [0], [1], [0, 0, 1, 1], [], []>} : vector<256x4xbf16>, vector<4x4xbf16>, vector<256x4xf32> -> vector<256x4xf32>
    %11 = arith.addf %2, %10 : vector<256x4xf32>
    %12 = vector.extract_strided_slice %5 {offsets = [18, 0, 0], sizes = [16, 16, 4], strides = [1, 1, 1]} : vector<52x16x4xbf16> to vector<16x16x4xbf16>
    %13 = vector.shape_cast %12 : vector<16x16x4xbf16> to vector<256x4xbf16>
    %c0_7 = arith.constant 0 : index
    %c1 = arith.constant 1 : index
    %c0_8 = arith.constant 0 : index
    %c0_9 = arith.constant 0 : index
    %c0_10 = arith.constant 0 : index
    %14 = vector.load %arg3[%c0_7, %c1, %c0_8, %c0_9, %c0_10] : memref<3x3x3x4x4xbf16, #tpu.memory_space<vmem>>, vector<1x1x1x4x4xbf16>
    %15 = vector.shape_cast %14 : vector<1x1x1x4x4xbf16> to vector<4x4xbf16>
    %cst_11 = arith.constant dense<0.000000e+00> : vector<256x4xf32>
    %16 = tpu.matmul %13, %15, %cst_11 {dimension_numbers = #tpu.dot_dimension_numbers<[1], [0], [0], [1], [0, 0, 1, 1], [], []>} : vector<256x4xbf16>, vector<4x4xbf16>, vector<256x4xf32> -> vector<256x4xf32>
    %17 = arith.addf %11, %16 : vector<256x4xf32>
    %18 = vector.extract_strided_slice %5 {offsets = [24, 0, 0], sizes = [16, 16, 4], strides = [1, 1, 1]} : vector<52x16x4xbf16> to vector<16x16x4xbf16>
    %19 = vector.shape_cast %18 : vector<16x16x4xbf16> to vector<256x4xbf16>
    %c0_12 = arith.constant 0 : index
    %c2 = arith.constant 2 : index
    %c0_13 = arith.constant 0 : index
    %c0_14 = arith.constant 0 : index
    %c0_15 = arith.constant 0 : index
    %20 = vector.load %arg3[%c0_12, %c2, %c0_13, %c0_14, %c0_15] : memref<3x3x3x4x4xbf16, #tpu.memory_space<vmem>>, vector<1x1x1x4x4xbf16>
    %21 = vector.shape_cast %20 : vector<1x1x1x4x4xbf16> to vector<4x4xbf16>
    %cst_16 = arith.constant dense<0.000000e+00> : vector<256x4xf32>
    %22 = tpu.matmul %19, %21, %cst_16 {dimension_numbers = #tpu.dot_dimension_numbers<[1], [0], [0], [1], [0, 0, 1, 1], [], []>} : vector<256x4xbf16>, vector<4x4xbf16>, vector<256x4xf32> -> vector<256x4xf32>
    %23 = arith.addf %17, %22 : vector<256x4xf32>
    %c0_17 = arith.constant 0 : index
    %24 = arith.index_cast %1 : i32 to index
    %c18 = arith.constant 18 : index
    %c0_18 = arith.constant 0 : index
    %25 = vector.load %arg2[%c0_17, %24, %c18, %c0_18] : memref<1x52x52x4xbf16, #tpu.memory_space<vmem>>, vector<1x52x16x4xbf16>
    %26 = vector.shape_cast %25 : vector<1x52x16x4xbf16> to vector<52x16x4xbf16>
    %27 = vector.extract_strided_slice %26 {offsets = [12, 0, 0], sizes = [16, 16, 4], strides = [1, 1, 1]} : vector<52x16x4xbf16> to vector<16x16x4xbf16>
    %28 = vector.shape_cast %27 : vector<16x16x4xbf16> to vector<256x4xbf16>
    %c0_19 = arith.constant 0 : index
    %c0_20 = arith.constant 0 : index
    %c1_21 = arith.constant 1 : index
    %c0_22 = arith.constant 0 : index
    %c0_23 = arith.constant 0 : index
    %29 = vector.load %arg3[%c0_19, %c0_20, %c1_21, %c0_22, %c0_23] : memref<3x3x3x4x4xbf16, #tpu.memory_space<vmem>>, vector<1x1x1x4x4xbf16>
    %30 = vector.shape_cast %29 : vector<1x1x1x4x4xbf16> to vector<4x4xbf16>
    %cst_24 = arith.constant dense<0.000000e+00> : vector<256x4xf32>
    %31 = tpu.matmul %28, %30, %cst_24 {dimension_numbers = #tpu.dot_dimension_numbers<[1], [0], [0], [1], [0, 0, 1, 1], [], []>} : vector<256x4xbf16>, vector<4x4xbf16>, vector<256x4xf32> -> vector<256x4xf32>
    %32 = arith.addf %23, %31 : vector<256x4xf32>
    %33 = vector.extract_strided_slice %26 {offsets = [18, 0, 0], sizes = [16, 16, 4], strides = [1, 1, 1]} : vector<52x16x4xbf16> to vector<16x16x4xbf16>
    %34 = vector.shape_cast %33 : vector<16x16x4xbf16> to vector<256x4xbf16>
    %c0_25 = arith.constant 0 : index
    %c1_26 = arith.constant 1 : index
    %c1_27 = arith.constant 1 : index
    %c0_28 = arith.constant 0 : index
    %c0_29 = arith.constant 0 : index
    %35 = vector.load %arg3[%c0_25, %c1_26, %c1_27, %c0_28, %c0_29] : memref<3x3x3x4x4xbf16, #tpu.memory_space<vmem>>, vector<1x1x1x4x4xbf16>
    %36 = vector.shape_cast %35 : vector<1x1x1x4x4xbf16> to vector<4x4xbf16>
    %cst_30 = arith.constant dense<0.000000e+00> : vector<256x4xf32>
    %37 = tpu.matmul %34, %36, %cst_30 {dimension_numbers = #tpu.dot_dimension_numbers<[1], [0], [0], [1], [0, 0, 1, 1], [], []>} : vector<256x4xbf16>, vector<4x4xbf16>, vector<256x4xf32> -> vector<256x4xf32>
    %38 = arith.addf %32, %37 : vector<256x4xf32>
    %39 = vector.extract_strided_slice %26 {offsets = [24, 0, 0], sizes = [16, 16, 4], strides = [1, 1, 1]} : vector<52x16x4xbf16> to vector<16x16x4xbf16>
    %40 = vector.shape_cast %39 : vector<16x16x4xbf16> to vector<256x4xbf16>
    %c0_31 = arith.constant 0 : index
    %c2_32 = arith.constant 2 : index
    %c1_33 = arith.constant 1 : index
    %c0_34 = arith.constant 0 : index
    %c0_35 = arith.constant 0 : index
    %41 = vector.load %arg3[%c0_31, %c2_32, %c1_33, %c0_34, %c0_35] : memref<3x3x3x4x4xbf16, #tpu.memory_space<vmem>>, vector<1x1x1x4x4xbf16>
    %42 = vector.shape_cast %41 : vector<1x1x1x4x4xbf16> to vector<4x4xbf16>
    %cst_36 = arith.constant dense<0.000000e+00> : vector<256x4xf32>
    %43 = tpu.matmul %40, %42, %cst_36 {dimension_numbers = #tpu.dot_dimension_numbers<[1], [0], [0], [1], [0, 0, 1, 1], [], []>} : vector<256x4xbf16>, vector<4x4xbf16>, vector<256x4xf32> -> vector<256x4xf32>
    %44 = arith.addf %38, %43 : vector<256x4xf32>
    %c0_37 = arith.constant 0 : index
    %45 = arith.index_cast %1 : i32 to index
    %c24 = arith.constant 24 : index
    %c0_38 = arith.constant 0 : index
    %46 = vector.load %arg2[%c0_37, %45, %c24, %c0_38] : memref<1x52x52x4xbf16, #tpu.memory_space<vmem>>, vector<1x52x16x4xbf16>
    %47 = vector.shape_cast %46 : vector<1x52x16x4xbf16> to vector<52x16x4xbf16>
    %48 = vector.extract_strided_slice %47 {offsets = [12, 0, 0], sizes = [16, 16, 4], strides = [1, 1, 1]} : vector<52x16x4xbf16> to vector<16x16x4xbf16>
    %49 = vector.shape_cast %48 : vector<16x16x4xbf16> to vector<256x4xbf16>
    %c0_39 = arith.constant 0 : index
    %c0_40 = arith.constant 0 : index
    %c2_41 = arith.constant 2 : index
    %c0_42 = arith.constant 0 : index
    %c0_43 = arith.constant 0 : index
    %50 = vector.load %arg3[%c0_39, %c0_40, %c2_41, %c0_42, %c0_43] : memref<3x3x3x4x4xbf16, #tpu.memory_space<vmem>>, vector<1x1x1x4x4xbf16>
    %51 = vector.shape_cast %50 : vector<1x1x1x4x4xbf16> to vector<4x4xbf16>
    %cst_44 = arith.constant dense<0.000000e+00> : vector<256x4xf32>
    %52 = tpu.matmul %49, %51, %cst_44 {dimension_numbers = #tpu.dot_dimension_numbers<[1], [0], [0], [1], [0, 0, 1, 1], [], []>} : vector<256x4xbf16>, vector<4x4xbf16>, vector<256x4xf32> -> vector<256x4xf32>
    %53 = arith.addf %44, %52 : vector<256x4xf32>
    %54 = vector.extract_strided_slice %47 {offsets = [18, 0, 0], sizes = [16, 16, 4], strides = [1, 1, 1]} : vector<52x16x4xbf16> to vector<16x16x4xbf16>
    %55 = vector.shape_cast %54 : vector<16x16x4xbf16> to vector<256x4xbf16>
    %c0_45 = arith.constant 0 : index
    %c1_46 = arith.constant 1 : index
    %c2_47 = arith.constant 2 : index
    %c0_48 = arith.constant 0 : index
    %c0_49 = arith.constant 0 : index
    %56 = vector.load %arg3[%c0_45, %c1_46, %c2_47, %c0_48, %c0_49] : memref<3x3x3x4x4xbf16, #tpu.memory_space<vmem>>, vector<1x1x1x4x4xbf16>
    %57 = vector.shape_cast %56 : vector<1x1x1x4x4xbf16> to vector<4x4xbf16>
    %cst_50 = arith.constant dense<0.000000e+00> : vector<256x4xf32>
    %58 = tpu.matmul %55, %57, %cst_50 {dimension_numbers = #tpu.dot_dimension_numbers<[1], [0], [0], [1], [0, 0, 1, 1], [], []>} : vector<256x4xbf16>, vector<4x4xbf16>, vector<256x4xf32> -> vector<256x4xf32>
    %59 = arith.addf %53, %58 : vector<256x4xf32>
    %60 = vector.extract_strided_slice %47 {offsets = [24, 0, 0], sizes = [16, 16, 4], strides = [1, 1, 1]} : vector<52x16x4xbf16> to vector<16x16x4xbf16>
    %61 = vector.shape_cast %60 : vector<16x16x4xbf16> to vector<256x4xbf16>
    %c0_51 = arith.constant 0 : index
    %c2_52 = arith.constant 2 : index
    %c2_53 = arith.constant 2 : index
    %c0_54 = arith.constant 0 : index
    %c0_55 = arith.constant 0 : index
    %62 = vector.load %arg3[%c0_51, %c2_52, %c2_53, %c0_54, %c0_55] : memref<3x3x3x4x4xbf16, #tpu.memory_space<vmem>>, vector<1x1x1x4x4xbf16>
    %63 = vector.shape_cast %62 : vector<1x1x1x4x4xbf16> to vector<4x4xbf16>
    %cst_56 = arith.constant dense<0.000000e+00> : vector<256x4xf32>
    %64 = tpu.matmul %61, %63, %cst_56 {dimension_numbers = #tpu.dot_dimension_numbers<[1], [0], [0], [1], [0, 0, 1, 1], [], []>} : vector<256x4xbf16>, vector<4x4xbf16>, vector<256x4xf32> -> vector<256x4xf32>
    %65 = arith.addf %59, %64 : vector<256x4xf32>
    %c0_57 = arith.constant 0 : index
    %c0_58 = arith.constant 0 : index
    %c0_59 = arith.constant 0 : index
    %66 = vector.load %arg4[%c0_57, %c0_58, %c0_59] : memref<3x1x4xf32, #tpu.memory_space<vmem>>, vector<1x1x4xf32>
    %67 = vector.shape_cast %66 : vector<1x1x4xf32> to vector<1x4xf32>
    %68 = vector.broadcast %67 : vector<1x4xf32> to vector<256x4xf32>
    %69 = arith.addf %65, %68 : vector<256x4xf32>
    %cst_60 = arith.constant 0.000000e+00 : f32
    %70 = vector.broadcast %cst_60 : f32 to vector<256x4xf32>
    %71 = arith.maximumf %69, %70 : vector<256x4xf32>
    %72 = vector.shape_cast %71 : vector<256x4xf32> to vector<16x16x4xf32>
    %73 = arith.truncf %72 : vector<16x16x4xf32> to vector<16x16x4xbf16>
    %c0_61 = arith.constant 0 : index
    %c0_62 = arith.constant 0 : index
    %c0_63 = arith.constant 0 : index
    %c0_64 = arith.constant 0 : index
    %74 = vector.load %arg5[%c0_61, %c0_62, %c0_63, %c0_64] : memref<1x16x16x12xbf16, #tpu.memory_space<vmem>>, vector<1x16x16x4xbf16>
    %75 = vector.shape_cast %74 : vector<1x16x16x4xbf16> to vector<16x16x4xbf16>
    %76 = vector.shape_cast %73 : vector<16x16x4xbf16> to vector<1x16x16x4xbf16>
    tpu.vector_store %arg5[%c0_61, %c0_62, %c0_63, %c0_64], %76 {strides = array<i32>} : memref<1x16x16x12xbf16, #tpu.memory_space<vmem>>, vector<1x16x16x4xbf16>,
    %cst_65 = arith.constant dense<0.000000e+00> : vector<4xf32>
    %77 = vector.multi_reduction <add>, %71, %cst_65 [0] : vector<256x4xf32> to vector<4xf32>
    %78 = vector.shape_cast %77 : vector<4xf32> to vector<1x4xf32>
    %79 = arith.mulf %71, %71 : vector<256x4xf32>
    %cst_66 = arith.constant dense<0.000000e+00> : vector<4xf32>
    %80 = vector.multi_reduction <add>, %79, %cst_66 [0] : vector<256x4xf32> to vector<4xf32>
    %81 = vector.shape_cast %80 : vector<4xf32> to vector<1x4xf32>
    %cst_67 = arith.constant 0.000000e+00 : f32
    %82 = vector.broadcast %cst_67 : f32 to vector<256x4xf32>
    %c0_68 = arith.constant 0 : index
    %83 = arith.index_cast %1 : i32 to index
    %c6 = arith.constant 6 : index
    %c0_69 = arith.constant 0 : index
    %84 = vector.load %arg2[%c0_68, %83, %c6, %c0_69] : memref<1x52x52x4xbf16, #tpu.memory_space<vmem>>, vector<1x52x16x4xbf16>
    %85 = vector.shape_cast %84 : vector<1x52x16x4xbf16> to vector<52x16x4xbf16>
    %86 = vector.extract_strided_slice %85 {offsets = [6, 0, 0], sizes = [16, 16, 4], strides = [1, 1, 1]} : vector<52x16x4xbf16> to vector<16x16x4xbf16>
    %87 = vector.shape_cast %86 : vector<16x16x4xbf16> to vector<256x4xbf16>
    %c1_70 = arith.constant 1 : index
    %c0_71 = arith.constant 0 : index
    %c0_72 = arith.constant 0 : index
    %c0_73 = arith.constant 0 : index
    %c0_74 = arith.constant 0 : index
    %88 = vector.load %arg3[%c1_70, %c0_71, %c0_72, %c0_73, %c0_74] : memref<3x3x3x4x4xbf16, #tpu.memory_space<vmem>>, vector<1x1x1x4x4xbf16>
    %89 = vector.shape_cast %88 : vector<1x1x1x4x4xbf16> to vector<4x4xbf16>
    %cst_75 = arith.constant dense<0.000000e+00> : vector<256x4xf32>
    %90 = tpu.matmul %87, %89, %cst_75 {dimension_numbers = #tpu.dot_dimension_numbers<[1], [0], [0], [1], [0, 0, 1, 1], [], []>} : vector<256x4xbf16>, vector<4x4xbf16>, vector<256x4xf32> -> vector<256x4xf32>
    %91 = arith.addf %82, %90 : vector<256x4xf32>
    %92 = vector.extract_strided_slice %85 {offsets = [18, 0, 0], sizes = [16, 16, 4], strides = [1, 1, 1]} : vector<52x16x4xbf16> to vector<16x16x4xbf16>
    %93 = vector.shape_cast %92 : vector<16x16x4xbf16> to vector<256x4xbf16>
    %c1_76 = arith.constant 1 : index
    %c1_77 = arith.constant 1 : index
    %c0_78 = arith.constant 0 : index
    %c0_79 = arith.constant 0 : index
    %c0_80 = arith.constant 0 : index
    %94 = vector.load %arg3[%c1_76, %c1_77, %c0_78, %c0_79, %c0_80] : memref<3x3x3x4x4xbf16, #tpu.memory_space<vmem>>, vector<1x1x1x4x4xbf16>
    %95 = vector.shape_cast %94 : vector<1x1x1x4x4xbf16> to vector<4x4xbf16>
    %cst_81 = arith.constant dense<0.000000e+00> : vector<256x4xf32>
    %96 = tpu.matmul %93, %95, %cst_81 {dimension_numbers = #tpu.dot_dimension_numbers<[1], [0], [0], [1], [0, 0, 1, 1], [], []>} : vector<256x4xbf16>, vector<4x4xbf16>, vector<256x4xf32> -> vector<256x4xf32>
    %97 = arith.addf %91, %96 : vector<256x4xf32>
    %98 = vector.extract_strided_slice %85 {offsets = [30, 0, 0], sizes = [16, 16, 4], strides = [1, 1, 1]} : vector<52x16x4xbf16> to vector<16x16x4xbf16>
    %99 = vector.shape_cast %98 : vector<16x16x4xbf16> to vector<256x4xbf16>
    %c1_82 = arith.constant 1 : index
    %c2_83 = arith.constant 2 : index
    %c0_84 = arith.constant 0 : index
    %c0_85 = arith.constant 0 : index
    %c0_86 = arith.constant 0 : index
    %100 = vector.load %arg3[%c1_82, %c2_83, %c0_84, %c0_85, %c0_86] : memref<3x3x3x4x4xbf16, #tpu.memory_space<vmem>>, vector<1x1x1x4x4xbf16>
    %101 = vector.shape_cast %100 : vector<1x1x1x4x4xbf16> to vector<4x4xbf16>
    %cst_87 = arith.constant dense<0.000000e+00> : vector<256x4xf32>
    %102 = tpu.matmul %99, %101, %cst_87 {dimension_numbers = #tpu.dot_dimension_numbers<[1], [0], [0], [1], [0, 0, 1, 1], [], []>} : vector<256x4xbf16>, vector<4x4xbf16>, vector<256x4xf32> -> vector<256x4xf32>
    %103 = arith.addf %97, %102 : vector<256x4xf32>
    %c0_88 = arith.constant 0 : index
    %104 = arith.index_cast %1 : i32 to index
    %c18_89 = arith.constant 18 : index
    %c0_90 = arith.constant 0 : index
    %105 = vector.load %arg2[%c0_88, %104, %c18_89, %c0_90] : memref<1x52x52x4xbf16, #tpu.memory_space<vmem>>, vector<1x52x16x4xbf16>
    %106 = vector.shape_cast %105 : vector<1x52x16x4xbf16> to vector<52x16x4xbf16>
    %107 = vector.extract_strided_slice %106 {offsets = [6, 0, 0], sizes = [16, 16, 4], strides = [1, 1, 1]} : vector<52x16x4xbf16> to vector<16x16x4xbf16>
    %108 = vector.shape_cast %107 : vector<16x16x4xbf16> to vector<256x4xbf16>
    %c1_91 = arith.constant 1 : index
    %c0_92 = arith.constant 0 : index
    %c1_93 = arith.constant 1 : index
    %c0_94 = arith.constant 0 : index
    %c0_95 = arith.constant 0 : index
    %109 = vector.load %arg3[%c1_91, %c0_92, %c1_93, %c0_94, %c0_95] : memref<3x3x3x4x4xbf16, #tpu.memory_space<vmem>>, vector<1x1x1x4x4xbf16>
    %110 = vector.shape_cast %109 : vector<1x1x1x4x4xbf16> to vector<4x4xbf16>
    %cst_96 = arith.constant dense<0.000000e+00> : vector<256x4xf32>
    %111 = tpu.matmul %108, %110, %cst_96 {dimension_numbers = #tpu.dot_dimension_numbers<[1], [0], [0], [1], [0, 0, 1, 1], [], []>} : vector<256x4xbf16>, vector<4x4xbf16>, vector<256x4xf32> -> vector<256x4xf32>
    %112 = arith.addf %103, %111 : vector<256x4xf32>
    %113 = vector.extract_strided_slice %106 {offsets = [18, 0, 0], sizes = [16, 16, 4], strides = [1, 1, 1]} : vector<52x16x4xbf16> to vector<16x16x4xbf16>
    %114 = vector.shape_cast %113 : vector<16x16x4xbf16> to vector<256x4xbf16>
    %c1_97 = arith.constant 1 : index
    %c1_98 = arith.constant 1 : index
    %c1_99 = arith.constant 1 : index
    %c0_100 = arith.constant 0 : index
    %c0_101 = arith.constant 0 : index
    %115 = vector.load %arg3[%c1_97, %c1_98, %c1_99, %c0_100, %c0_101] : memref<3x3x3x4x4xbf16, #tpu.memory_space<vmem>>, vector<1x1x1x4x4xbf16>
    %116 = vector.shape_cast %115 : vector<1x1x1x4x4xbf16> to vector<4x4xbf16>
    %cst_102 = arith.constant dense<0.000000e+00> : vector<256x4xf32>
    %117 = tpu.matmul %114, %116, %cst_102 {dimension_numbers = #tpu.dot_dimension_numbers<[1], [0], [0], [1], [0, 0, 1, 1], [], []>} : vector<256x4xbf16>, vector<4x4xbf16>, vector<256x4xf32> -> vector<256x4xf32>
    %118 = arith.addf %112, %117 : vector<256x4xf32>
    %119 = vector.extract_strided_slice %106 {offsets = [30, 0, 0], sizes = [16, 16, 4], strides = [1, 1, 1]} : vector<52x16x4xbf16> to vector<16x16x4xbf16>
    %120 = vector.shape_cast %119 : vector<16x16x4xbf16> to vector<256x4xbf16>
    %c1_103 = arith.constant 1 : index
    %c2_104 = arith.constant 2 : index
    %c1_105 = arith.constant 1 : index
    %c0_106 = arith.constant 0 : index
    %c0_107 = arith.constant 0 : index
    %121 = vector.load %arg3[%c1_103, %c2_104, %c1_105, %c0_106, %c0_107] : memref<3x3x3x4x4xbf16, #tpu.memory_space<vmem>>, vector<1x1x1x4x4xbf16>
    %122 = vector.shape_cast %121 : vector<1x1x1x4x4xbf16> to vector<4x4xbf16>
    %cst_108 = arith.constant dense<0.000000e+00> : vector<256x4xf32>
    %123 = tpu.matmul %120, %122, %cst_108 {dimension_numbers = #tpu.dot_dimension_numbers<[1], [0], [0], [1], [0, 0, 1, 1], [], []>} : vector<256x4xbf16>, vector<4x4xbf16>, vector<256x4xf32> -> vector<256x4xf32>
    %124 = arith.addf %118, %123 : vector<256x4xf32>
    %c0_109 = arith.constant 0 : index
    %125 = arith.index_cast %1 : i32 to index
    %c30 = arith.constant 30 : index
    %c0_110 = arith.constant 0 : index
    %126 = vector.load %arg2[%c0_109, %125, %c30, %c0_110] : memref<1x52x52x4xbf16, #tpu.memory_space<vmem>>, vector<1x52x16x4xbf16>
    %127 = vector.shape_cast %126 : vector<1x52x16x4xbf16> to vector<52x16x4xbf16>
    %128 = vector.extract_strided_slice %127 {offsets = [6, 0, 0], sizes = [16, 16, 4], strides = [1, 1, 1]} : vector<52x16x4xbf16> to vector<16x16x4xbf16>
    %129 = vector.shape_cast %128 : vector<16x16x4xbf16> to vector<256x4xbf16>
    %c1_111 = arith.constant 1 : index
    %c0_112 = arith.constant 0 : index
    %c2_113 = arith.constant 2 : index
    %c0_114 = arith.constant 0 : index
    %c0_115 = arith.constant 0 : index
    %130 = vector.load %arg3[%c1_111, %c0_112, %c2_113, %c0_114, %c0_115] : memref<3x3x3x4x4xbf16, #tpu.memory_space<vmem>>, vector<1x1x1x4x4xbf16>
    %131 = vector.shape_cast %130 : vector<1x1x1x4x4xbf16> to vector<4x4xbf16>
    %cst_116 = arith.constant dense<0.000000e+00> : vector<256x4xf32>
    %132 = tpu.matmul %129, %131, %cst_116 {dimension_numbers = #tpu.dot_dimension_numbers<[1], [0], [0], [1], [0, 0, 1, 1], [], []>} : vector<256x4xbf16>, vector<4x4xbf16>, vector<256x4xf32> -> vector<256x4xf32>
    %133 = arith.addf %124, %132 : vector<256x4xf32>
    %134 = vector.extract_strided_slice %127 {offsets = [18, 0, 0], sizes = [16, 16, 4], strides = [1, 1, 1]} : vector<52x16x4xbf16> to vector<16x16x4xbf16>
    %135 = vector.shape_cast %134 : vector<16x16x4xbf16> to vector<256x4xbf16>
    %c1_117 = arith.constant 1 : index
    %c1_118 = arith.constant 1 : index
    %c2_119 = arith.constant 2 : index
    %c0_120 = arith.constant 0 : index
    %c0_121 = arith.constant 0 : index
    %136 = vector.load %arg3[%c1_117, %c1_118, %c2_119, %c0_120, %c0_121] : memref<3x3x3x4x4xbf16, #tpu.memory_space<vmem>>, vector<1x1x1x4x4xbf16>
    %137 = vector.shape_cast %136 : vector<1x1x1x4x4xbf16> to vector<4x4xbf16>
    %cst_122 = arith.constant dense<0.000000e+00> : vector<256x4xf32>
    %138 = tpu.matmul %135, %137, %cst_122 {dimension_numbers = #tpu.dot_dimension_numbers<[1], [0], [0], [1], [0, 0, 1, 1], [], []>} : vector<256x4xbf16>, vector<4x4xbf16>, vector<256x4xf32> -> vector<256x4xf32>
    %139 = arith.addf %133, %138 : vector<256x4xf32>
    %140 = vector.extract_strided_slice %127 {offsets = [30, 0, 0], sizes = [16, 16, 4], strides = [1, 1, 1]} : vector<52x16x4xbf16> to vector<16x16x4xbf16>
    %141 = vector.shape_cast %140 : vector<16x16x4xbf16> to vector<256x4xbf16>
    %c1_123 = arith.constant 1 : index
    %c2_124 = arith.constant 2 : index
    %c2_125 = arith.constant 2 : index
    %c0_126 = arith.constant 0 : index
    %c0_127 = arith.constant 0 : index
    %142 = vector.load %arg3[%c1_123, %c2_124, %c2_125, %c0_126, %c0_127] : memref<3x3x3x4x4xbf16, #tpu.memory_space<vmem>>, vector<1x1x1x4x4xbf16>
    %143 = vector.shape_cast %142 : vector<1x1x1x4x4xbf16> to vector<4x4xbf16>
    %cst_128 = arith.constant dense<0.000000e+00> : vector<256x4xf32>
    %144 = tpu.matmul %141, %143, %cst_128 {dimension_numbers = #tpu.dot_dimension_numbers<[1], [0], [0], [1], [0, 0, 1, 1], [], []>} : vector<256x4xbf16>, vector<4x4xbf16>, vector<256x4xf32> -> vector<256x4xf32>
    %145 = arith.addf %139, %144 : vector<256x4xf32>
    %c1_129 = arith.constant 1 : index
    %c0_130 = arith.constant 0 : index
    %c0_131 = arith.constant 0 : index
    %146 = vector.load %arg4[%c1_129, %c0_130, %c0_131] : memref<3x1x4xf32, #tpu.memory_space<vmem>>, vector<1x1x4xf32>
    %147 = vector.shape_cast %146 : vector<1x1x4xf32> to vector<1x4xf32>
    %148 = vector.broadcast %147 : vector<1x4xf32> to vector<256x4xf32>
    %149 = arith.addf %145, %148 : vector<256x4xf32>
    %cst_132 = arith.constant 0.000000e+00 : f32
    %150 = vector.broadcast %cst_132 : f32 to vector<256x4xf32>
    %151 = arith.maximumf %149, %150 : vector<256x4xf32>
    %152 = vector.shape_cast %151 : vector<256x4xf32> to vector<16x16x4xf32>
    %153 = arith.truncf %152 : vector<16x16x4xf32> to vector<16x16x4xbf16>
    %c0_133 = arith.constant 0 : index
    %c0_134 = arith.constant 0 : index
    %c0_135 = arith.constant 0 : index
    %c4 = arith.constant 4 : index
    %154 = vector.load %arg5[%c0_133, %c0_134, %c0_135, %c4] : memref<1x16x16x12xbf16, #tpu.memory_space<vmem>>, vector<1x16x16x4xbf16>
    %155 = vector.shape_cast %154 : vector<1x16x16x4xbf16> to vector<16x16x4xbf16>
    %156 = vector.shape_cast %153 : vector<16x16x4xbf16> to vector<1x16x16x4xbf16>
    tpu.vector_store %arg5[%c0_133, %c0_134, %c0_135, %c4], %156 {strides = array<i32>} : memref<1x16x16x12xbf16, #tpu.memory_space<vmem>>, vector<1x16x16x4xbf16>,
    %cst_136 = arith.constant dense<0.000000e+00> : vector<4xf32>
    %157 = vector.multi_reduction <add>, %151, %cst_136 [0] : vector<256x4xf32> to vector<4xf32>
    %158 = vector.shape_cast %157 : vector<4xf32> to vector<1x4xf32>
    %159 = arith.mulf %151, %151 : vector<256x4xf32>
    %cst_137 = arith.constant dense<0.000000e+00> : vector<4xf32>
    %160 = vector.multi_reduction <add>, %159, %cst_137 [0] : vector<256x4xf32> to vector<4xf32>
    %161 = vector.shape_cast %160 : vector<4xf32> to vector<1x4xf32>
    %cst_138 = arith.constant 0.000000e+00 : f32
    %162 = vector.broadcast %cst_138 : f32 to vector<256x4xf32>
    %c0_139 = arith.constant 0 : index
    %163 = arith.index_cast %1 : i32 to index
    %c0_140 = arith.constant 0 : index
    %c0_141 = arith.constant 0 : index
    %164 = vector.load %arg2[%c0_139, %163, %c0_140, %c0_141] : memref<1x52x52x4xbf16, #tpu.memory_space<vmem>>, vector<1x52x16x4xbf16>
    %165 = vector.shape_cast %164 : vector<1x52x16x4xbf16> to vector<52x16x4xbf16>
    %166 = vector.extract_strided_slice %165 {offsets = [0, 0, 0], sizes = [16, 16, 4], strides = [1, 1, 1]} : vector<52x16x4xbf16> to vector<16x16x4xbf16>
    %167 = vector.shape_cast %166 : vector<16x16x4xbf16> to vector<256x4xbf16>
    %c2_142 = arith.constant 2 : index
    %c0_143 = arith.constant 0 : index
    %c0_144 = arith.constant 0 : index
    %c0_145 = arith.constant 0 : index
    %c0_146 = arith.constant 0 : index
    %168 = vector.load %arg3[%c2_142, %c0_143, %c0_144, %c0_145, %c0_146] : memref<3x3x3x4x4xbf16, #tpu.memory_space<vmem>>, vector<1x1x1x4x4xbf16>
    %169 = vector.shape_cast %168 : vector<1x1x1x4x4xbf16> to vector<4x4xbf16>
    %cst_147 = arith.constant dense<0.000000e+00> : vector<256x4xf32>
    %170 = tpu.matmul %167, %169, %cst_147 {dimension_numbers = #tpu.dot_dimension_numbers<[1], [0], [0], [1], [0, 0, 1, 1], [], []>} : vector<256x4xbf16>, vector<4x4xbf16>, vector<256x4xf32> -> vector<256x4xf32>
    %171 = arith.addf %162, %170 : vector<256x4xf32>
    %172 = vector.extract_strided_slice %165 {offsets = [18, 0, 0], sizes = [16, 16, 4], strides = [1, 1, 1]} : vector<52x16x4xbf16> to vector<16x16x4xbf16>
    %173 = vector.shape_cast %172 : vector<16x16x4xbf16> to vector<256x4xbf16>
    %c2_148 = arith.constant 2 : index
    %c1_149 = arith.constant 1 : index
    %c0_150 = arith.constant 0 : index
    %c0_151 = arith.constant 0 : index
    %c0_152 = arith.constant 0 : index
    %174 = vector.load %arg3[%c2_148, %c1_149, %c0_150, %c0_151, %c0_152] : memref<3x3x3x4x4xbf16, #tpu.memory_space<vmem>>, vector<1x1x1x4x4xbf16>
    %175 = vector.shape_cast %174 : vector<1x1x1x4x4xbf16> to vector<4x4xbf16>
    %cst_153 = arith.constant dense<0.000000e+00> : vector<256x4xf32>
    %176 = tpu.matmul %173, %175, %cst_153 {dimension_numbers = #tpu.dot_dimension_numbers<[1], [0], [0], [1], [0, 0, 1, 1], [], []>} : vector<256x4xbf16>, vector<4x4xbf16>, vector<256x4xf32> -> vector<256x4xf32>
    %177 = arith.addf %171, %176 : vector<256x4xf32>
    %178 = vector.extract_strided_slice %165 {offsets = [36, 0, 0], sizes = [16, 16, 4], strides = [1, 1, 1]} : vector<52x16x4xbf16> to vector<16x16x4xbf16>
    %179 = vector.shape_cast %178 : vector<16x16x4xbf16> to vector<256x4xbf16>
    %c2_154 = arith.constant 2 : index
    %c2_155 = arith.constant 2 : index
    %c0_156 = arith.constant 0 : index
    %c0_157 = arith.constant 0 : index
    %c0_158 = arith.constant 0 : index
    %180 = vector.load %arg3[%c2_154, %c2_155, %c0_156, %c0_157, %c0_158] : memref<3x3x3x4x4xbf16, #tpu.memory_space<vmem>>, vector<1x1x1x4x4xbf16>
    %181 = vector.shape_cast %180 : vector<1x1x1x4x4xbf16> to vector<4x4xbf16>
    %cst_159 = arith.constant dense<0.000000e+00> : vector<256x4xf32>
    %182 = tpu.matmul %179, %181, %cst_159 {dimension_numbers = #tpu.dot_dimension_numbers<[1], [0], [0], [1], [0, 0, 1, 1], [], []>} : vector<256x4xbf16>, vector<4x4xbf16>, vector<256x4xf32> -> vector<256x4xf32>
    %183 = arith.addf %177, %182 : vector<256x4xf32>
    %c0_160 = arith.constant 0 : index
    %184 = arith.index_cast %1 : i32 to index
    %c18_161 = arith.constant 18 : index
    %c0_162 = arith.constant 0 : index
    %185 = vector.load %arg2[%c0_160, %184, %c18_161, %c0_162] : memref<1x52x52x4xbf16, #tpu.memory_space<vmem>>, vector<1x52x16x4xbf16>
    %186 = vector.shape_cast %185 : vector<1x52x16x4xbf16> to vector<52x16x4xbf16>
    %187 = vector.extract_strided_slice %186 {offsets = [0, 0, 0], sizes = [16, 16, 4], strides = [1, 1, 1]} : vector<52x16x4xbf16> to vector<16x16x4xbf16>
    %188 = vector.shape_cast %187 : vector<16x16x4xbf16> to vector<256x4xbf16>
    %c2_163 = arith.constant 2 : index
    %c0_164 = arith.constant 0 : index
    %c1_165 = arith.constant 1 : index
    %c0_166 = arith.constant 0 : index
    %c0_167 = arith.constant 0 : index
    %189 = vector.load %arg3[%c2_163, %c0_164, %c1_165, %c0_166, %c0_167] : memref<3x3x3x4x4xbf16, #tpu.memory_space<vmem>>, vector<1x1x1x4x4xbf16>
    %190 = vector.shape_cast %189 : vector<1x1x1x4x4xbf16> to vector<4x4xbf16>
    %cst_168 = arith.constant dense<0.000000e+00> : vector<256x4xf32>
    %191 = tpu.matmul %188, %190, %cst_168 {dimension_numbers = #tpu.dot_dimension_numbers<[1], [0], [0], [1], [0, 0, 1, 1], [], []>} : vector<256x4xbf16>, vector<4x4xbf16>, vector<256x4xf32> -> vector<256x4xf32>
    %192 = arith.addf %183, %191 : vector<256x4xf32>
    %193 = vector.extract_strided_slice %186 {offsets = [18, 0, 0], sizes = [16, 16, 4], strides = [1, 1, 1]} : vector<52x16x4xbf16> to vector<16x16x4xbf16>
    %194 = vector.shape_cast %193 : vector<16x16x4xbf16> to vector<256x4xbf16>
    %c2_169 = arith.constant 2 : index
    %c1_170 = arith.constant 1 : index
    %c1_171 = arith.constant 1 : index
    %c0_172 = arith.constant 0 : index
    %c0_173 = arith.constant 0 : index
    %195 = vector.load %arg3[%c2_169, %c1_170, %c1_171, %c0_172, %c0_173] : memref<3x3x3x4x4xbf16, #tpu.memory_space<vmem>>, vector<1x1x1x4x4xbf16>
    %196 = vector.shape_cast %195 : vector<1x1x1x4x4xbf16> to vector<4x4xbf16>
    %cst_174 = arith.constant dense<0.000000e+00> : vector<256x4xf32>
    %197 = tpu.matmul %194, %196, %cst_174 {dimension_numbers = #tpu.dot_dimension_numbers<[1], [0], [0], [1], [0, 0, 1, 1], [], []>} : vector<256x4xbf16>, vector<4x4xbf16>, vector<256x4xf32> -> vector<256x4xf32>
    %198 = arith.addf %192, %197 : vector<256x4xf32>
    %199 = vector.extract_strided_slice %186 {offsets = [36, 0, 0], sizes = [16, 16, 4], strides = [1, 1, 1]} : vector<52x16x4xbf16> to vector<16x16x4xbf16>
    %200 = vector.shape_cast %199 : vector<16x16x4xbf16> to vector<256x4xbf16>
    %c2_175 = arith.constant 2 : index
    %c2_176 = arith.constant 2 : index
    %c1_177 = arith.constant 1 : index
    %c0_178 = arith.constant 0 : index
    %c0_179 = arith.constant 0 : index
    %201 = vector.load %arg3[%c2_175, %c2_176, %c1_177, %c0_178, %c0_179] : memref<3x3x3x4x4xbf16, #tpu.memory_space<vmem>>, vector<1x1x1x4x4xbf16>
    %202 = vector.shape_cast %201 : vector<1x1x1x4x4xbf16> to vector<4x4xbf16>
    %cst_180 = arith.constant dense<0.000000e+00> : vector<256x4xf32>
    %203 = tpu.matmul %200, %202, %cst_180 {dimension_numbers = #tpu.dot_dimension_numbers<[1], [0], [0], [1], [0, 0, 1, 1], [], []>} : vector<256x4xbf16>, vector<4x4xbf16>, vector<256x4xf32> -> vector<256x4xf32>
    %204 = arith.addf %198, %203 : vector<256x4xf32>
    %c0_181 = arith.constant 0 : index
    %205 = arith.index_cast %1 : i32 to index
    %c36 = arith.constant 36 : index
    %c0_182 = arith.constant 0 : index
    %206 = vector.load %arg2[%c0_181, %205, %c36, %c0_182] : memref<1x52x52x4xbf16, #tpu.memory_space<vmem>>, vector<1x52x16x4xbf16>
    %207 = vector.shape_cast %206 : vector<1x52x16x4xbf16> to vector<52x16x4xbf16>
    %208 = vector.extract_strided_slice %207 {offsets = [0, 0, 0], sizes = [16, 16, 4], strides = [1, 1, 1]} : vector<52x16x4xbf16> to vector<16x16x4xbf16>
    %209 = vector.shape_cast %208 : vector<16x16x4xbf16> to vector<256x4xbf16>
    %c2_183 = arith.constant 2 : index
    %c0_184 = arith.constant 0 : index
    %c2_185 = arith.constant 2 : index
    %c0_186 = arith.constant 0 : index
    %c0_187 = arith.constant 0 : index
    %210 = vector.load %arg3[%c2_183, %c0_184, %c2_185, %c0_186, %c0_187] : memref<3x3x3x4x4xbf16, #tpu.memory_space<vmem>>, vector<1x1x1x4x4xbf16>
    %211 = vector.shape_cast %210 : vector<1x1x1x4x4xbf16> to vector<4x4xbf16>
    %cst_188 = arith.constant dense<0.000000e+00> : vector<256x4xf32>
    %212 = tpu.matmul %209, %211, %cst_188 {dimension_numbers = #tpu.dot_dimension_numbers<[1], [0], [0], [1], [0, 0, 1, 1], [], []>} : vector<256x4xbf16>, vector<4x4xbf16>, vector<256x4xf32> -> vector<256x4xf32>
    %213 = arith.addf %204, %212 : vector<256x4xf32>
    %214 = vector.extract_strided_slice %207 {offsets = [18, 0, 0], sizes = [16, 16, 4], strides = [1, 1, 1]} : vector<52x16x4xbf16> to vector<16x16x4xbf16>
    %215 = vector.shape_cast %214 : vector<16x16x4xbf16> to vector<256x4xbf16>
    %c2_189 = arith.constant 2 : index
    %c1_190 = arith.constant 1 : index
    %c2_191 = arith.constant 2 : index
    %c0_192 = arith.constant 0 : index
    %c0_193 = arith.constant 0 : index
    %216 = vector.load %arg3[%c2_189, %c1_190, %c2_191, %c0_192, %c0_193] : memref<3x3x3x4x4xbf16, #tpu.memory_space<vmem>>, vector<1x1x1x4x4xbf16>
    %217 = vector.shape_cast %216 : vector<1x1x1x4x4xbf16> to vector<4x4xbf16>
    %cst_194 = arith.constant dense<0.000000e+00> : vector<256x4xf32>
    %218 = tpu.matmul %215, %217, %cst_194 {dimension_numbers = #tpu.dot_dimension_numbers<[1], [0], [0], [1], [0, 0, 1, 1], [], []>} : vector<256x4xbf16>, vector<4x4xbf16>, vector<256x4xf32> -> vector<256x4xf32>
    %219 = arith.addf %213, %218 : vector<256x4xf32>
    %220 = vector.extract_strided_slice %207 {offsets = [36, 0, 0], sizes = [16, 16, 4], strides = [1, 1, 1]} : vector<52x16x4xbf16> to vector<16x16x4xbf16>
    %221 = vector.shape_cast %220 : vector<16x16x4xbf16> to vector<256x4xbf16>
    %c2_195 = arith.constant 2 : index
    %c2_196 = arith.constant 2 : index
    %c2_197 = arith.constant 2 : index
    %c0_198 = arith.constant 0 : index
    %c0_199 = arith.constant 0 : index
    %222 = vector.load %arg3[%c2_195, %c2_196, %c2_197, %c0_198, %c0_199] : memref<3x3x3x4x4xbf16, #tpu.memory_space<vmem>>, vector<1x1x1x4x4xbf16>
    %223 = vector.shape_cast %222 : vector<1x1x1x4x4xbf16> to vector<4x4xbf16>
    %cst_200 = arith.constant dense<0.000000e+00> : vector<256x4xf32>
    %224 = tpu.matmul %221, %223, %cst_200 {dimension_numbers = #tpu.dot_dimension_numbers<[1], [0], [0], [1], [0, 0, 1, 1], [], []>} : vector<256x4xbf16>, vector<4x4xbf16>, vector<256x4xf32> -> vector<256x4xf32>
    %225 = arith.addf %219, %224 : vector<256x4xf32>
    %c2_201 = arith.constant 2 : index
    %c0_202 = arith.constant 0 : index
    %c0_203 = arith.constant 0 : index
    %226 = vector.load %arg4[%c2_201, %c0_202, %c0_203] : memref<3x1x4xf32, #tpu.memory_space<vmem>>, vector<1x1x4xf32>
    %227 = vector.shape_cast %226 : vector<1x1x4xf32> to vector<1x4xf32>
    %228 = vector.broadcast %227 : vector<1x4xf32> to vector<256x4xf32>
    %229 = arith.addf %225, %228 : vector<256x4xf32>
    %cst_204 = arith.constant 0.000000e+00 : f32
    %230 = vector.broadcast %cst_204 : f32 to vector<256x4xf32>
    %231 = arith.maximumf %229, %230 : vector<256x4xf32>
    %232 = vector.shape_cast %231 : vector<256x4xf32> to vector<16x16x4xf32>
    %233 = arith.truncf %232 : vector<16x16x4xf32> to vector<16x16x4xbf16>
    %c0_205 = arith.constant 0 : index
    %c0_206 = arith.constant 0 : index
    %c0_207 = arith.constant 0 : index
    %c8 = arith.constant 8 : index
    %234 = vector.load %arg5[%c0_205, %c0_206, %c0_207, %c8] : memref<1x16x16x12xbf16, #tpu.memory_space<vmem>>, vector<1x16x16x4xbf16>
    %235 = vector.shape_cast %234 : vector<1x16x16x4xbf16> to vector<16x16x4xbf16>
    %236 = vector.shape_cast %233 : vector<16x16x4xbf16> to vector<1x16x16x4xbf16>
    tpu.vector_store %arg5[%c0_205, %c0_206, %c0_207, %c8], %236 {strides = array<i32>} : memref<1x16x16x12xbf16, #tpu.memory_space<vmem>>, vector<1x16x16x4xbf16>,
    %cst_208 = arith.constant dense<0.000000e+00> : vector<4xf32>
    %237 = vector.multi_reduction <add>, %231, %cst_208 [0] : vector<256x4xf32> to vector<4xf32>
    %238 = vector.shape_cast %237 : vector<4xf32> to vector<1x4xf32>
    %239 = arith.mulf %231, %231 : vector<256x4xf32>
    %cst_209 = arith.constant dense<0.000000e+00> : vector<4xf32>
    %240 = vector.multi_reduction <add>, %239, %cst_209 [0] : vector<256x4xf32> to vector<4xf32>
    %241 = vector.shape_cast %240 : vector<4xf32> to vector<1x4xf32>
    %242 = tpu.concatenate %78, %158, %238 in 0 : vector<1x4xf32>, vector<1x4xf32>, vector<1x4xf32> -> vector<3x4xf32>
    %243 = tpu.concatenate %81, %161, %241 in 0 : vector<1x4xf32>, vector<1x4xf32>, vector<1x4xf32> -> vector<3x4xf32>
    %244 = vector.shape_cast %242 : vector<3x4xf32> to vector<1x3x4xf32>
    %245 = vector.shape_cast %243 : vector<3x4xf32> to vector<1x3x4xf32>
    %246 = tpu.concatenate %244, %245 in 0 : vector<1x3x4xf32>, vector<1x3x4xf32> -> vector<2x3x4xf32>
    %c0_210 = arith.constant 0 : index
    %c0_211 = arith.constant 0 : index
    %c0_212 = arith.constant 0 : index
    %c0_213 = arith.constant 0 : index
    %c0_214 = arith.constant 0 : index
    %247 = vector.load %arg6[%c0_210, %c0_211, %c0_212, %c0_213, %c0_214] : memref<1x1x2x3x4xf32, #tpu.memory_space<vmem>>, vector<1x1x2x3x4xf32>
    %248 = vector.shape_cast %247 : vector<1x1x2x3x4xf32> to vector<2x3x4xf32>
    %249 = vector.shape_cast %246 : vector<2x3x4xf32> to vector<1x1x2x3x4xf32>
    tpu.vector_store %arg6[%c0_210, %c0_211, %c0_212, %c0_213, %c0_214], %249 {strides = array<i32>} : memref<1x1x2x3x4xf32, #tpu.memory_space<vmem>>, vector<1x1x2x3x4xf32>,
    return
  }
  func.func @transform_0(%arg0: i32, %arg1: i32) -> (i32, i32, i32, i32) {
    %c0_i32 = arith.constant 0 : i32
    %c0_i32_0 = arith.constant 0 : i32
    %c0_i32_1 = arith.constant 0 : i32
    %c0_i32_2 = arith.constant 0 : i32
    return %arg0, %c0_i32, %c0_i32_0, %c0_i32_1 : i32, i32, i32, i32
  }
  func.func @transform_1(%arg0: i32, %arg1: i32) -> (i32, i32, i32, i32, i32) {
    %c0_i32 = arith.constant 0 : i32
    %c0_i32_0 = arith.constant 0 : i32
    %c0_i32_1 = arith.constant 0 : i32
    %c0_i32_2 = arith.constant 0 : i32
    %c0_i32_3 = arith.constant 0 : i32
    %c0_i32_4 = arith.constant 0 : i32
    return %c0_i32, %c0_i32_0, %c0_i32_1, %c0_i32_2, %c0_i32_3 : i32, i32, i32, i32, i32
  }
  func.func @transform_2(%arg0: i32, %arg1: i32) -> (i32, i32, i32) {
    %c0_i32 = arith.constant 0 : i32
    %c0_i32_0 = arith.constant 0 : i32
    %c0_i32_1 = arith.constant 0 : i32
    %c0_i32_2 = arith.constant 0 : i32
    return %c0_i32, %c0_i32_0, %c0_i32_1 : i32, i32, i32
  }
  func.func @transform_3(%arg0: i32, %arg1: i32) -> (i32, i32, i32, i32) {
    %c0_i32 = arith.constant 0 : i32
    %c0_i32_0 = arith.constant 0 : i32
    %c0_i32_1 = arith.constant 0 : i32
    return %arg0, %arg1, %c0_i32, %c0_i32_0 : i32, i32, i32, i32
  }
  func.func @transform_4(%arg0: i32, %arg1: i32) -> (i32, i32, i32, i32, i32) {
    %c0_i32 = arith.constant 0 : i32
    %c0_i32_0 = arith.constant 0 : i32
    %c0_i32_1 = arith.constant 0 : i32
    %c0_i32_2 = arith.constant 0 : i32
    return %arg0, %arg1, %c0_i32, %c0_i32_0, %c0_i32_1 : i32, i32, i32, i32, i32
  }
}

module attributes {stable_mosaic.version = 11 : i64} {
  func.func @kernel(%arg0: i32, %arg1: i32, %arg2: memref<1x16x16x12xbf16, #tpu.memory_space<vmem>>, %arg3: memref<12x4xbf16, #tpu.memory_space<vmem>>, %arg4: memref<1x4xf32, #tpu.memory_space<vmem>>, %arg5: memref<1x16x16x4xf32, #tpu.memory_space<vmem>>) attributes {dimension_semantics = [#tpu.dimension_semantics<parallel>, #tpu.dimension_semantics<parallel>], iteration_bounds = array<i64: 2, 1>, scalar_prefetch = 0 : i64, scratch_operands = 0 : i64, tpu.core_type = #tpu.core_type<tc>, window_params = [{transform_indices = @transform_0, window_bounds = array<i64: 1, 16, 16, 12>}, {pipeline_mode = #tpu.pipeline_mode<synchronous>, transform_indices = @transform_1, window_bounds = array<i64: 12, 4>}, {pipeline_mode = #tpu.pipeline_mode<synchronous>, transform_indices = @transform_2, window_bounds = array<i64: 1, 4>}, {transform_indices = @transform_3, window_bounds = array<i64: 1, 16, 16, 4>}]} {
    %c0 = arith.constant 0 : index
    %c0_0 = arith.constant 0 : index
    %c0_1 = arith.constant 0 : index
    %c0_2 = arith.constant 0 : index
    %0 = vector.load %arg2[%c0, %c0_0, %c0_1, %c0_2] : memref<1x16x16x12xbf16, #tpu.memory_space<vmem>>, vector<1x16x16x12xbf16>
    %1 = vector.shape_cast %0 : vector<1x16x16x12xbf16> to vector<16x16x12xbf16>
    %2 = vector.shape_cast %1 : vector<16x16x12xbf16> to vector<256x12xbf16>
    %c0_3 = arith.constant 0 : index
    %c0_4 = arith.constant 0 : index
    %3 = vector.load %arg3[%c0_3, %c0_4] : memref<12x4xbf16, #tpu.memory_space<vmem>>, vector<12x4xbf16>
    %cst = arith.constant dense<0.000000e+00> : vector<256x4xf32>
    %4 = tpu.matmul %2, %3, %cst {dimension_numbers = #tpu.dot_dimension_numbers<[1], [0], [0], [1], [0, 0, 1, 1], [], []>} : vector<256x12xbf16>, vector<12x4xbf16>, vector<256x4xf32> -> vector<256x4xf32>
    %c0_5 = arith.constant 0 : index
    %c0_6 = arith.constant 0 : index
    %5 = vector.load %arg4[%c0_5, %c0_6] : memref<1x4xf32, #tpu.memory_space<vmem>>, vector<1x4xf32>
    %6 = vector.broadcast %5 : vector<1x4xf32> to vector<256x4xf32>
    %7 = arith.addf %4, %6 : vector<256x4xf32>
    %8 = vector.shape_cast %7 : vector<256x4xf32> to vector<16x16x4xf32>
    %c0_7 = arith.constant 0 : index
    %c0_8 = arith.constant 0 : index
    %c0_9 = arith.constant 0 : index
    %c0_10 = arith.constant 0 : index
    %9 = vector.load %arg5[%c0_7, %c0_8, %c0_9, %c0_10] : memref<1x16x16x4xf32, #tpu.memory_space<vmem>>, vector<1x16x16x4xf32>
    %10 = vector.shape_cast %9 : vector<1x16x16x4xf32> to vector<16x16x4xf32>
    %11 = vector.shape_cast %8 : vector<16x16x4xf32> to vector<1x16x16x4xf32>
    tpu.vector_store %arg5[%c0_7, %c0_8, %c0_9, %c0_10], %11 {strides = array<i32>} : memref<1x16x16x4xf32, #tpu.memory_space<vmem>>, vector<1x16x16x4xf32>,
    return
  }
  func.func @transform_0(%arg0: i32, %arg1: i32) -> (i32, i32, i32, i32) {
    %c0_i32 = arith.constant 0 : i32
    %c0_i32_0 = arith.constant 0 : i32
    %c0_i32_1 = arith.constant 0 : i32
    return %arg0, %arg1, %c0_i32, %c0_i32_0 : i32, i32, i32, i32
  }
  func.func @transform_1(%arg0: i32, %arg1: i32) -> (i32, i32) {
    %c0_i32 = arith.constant 0 : i32
    %c0_i32_0 = arith.constant 0 : i32
    %c0_i32_1 = arith.constant 0 : i32
    return %c0_i32, %c0_i32_0 : i32, i32
  }
  func.func @transform_2(%arg0: i32, %arg1: i32) -> (i32, i32) {
    %c0_i32 = arith.constant 0 : i32
    %c0_i32_0 = arith.constant 0 : i32
    %c0_i32_1 = arith.constant 0 : i32
    return %c0_i32, %c0_i32_0 : i32, i32
  }
  func.func @transform_3(%arg0: i32, %arg1: i32) -> (i32, i32, i32, i32) {
    %c0_i32 = arith.constant 0 : i32
    %c0_i32_0 = arith.constant 0 : i32
    %c0_i32_1 = arith.constant 0 : i32
    return %arg0, %arg1, %c0_i32, %c0_i32_0 : i32, i32, i32, i32
  }
}

</mosaic_0001>

<bundles_post_ra>
// kernel: mul.2
= control target key start
LH: loop header
LB: loop body
LE: loop exit
PB: predicated region body
PF: predicated region fallthrough
CT: control target
= control target key end

     0   :  { %s34_s0 = inlined_call_operand.vmem [shape: f32[12], index: 0, kind: input, shape index: {}]   ;;  %s35_s1 = inlined_call_operand.vmem [shape: f32[12], index: 1, kind: input, shape index: {}]   ;;  %s36_s2 = inlined_call_operand.vmem [shape: f32[12], index: 2, kind: output, shape index: {}]  }
   0x1   :  { %v3_v0 = vld [vmem:[%s34_s0] sm:$0x1] }
   0x2   :  { %v4_v1 = vld [vmem:[%s35_s1] sm:$0x1] }
   0x3   :  { %v7_v2 = vmul.f32 %v4_v1, %v3_v0 }
   0x5   :  { %9 = vst [vmem:[%s36_s2] sm:$0x1] %v7_v2 }

// kernel: aspp_forward.3
= control target key start
LH: loop header
LB: loop body
LE: loop exit
PB: predicated region body
PF: predicated region fallthrough
CT: control target
= control target key end

     0   :  { %s872_s12 = smov 0   ;;  %s874_s13 = smov 0   ;;  %s1049_s0 = inlined_call_operand.vmem [shape: bf16[2,16,16,12], index: 0, kind: input, shape index: {}]   ;;  %s1050_s1 = inlined_call_operand.vmem [shape: bf16[12,4], index: 1, kind: input, shape index: {}]   ;;  %s1051_s2 = inlined_call_operand.vmem [shape: f32[1,4], index: 2, kind: input, shape index: {}]   ;;  %s1052_s3 = inlined_call_operand.vmem [shape: f32[2,16,16,4], index: 3, kind: output, shape index: {}]  }
   0x1   :  { %s876_s14 = smov 0  }
   0x2 LB: > { %s25_s15 = sadd.s32 1, %s846_s13  ;;  %p689_p0 = scmp.ge.s32.totalorder %s850_s14, 1  ;;  %s850_s14 = sphi %s876_s14, %s13_s14   ;;  %s846_s13 = sphi %s874_s13, %s1054_s13   ;;  %s842_s12 = sphi %s872_s12, %s1053_s12  }
   0x3   : > { %p27_p1 = scmp.ge.s32.totalorder %s25_s15, 2  ;;  %p159_p2 = scmp.lt.s32.totalorder %s850_s14, 3 }
   0x5   : > { %s1056_s15 = smov (%p27_p1, %s25_s15), 0  ;;  %p160_p3 = pnand %p689_p0, %p159_p2 }
   0x6   : > { %v811_v0 = vld [vmem:[%s1050_s1] sm:$0x3f] (!%p160_p3)   ;;  %vm391_vm0 = vcmask (!%p160_p3), 1045504   ;;  %p194_p4 = scmp.lt.s32.totalorder (!%p160_p3), %s842_s12, 1  ;;  %vm342_vm1 = vcmask (!%p160_p3), 97280   ;;  %vm556_vm2 = vcmask (!%p160_p3), 31744  }
   0x7   : > { %163 = sbr.rel (%p160_p3) target bundleno = 262 (0x106), region = 32  ;;  %785 = vmatprep.subr.msk.bf16.mxu0 (!%p160_p3), %vm391_vm0, %v811_v0  ;;  %786 = vmatprep.subr.msk.bf16.mxu1 (!%p160_p3), %vm391_vm0, %v811_v0  ;;  %v393_v1 = vsel (!%p160_p3), %vm391_vm0, %v811_v0, 0  ;;  %v937_v18 = vld [vmem:[%s1051_s2] ss:$0 sm:$0xff] (!%p160_p3) }
   0x8   : > { %750 = vmatpush3.bf16.msra.mxu0 (!%p160_p3), %v393_v1  ;;  %784 = vmatpush3.bf16.msra.mxu1 (!%p160_p3), %v393_v1 }
   0xe   : > { %s1058_s12 = smov (!%p194_p4, %s842_s12), 1 }
   0xf   : > { %s730_s18 = sshll.u32 %s1058_s12, 7  ;;  %s731_s22 = sshll.u32 %s1058_s12, 8 }
  0x10   : > { %s899_s21 = scalar_lea.vmem %s1049_s0, %s730_s18  ;;  %s942_s27 = scalar_lea.vmem %s1052_s3, %s731_s22 }
  0x11   : > { %v812_v2 = vld [vmem:[%s899_s21] sm:$0xff]   ;;  %v814_v4 = vld [vmem:[%s899_s21 + $0x8] sm:$0xff]   ;;  %v816_v6 = vld [vmem:[%s899_s21 + $0x10] sm:$0xff]  }
  0x12   : > { %v813_v3 = vld [vmem:[%s899_s21 + $0x40] sm:$0xff]   ;;  %751 = vmatprep.mubr.msk.bf16.mxu0 %vm342_vm1, %v812_v2  ;;  %v815_v5 = vld [vmem:[%s899_s21 + $0x48] sm:$0xff]   ;;  %v817_v7 = vld [vmem:[%s899_s21 + $0x50] sm:$0xff]  }
  0x13   : > { %767 = vmatprep.mubr.msk.bf16.mxu1 %vm342_vm1, %v813_v3  ;;  %752 = vmatmul.mubr.msk.bf16.vlgmr.msra.gmra.mrb[0].mxu0 %vm342_vm1, %v814_v4  ;;  %v818_v8 = vld [vmem:[%s899_s21 + $0x18] sm:$0xff]   ;;  %v820_v10 = vld [vmem:[%s899_s21 + $0x20] sm:$0xff]   ;;  %v822_v12 = vld [vmem:[%s899_s21 + $0x28] sm:$0xff]  }
  0x14   : > { %768 = vmatmul.mubr.msk.bf16.vlgmr.msra.gmra.mrb[0].mxu1 %vm342_vm1, %v815_v5  ;;  %755 = vmatprep.mubr.msk.bf16.mxu0 %vm342_vm1, %v816_v6  ;;  %v819_v9 = vld [vmem:[%s899_s21 + $0x58] sm:$0xff]   ;;  %v821_v11 = vld [vmem:[%s899_s21 + $0x60] sm:$0xff]   ;;  %v823_v13 = vld [vmem:[%s899_s21 + $0x68] sm:$0xff]  }
  0x15   : > { %771 = vmatprep.mubr.msk.bf16.mxu1 %vm342_vm1, %v817_v7  ;;  %v824_v14 = vld [vmem:[%s899_s21 + $0x30] sm:$0xff]   ;;  %v826_v16 = vld [vmem:[%s899_s21 + $0x38] sm:$0xff]  }
  0x16   : > { %v825_v15 = vld [vmem:[%s899_s21 + $0x70] sm:$0xff]   ;;  %v827_v17 = vld [vmem:[%s899_s21 + $0x78] sm:$0xff]  }
  0x1b   : > { %756 = vmatmul.mubr.msk.bf16.gmra.mrb[4].mxu0 %vm342_vm1, %v818_v8 }
  0x1c   : > { %772 = vmatmul.mubr.msk.bf16.gmra.mrb[4].mxu1 %vm342_vm1, %v819_v9  ;;  %759 = vmatprep.mubr.msk.bf16.mxu0 %vm342_vm1, %v820_v10 }
  0x1d   : > { %775 = vmatprep.mubr.msk.bf16.mxu1 %vm342_vm1, %v821_v11 }
  0x23   : > { %760 = vmatmul.mubr.msk.bf16.gmra.mrb[8].mxu0 %vm342_vm1, %v822_v12 }
  0x24   : > { %776 = vmatmul.mubr.msk.bf16.gmra.mrb[8].mxu1 %vm342_vm1, %v823_v13  ;;  %763 = vmatprep.mubr.msk.bf16.mxu0 %vm342_vm1, %v824_v14 }
  0x25   : > { %779 = vmatprep.mubr.msk.bf16.mxu1 %vm342_vm1, %v825_v15 }
  0x2b   : > { %764 = vmatmul.mubr.msk.bf16.gmra.mrb[12].mxu0 %vm342_vm1, %v826_v16 }
  0x2c   : > { %780 = vmatmul.mubr.msk.bf16.gmra.mrb[12].mxu1 %vm342_vm1, %v827_v17 }
  0xe6   : > { %v753_v19 = vpop.f32.mrb[0].mxu0 }
  0xe7   : > { %v438_v20 = vadd.f32 %v753_v19, %v937_v18  ;;  %v769_v21 = vpop.f32.mrb[0].mxu1  ;;  %v429_v22 = vpop.f32.mrb[1].mxu0 }
  0xe8   : > { %v502_v23 = vadd.f32 %v769_v21, %v937_v18  ;;  %v430_v24 = vadd.f32 %v937_v18, %v429_v22  ;;  %v493_v25 = vpop.f32.mrb[1].mxu1  ;;  %v754_v26 = vpop.f32.mrb[2].mxu0 }
  0xe9   : > { %559 = vst.msk [vmem:[%s942_s27 + $0x10] sm:$0xff] %vm556_vm2, %v438_v20  ;;  %v494_v27 = vadd.f32 %v937_v18, %v493_v25  ;;  %v441_v28 = vadd.f32 %v754_v26, %v937_v18  ;;  %v770_v29 = vpop.f32.mrb[2].mxu1  ;;  %v432_v30 = vpop.f32.mrb[3].mxu0 }
  0xea   : > { %575 = vst.msk [vmem:[%s942_s27 + $0x90] sm:$0xff] %vm556_vm2, %v502_v23  ;;  %557 = vst.msk [vmem:[%s942_s27] sm:$0xff] %vm556_vm2, %v430_v24  ;;  %v505_v31 = vadd.f32 %v770_v29, %v937_v18  ;;  %v433_v32 = vadd.f32 %v937_v18, %v432_v30  ;;  %v496_v33 = vpop.f32.mrb[3].mxu1 }
  0xeb   : > { %573 = vst.msk [vmem:[%s942_s27 + $0x80] sm:$0xff] %vm556_vm2, %v494_v27  ;;  %560 = vst.msk [vmem:[%s942_s27 + $0x18] sm:$0xff] %vm556_vm2, %v441_v28  ;;  %v497_v34 = vadd.f32 %v937_v18, %v496_v33 }
  0xec   : > { %576 = vst.msk [vmem:[%s942_s27 + $0x98] sm:$0xff] %vm556_vm2, %v505_v31  ;;  %558 = vst.msk [vmem:[%s942_s27 + $0x8] sm:$0xff] %vm556_vm2, %v433_v32 }
  0xed   : > { %574 = vst.msk [vmem:[%s942_s27 + $0x88] sm:$0xff] %vm556_vm2, %v497_v34 }
  0xee   : > { %v757_v35 = vpop.f32.mrb[4].mxu0 }
  0xef   : > { %v454_v36 = vadd.f32 %v757_v35, %v937_v18  ;;  %v773_v37 = vpop.f32.mrb[4].mxu1  ;;  %v445_v38 = vpop.f32.mrb[5].mxu0 }
  0xf0   : > { %v518_v39 = vadd.f32 %v773_v37, %v937_v18  ;;  %v446_v40 = vadd.f32 %v937_v18, %v445_v38  ;;  %v509_v41 = vpop.f32.mrb[5].mxu1  ;;  %v758_v42 = vpop.f32.mrb[6].mxu0 }
  0xf1   : > { %563 = vst.msk [vmem:[%s942_s27 + $0x30] sm:$0xff] %vm556_vm2, %v454_v36  ;;  %v510_v43 = vadd.f32 %v937_v18, %v509_v41  ;;  %v457_v44 = vadd.f32 %v758_v42, %v937_v18  ;;  %v774_v45 = vpop.f32.mrb[6].mxu1  ;;  %v448_v46 = vpop.f32.mrb[7].mxu0 }
  0xf2   : > { %579 = vst.msk [vmem:[%s942_s27 + $0xb0] sm:$0xff] %vm556_vm2, %v518_v39  ;;  %561 = vst.msk [vmem:[%s942_s27 + $0x20] sm:$0xff] %vm556_vm2, %v446_v40  ;;  %v521_v47 = vadd.f32 %v774_v45, %v937_v18  ;;  %v449_v48 = vadd.f32 %v937_v18, %v448_v46  ;;  %v512_v49 = vpop.f32.mrb[7].mxu1 }
  0xf3   : > { %577 = vst.msk [vmem:[%s942_s27 + $0xa0] sm:$0xff] %vm556_vm2, %v510_v43  ;;  %564 = vst.msk [vmem:[%s942_s27 + $0x38] sm:$0xff] %vm556_vm2, %v457_v44  ;;  %v513_v50 = vadd.f32 %v937_v18, %v512_v49 }
  0xf4   : > { %580 = vst.msk [vmem:[%s942_s27 + $0xb8] sm:$0xff] %vm556_vm2, %v521_v47  ;;  %562 = vst.msk [vmem:[%s942_s27 + $0x28] sm:$0xff] %vm556_vm2, %v449_v48 }
  0xf5   : > { %578 = vst.msk [vmem:[%s942_s27 + $0xa8] sm:$0xff] %vm556_vm2, %v513_v50 }
  0xf6   : > { %v761_v51 = vpop.f32.mrb[8].mxu0 }
  0xf7   : > { %v470_v52 = vadd.f32 %v761_v51, %v937_v18  ;;  %v777_v53 = vpop.f32.mrb[8].mxu1  ;;  %v461_v54 = vpop.f32.mrb[9].mxu0 }
  0xf8   : > { %v534_v55 = vadd.f32 %v777_v53, %v937_v18  ;;  %v462_v56 = vadd.f32 %v937_v18, %v461_v54  ;;  %v525_v57 = vpop.f32.mrb[9].mxu1  ;;  %v762_v58 = vpop.f32.mrb[10].mxu0 }
  0xf9   : > { %567 = vst.msk [vmem:[%s942_s27 + $0x50] sm:$0xff] %vm556_vm2, %v470_v52  ;;  %v526_v59 = vadd.f32 %v937_v18, %v525_v57  ;;  %v473_v60 = vadd.f32 %v762_v58, %v937_v18  ;;  %v778_v61 = vpop.f32.mrb[10].mxu1  ;;  %v464_v62 = vpop.f32.mrb[11].mxu0 }
  0xfa   : > { %583 = vst.msk [vmem:[%s942_s27 + $0xd0] sm:$0xff] %vm556_vm2, %v534_v55  ;;  %565 = vst.msk [vmem:[%s942_s27 + $0x40] sm:$0xff] %vm556_vm2, %v462_v56  ;;  %v537_v63 = vadd.f32 %v778_v61, %v937_v18  ;;  %v465_v0 = vadd.f32 %v937_v18, %v464_v62  ;;  %v528_v1 = vpop.f32.mrb[11].mxu1 }
  0xfb   : > { %581 = vst.msk [vmem:[%s942_s27 + $0xc0] sm:$0xff] %vm556_vm2, %v526_v59  ;;  %568 = vst.msk [vmem:[%s942_s27 + $0x58] sm:$0xff] %vm556_vm2, %v473_v60  ;;  %v529_v2 = vadd.f32 %v937_v18, %v528_v1 }
  0xfc   : > { %584 = vst.msk [vmem:[%s942_s27 + $0xd8] sm:$0xff] %vm556_vm2, %v537_v63  ;;  %566 = vst.msk [vmem:[%s942_s27 + $0x48] sm:$0xff] %vm556_vm2, %v465_v0 }
  0xfd   : > { %582 = vst.msk [vmem:[%s942_s27 + $0xc8] sm:$0xff] %vm556_vm2, %v529_v2 }
  0xfe   : > { %v765_v3 = vpop.f32.mrb[12].mxu0 }
  0xff   : > { %v486_v4 = vadd.f32 %v765_v3, %v937_v18  ;;  %v781_v5 = vpop.f32.mrb[12].mxu1  ;;  %v477_v6 = vpop.f32.mrb[13].mxu0 }
 0x100   : > { %v550_v7 = vadd.f32 %v781_v5, %v937_v18  ;;  %v478_v8 = vadd.f32 %v937_v18, %v477_v6  ;;  %v541_v9 = vpop.f32.mrb[13].mxu1  ;;  %v766_v10 = vpop.f32.mrb[14].mxu0 }
 0x101   : > { %571 = vst.msk [vmem:[%s942_s27 + $0x70] sm:$0xff] %vm556_vm2, %v486_v4  ;;  %v542_v11 = vadd.f32 %v937_v18, %v541_v9  ;;  %v489_v12 = vadd.f32 %v766_v10, %v937_v18  ;;  %v782_v13 = vpop.f32.mrb[14].mxu1  ;;  %v480_v14 = vpop.f32.mrb[15].mxu0 }
 0x102   : > { %587 = vst.msk [vmem:[%s942_s27 + $0xf0] sm:$0xff] %vm556_vm2, %v550_v7  ;;  %569 = vst.msk [vmem:[%s942_s27 + $0x60] sm:$0xff] %vm556_vm2, %v478_v8  ;;  %v553_v15 = vadd.f32 %v782_v13, %v937_v18  ;;  %v481_v16 = vadd.f32 %v937_v18, %v480_v14  ;;  %v544_v17 = vpop.f32.mrb[15].mxu1 }
 0x103   : > { %585 = vst.msk [vmem:[%s942_s27 + $0xe0] sm:$0xff] %vm556_vm2, %v542_v11  ;;  %572 = vst.msk [vmem:[%s942_s27 + $0x78] sm:$0xff] %vm556_vm2, %v489_v12  ;;  %v545_v19 = vadd.f32 %v937_v18, %v544_v17 }
 0x104   : > { %588 = vst.msk [vmem:[%s942_s27 + $0xf8] sm:$0xff] %vm556_vm2, %v553_v15  ;;  %570 = vst.msk [vmem:[%s942_s27 + $0x68] sm:$0xff] %vm556_vm2, %v481_v16 }
 0x105   : > { %586 = vst.msk [vmem:[%s942_s27 + $0xe8] sm:$0xff] %vm556_vm2, %v545_v19 }
 0x106 PF: > { %s13_s14 = sadd.s32 1, %s850_s14   ;;  %s1053_s12 = smov %s846_s13 }
 0x107   : > { %p10_p5 = scmp.ge.s32.totalorder %s13_s14, 4   ;;  %s1054_s13 = smov %s1056_s15 }
 0x109   :  { %12 = sbr.rel (!%p10_p5) target bundleno = 2 (0x2), region = 62 }

// kernel: aspp_forward.2
= control target key start
LH: loop header
LB: loop body
LE: loop exit
PB: predicated region body
PF: predicated region fallthrough
CT: control target
= control target key end

     0   :  { %s16405_s15 = smov 0   ;;  %s16407_s16 = smov 0   ;;  %s21611_s0 = inlined_call_operand.vmem [shape: bf16[2,52,52,4], index: 0, kind: input, shape index: {}]   ;;  %s21612_s1 = inlined_call_operand.vmem [shape: bf16[3,3,3,4,4], index: 1, kind: input, shape index: {}]   ;;  %s21613_s2 = inlined_call_operand.vmem [shape: f32[3,1,4], index: 2, kind: input, shape index: {}]   ;;  %s21614_s3 = inlined_call_operand.vmem [shape: bf16[2,16,16,12], index: 3, kind: output, shape index: {0}]   ;;  %s21615_s4 = inlined_call_operand.vmem [shape: f32[2,1,2,3,4], index: 4, kind: output, shape index: {1}]  }
   0x1   :  { %s16409_s17 = smov 0  }
   0x2 LB: > { %s27_s18 = sadd.s32 1, %s16372_s16  ;;  %p12777_p0 = scmp.ge.s32.totalorder %s16376_s17, 1  ;;  %s16376_s17 = sphi %s16409_s17, %s15_s17   ;;  %s16372_s16 = sphi %s16407_s16, %s21973_s16   ;;  %s16368_s15 = sphi %s16405_s15, %s21972_s15  }
   0x3   : > { %p29_p1 = scmp.ge.s32.totalorder %s27_s18, 2  ;;  %p181_p2 = scmp.lt.s32.totalorder %s16376_s17, 3 }
   0x5   : > { %s21975_s18 = smov (%p29_p1, %s27_s18), 0  ;;  %p182_p3 = pnand %p12777_p0, %p181_p2 }
   0x7   : > { %185 = sbr.rel (%p182_p3) target bundleno = 1364 (0x554), region = 32 }
   0xe   : > { %vm383_vm0 = vcmask 1041408   ;;  %v12805_v0 = vld [vmem:[%s21612_s1 + $0x6] sm:$0x3]  ;;  %v12944_v1 = vld [vmem:[%s21612_s1 + $0x8] sm:$0x3]  ;;  %p221_p4 = scmp.lt.s32.totalorder %s16368_s15, 1 }
   0xf   : > { %16209 = vmatprep.subr.msk.bf16.mxu1 %vm383_vm0, %v12805_v0  ;;  %16213 = vmatprep.subr.msk.bf16.mxu0 %vm383_vm0, %v12944_v1  ;;  %v660_v2 = vsel %vm383_vm0, %v12805_v0, 0  ;;  %v16433_v3 = vsel %vm383_vm0, %v12944_v1, 0  ;;  %v498_v4 = vld [vmem:[%s21612_s1] sm:$0x3]  ;;  %v12973_v5 = vld [vmem:[%s21612_s1 + $0xe] sm:$0x3] }
  0x10   : > { %14522 = vmatpush3.bf16.msra.mxu1 %v660_v2  ;;  %14658 = vmatpush3.bf16.msra.mxu0 %v16433_v3  ;;  %s21977_s15 = smov (!%p221_p4, %s16368_s15), 1  ;;  %vm384_vm1 = vcmask 1045508   ;;  %v21700_v6 = vmov 0  ;;  %vm1449_vm3 = vcmask 1042432   ;;  %vm1450_vm4 = vcmask 1046532   ;;  %s16378_s24 = smov 8  }
  0x11   : > { %16210 = vmatprep.subr.msk.bf16.mxu1 %vm383_vm0, %v498_v4  ;;  %16215 = vmatprep.subr.msk.bf16.mxu0 %vm383_vm0, %v12973_v5  ;;  %s16237_s27 = smul.u32 1456, %s21977_s15  ;;  %vm16453_vm2 = vmor %vm383_vm0, %vm384_vm1  ;;  %vm609_vm5 = vcmask 31744   ;;  %v860_v18 = vsel %vm383_vm0, %v498_v4, 0  ;;  %v2251_v27 = vsel %vm383_vm0, %v12973_v5, 0  ;;  %v16504_v56 = vld [vmem:[%s21612_s1 + $0xc] sm:$0x3] }
  0x12   : > { %v21701_v6 = vsel %vm16453_vm2, 4294967295, %v21700_v6  ;;  %vm16463_vm6 = vmor %vm1449_vm3, %vm1450_vm4  ;;  %v16517_v63 = vld [vmem:[%s21612_s1 + $0x4] sm:$0x3]  ;;  %vm3834_vm7 = vcmask 1040384   ;;  %vm3835_vm8 = vcmask 1044484   ;;  %s13964_s22 = sshll.u32 %s21977_s15, 7 }
  0x13   : > { %s16450_s30 = scalar_lea.vmem %s21611_s0, %s16237_s27  ;;  %21702 = vst [vmem:[#allocation2_spill] sm:$0xff] %v21701_v6  ;;  %vm17354_vm9 = vmor %vm3834_vm7, %vm3835_vm8  ;;  %vm3463_vm10 = vcmask 27648   ;;  %s18829_s25 = scalar_lea.vmem %s21614_s3, %s13964_s22  ;;  %vm7931_vm11 = vcmask 60448   ;;  %vm12420_vm12 = vcmask 93248   ;;  %vm12628_vm13 = vcmask 26624  }
  0x14   : > { %v269_v7 = vld [vmem:[%s16450_s30 + $0x1fc] sm:$0xc]  ;;  %v270_v8 = vld [vmem:[%s16450_s30 + $0x200] sm:$0xf]  ;;  %v271_v9 = vld [vmem:[%s16450_s30 + $0x204] sm:$0x3] }
  0x15   : > { %v12789_v10 = vrot.slane %v269_v7, 10  ;;  %v430_v11 = vrot.slane %v270_v8, 6  ;;  %v433_v12 = vrot.slane %v271_v9, 6  ;;  %v1335_v13 = vld [vmem:[%s16450_s30 + $0x200] sm:$0xe]  ;;  %s16379_s26 = smov 4  }
  0x16   : > { %v1336_v14 = vld [vmem:[%s16450_s30 + $0x204] sm:$0xf]  ;;  %v1337_v15 = vld [vmem:[%s16450_s30 + $0x208] sm:$0x1]  ;;  %v12895_v17 = vrot.slane %v1335_v13, 9  ;;  %s13965_s6 = sshll.u32 %s21977_s15, 3 }
  0x17   : > { %v431_v19 = vsel %vm16453_vm2, %v12789_v10, %v430_v11  ;;  %v432_v20 = vrot.slane %v430_v11, 4  ;;  %v1496_v21 = vrot.slane %v1336_v14, 5  ;;  %v1499_v22 = vrot.slane %v1337_v15, 5  ;;  %v272_v23 = vld [vmem:[%s16450_s30 + $0x218] sm:$0xc]  ;;  %s245_s15 = scalar_lea.vmem %s21615_s4, %s13965_s6 }
  0x18   : > { %v273_v24 = vld [vmem:[%s16450_s30 + $0x21c] sm:$0xf]  ;;  %v274_v25 = vld [vmem:[%s16450_s30 + $0x220] sm:$0x3]  ;;  %v12790_v26 = vrot.slane %v272_v23, 10 }
  0x19   : > { %v434_v28 = vsel %vm16453_vm2, %v432_v20, %v433_v12  ;;  %v1497_v29 = vsel %vm16463_vm6, %v12895_v17, %v1496_v21  ;;  %v1498_v30 = vrot.slane %v1496_v21, 4  ;;  %v437_v31 = vrot.slane %v273_v24, 6  ;;  %v1338_v32 = vld [vmem:[%s16450_s30 + $0x21c] sm:$0xe]  ;;  %v1339_v33 = vld [vmem:[%s16450_s30 + $0x220] sm:$0xf] }
  0x1a   : > { %v16480_v34 = vcombine.low %v431_v19, %v434_v28  ;;  %v440_v35 = vrot.slane %v274_v25, 6  ;;  %v1340_v36 = vld [vmem:[%s16450_s30 + $0x224] sm:$0x1]  ;;  %v12896_v37 = vrot.slane %v1338_v32, 9  ;;  %v1503_v38 = vrot.slane %v1339_v33, 5 }
  0x1b   : > { %v1500_v39 = vsel %vm16463_vm6, %v1498_v30, %v1499_v22  ;;  %v438_v40 = vsel %vm16453_vm2, %v12790_v26, %v437_v31  ;;  %v439_v41 = vrot.slane %v437_v31, 4  ;;  %v1506_v42 = vrot.slane %v1340_v36, 5  ;;  %v275_v43 = vld [vmem:[%s16450_s30 + $0x234] sm:$0xc]  ;;  %v276_v44 = vld [vmem:[%s16450_s30 + $0x238] sm:$0xf] }
  0x1c   : > { %14523 = vmatprep.mubr.msk.bf16.mxu1 %vm609_vm5, %v16480_v34  ;;  %v16491_v45 = vcombine.low %v1497_v29, %v1500_v39  ;;  %v1504_v46 = vsel %vm16463_vm6, %v12896_v37, %v1503_v38  ;;  %v1505_v47 = vrot.slane %v1503_v38, 4  ;;  %v277_v48 = vld [vmem:[%s16450_s30 + $0x23c] sm:$0x3]  ;;  %v12791_v49 = vrot.slane %v275_v43, 10  ;;  %v1341_v50 = vld [vmem:[%s16450_s30 + $0x238] sm:$0xe] }
  0x1d   : > { %v441_v51 = vsel %vm16453_vm2, %v439_v41, %v440_v35  ;;  %v444_v52 = vrot.slane %v276_v44, 6  ;;  %v447_v53 = vrot.slane %v277_v48, 6  ;;  %v1342_v54 = vld [vmem:[%s16450_s30 + $0x23c] sm:$0xf]  ;;  %v1343_v55 = vld [vmem:[%s16450_s30 + $0x240] sm:$0x1] }
  0x1e   : > { %14659 = vmatprep.mubr.msk.bf16.mxu0 %vm609_vm5, %v16491_v45  ;;  %v16508_v57 = vcombine.low %v438_v40, %v441_v51  ;;  %v1507_v58 = vsel %vm16463_vm6, %v1505_v47, %v1506_v42  ;;  %v12897_v59 = vrot.slane %v1341_v50, 9  ;;  %v1510_v60 = vrot.slane %v1342_v54, 5  ;;  %v278_v61 = vld [vmem:[%s16450_s30 + $0x250] sm:$0xc]  ;;  %v279_v62 = vld [vmem:[%s16450_s30 + $0x254] sm:$0xf] }
  0x1f   : > { %v16519_v0 = vcombine.low %v1504_v46, %v1507_v58  ;;  %v445_v1 = vsel %vm16453_vm2, %v12791_v49, %v444_v52  ;;  %v446_v2 = vrot.slane %v444_v52, 4  ;;  %v1513_v4 = vrot.slane %v1343_v55, 5  ;;  %v280_v5 = vld [vmem:[%s16450_s30 + $0x258] sm:$0x3]  ;;  %v1344_v7 = vld [vmem:[%s16450_s30 + $0x254] sm:$0xe] }
  0x20   : > { %14524 = vmatmul.mubr.msk.bf16.vlgmr.msra.gmra.mrb[0].mxu1 %vm609_vm5, %v16508_v57  ;;  %v1511_v8 = vsel %vm16463_vm6, %v12897_v59, %v1510_v60  ;;  %v1512_v9 = vrot.slane %v1510_v60, 4  ;;  %v12792_v10 = vrot.slane %v278_v61, 10  ;;  %v451_v11 = vrot.slane %v279_v62, 6  ;;  %v1345_v12 = vld [vmem:[%s16450_s30 + $0x258] sm:$0xf] }
  0x21   : > { %14556 = vmatpush3.bf16.msra.mxu1 %v860_v18  ;;  %14660 = vmatmul.mubr.msk.bf16.vlgmr.msra.gmra.mrb[0].mxu0 %vm609_vm5, %v16519_v0  ;;  %v448_v13 = vsel %vm16453_vm2, %v446_v2, %v447_v53  ;;  %v454_v14 = vrot.slane %v280_v5, 6  ;;  %v1346_v15 = vld [vmem:[%s16450_s30 + $0x25c] sm:$0x1]  ;;  %v12898_v17 = vrot.slane %v1344_v7, 9  ;;  %v1517_v19 = vrot.slane %v1345_v12, 5 }
  0x22   : > { %14692 = vmatpush3.bf16.msra.mxu0 %v2251_v27  ;;  %v16535_v20 = vcombine.low %v445_v1, %v448_v13  ;;  %v1514_v21 = vsel %vm16463_vm6, %v1512_v9, %v1513_v4  ;;  %v452_v18 = vsel %vm16453_vm2, %v12792_v10, %v451_v11  ;;  %v453_v22 = vrot.slane %v451_v11, 4  ;;  %v281_v23 = vld [vmem:[%s16450_s30 + $0x26c] sm:$0xc]  ;;  %v282_v24 = vld [vmem:[%s16450_s30 + $0x270] sm:$0xf]  ;;  %16211 = vmatprep.subr.msk.bf16.mxu1 %vm383_vm0, %v16504_v56 }
  0x23   : > { %v16545_v25 = vcombine.low %v1511_v8, %v1514_v21  ;;  %v1518_v26 = vsel %vm16463_vm6, %v12898_v17, %v1517_v19  ;;  %v1519_v27 = vrot.slane %v1517_v19, 4  ;;  %v1520_v28 = vrot.slane %v1346_v15, 5  ;;  %v283_v29 = vld [vmem:[%s16450_s30 + $0x274] sm:$0x3]  ;;  %v1347_v30 = vld [vmem:[%s16450_s30 + $0x270] sm:$0xe]  ;;  %16216 = vmatprep.subr.msk.bf16.mxu0 %vm383_vm0, %v16517_v63 }
  0x24   : > { %14527 = vmatprep.mubr.msk.bf16.mxu1 %vm609_vm5, %v16535_v20  ;;  %v455_v31 = vsel %vm16453_vm2, %v453_v22, %v454_v14  ;;  %v12793_v32 = vrot.slane %v281_v23, 10  ;;  %v458_v33 = vrot.slane %v282_v24, 6  ;;  %v461_v35 = vrot.slane %v283_v29, 6  ;;  %v1348_v36 = vld [vmem:[%s16450_s30 + $0x274] sm:$0xf] }
  0x25   : > { %14663 = vmatprep.mubr.msk.bf16.mxu0 %vm609_vm5, %v16545_v25  ;;  %v16560_v37 = vcombine.low %v452_v18, %v455_v31  ;;  %v1521_v38 = vsel %vm16463_vm6, %v1519_v27, %v1520_v28  ;;  %v1349_v39 = vld [vmem:[%s16450_s30 + $0x278] sm:$0x1]  ;;  %v12899_v40 = vrot.slane %v1347_v30, 9  ;;  %v1524_v41 = vrot.slane %v1348_v36, 5  ;;  %v284_v42 = vld [vmem:[%s16450_s30 + $0x288] sm:$0xc] }
  0x26   : > { %v16566_v43 = vcombine.low %v1518_v26, %v1521_v38  ;;  %v459_v44 = vsel %vm16453_vm2, %v12793_v32, %v458_v33  ;;  %v460_v46 = vrot.slane %v458_v33, 4  ;;  %v1527_v47 = vrot.slane %v1349_v39, 5  ;;  %v285_v48 = vld [vmem:[%s16450_s30 + $0x28c] sm:$0xf]  ;;  %v286_v49 = vld [vmem:[%s16450_s30 + $0x290] sm:$0x3] }
  0x27   : > { %v1525_v50 = vsel %vm16463_vm6, %v12899_v40, %v1524_v41  ;;  %v1526_v51 = vrot.slane %v1524_v41, 4  ;;  %v12794_v52 = vrot.slane %v284_v42, 10  ;;  %v465_v53 = vrot.slane %v285_v48, 6  ;;  %v1350_v54 = vld [vmem:[%s16450_s30 + $0x28c] sm:$0xe] }
  0x28   : > { %14528 = vmatmul.mubr.msk.bf16.gmra.mrb[4].mxu1 %vm609_vm5, %v16560_v37  ;;  %v462_v55 = vsel %vm16453_vm2, %v460_v46, %v461_v35  ;;  %v468_v58 = vrot.slane %v286_v49, 6  ;;  %v1351_v59 = vld [vmem:[%s16450_s30 + $0x290] sm:$0xf]  ;;  %v1352_v60 = vld [vmem:[%s16450_s30 + $0x294] sm:$0x1]  ;;  %v12900_v61 = vrot.slane %v1350_v54, 9 }
  0x29   : > { %14664 = vmatmul.mubr.msk.bf16.gmra.mrb[4].mxu0 %vm609_vm5, %v16566_v43  ;;  %v16583_v62 = vcombine.low %v459_v44, %v462_v55  ;;  %v1528_v1 = vsel %vm16463_vm6, %v1526_v51, %v1527_v47  ;;  %v466_v2 = vsel %vm16453_vm2, %v12794_v52, %v465_v53  ;;  %v467_v4 = vrot.slane %v465_v53, 4  ;;  %v287_v5 = vld [vmem:[%s16450_s30 + $0x2a4] sm:$0xc]  ;;  %v288_v7 = vld [vmem:[%s16450_s30 + $0x2a8] sm:$0xf] }
  0x2a   : > { %v16591_v8 = vcombine.low %v1525_v50, %v1528_v1  ;;  %v1531_v9 = vrot.slane %v1351_v59, 5  ;;  %v1534_v10 = vrot.slane %v1352_v60, 5  ;;  %v289_v11 = vld [vmem:[%s16450_s30 + $0x2ac] sm:$0x3]  ;;  %v12795_v12 = vrot.slane %v287_v5, 10 }
  0x2b   : > { %14531 = vmatprep.mubr.msk.bf16.mxu1 %vm609_vm5, %v16583_v62  ;;  %v469_v13 = vsel %vm16453_vm2, %v467_v4, %v468_v58  ;;  %v472_v14 = vrot.slane %v288_v7, 6  ;;  %v475_v15 = vrot.slane %v289_v11, 6  ;;  %v1353_v17 = vld [vmem:[%s16450_s30 + $0x2a8] sm:$0xe]  ;;  %v1354_v19 = vld [vmem:[%s16450_s30 + $0x2ac] sm:$0xf] }
  0x2c   : > { %14667 = vmatprep.mubr.msk.bf16.mxu0 %vm609_vm5, %v16591_v8  ;;  %v16602_v21 = vcombine.low %v466_v2, %v469_v13  ;;  %v1532_v18 = vsel %vm16463_vm6, %v12900_v61, %v1531_v9  ;;  %v1533_v22 = vrot.slane %v1531_v9, 4  ;;  %v1355_v23 = vld [vmem:[%s16450_s30 + $0x2b0] sm:$0x1]  ;;  %v12901_v24 = vrot.slane %v1353_v17, 9  ;;  %v290_v26 = vld [vmem:[%s16450_s30 + $0x2c0] sm:$0xc] }
  0x2d   : > { %v473_v27 = vsel %vm16453_vm2, %v12795_v12, %v472_v14  ;;  %v474_v28 = vrot.slane %v472_v14, 4  ;;  %v1538_v29 = vrot.slane %v1354_v19, 5  ;;  %v1541_v30 = vrot.slane %v1355_v23, 5  ;;  %v291_v31 = vld [vmem:[%s16450_s30 + $0x2c4] sm:$0xf] }
  0x2e   : > { %v1535_v32 = vsel %vm16463_vm6, %v1533_v22, %v1534_v10  ;;  %v292_v33 = vld [vmem:[%s16450_s30 + $0x2c8] sm:$0x3]  ;;  %v12796_v35 = vrot.slane %v290_v26, 10  ;;  %v479_v36 = vrot.slane %v291_v31, 6  ;;  %v1356_v38 = vld [vmem:[%s16450_s30 + $0x2c4] sm:$0xe] }
  0x2f   : > { %v16615_v39 = vcombine.low %v1532_v18, %v1535_v32  ;;  %v476_v40 = vsel %vm16453_vm2, %v474_v28, %v475_v15  ;;  %v1539_v41 = vsel %vm16463_vm6, %v12901_v24, %v1538_v29  ;;  %v1540_v42 = vrot.slane %v1538_v29, 4  ;;  %v16622_v44 = vld [vmem:[%s16450_s30 + $0x2c8] sm:$0xf]  ;;  %v1358_v46 = vld [vmem:[%s16450_s30 + $0x2cc] sm:$0x1] }
  0x30   : > { %14532 = vmatmul.mubr.msk.bf16.gmra.mrb[8].mxu1 %vm609_vm5, %v16602_v21  ;;  %v16627_v47 = vcombine.low %v473_v27, %v476_v40  ;;  %v480_v48 = vsel %vm16453_vm2, %v12796_v35, %v479_v36  ;;  %v481_v49 = vrot.slane %v479_v36, 4  ;;  %v482_v50 = vrot.slane %v292_v33, 6  ;;  %v293_v51 = vld [vmem:[%s16450_s30 + $0x2dc] sm:$0xc]  ;;  %v294_v52 = vld [vmem:[%s16450_s30 + $0x2e0] sm:$0xf] }
  0x31   : > { %21705 = vst [vmem:[#allocation3_spill] sm:$0xff] %v16615_v39  ;;  %14668 = vmatmul.mubr.msk.bf16.gmra.mrb[8].mxu0 %vm609_vm5, %v16615_v39  ;;  %v1542_v53 = vsel %vm16463_vm6, %v1540_v42, %v1541_v30  ;;  %v12902_v54 = vrot.slane %v1356_v38, 9  ;;  %v1545_v55 = vrot.slane %v16622_v44, 5  ;;  %v1548_v58 = vrot.slane %v1358_v46, 5  ;;  %v295_v59 = vld [vmem:[%s16450_s30 + $0x2e4] sm:$0x3] }
  0x32   : > { %14535 = vmatprep.mubr.msk.bf16.mxu1 %vm609_vm5, %v16627_v47  ;;  %v16641_v60 = vcombine.low %v1539_v41, %v1542_v53  ;;  %v483_v61 = vsel %vm16453_vm2, %v481_v49, %v482_v50  ;;  %v12797_v1 = vrot.slane %v293_v51, 10  ;;  %v486_v2 = vrot.slane %v294_v52, 6  ;;  %v296_v4 = vld [vmem:[%s16450_s30 + $0x2f8] sm:$0xc]  ;;  %v297_v5 = vld [vmem:[%s16450_s30 + $0x2fc] sm:$0xf] }
  0x33   : > { %v1546_v7 = vsel %vm16463_vm6, %v12902_v54, %v1545_v55  ;;  %v1547_v9 = vrot.slane %v1545_v55, 4  ;;  %v489_v10 = vrot.slane %v295_v59, 6  ;;  %v298_v11 = vld [vmem:[%s16450_s30 + $0x300] sm:$0x3]  ;;  %v299_v12 = vld [vmem:[%s16450_s30 + $0x314] sm:$0xc]  ;;  %v16653_v13 = vcombine.low %v480_v48, %v483_v61 }
  0x34   : > { %21706 = vst [vmem:[#allocation4_spill] sm:$0xff] %v16641_v60  ;;  %14671 = vmatprep.mubr.msk.bf16.mxu0 %vm609_vm5, %v16641_v60  ;;  %v487_v14 = vsel %vm16453_vm2, %v12797_v1, %v486_v2  ;;  %v488_v15 = vrot.slane %v486_v2, 4  ;;  %v493_v17 = vrot.slane %v297_v5, 6  ;;  %v300_v19 = vld [vmem:[%s16450_s30 + $0x318] sm:$0xf]  ;;  %v12798_v22 = vrot.slane %v296_v4, 10 }
  0x35   : > { %v1549_v18 = vsel %vm16463_vm6, %v1547_v9, %v1548_v58  ;;  %v496_v23 = vrot.slane %v298_v11, 6  ;;  %v301_v24 = vld [vmem:[%s16450_s30 + $0x31c] sm:$0x3]  ;;  %v519_v26 = vrot.slane %v300_v19, 6  ;;  %v12799_v30 = vrot.slane %v299_v12, 10 }
  0x36   : > { %v16661_v27 = vcombine.low %v1546_v7, %v1549_v18  ;;  %v490_v28 = vsel %vm16453_vm2, %v488_v15, %v489_v10  ;;  %v495_v29 = vrot.slane %v493_v17, 4  ;;  %v1359_v31 = vld [vmem:[%s16450_s30 + $0x2e0] sm:$0xe]  ;;  %v16667_v32 = vld [vmem:[%s16450_s30 + $0x2e4] sm:$0xf]  ;;  %v522_v36 = vrot.slane %v301_v24, 6 }
  0x37   : > { %v16669_v33 = vcombine.low %v487_v14, %v490_v28  ;;  %v521_v35 = vrot.slane %v519_v26, 4  ;;  %v1361_v38 = vld [vmem:[%s16450_s30 + $0x2e8] sm:$0x1]  ;;  %v302_v40 = vld [vmem:[%s16450_s30 + $0x330] sm:$0xc]  ;;  %v12903_v41 = vrot.slane %v1359_v31, 9  ;;  %v494_v49 = vsel %vm16453_vm2, %v12798_v22, %v493_v17 }
  0x38   : > { %21707 = vst [vmem:[#allocation5_spill] sm:$0xff] %v16661_v27  ;;  %14536 = vmatmul.mubr.msk.bf16.gmra.mrb[12].mxu1 %vm609_vm5, %v16653_v13  ;;  %v1552_v42 = vrot.slane %v16667_v32, 5  ;;  %v1555_v46 = vrot.slane %v1361_v38, 5  ;;  %v303_v48 = vld [vmem:[%s16450_s30 + $0x334] sm:$0xf]  ;;  %v497_v50 = vsel %vm16453_vm2, %v495_v29, %v496_v23  ;;  %v2589_v51 = vsel %vm383_vm0, %v16517_v63, 0 }
  0x39   : > { %14672 = vmatmul.mubr.msk.bf16.gmra.mrb[12].mxu0 %vm609_vm5, %v16661_v27  ;;  %14539 = vmatprep.mubr.msk.bf16.mxu1 %vm609_vm5, %v16669_v33  ;;  %v304_v52 = vld [vmem:[%s16450_s30 + $0x338] sm:$0x3]  ;;  %v526_v53 = vrot.slane %v303_v48, 6  ;;  %v1362_v54 = vld [vmem:[%s16450_s30 + $0x2fc] sm:$0xe]  ;;  %v520_v55 = vsel %vm16453_vm2, %v12799_v30, %v519_v26  ;;  %v523_v58 = vsel %vm16453_vm2, %v521_v35, %v522_v36  ;;  %v12800_v61 = vrot.slane %v302_v40, 10 }
  0x3a   : > { %14693 = vmatprep.mubr.msk.bf16.mxu0 %vm609_vm5, %v16641_v60  ;;  %v1554_v59 = vrot.slane %v1552_v42, 4  ;;  %v16696_v1 = vld [vmem:[%s16450_s30 + $0x300] sm:$0xf]  ;;  %v1364_v63 = vld [vmem:[%s16450_s30 + $0x304] sm:$0x1]  ;;  %v1553_v2 = vsel %vm16463_vm6, %v12903_v41, %v1552_v42  ;;  %v529_v5 = vrot.slane %v304_v52, 6  ;;  %v16703_v10 = vcombine.low %v494_v49, %v497_v50 }
  0x3b   : > { %v528_v4 = vrot.slane %v526_v53, 4  ;;  %v1559_v7 = vrot.slane %v16696_v1, 5  ;;  %v305_v9 = vld [vmem:[%s16450_s30 + $0x34c] sm:$0xc]  ;;  %v12904_v12 = vrot.slane %v1362_v54, 9  ;;  %v1562_v14 = vrot.slane %v1364_v63, 5 }
  0x3c   : > { %v1556_v11 = vsel %vm16463_vm6, %v1554_v59, %v1555_v46  ;;  %v306_v15 = vld [vmem:[%s16450_s30 + $0x350] sm:$0xf]  ;;  %v307_v17 = vld [vmem:[%s16450_s30 + $0x354] sm:$0x3]  ;;  %v16709_v19 = vcombine.low %v520_v55, %v523_v58  ;;  %v12801_v22 = vrot.slane %v305_v9, 10  ;;  %v527_v42 = vsel %vm16453_vm2, %v12800_v61, %v526_v53 }
  0x3d   : > { %v1561_v18 = vrot.slane %v1559_v7, 4  ;;  %v1365_v23 = vld [vmem:[%s16450_s30 + $0x318] sm:$0xe]  ;;  %v1366_v24 = vld [vmem:[%s16450_s30 + $0x31c] sm:$0xf]  ;;  %v16713_v26 = vcombine.low %v1553_v2, %v1556_v11  ;;  %v533_v28 = vrot.slane %v306_v15, 6  ;;  %v530_v46 = vsel %vm16453_vm2, %v528_v4, %v529_v5 }
  0x3e   : > { %v536_v29 = vrot.slane %v307_v17, 6  ;;  %v1367_v30 = vld [vmem:[%s16450_s30 + $0x320] sm:$0x1]  ;;  %v12938_v31 = vrot.slane %v1365_v23, 9  ;;  %v16719_v35 = vld [vmem:[%s21612_s1 + $0xa] sm:$0x3]  ;;  %v1560_v48 = vsel %vm16463_vm6, %v12904_v12, %v1559_v7  ;;  %v16756_v17 = vcombine.low %v527_v42, %v530_v46 }
  0x3f   : > { %21708 = vst [vmem:[#allocation6_spill] sm:$0xff] %v16713_v26  ;;  %v1878_v36 = vrot.slane %v1366_v24, 5  ;;  %v1881_v38 = vrot.slane %v1367_v30, 5  ;;  %v308_v40 = vld [vmem:[%s16450_s30 + $0x368] sm:$0xc]  ;;  %v535_v49 = vrot.slane %v533_v28, 4  ;;  %v1563_v53 = vsel %vm16463_vm6, %v1561_v18, %v1562_v14 }
  0x40   : > { %v309_v41 = vld [vmem:[%s16450_s30 + $0x36c] sm:$0xf]  ;;  %14540 = vmatmul.mubr.msk.bf16.gmra.mrb[16].mxu1 %vm609_vm5, %v16703_v10  ;;  %v310_v50 = vld [vmem:[%s16450_s30 + $0x370] sm:$0x3]  ;;  %v1368_v52 = vld [vmem:[%s16450_s30 + $0x334] sm:$0xe]  ;;  %v534_v61 = vsel %vm16453_vm2, %v12801_v22, %v533_v28  ;;  %v16758_v18 = vcombine.low %v1560_v48, %v1563_v53 }
  0x41   : > { %14694 = vmatmul.mubr.msk.bf16.vlgmr.msra.gmra.mrb[0].mxu0 %vm609_vm5, %v16661_v27  ;;  %14543 = vmatprep.mubr.msk.bf16.mxu1 %vm609_vm5, %v16709_v19  ;;  %v1880_v54 = vrot.slane %v1878_v36, 4  ;;  %v12802_v55 = vrot.slane %v308_v40, 10  ;;  %v540_v58 = vrot.slane %v309_v41, 6  ;;  %v1369_v59 = vld [vmem:[%s16450_s30 + $0x338] sm:$0xf]  ;;  %v537_v63 = vsel %vm16453_vm2, %v535_v49, %v536_v29 }
  0x42   : > { %14726 = vmatpush3.bf16.msra.mxu0 %v2589_v51  ;;  %14697 = vmatprep.mubr.msk.bf16.mxu0 %vm609_vm5, %v16713_v26  ;;  %v543_v2 = vrot.slane %v310_v50, 6  ;;  %v1370_v4 = vld [vmem:[%s16450_s30 + $0x33c] sm:$0x1]  ;;  %v1885_v5 = vrot.slane %v1369_v59, 5  ;;  %v311_v7 = vld [vmem:[%s16450_s30 + $0x384] sm:$0xc]  ;;  %v1879_v9 = vsel %vm16463_vm6, %v12938_v31, %v1878_v36  ;;  %v16762_v29 = vcombine.low %v534_v61, %v537_v63 }
  0x43   : > { %v1882_v51 = vsel %vm16463_vm6, %v1880_v54, %v1881_v38  ;;  %v542_v11 = vrot.slane %v540_v58, 4  ;;  %v12939_v12 = vrot.slane %v1368_v52, 9  ;;  %v312_v14 = vld [vmem:[%s16450_s30 + $0x388] sm:$0xf]  ;;  %v313_v15 = vld [vmem:[%s16450_s30 + $0x38c] sm:$0x3]  ;;  %16217 = vmatprep.subr.msk.bf16.mxu0 %vm383_vm0, %v16719_v35  ;;  %v541_v41 = vsel %vm16453_vm2, %v12802_v55, %v540_v58 }
  0x44   : > { %21709 = vst [vmem:[#allocation7_spill] sm:$0xff] %v16758_v18  ;;  %v1887_v22 = vrot.slane %v1885_v5, 4  ;;  %v1888_v23 = vrot.slane %v1370_v4, 5  ;;  %v1371_v24 = vld [vmem:[%s16450_s30 + $0x350] sm:$0xe]  ;;  %v12803_v30 = vrot.slane %v311_v7, 10  ;;  %v16765_v40 = vcombine.low %v1879_v9, %v1882_v51 }
  0x45   : > { %v1372_v28 = vld [vmem:[%s16450_s30 + $0x354] sm:$0xf]  ;;  %v547_v31 = vrot.slane %v312_v14, 6  ;;  %v550_v36 = vrot.slane %v313_v15, 6  ;;  %v1373_v38 = vld [vmem:[%s16450_s30 + $0x358] sm:$0x1]  ;;  %v544_v50 = vsel %vm16453_vm2, %v542_v11, %v543_v2  ;;  %v1886_v52 = vsel %vm16463_vm6, %v12939_v12, %v1885_v5 }
  0x46   : > { %21710 = vst [vmem:[#allocation8_spill] sm:$0xff] %v16765_v40  ;;  %v12940_v42 = vrot.slane %v1371_v24, 9  ;;  %v1892_v46 = vrot.slane %v1372_v28, 5  ;;  %v314_v48 = vld [vmem:[%s16450_s30 + $0x3a0] sm:$0xc]  ;;  %v1895_v54 = vrot.slane %v1373_v38, 5  ;;  %v1889_v55 = vsel %vm16463_vm6, %v1887_v22, %v1888_v23 }
  0x47   : > { %v315_v49 = vld [vmem:[%s16450_s30 + $0x3a4] sm:$0xf]  ;;  %v549_v53 = vrot.slane %v547_v31, 4  ;;  %v316_v59 = vld [vmem:[%s16450_s30 + $0x3a8] sm:$0x3]  ;;  %v548_v58 = vsel %vm16453_vm2, %v12803_v30, %v547_v31  ;;  %v12804_v7 = vrot.slane %v314_v48, 10  ;;  %v16801_v38 = vcombine.low %v541_v41, %v544_v50 }
  0x48   : > { %v1374_v61 = vld [vmem:[%s16450_s30 + $0x36c] sm:$0xe]  ;;  %14544 = vmatmul.mubr.msk.bf16.gmra.mrb[20].mxu1 %vm609_vm5, %v16756_v17  ;;  %v1894_v63 = vrot.slane %v1892_v46, 4  ;;  %v554_v2 = vrot.slane %v315_v49, 6  ;;  %v1375_v4 = vld [vmem:[%s16450_s30 + $0x370] sm:$0xf]  ;;  %v1893_v23 = vsel %vm16463_vm6, %v12940_v42, %v1892_v46  ;;  %v16803_v48 = vcombine.low %v1886_v52, %v1889_v55 }
  0x49   : > { %14698 = vmatmul.mubr.msk.bf16.gmra.mrb[4].mxu0 %vm609_vm5, %v16758_v18  ;;  %14547 = vmatprep.mubr.msk.bf16.mxu1 %vm609_vm5, %v16762_v29  ;;  %v551_v5 = vsel %vm16453_vm2, %v549_v53, %v550_v36  ;;  %v557_v9 = vrot.slane %v316_v59, 6  ;;  %v1376_v51 = vld [vmem:[%s16450_s30 + $0x374] sm:$0x1]  ;;  %v1899_v11 = vrot.slane %v1375_v4, 5  ;;  %v12941_v14 = vrot.slane %v1374_v61, 9 }
  0x4a   : > { %14701 = vmatprep.mubr.msk.bf16.mxu0 %vm609_vm5, %v16765_v40  ;;  %v556_v12 = vrot.slane %v554_v2, 4  ;;  %v251_v15 = vld [vmem:[%s16450_s30 + $0x154] sm:$0xc]  ;;  %v252_v22 = vld [vmem:[%s16450_s30 + $0x158] sm:$0xf]  ;;  %v1896_v24 = vsel %vm16463_vm6, %v1894_v63, %v1895_v54  ;;  %v1902_v30 = vrot.slane %v1376_v51, 5  ;;  %v16805_v49 = vcombine.low %v548_v58, %v551_v5 }
  0x4b   : > { %v1901_v28 = vrot.slane %v1899_v11, 4  ;;  %v253_v31 = vld [vmem:[%s16450_s30 + $0x15c] sm:$0x3]  ;;  %v1377_v36 = vld [vmem:[%s16450_s30 + $0x388] sm:$0xe]  ;;  %21711 = vst [vmem:[#allocation9_spill] sm:$0xff] %v16803_v48  ;;  %v555_v42 = vsel %vm16453_vm2, %v12804_v7, %v554_v2  ;;  %v16814_v50 = vcombine.low %v1893_v23, %v1896_v24  ;;  %v1900_v4 = vsel %vm16463_vm6, %v12941_v14, %v1899_v11 }
  0x4c   : > { %v388_v53 = vrot.slane %v252_v22, 6  ;;  %v16808_v59 = vld [vmem:[%s16450_s30 + $0x38c] sm:$0xf]  ;;  %v12783_v46 = vrot.slane %v251_v15, 10  ;;  %v391_v54 = vrot.slane %v253_v31, 6  ;;  %v558_v52 = vsel %vm16453_vm2, %v556_v12, %v557_v9 }
  0x4d   : > { %v1379_v61 = vld [vmem:[%s16450_s30 + $0x390] sm:$0x1]  ;;  %v1906_v41 = vrot.slane %v16808_v59, 5  ;;  %21712 = vst [vmem:[#allocation10_spill] sm:$0xff] %v16814_v50  ;;  %v12942_v58 = vrot.slane %v1377_v36, 9  ;;  %v1903_v2 = vsel %vm16463_vm6, %v1901_v28, %v1902_v30  ;;  %v16835_v11 = vcombine.low %v555_v42, %v558_v52 }
  0x4e   : > { %v390_v55 = vrot.slane %v388_v53, 4  ;;  %v255_v63 = vld [vmem:[%s16450_s30 + $0x174] sm:$0xf]  ;;  %v1909_v7 = vrot.slane %v1379_v61, 5  ;;  %v254_v51 = vld [vmem:[%s16450_s30 + $0x170] sm:$0xc]  ;;  %v389_v14 = vsel %vm16453_vm2, %v12783_v46, %v388_v53  ;;  %v16846_v31 = vcombine.low %v1900_v4, %v1903_v2 }
  0x4f   : > { %v1908_v5 = vrot.slane %v1906_v41, 4  ;;  %v256_v15 = vld [vmem:[%s16450_s30 + $0x178] sm:$0x3]  ;;  %v395_v9 = vrot.slane %v255_v63, 6  ;;  %v1380_v12 = vld [vmem:[%s16450_s30 + $0x3a4] sm:$0xe]  ;;  %v1907_v53 = vsel %vm16463_vm6, %v12942_v58, %v1906_v41 }
  0x50   : > { %14548 = vmatmul.mubr.msk.bf16.gmra.mrb[24].mxu1 %vm609_vm5, %v16801_v38  ;;  %v16829_v22 = vld [vmem:[%s16450_s30 + $0x3a8] sm:$0xf]  ;;  %v392_v23 = vsel %vm16453_vm2, %v390_v55, %v391_v54  ;;  %v1382_v24 = vld [vmem:[%s16450_s30 + $0x3ac] sm:$0x1]  ;;  %v257_v28 = vld [vmem:[%s16450_s30 + $0x18c] sm:$0xc] }
  0x51   : > { %14702 = vmatmul.mubr.msk.bf16.gmra.mrb[8].mxu0 %vm609_vm5, %v16803_v48  ;;  %14551 = vmatprep.mubr.msk.bf16.mxu1 %vm609_vm5, %v16805_v49  ;;  %v258_v30 = vld [vmem:[%s16450_s30 + $0x190] sm:$0xf]  ;;  %21713 = vst [vmem:[#allocation11_spill] sm:$0xff] %v16846_v31  ;;  %v12784_v36 = vrot.slane %v254_v51, 10  ;;  %v398_v42 = vrot.slane %v256_v15, 6  ;;  %v1913_v61 = vrot.slane %v16829_v22, 5  ;;  %v1910_v46 = vsel %vm16463_vm6, %v1908_v5, %v1909_v7 }
  0x52   : > { %14705 = vmatprep.mubr.msk.bf16.mxu0 %vm609_vm5, %v16814_v50  ;;  %v259_v52 = vld [vmem:[%s16450_s30 + $0x194] sm:$0x3]  ;;  %v12943_v54 = vrot.slane %v1380_v12, 9  ;;  %v402_v55 = vrot.slane %v258_v30, 6  ;;  %v1383_v63 = vld [vmem:[%s16450_s30 + $0x3c0] sm:$0xe]  ;;  %v12838_v4 = vcombine.low %v389_v14, %v392_v23  ;;  %v16861_v5 = vcombine.low %v1907_v53, %v1910_v46 }
  0x53   : > { %v16856_v50 = vld [vmem:[%s16450_s30 + $0x3c4] sm:$0xf]  ;;  %v397_v2 = vrot.slane %v395_v9, 4  ;;  %v1916_v51 = vrot.slane %v1382_v24, 5  ;;  %v12785_v15 = vrot.slane %v257_v28, 10  ;;  %v1915_v40 = vrot.slane %v1913_v61, 4 }
  0x54   : > { %21714 = vst [vmem:[#allocation12_spill] sm:$0xff] %v16856_v50  ;;  %v1385_v48 = vld [vmem:[%s16450_s30 + $0x3c8] sm:$0x1]  ;;  %v404_v18 = vrot.slane %v402_v55, 4  ;;  %v405_v26 = vrot.slane %v259_v52, 6  ;;  %v2172_v41 = vrot.slane %v16856_v50, 5  ;;  %v396_v23 = vsel %vm16453_vm2, %v12784_v36, %v395_v9 }
  0x55   : > { %v261_v58 = vld [vmem:[%s16450_s30 + $0x1ac] sm:$0xf]  ;;  %21715 = vst [vmem:[#allocation13_spill] sm:$0xff] %v16861_v5  ;;  %v12967_v7 = vrot.slane %v1383_v63, 9  ;;  %v2175_v12 = vrot.slane %v1385_v48, 5  ;;  %v399_v24 = vsel %vm16453_vm2, %v397_v2, %v398_v42  ;;  %v1914_v28 = vsel %vm16463_vm6, %v12943_v54, %v1913_v61 }
  0x56   : > { %v2174_v30 = vrot.slane %v2172_v41, 4  ;;  %v16864_v14 = vld [vmem:[%s16450_s30 + $0x3e0] sm:$0xf]  ;;  %v260_v52 = vld [vmem:[%s16450_s30 + $0x1a8] sm:$0xc]  ;;  %v409_v48 = vrot.slane %v261_v58, 6  ;;  %v1917_v9 = vsel %vm16463_vm6, %v1915_v40, %v1916_v51  ;;  %v403_v36 = vsel %vm16453_vm2, %v12785_v15, %v402_v55 }
  0x57   : > { %21716 = vst [vmem:[#allocation14_spill] sm:$0xff] %v16864_v14  ;;  %v264_v53 = vld [vmem:[%s16450_s30 + $0x1c8] sm:$0xf]  ;;  %v406_v42 = vsel %vm16453_vm2, %v404_v18, %v405_v26  ;;  %v262_v61 = vld [vmem:[%s16450_s30 + $0x1b0] sm:$0x3]  ;;  %v2173_v54 = vsel %vm16463_vm6, %v12967_v7, %v2172_v41  ;;  %v12839_v26 = vcombine.low %v396_v23, %v399_v24  ;;  %v1122_v18 = vsel %vm383_vm0, %v16504_v56, 0 }
  0x58   : > { %14552 = vmatmul.mubr.msk.bf16.gmra.mrb[28].mxu1 %vm609_vm5, %v16835_v11  ;;  %v1386_v46 = vld [vmem:[%s16450_s30 + $0x3dc] sm:$0xe]  ;;  %v2176_v40 = vsel %vm16463_vm6, %v2174_v30, %v2175_v12  ;;  %v1388_v63 = vld [vmem:[%s16450_s30 + $0x3e4] sm:$0x1]  ;;  %v416_v55 = vrot.slane %v264_v53, 6  ;;  %v12786_v51 = vrot.slane %v260_v52, 10  ;;  %v12840_v41 = vcombine.low %v403_v36, %v406_v42 }
  0x59   : > { %14706 = vmatmul.mubr.msk.bf16.gmra.mrb[12].mxu0 %vm609_vm5, %v16846_v31  ;;  %14557 = vmatprep.mubr.msk.bf16.mxu1 %vm609_vm5, %v12838_v4  ;;  %v2179_v4 = vrot.slane %v16864_v14, 5  ;;  %v16896_v2 = vld [vmem:[%s16450_s30 + $0x3fc] sm:$0xf]  ;;  %v263_v15 = vld [vmem:[%s16450_s30 + $0x1c4] sm:$0xc]  ;;  %v411_v7 = vrot.slane %v409_v48, 4  ;;  %v12974_v31 = vcombine.low %v2173_v54, %v2176_v40 }
  0x5a   : > { %14709 = vmatprep.mubr.msk.bf16.mxu0 %vm609_vm5, %v16861_v5  ;;  %v265_v58 = vld [vmem:[%s16450_s30 + $0x1cc] sm:$0x3]  ;;  %v16902_v5 = vcombine.low %v1914_v28, %v1917_v9  ;;  %v1389_v12 = vld [vmem:[%s16450_s30 + $0x3f8] sm:$0xe]  ;;  %v1391_v30 = vld [vmem:[%s16450_s30 + $0x400] sm:$0x1] }
  0x5b   : > { %v2186_v53 = vrot.slane %v16896_v2, 5  ;;  %v412_v14 = vrot.slane %v262_v61, 6  ;;  %v12968_v23 = vrot.slane %v1386_v46, 9  ;;  %v2182_v24 = vrot.slane %v1388_v63, 5  ;;  %v267_v60 = vld [vmem:[%s16450_s30 + $0x1e4] sm:$0xf] }
  0x5c   : > { %21717 = vst [vmem:[#allocation15_spill] sm:$0xff] %v16902_v5  ;;  %v2181_v50 = vrot.slane %v2179_v4, 4  ;;  %v12787_v56 = vrot.slane %v263_v15, 10  ;;  %v418_v52 = vrot.slane %v416_v55, 4  ;;  %v419_v27 = vrot.slane %v265_v58, 6 }
  0x5d   : > { %v12969_v28 = vrot.slane %v1389_v12, 9  ;;  %v2188_v9 = vrot.slane %v2186_v53, 4  ;;  %v2189_v36 = vrot.slane %v1391_v30, 5  ;;  %v16909_v42 = vld [vmem:[%s16450_s30 + $0x418] sm:$0xf]  ;;  %v410_v61 = vsel %vm16453_vm2, %v12786_v51, %v409_v48 }
  0x5e   : > { %v16913_v39 = vld [vmem:[%s16450_s30 + $0x434] sm:$0xf]  ;;  %v413_v46 = vsel %vm16453_vm2, %v411_v7, %v412_v14  ;;  %v2180_v54 = vsel %vm16463_vm6, %v12968_v23, %v2179_v4  ;;  %v266_v40 = vld [vmem:[%s16450_s30 + $0x1e0] sm:$0xc]  ;;  %v423_v63 = vrot.slane %v267_v60, 6  ;;  %v417_v48 = vsel %vm16453_vm2, %v12787_v56, %v416_v55 }
  0x5f   : > { %v420_v14 = vsel %vm16453_vm2, %v418_v52, %v419_v27  ;;  %v2193_v4 = vrot.slane %v16909_v42, 5  ;;  %v2187_v60 = vsel %vm16463_vm6, %v12969_v28, %v2186_v53  ;;  %v2190_v51 = vsel %vm16463_vm6, %v2188_v9, %v2189_v36  ;;  %v1392_v15 = vld [vmem:[%s16450_s30 + $0x414] sm:$0xe]  ;;  %v1395_v55 = vld [vmem:[%s16450_s30 + $0x430] sm:$0xe] }
  0x60   : > { %14558 = vmatmul.mubr.msk.bf16.vlgmr.msra.gmra.mrb[0].mxu1 %vm609_vm5, %v12839_v26  ;;  %v2183_v26 = vsel %vm16463_vm6, %v2181_v50, %v2182_v24  ;;  %v2200_v58 = vrot.slane %v16913_v39, 5  ;;  %v12841_v50 = vcombine.low %v410_v61, %v413_v46  ;;  %v1397_v7 = vld [vmem:[%s16450_s30 + $0x438] sm:$0x1]  ;;  %v12842_v27 = vcombine.low %v417_v48, %v420_v14 }
  0x61   : > { %14590 = vmatpush3.bf16.msra.mxu1 %v1122_v18  ;;  %14710 = vmatmul.mubr.msk.bf16.gmra.mrb[16].mxu0 %vm609_vm5, %v16902_v5  ;;  %v268_v18 = vld [vmem:[%s16450_s30 + $0x1e8] sm:$0x3]  ;;  %v12975_v12 = vcombine.low %v2180_v54, %v2183_v26  ;;  %v425_v30 = vrot.slane %v423_v63, 4  ;;  %v12976_v24 = vcombine.low %v2187_v60, %v2190_v51  ;;  %v12970_v56 = vrot.slane %v1392_v15, 9  ;;  %v16944_v5 = vld [vmem:[%s16450_s30 + $0x450] sm:$0xf] }
  0x62   : > { %14561 = vmatprep.mubr.msk.bf16.mxu1 %vm609_vm5, %v12840_v41  ;;  %14713 = vmatprep.mubr.msk.bf16.mxu0 %vm609_vm5, %v12974_v31  ;;  %v1394_v31 = vld [vmem:[%s16450_s30 + $0x41c] sm:$0x1]  ;;  %v12788_v41 = vrot.slane %v266_v40, 10  ;;  %v426_v23 = vrot.slane %v268_v18, 6  ;;  %v2195_v52 = vrot.slane %v2193_v4, 4  ;;  %v12971_v28 = vrot.slane %v1395_v55, 9 }
  0x63   : > { %v2196_v53 = vrot.slane %v1394_v31, 5  ;;  %v2202_v9 = vrot.slane %v2200_v58, 4  ;;  %v2203_v36 = vrot.slane %v1397_v7, 5  ;;  %v2194_v54 = vsel %vm16463_vm6, %v12970_v56, %v2193_v4  ;;  %v1400_v18 = vld [vmem:[%s16450_s30 + $0x454] sm:$0x1] }
  0x64   : > { %v424_v61 = vsel %vm16453_vm2, %v12788_v41, %v423_v63  ;;  %v427_v46 = vsel %vm16453_vm2, %v425_v30, %v426_v23  ;;  %v2207_v26 = vrot.slane %v16944_v5, 5  ;;  %v2201_v48 = vsel %vm16463_vm6, %v12971_v28, %v2200_v58  ;;  %v1398_v63 = vld [vmem:[%s16450_s30 + $0x44c] sm:$0xe]  ;;  %v12905_v60 = vld [vmem:[%s21612_s1 + $0x2] sm:$0x3] }
  0x65   : > { %v2197_v40 = vsel %vm16463_vm6, %v2195_v52, %v2196_v53  ;;  %v2204_v14 = vsel %vm16463_vm6, %v2202_v9, %v2203_v36  ;;  %v12843_v4 = vcombine.low %v424_v61, %v427_v46  ;;  %16212 = vmatprep.subr.msk.bf16.mxu1 %vm383_vm0, %v12905_v60  ;;  %v12972_v31 = vrot.slane %v1398_v63, 9  ;;  %v16979_v7 = vld [vmem:[%s16450_s30 + $0x15c] sm:$0xf]  ;;  %v2448_v56 = vld [vmem:[%s16450_s30 + $0x198] sm:$0xf] }
  0x66   : > { %v12977_v51 = vcombine.low %v2194_v54, %v2197_v40  ;;  %v12978_v15 = vcombine.low %v2201_v48, %v2204_v14  ;;  %v2210_v58 = vrot.slane %v1400_v18, 5  ;;  %v2447_v23 = vld [vmem:[%s16450_s30 + $0x17c] sm:$0xf]  ;;  %v2829_v53 = vsel %vm383_vm0, %v16719_v35, 0  ;;  %v17012_v28 = vld [vmem:[%s16450_s30 + $0x1b0] sm:$0xf] }
  0x67   : > { %v2208_v41 = vsel %vm16463_vm6, %v12972_v31, %v2207_v26  ;;  %v2449_v35 = vld [vmem:[%s16450_s30 + $0x1b4] sm:$0xf]  ;;  %v2450_v9 = vld [vmem:[%s16450_s30 + $0x1d0] sm:$0xf]  ;;  %v1663_v61 = vsel %vm383_vm0, %v12905_v60, 0 }
  0x68   : > { %14562 = vmatmul.mubr.msk.bf16.gmra.mrb[4].mxu1 %vm609_vm5, %v12841_v50  ;;  %v2209_v50 = vrot.slane %v2207_v26, 4  ;;  %v13000_v36 = vcombine.low %v17012_v28, %v2449_v35  ;;  %v17028_v46 = vld [vmem:[%s16450_s30 + $0x1e8] sm:$0xf]  ;;  %v2451_v54 = vld [vmem:[%s16450_s30 + $0x1ec] sm:$0xf] }
  0x69   : > { %14714 = vmatmul.mubr.msk.bf16.gmra.mrb[20].mxu0 %vm609_vm5, %v12975_v12  ;;  %14565 = vmatprep.mubr.msk.bf16.mxu1 %vm609_vm5, %v12842_v27  ;;  %v2446_v12 = vld [vmem:[%s16450_s30 + $0x160] sm:$0xf]  ;;  %v2452_v40 = vld [vmem:[%s16450_s30 + $0x208] sm:$0xf]  ;;  %v13002_v26 = vcombine.low %v17028_v46, %v2451_v54  ;;  %v16340_v48 = vld [vmem:[%s16450_s30 + $0x204] sm:$0xf] }
  0x6a   : > { %14717 = vmatprep.mubr.msk.bf16.mxu0 %vm609_vm5, %v12976_v24  ;;  %v2211_v55 = vsel %vm16463_vm6, %v2209_v50, %v2210_v58  ;;  %v12997_v30 = vcombine.low %v16979_v7, %v2446_v12  ;;  %v16994_v24 = vld [vmem:[%s16450_s30 + $0x194] sm:$0xf]  ;;  %v13003_v14 = vcombine.low %v16340_v48, %v2452_v40  ;;  %v2454_v63 = vld [vmem:[%s16450_s30 + $0x240] sm:$0xf]  ;;  %v2456_v31 = vld [vmem:[%s16450_s30 + $0x278] sm:$0xf] }
  0x6b   : > { %v12979_v27 = vcombine.low %v2208_v41, %v2211_v55  ;;  %v16341_v18 = vld [vmem:[%s16450_s30 + $0x220] sm:$0xf]  ;;  %v16343_v50 = vld [vmem:[%s16450_s30 + $0x258] sm:$0xf]  ;;  %v16344_v41 = vld [vmem:[%s16450_s30 + $0x274] sm:$0xf] }
  0x6c   : > { %v17066_v55 = vcombine.low %v16344_v41, %v2456_v31  ;;  %v2458_v12 = vld [vmem:[%s16450_s30 + $0x2b0] sm:$0xf]  ;;  %v317_v35 = vld [vmem:[%s16450_s30 + $0x3bc] sm:$0xc]  ;;  %v324_v54 = vld [vmem:[%s16450_s30 + $0x3f8] sm:$0xf] }
  0x6d   : > { %v322_v48 = vld [vmem:[%s16450_s30 + $0x3e0] sm:$0x3]  ;;  %v327_v41 = vld [vmem:[%s16450_s30 + $0x414] sm:$0xf] }
  0x70   : > { %14566 = vmatmul.mubr.msk.bf16.gmra.mrb[8].mxu1 %vm609_vm5, %v12843_v4  ;;  %v16342_v4 = vld [vmem:[%s16450_s30 + $0x23c] sm:$0xf] }
  0x71   : > { %14718 = vmatmul.mubr.msk.bf16.gmra.mrb[24].mxu0 %vm609_vm5, %v12977_v51  ;;  %14569 = vmatprep.mubr.msk.bf16.mxu1 %vm609_vm5, %v16480_v34  ;;  %v16990_v34 = vld [vmem:[%s16450_s30 + $0x178] sm:$0xf]  ;;  %v17050_v51 = vcombine.low %v16342_v4, %v2454_v63  ;;  %v325_v63 = vld [vmem:[%s16450_s30 + $0x3fc] sm:$0x3] }
  0x72   : > { %14721 = vmatprep.mubr.msk.bf16.mxu0 %vm609_vm5, %v12978_v15  ;;  %v12998_v52 = vcombine.low %v16990_v34, %v2447_v23  ;;  %v2455_v15 = vld [vmem:[%s16450_s30 + $0x25c] sm:$0xf]  ;;  %v16347_v23 = vld [vmem:[%s16450_s30 + $0x2ac] sm:$0xf] }
  0x73   : > { %v17063_v58 = vcombine.low %v16343_v50, %v2455_v15 }
  0x78   : > { %14570 = vmatmul.mubr.msk.bf16.gmra.mrb[12].mxu1 %vm609_vm5, %v16508_v57  ;;  %v12999_v57 = vcombine.low %v16994_v24, %v2448_v56  ;;  %v17086_v56 = vcombine.low %v16347_v23, %v2458_v12  ;;  %v330_v12 = vld [vmem:[%s16450_s30 + $0x430] sm:$0xf]  ;;  %v1064_v23 = vrot.slane %v327_v41, 6 }
  0x79   : > { %14722 = vmatmul.mubr.msk.bf16.gmra.mrb[28].mxu0 %vm609_vm5, %v12979_v27  ;;  %14573 = vmatprep.mubr.msk.bf16.mxu1 %vm609_vm5, %v16535_v20  ;;  %v17006_v20 = vld [vmem:[%s21612_s1 + $0x10] sm:$0x3]  ;;  %v16345_v27 = vld [vmem:[%s21612_s1 + $0x8] sm:$0x3] }
  0x7a   : > { %14727 = vmatprep.mubr.msk.bf16.mxu0 %vm609_vm5, %v12997_v30 }
  0x80   : > { %14574 = vmatmul.mubr.msk.bf16.gmra.mrb[16].mxu1 %vm609_vm5, %v16560_v37  ;;  %v17017_v37 = vld [vmem:[%s16450_s30 + $0x1cc] sm:$0xf] }
  0x81   : > { %14728 = vmatmul.mubr.msk.bf16.vlgmr.msra.gmra.mrb[0].mxu0 %vm609_vm5, %v12998_v52  ;;  %14577 = vmatprep.mubr.msk.bf16.mxu1 %vm609_vm5, %v16583_v62  ;;  %v13001_v62 = vcombine.low %v17017_v37, %v2450_v9  ;;  %v2460_v52 = vld [vmem:[%s16450_s30 + $0x2e8] sm:$0xf] }
  0x82   : > { %14760 = vmatpush3.bf16.msra.mxu0 %v2829_v53  ;;  %14731 = vmatprep.mubr.msk.bf16.mxu0 %vm609_vm5, %v12999_v57  ;;  %v17102_v53 = vcombine.low %v16667_v32, %v2460_v52  ;;  %v319_v32 = vld [vmem:[%s16450_s30 + $0x3c4] sm:$0x3]  ;;  %v328_v52 = vld [vmem:[%s16450_s30 + $0x418] sm:$0x3] }
  0x83   : > { %16218 = vmatprep.subr.msk.bf16.mxu0 %vm383_vm0, %v17006_v20 }
  0x88   : > { %14578 = vmatmul.mubr.msk.bf16.gmra.mrb[20].mxu1 %vm609_vm5, %v16602_v21  ;;  %v2453_v21 = vld [vmem:[%s16450_s30 + $0x224] sm:$0xf] }
  0x89   : > { %14732 = vmatmul.mubr.msk.bf16.gmra.mrb[4].mxu0 %vm609_vm5, %v13000_v36  ;;  %14581 = vmatprep.mubr.msk.bf16.mxu1 %vm609_vm5, %v16627_v47  ;;  %v17047_v60 = vcombine.low %v16341_v18, %v2453_v21  ;;  %v323_v21 = vld [vmem:[%s16450_s30 + $0x3f4] sm:$0xc] }
  0x8a   : > { %14735 = vmatprep.mubr.msk.bf16.mxu0 %vm609_vm5, %v13001_v62  ;;  %v321_v62 = vld [vmem:[%s16450_s30 + $0x3dc] sm:$0xf]  ;;  %v12862_v31 = vrot.slane %v323_v21, 10  ;;  %v332_v21 = vld [vmem:[%s16450_s30 + $0x448] sm:$0xc] }
  0x90   : > { %14582 = vmatmul.mubr.msk.bf16.gmra.mrb[24].mxu1 %vm609_vm5, %v16653_v13 }
  0x91   : > { %14736 = vmatmul.mubr.msk.bf16.gmra.mrb[8].mxu0 %vm609_vm5, %v13002_v26  ;;  %14585 = vmatprep.mubr.msk.bf16.mxu1 %vm609_vm5, %v16669_v33  ;;  %v320_v26 = vld [vmem:[%s16450_s30 + $0x3d8] sm:$0xc] }
  0x92   : > { %14739 = vmatprep.mubr.msk.bf16.mxu0 %vm609_vm5, %v13003_v14  ;;  %v12861_v4 = vrot.slane %v320_v26, 10 }
  0x98   : > { %14586 = vmatmul.mubr.msk.bf16.gmra.mrb[28].mxu1 %vm609_vm5, %v16703_v10 }
  0x99   : > { %14740 = vmatmul.mubr.msk.bf16.gmra.mrb[12].mxu0 %vm609_vm5, %v17047_v60  ;;  %14591 = vmatprep.mubr.msk.bf16.mxu1 %vm609_vm5, %v16627_v47  ;;  %v2457_v47 = vld [vmem:[%s16450_s30 + $0x294] sm:$0xf] }
  0x9a   : > { %14743 = vmatprep.mubr.msk.bf16.mxu0 %vm609_vm5, %v17050_v51 }
  0xa0   : > { %14592 = vmatmul.mubr.msk.bf16.vlgmr.msra.gmra.mrb[0].mxu1 %vm609_vm5, %v16653_v13  ;;  %v16346_v13 = vld [vmem:[%s16450_s30 + $0x290] sm:$0xf] }
  0xa1   : > { %14624 = vmatpush3.bf16.msra.mxu1 %v1663_v61  ;;  %14744 = vmatmul.mubr.msk.bf16.gmra.mrb[16].mxu0 %vm609_vm5, %v17063_v58  ;;  %v17083_v30 = vcombine.low %v16346_v13, %v2457_v47  ;;  %v1046_v61 = vrot.slane %v319_v32, 6  ;;  %v3069_v47 = vsel %vm383_vm0, %v17006_v20, 0 }
  0xa2   : > { %14595 = vmatprep.mubr.msk.bf16.mxu1 %vm609_vm5, %v16669_v33  ;;  %14747 = vmatprep.mubr.msk.bf16.mxu0 %vm609_vm5, %v17066_v55  ;;  %v2459_v33 = vld [vmem:[%s16450_s30 + $0x2cc] sm:$0xf] }
  0xa3   : > { %16214 = vmatprep.subr.msk.bf16.mxu1 %vm383_vm0, %v16345_v27  ;;  %v17099_v57 = vcombine.low %v16622_v44, %v2459_v33  ;;  %v17145_v27 = vld [vmem:[%s21612_s1 + $0x2a] sm:$0x3]  ;;  %v326_v33 = vld [vmem:[%s16450_s30 + $0x410] sm:$0xc] }
  0xa8   : > { %14596 = vmatmul.mubr.msk.bf16.gmra.mrb[4].mxu1 %vm609_vm5, %v16703_v10  ;;  %v318_v10 = vld [vmem:[%s16450_s30 + $0x3c0] sm:$0xf] }
  0xa9   : > { %14748 = vmatmul.mubr.msk.bf16.gmra.mrb[20].mxu0 %vm609_vm5, %v17083_v30  ;;  %14599 = vmatprep.mubr.msk.bf16.mxu1 %vm609_vm5, %v16709_v19  ;;  %v2461_v19 = vld [vmem:[%s16450_s30 + $0x304] sm:$0xf]  ;;  %v1043_v44 = vrot.slane %v318_v10, 6  ;;  %v1071_v10 = vrot.slane %v330_v12, 6 }
  0xaa   : > { %14751 = vmatprep.mubr.msk.bf16.mxu0 %vm609_vm5, %v17086_v56  ;;  %v17117_v9 = vcombine.low %v16696_v1, %v2461_v19  ;;  %v329_v19 = vld [vmem:[%s16450_s30 + $0x42c] sm:$0xc] }
  0xab   : > { %v1045_v36 = vrot.slane %v1043_v44, 4 }
  0xad   : > { %v1047_v40 = vsel %vm16453_vm2, %v1045_v36, %v1046_v61  ;;  %v1066_v36 = vrot.slane %v1064_v23, 4  ;;  %v12864_v61 = vrot.slane %v329_v19, 10 }
  0xb0   : > { %14600 = vmatmul.mubr.msk.bf16.gmra.mrb[8].mxu1 %vm609_vm5, %v16756_v17  ;;  %v12860_v17 = vrot.slane %v317_v35, 10 }
  0xb1   : > { %14752 = vmatmul.mubr.msk.bf16.gmra.mrb[24].mxu0 %vm609_vm5, %v17099_v57  ;;  %14603 = vmatprep.mubr.msk.bf16.mxu1 %vm609_vm5, %v16762_v29  ;;  %v1050_v29 = vrot.slane %v321_v62, 6  ;;  %v1073_v62 = vrot.slane %v1071_v10, 4 }
  0xb2   : > { %14755 = vmatprep.mubr.msk.bf16.mxu0 %vm609_vm5, %v17102_v53  ;;  %v1044_v1 = vsel %vm16453_vm2, %v12860_v17, %v1043_v44  ;;  %v331_v44 = vld [vmem:[%s16450_s30 + $0x434] sm:$0x3]  ;;  %v12863_v17 = vrot.slane %v326_v33, 10  ;;  %v1323_v33 = vld [vmem:[%s16450_s30 + $0x190] sm:$0xe] }
  0xb3   : > { %v12867_v18 = vcombine.low %v1044_v1, %v1047_v40  ;;  %v1052_v15 = vrot.slane %v1050_v29, 4  ;;  %v1051_v13 = vsel %vm16453_vm2, %v12861_v4, %v1050_v29  ;;  %v333_v29 = vld [vmem:[%s16450_s30 + $0x44c] sm:$0xf]  ;;  %v1319_v4 = vld [vmem:[%s16450_s30 + $0x160] sm:$0x1] }
  0xb4   : > { %v1065_v1 = vsel %vm16453_vm2, %v12863_v17, %v1064_v23  ;;  %v1078_v26 = vrot.slane %v333_v29, 6  ;;  %v1457_v41 = vrot.slane %v1319_v4, 5  ;;  %v1320_v23 = vld [vmem:[%s16450_s30 + $0x174] sm:$0xe]  ;;  %v12891_v17 = vrot.slane %v1323_v33, 9 }
  0xb5   : > { %v1328_v29 = vld [vmem:[%s16450_s30 + $0x1b4] sm:$0x1]  ;;  %v16348_v4 = vld [vmem:[%s16450_s30 + $0x31c] sm:$0xf] }
  0xb8   : > { %14604 = vmatmul.mubr.msk.bf16.gmra.mrb[12].mxu1 %vm609_vm5, %v16801_v38  ;;  %v1057_v38 = vrot.slane %v324_v54, 6  ;;  %v1074_v54 = vrot.slane %v331_v44, 6  ;;  %v12890_v44 = vrot.slane %v1320_v23, 9  ;;  %v16349_v23 = vld [vmem:[%s16450_s30 + $0x338] sm:$0xf] }
  0xb9   : > { %14756 = vmatmul.mubr.msk.bf16.gmra.mrb[28].mxu0 %vm609_vm5, %v17117_v9  ;;  %14607 = vmatprep.mubr.msk.bf16.mxu1 %vm609_vm5, %v16805_v49  ;;  %v1053_v49 = vrot.slane %v322_v48, 6  ;;  %v1454_v48 = vrot.slane %v16979_v7, 5 }
  0xba   : > { %14761 = vmatprep.mubr.msk.bf16.mxu0 %vm609_vm5, %v13003_v14  ;;  %v1059_v50 = vrot.slane %v1057_v38, 4  ;;  %v1060_v14 = vrot.slane %v325_v63, 6  ;;  %v334_v63 = vld [vmem:[%s16450_s30 + $0x450] sm:$0x3] }
  0xbb   : > { %v1054_v20 = vsel %vm16453_vm2, %v1052_v15, %v1053_v49  ;;  %v1081_v7 = vrot.slane %v334_v63, 6  ;;  %v1478_v63 = vrot.slane %v1328_v29, 5  ;;  %v2469_v29 = vld [vmem:[%s16450_s30 + $0x3e4] sm:$0xf] }
  0xbc   : > { %v12868_v35 = vcombine.low %v1051_v13, %v1054_v20 }
  0xc0   : > { %14608 = vmatmul.mubr.msk.bf16.gmra.mrb[16].mxu1 %vm609_vm5, %v16835_v11  ;;  %v1058_v11 = vsel %vm16453_vm2, %v12862_v31, %v1057_v38  ;;  %v1072_v38 = vsel %vm16453_vm2, %v12864_v61, %v1071_v10  ;;  %v12865_v31 = vrot.slane %v332_v21, 10 }
  0xc1   : > { %14762 = vmatmul.mubr.msk.bf16.vlgmr.msra.gmra.mrb[0].mxu0 %vm609_vm5, %v17047_v60  ;;  %14611 = vmatprep.mubr.msk.bf16.mxu1 %vm609_vm5, %v12867_v18  ;;  %v1061_v60 = vsel %vm16453_vm2, %v1059_v50, %v1060_v14  ;;  %v1317_v18 = vld [vmem:[%s16450_s30 + $0x158] sm:$0xe]  ;;  %v1080_v50 = vrot.slane %v1078_v26, 4  ;;  %v1456_v14 = vrot.slane %v1454_v48, 4 }
  0xc2   : > { %14794 = vmatpush3.bf16.msra.mxu0 %v3069_v47  ;;  %14765 = vmatprep.mubr.msk.bf16.mxu0 %vm609_vm5, %v17050_v51  ;;  %v12869_v32 = vcombine.low %v1058_v11, %v1061_v60  ;;  %v1067_v51 = vrot.slane %v328_v52, 6  ;;  %v1461_v47 = vrot.slane %v16990_v34, 5  ;;  %v1079_v12 = vsel %vm16453_vm2, %v12865_v31, %v1078_v26  ;;  %v1322_v11 = vld [vmem:[%s16450_s30 + $0x17c] sm:$0x1]  ;;  %v1325_v52 = vld [vmem:[%s16450_s30 + $0x198] sm:$0x1] }
  0xc3   : > { %16228 = vmatprep.subr.msk.bf16.mxu0 %vm383_vm0, %v17145_v27  ;;  %v1082_v13 = vsel %vm16453_vm2, %v1080_v50, %v1081_v7  ;;  %v1458_v34 = vsel %vm16463_vm6, %v1456_v14, %v1457_v41  ;;  %v1331_v26 = vld [vmem:[%s16450_s30 + $0x1d0] sm:$0x1]  ;;  %v1489_v50 = vrot.slane %v17028_v46, 5  ;;  %v17233_v7 = vld [vmem:[%s21612_s1 + $0x18] sm:$0x3] }
  0xc4   : > { %v1068_v40 = vsel %vm16453_vm2, %v1066_v36, %v1067_v51  ;;  %v12872_v60 = vcombine.low %v1079_v12, %v1082_v13  ;;  %v1463_v10 = vrot.slane %v1461_v47, 4  ;;  %v1471_v36 = vrot.slane %v1325_v52, 5  ;;  %v2463_v46 = vld [vmem:[%s16450_s30 + $0x33c] sm:$0xf]  ;;  %v1334_v12 = vld [vmem:[%s16450_s30 + $0x1ec] sm:$0x1] }
  0xc5   : > { %v12870_v15 = vcombine.low %v1065_v1, %v1068_v40  ;;  %v1475_v51 = vrot.slane %v17012_v28, 5  ;;  %v1462_v61 = vsel %vm16463_vm6, %v12890_v44, %v1461_v47  ;;  %v2462_v1 = vld [vmem:[%s16450_s30 + $0x320] sm:$0xf]  ;;  %v1329_v40 = vld [vmem:[%s16450_s30 + $0x1c8] sm:$0xe]  ;;  %v1485_v31 = vrot.slane %v1331_v26, 5 }
  0xc6   : > { %v1332_v47 = vld [vmem:[%s16450_s30 + $0x1e4] sm:$0xe]  ;;  %v2464_v13 = vld [vmem:[%s16450_s30 + $0x358] sm:$0xf]  ;;  %v1492_v33 = vrot.slane %v1334_v12, 5 }
  0xc7   : > { %v16350_v52 = vld [vmem:[%s16450_s30 + $0x354] sm:$0xf]  ;;  %v3703_v26 = vld [vmem:[%s16450_s30 + $0x1fc] sm:$0xf] }
  0xc8   : > { %14612 = vmatmul.mubr.msk.bf16.gmra.mrb[20].mxu1 %vm609_vm5, %v12868_v35  ;;  %v1464_v35 = vrot.slane %v1322_v11, 5  ;;  %v13031_v11 = vcombine.low %v16349_v23, %v2463_v46  ;;  %v3709_v46 = vld [vmem:[%s16450_s30 + $0x234] sm:$0xf]  ;;  %v3708_v23 = vld [vmem:[%s16450_s30 + $0x230] sm:$0x8] }
  0xc9   : > { %14766 = vmatmul.mubr.msk.bf16.gmra.mrb[4].mxu0 %vm609_vm5, %v17063_v58  ;;  %14615 = vmatprep.mubr.msk.bf16.mxu1 %vm609_vm5, %v12869_v32  ;;  %v1075_v58 = vsel %vm16453_vm2, %v1073_v62, %v1074_v54  ;;  %v1326_v54 = vld [vmem:[%s16450_s30 + $0x1ac] sm:$0xe]  ;;  %v3705_v12 = vld [vmem:[%s16450_s30 + $0x214] sm:$0x8] }
  0xca   : > { %14769 = vmatprep.mubr.msk.bf16.mxu0 %vm609_vm5, %v17066_v55  ;;  %v12871_v49 = vcombine.low %v1072_v38, %v1075_v58  ;;  %v12889_v55 = vrot.slane %v1317_v18, 9  ;;  %v1465_v62 = vsel %vm16463_vm6, %v1463_v10, %v1464_v35  ;;  %v1477_v38 = vrot.slane %v1475_v51, 4  ;;  %v2465_v35 = vld [vmem:[%s16450_s30 + $0x374] sm:$0xf] }
  0xcb   : > { %v12892_v21 = vrot.slane %v1326_v54, 9  ;;  %v13032_v10 = vcombine.low %v16350_v52, %v2464_v13  ;;  %v21724_v54 = vld [vmem:[#allocation8_spill] sm:$0xff]  ;;  %v3707_v13 = vld [vmem:[%s16450_s30 + $0x21c] sm:$0x7] }
  0xcc   : > { %v1455_v20 = vsel %vm16463_vm6, %v12889_v55, %v1454_v48  ;;  %v12907_v48 = vcombine.low %v1462_v61, %v1465_v62  ;;  %v1479_v55 = vsel %vm16463_vm6, %v1477_v38, %v1478_v63  ;;  %v2467_v61 = vld [vmem:[%s16450_s30 + $0x3ac] sm:$0xf]  ;;  %v21727_v38 = vld [vmem:[#allocation10_spill] sm:$0xff]  ;;  %v2472_v63 = vld [vmem:[%s16450_s30 + $0x438] sm:$0xf]  ;;  %v3933_v52 = vrot.slane %v3707_v13, 7 }
  0xcd   : > { %v12906_v19 = vcombine.low %v1455_v20, %v1458_v34  ;;  %v1476_v14 = vsel %vm16463_vm6, %v12892_v21, %v1475_v51  ;;  %v1491_v20 = vrot.slane %v1489_v50, 4  ;;  %v13035_v62 = vcombine.low %v16829_v22, %v2467_v61  ;;  %v21722_v22 = vld [vmem:[#allocation7_spill] sm:$0xff] }
  0xce   : > { %v12909_v34 = vcombine.low %v1476_v14, %v1479_v55  ;;  %v3923_v21 = vrot.slane %v3703_v26, 7  ;;  %v21728_v14 = vmov 0  ;;  %v21731_v55 = vld [vmem:[#allocation11_spill] sm:$0xff] }
  0xcf   : > { %v1493_v44 = vsel %vm16463_vm6, %v1491_v20, %v1492_v33  ;;  %v21729_v14 = vsel %vm17354_vm9, 4294967295, %v21728_v14  ;;  %v3937_v20 = vrot.slane %v3709_v46, 7  ;;  %v3711_v61 = vld [vmem:[%s16450_s30 + $0x24c] sm:$0x8] }
  0xd0   : > { %14616 = vmatmul.mubr.msk.bf16.gmra.mrb[24].mxu1 %vm609_vm5, %v12870_v15  ;;  %v13030_v15 = vcombine.low %v16348_v4, %v2462_v1  ;;  %v3704_v4 = vld [vmem:[%s16450_s30 + $0x200] sm:$0x7] }
  0xd1   : > { %14770 = vmatmul.mubr.msk.bf16.gmra.mrb[8].mxu0 %vm609_vm5, %v17083_v30  ;;  %14619 = vmatprep.mubr.msk.bf16.mxu1 %vm609_vm5, %v12871_v49  ;;  %v1468_v30 = vrot.slane %v16994_v24, 5  ;;  %v1482_v24 = vrot.slane %v17017_v37, 5  ;;  %v12893_v49 = vrot.slane %v1329_v40, 9 }
  0xd2   : > { %14773 = vmatprep.mubr.msk.bf16.mxu0 %vm609_vm5, %v17086_v56 }
  0xd3   : > { %v1470_v32 = vrot.slane %v1468_v30, 4  ;;  %v1469_v28 = vsel %vm16463_vm6, %v12891_v17, %v1468_v30  ;;  %v1484_v58 = vrot.slane %v1482_v24, 4  ;;  %v1483_v41 = vsel %vm16463_vm6, %v12893_v49, %v1482_v24 }
  0xd5   : > { %v1472_v37 = vsel %vm16463_vm6, %v1470_v32, %v1471_v36  ;;  %v2466_v32 = vld [vmem:[%s16450_s30 + $0x390] sm:$0xf] }
  0xd6   : > { %v12908_v18 = vcombine.low %v1469_v28, %v1472_v37  ;;  %v16351_v36 = vld [vmem:[%s16450_s30 + $0x370] sm:$0xf]  ;;  %v13034_v24 = vcombine.low %v16808_v59, %v2466_v32  ;;  %v8363_v59 = vsel %vm383_vm0, %v17145_v27, 0  ;;  %v2470_v28 = vld [vmem:[%s16450_s30 + $0x400] sm:$0xf] }
  0xd7   : > { %v13033_v51 = vcombine.low %v16351_v36, %v2465_v35  ;;  %v17327_v27 = vld [vmem:[%s21612_s1 + $0x12] sm:$0x3]  ;;  %v21725_v37 = vld [vmem:[#allocation14_spill] sm:$0xff]  ;;  %v13055_v40 = vcombine.low %v16896_v2, %v2470_v28  ;;  %v3939_v35 = vrot.slane %v3937_v20, 4  ;;  %v21733_v36 = vld [vmem:[#allocation15_spill] sm:$0xff] }
  0xd8   : > { %14620 = vmatmul.mubr.msk.bf16.gmra.mrb[28].mxu1 %vm609_vm5, %v12872_v60  ;;  %v12894_v60 = vrot.slane %v1332_v47, 9  ;;  %v13054_v1 = vcombine.low %v21725_v37, %v2469_v29 }
  0xd9   : > { %14774 = vmatmul.mubr.msk.bf16.gmra.mrb[12].mxu0 %vm609_vm5, %v17099_v57  ;;  %14625 = vmatprep.mubr.msk.bf16.mxu1 %vm609_vm5, %v12906_v19 }
  0xda   : > { %14777 = vmatprep.mubr.msk.bf16.mxu0 %vm609_vm5, %v17102_v53  ;;  %v1490_v19 = vsel %vm16463_vm6, %v12894_v60, %v1489_v50  ;;  %v3926_v50 = vrot.slane %v3704_v4, 7  ;;  %v13121_v60 = vrot.slane %v3705_v12, 11 }
  0xdb   : > { %v12911_v17 = vcombine.low %v1490_v19, %v1493_v44  ;;  %v3712_v19 = vld [vmem:[%s16450_s30 + $0x250] sm:$0xf]  ;;  %v13122_v44 = vrot.slane %v3708_v23, 11 }
  0xe0   : > { %14626 = vmatmul.mubr.msk.bf16.vlgmr.msra.gmra.mrb[0].mxu1 %vm609_vm5, %v12907_v48  ;;  %v21726_v48 = vld [vmem:[#allocation9_spill] sm:$0xff] }
  0xe1   : > { %15440 = vmatpush3.bf16.msra.mxu1 %v16433_v3  ;;  %14778 = vmatmul.mubr.msk.bf16.gmra.mrb[16].mxu0 %vm609_vm5, %v17117_v9  ;;  %v1486_v3 = vsel %vm16463_vm6, %v1484_v58, %v1485_v31  ;;  %v2471_v58 = vld [vmem:[%s16450_s30 + $0x41c] sm:$0xf]  ;;  %v3925_v31 = vrot.slane %v3923_v21, 4 }
  0xe2   : > { %14629 = vmatprep.mubr.msk.bf16.mxu1 %vm609_vm5, %v12908_v18  ;;  %14781 = vmatprep.mubr.msk.bf16.mxu0 %vm609_vm5, %v13030_v15  ;;  %v12910_v30 = vcombine.low %v1483_v41, %v1486_v3  ;;  %v3702_v18 = vld [vmem:[%s16450_s30 + $0x1f8] sm:$0x8]  ;;  %v13056_v2 = vcombine.low %v16909_v42, %v2471_v58 }
  0xe3   : > { %16219 = vmatprep.subr.msk.bf16.mxu1 %vm383_vm0, %v17233_v7  ;;  %v13120_v49 = vrot.slane %v3702_v18, 11  ;;  %v21732_v42 = vld [vmem:[#allocation13_spill] sm:$0xff]  ;;  %v3927_v47 = vsel %vm17354_vm9, %v3925_v31, %v3926_v50  ;;  %v3720_v31 = vld [vmem:[%s16450_s30 + $0x2a0] sm:$0x8]  ;;  %v3722_v50 = vld [vmem:[%s16450_s30 + $0x2a8] sm:$0x7] }
  0xe4   : > { %v4006_v13 = vrot.slane %v3722_v50, 7  ;;  %v3739_v50 = vld [vmem:[%s16450_s30 + $0x34c] sm:$0xf] }
  0xe5   : > { %v3924_v3 = vsel %vm17354_vm9, %v13120_v49, %v3923_v21 }
  0xe8   : > { %14630 = vmatmul.mubr.msk.bf16.gmra.mrb[4].mxu1 %vm609_vm5, %v12909_v34 }
  0xe9   : > { %14782 = vmatmul.mubr.msk.bf16.gmra.mrb[20].mxu0 %vm609_vm5, %v13031_v11  ;;  %14633 = vmatprep.mubr.msk.bf16.mxu1 %vm609_vm5, %v12910_v30  ;;  %v17375_v30 = vcombine.low %v3924_v3, %v3927_v47  ;;  %v16296_v3 = vld [vmem:[%s16450_s30 + $0x268] sm:$0xff]   ;;  %v13127_v47 = vrot.slane %v3720_v31, 11  ;;  %v3736_v31 = vld [vmem:[%s16450_s30 + $0x330] sm:$0xf] }
  0xea   : > { %14785 = vmatprep.mubr.msk.bf16.mxu0 %vm609_vm5, %v13032_v10 }
  0xf0   : > { %14634 = vmatmul.mubr.msk.bf16.gmra.mrb[8].mxu1 %vm609_vm5, %v12911_v17  ;;  %v3715_v17 = vld [vmem:[%s16450_s30 + $0x26c] sm:$0xf] }
  0xf1   : > { %14786 = vmatmul.mubr.msk.bf16.gmra.mrb[24].mxu0 %vm609_vm5, %v13033_v51  ;;  %14637 = vmatprep.mubr.msk.bf16.mxu1 %vm609_vm5, %v16491_v45  ;;  %v17289_v45 = vld [vmem:[%s21612_s1 + $0x24] sm:$0x3] }
  0xf2   : > { %14789 = vmatprep.mubr.msk.bf16.mxu0 %vm609_vm5, %v13034_v24  ;;  %v8655_v26 = vsel %vm383_vm0, %v17289_v45, 0 }
  0xf8   : > { %14638 = vmatmul.mubr.msk.bf16.gmra.mrb[12].mxu1 %vm609_vm5, %v16519_v0  ;;  %v21718_v0 = vld [vmem:[#allocation3_spill] sm:$0xff] }
  0xf9   : > { %14790 = vmatmul.mubr.msk.bf16.gmra.mrb[28].mxu0 %vm609_vm5, %v13035_v62  ;;  %14641 = vmatprep.mubr.msk.bf16.mxu1 %vm609_vm5, %v16545_v25  ;;  %v21719_v25 = vld [vmem:[#allocation4_spill] sm:$0xff]  ;;  %21730 = vst [vmem:[#allocation3_spill] sm:$0xff] %v21729_v14 }
  0xfa   : > { %14795 = vmatprep.mubr.msk.bf16.mxu0 %vm609_vm5, %v17086_v56  ;;  %v2468_v56 = vld [vmem:[%s16450_s30 + $0x3c8] sm:$0xf] }
 0x100   : > { %14642 = vmatmul.mubr.msk.bf16.gmra.mrb[16].mxu1 %vm609_vm5, %v16566_v43  ;;  %v21720_v43 = vld [vmem:[#allocation5_spill] sm:$0xff] }
 0x101   : > { %14796 = vmatmul.mubr.msk.bf16.vlgmr.msra.gmra.mrb[0].mxu0 %vm609_vm5, %v17099_v57  ;;  %14645 = vmatprep.mubr.msk.bf16.mxu1 %vm609_vm5, %v16591_v8  ;;  %v21721_v8 = vld [vmem:[#allocation6_spill] sm:$0xff]  ;;  %v4170_v57 = vsel %vm383_vm0, %v17233_v7, 0  ;;  %v3706_v7 = vld [vmem:[%s16450_s30 + $0x218] sm:$0xf] }
 0x102   : > { %15134 = vmatpush3.bf16.msra.mxu0 %v8363_v59  ;;  %14799 = vmatprep.mubr.msk.bf16.mxu0 %vm609_vm5, %v17102_v53  ;;  %v21723_v53 = vld [vmem:[#allocation12_spill] sm:$0xff]  ;;  %v3930_v41 = vrot.slane %v3706_v7, 7  ;;  %v3989_v59 = vrot.slane %v3715_v17, 7 }
 0x103   : > { %16229 = vmatprep.subr.msk.bf16.mxu0 %vm383_vm0, %v17289_v45 }
 0x104   : > { %v3932_v33 = vrot.slane %v3930_v41, 4  ;;  %v3991_v37 = vrot.slane %v3989_v59, 4 }
 0x108   : > { %14646 = vmatmul.mubr.msk.bf16.gmra.mrb[20].mxu1 %vm609_vm5, %v21718_v0  ;;  %v3938_v0 = vsel %vm17354_vm9, %v13122_v44, %v3937_v20  ;;  %v3724_v20 = vld [vmem:[%s16450_s30 + $0x2c0] sm:$0xf] }
 0x109   : > { %14800 = vmatmul.mubr.msk.bf16.gmra.mrb[4].mxu0 %vm609_vm5, %v17117_v9  ;;  %14649 = vmatprep.mubr.msk.bf16.mxu1 %vm609_vm5, %v21719_v25  ;;  %v13053_v9 = vcombine.low %v21723_v53, %v2468_v56  ;;  %v4406_v56 = vsel %vm383_vm0, %v17327_v27, 0  ;;  %v13123_v53 = vrot.slane %v3711_v61, 11 }
 0x10a   : > { %14803 = vmatprep.mubr.msk.bf16.mxu0 %vm609_vm5, %v13030_v15  ;;  %v13057_v15 = vcombine.low %v16913_v39, %v2472_v63  ;;  %v2473_v39 = vld [vmem:[%s16450_s30 + $0x454] sm:$0xf]  ;;  %v17425_v63 = vld [vmem:[%s21612_s1 + $0x30] sm:$0x3] }
 0x10b   : > { %v13058_v34 = vcombine.low %v16944_v5, %v2473_v39  ;;  %v3931_v5 = vsel %vm17354_vm9, %v13121_v60, %v3930_v41  ;;  %v4010_v60 = vrot.slane %v3724_v20, 7  ;;  %v3740_v20 = vld [vmem:[%s16450_s30 + $0x350] sm:$0x7] }
 0x110   : > { %14650 = vmatmul.mubr.msk.bf16.gmra.mrb[24].mxu1 %vm609_vm5, %v21720_v43  ;;  %v3714_v43 = vld [vmem:[%s16450_s30 + $0x268] sm:$0x8] }
 0x111   : > { %14804 = vmatmul.mubr.msk.bf16.gmra.mrb[8].mxu0 %vm609_vm5, %v13031_v11  ;;  %14653 = vmatprep.mubr.msk.bf16.mxu1 %vm609_vm5, %v21721_v8  ;;  %v3710_v11 = vld [vmem:[%s16450_s30 + $0x238] sm:$0x7]  ;;  %v13125_v28 = vrot.slane %v3714_v43, 11 }
 0x112   : > { %14807 = vmatprep.mubr.msk.bf16.mxu0 %vm609_vm5, %v13032_v10  ;;  %v16292_v10 = vld [vmem:[%s16450_s30 + $0x1f8] sm:$0xff]   ;;  %v3940_v32 = vrot.slane %v3710_v11, 7 }
 0x113   : > { %v3990_v18 = vsel %vm17354_vm9, %v13125_v28, %v3989_v59  ;;  %v3730_v43 = vld [vmem:[%s16450_s30 + $0x2f8] sm:$0xf]  ;;  %v3729_v28 = vld [vmem:[%s16450_s30 + $0x2f4] sm:$0x8] }
 0x114   : > { %v3941_v25 = vsel %vm17354_vm9, %v3939_v35, %v3940_v32  ;;  %v3726_v35 = vld [vmem:[%s16450_s30 + $0x2d8] sm:$0x8]  ;;  %v3728_v32 = vld [vmem:[%s16450_s30 + $0x2e0] sm:$0x7] }
 0x115   : > { %v17403_v29 = vcombine.low %v3938_v0, %v3941_v25  ;;  %v13129_v59 = vrot.slane %v3726_v35, 11  ;;  %v4020_v25 = vrot.slane %v3728_v32, 7  ;;  %v4048_v35 = vrot.slane %v3740_v20, 7  ;;  %v3742_v32 = vld [vmem:[%s16450_s30 + $0x368] sm:$0xf] }
 0x116   : > { %v3670_v20 = vld [vmem:[%s16450_s30 + $0xc8] sm:$0xf] }
 0x118   : > { %14654 = vmatmul.mubr.msk.bf16.gmra.mrb[28].mxu1 %vm609_vm5, %v21722_v22 }
 0x119   : > { %14808 = vmatmul.mubr.msk.bf16.gmra.mrb[12].mxu0 %vm609_vm5, %v13033_v51  ;;  %14675 = vmatprep.mubr.msk.bf16.mxu1 %vm609_vm5, %v21721_v8  ;;  %v3934_v51 = vsel %vm17354_vm9, %v3932_v33, %v3933_v52  ;;  %v3716_v8 = vld [vmem:[%s16450_s30 + $0x270] sm:$0x7] }
 0x11a   : > { %14811 = vmatprep.mubr.msk.bf16.mxu0 %vm609_vm5, %v13034_v24  ;;  %v3944_v24 = vrot.slane %v3712_v19, 7  ;;  %v3725_v19 = vld [vmem:[%s16450_s30 + $0x2c4] sm:$0x7] }
 0x11b   : > { %v4013_v61 = vrot.slane %v3725_v19, 7 }
 0x11c   : > { %v3945_v58 = vsel %vm17354_vm9, %v13123_v53, %v3944_v24  ;;  %v4024_v53 = vrot.slane %v3730_v43, 7  ;;  %v3746_v43 = vld [vmem:[%s16450_s30 + $0x388] sm:$0x7] }
 0x120   : > { %14676 = vmatmul.mubr.msk.bf16.vlgmr.msra.gmra.mrb[16].mxu1 %vm609_vm5, %v21722_v22  ;;  %v17398_v22 = vcombine.low %v3931_v5, %v3934_v51 }
 0x121   : > { %14812 = vmatmul.mubr.msk.bf16.gmra.mrb[16].mxu0 %vm609_vm5, %v13035_v62  ;;  %14828 = vmatpush3.bf16.msra.mxu1 %v4170_v57  ;;  %v3713_v62 = vld [vmem:[%s16450_s30 + $0x254] sm:$0x7] }
 0x122   : > { %14679 = vmatprep.mubr.msk.bf16.mxu1 %vm609_vm5, %v21724_v54  ;;  %14815 = vmatprep.mubr.msk.bf16.mxu0 %vm609_vm5, %v13053_v9  ;;  %v16293_v57 = vld [vmem:[%s16450_s30 + $0x214] sm:$0xff]   ;;  %v3946_v9 = vrot.slane %v3944_v24, 4  ;;  %v3947_v54 = vrot.slane %v3713_v62, 7  ;;  %v4012_v24 = vrot.slane %v4010_v60, 4  ;;  %v16298_v62 = vld [vmem:[%s16450_s30 + $0x2a0] sm:$0xff]  }
 0x123   : > { %16220 = vmatprep.subr.msk.bf16.mxu1 %vm383_vm0, %v17327_v27  ;;  %v17415_v27 = vld [vmem:[%s21612_s1 + $0x1e] sm:$0x3] }
 0x124   : > { %v3948_v45 = vsel %vm17354_vm9, %v3946_v9, %v3947_v54 }
 0x125   : > { %v17440_v7 = vcombine.low %v3945_v58, %v3948_v45  ;;  %v13130_v45 = vrot.slane %v3729_v28, 11  ;;  %v16304_v28 = vld [vmem:[%s16450_s30 + $0x348] sm:$0xff]  }
 0x128   : > { %14680 = vmatmul.mubr.msk.bf16.gmra.mrb[20].mxu1 %vm609_vm5, %v21726_v48  ;;  %v16294_v48 = vld [vmem:[%s16450_s30 + $0x230] sm:$0xff]  }
 0x129   : > { %14816 = vmatmul.mubr.msk.bf16.gmra.mrb[20].mxu0 %vm609_vm5, %v13054_v1  ;;  %14683 = vmatprep.mubr.msk.bf16.mxu1 %vm609_vm5, %v21727_v38  ;;  %v3992_v1 = vrot.slane %v3716_v8, 7  ;;  %v3721_v38 = vld [vmem:[%s16450_s30 + $0x2a4] sm:$0xf]  ;;  %v3733_v8 = vld [vmem:[%s16450_s30 + $0x314] sm:$0xf] }
 0x12a   : > { %14819 = vmatprep.mubr.msk.bf16.mxu0 %vm609_vm5, %v13055_v40  ;;  %v3718_v40 = vld [vmem:[%s16450_s30 + $0x288] sm:$0xf]  ;;  %v4003_v49 = vrot.slane %v3721_v38, 7  ;;  %v16299_v38 = vld [vmem:[%s16450_s30 + $0x2bc] sm:$0xff]  }
 0x12b   : > { %v3996_v21 = vrot.slane %v3718_v40, 7  ;;  %v3993_v4 = vsel %vm17354_vm9, %v3991_v37, %v3992_v1  ;;  %v3731_v37 = vld [vmem:[%s16450_s30 + $0x2fc] sm:$0x7]  ;;  %v4031_v1 = vrot.slane %v3733_v8, 7  ;;  %v3732_v40 = vld [vmem:[%s16450_s30 + $0x310] sm:$0x8] }
 0x12c   : > { %v13142_v46 = vcombine.low %v3990_v18, %v3993_v4  ;;  %v4005_v12 = vrot.slane %v4003_v49, 4  ;;  %v4004_v33 = vsel %vm17354_vm9, %v13127_v47, %v4003_v49  ;;  %v4027_v18 = vrot.slane %v3731_v37, 7  ;;  %v16300_v4 = vld [vmem:[%s16450_s30 + $0x2d8] sm:$0xff]   ;;  %v3737_v47 = vld [vmem:[%s16450_s30 + $0x334] sm:$0x7] }
 0x12d   : > { %v3998_v39 = vrot.slane %v3996_v21, 4 }
 0x12e   : > { %v4007_v52 = vsel %vm17354_vm9, %v4005_v12, %v4006_v13  ;;  %v4045_v12 = vrot.slane %v3739_v50, 7  ;;  %v3738_v13 = vld [vmem:[%s16450_s30 + $0x348] sm:$0x8] }
 0x12f   : > { %v13144_v5 = vcombine.low %v4004_v33, %v4007_v52  ;;  %v4041_v52 = vrot.slane %v3737_v47, 7  ;;  %v13133_v19 = vrot.slane %v3738_v13, 11 }
 0x130   : > { %14684 = vmatmul.mubr.msk.bf16.gmra.mrb[24].mxu1 %vm609_vm5, %v21731_v55  ;;  %v16295_v55 = vld [vmem:[%s16450_s30 + $0x24c] sm:$0xff]  }
 0x131   : > { %14820 = vmatmul.mubr.msk.bf16.gmra.mrb[24].mxu0 %vm609_vm5, %v13056_v2  ;;  %14687 = vmatprep.mubr.msk.bf16.mxu1 %vm609_vm5, %v21732_v42  ;;  %v3717_v2 = vld [vmem:[%s16450_s30 + $0x284] sm:$0x8] }
 0x132   : > { %14823 = vmatprep.mubr.msk.bf16.mxu0 %vm609_vm5, %v13057_v15  ;;  %v3719_v15 = vld [vmem:[%s16450_s30 + $0x28c] sm:$0x7]  ;;  %v13126_v42 = vrot.slane %v3717_v2, 11  ;;  %v13131_v2 = vrot.slane %v3732_v40, 11  ;;  %v4062_v40 = vrot.slane %v3746_v43, 7 }
 0x133   : > { %v3999_v41 = vrot.slane %v3719_v15, 7  ;;  %v4033_v15 = vrot.slane %v4031_v1, 4 }
 0x134   : > { %v3997_v23 = vsel %vm17354_vm9, %v13126_v42, %v3996_v21  ;;  %v4026_v21 = vrot.slane %v4024_v53, 4  ;;  %v4038_v42 = vrot.slane %v3736_v31, 7  ;;  %v3668_v31 = vld [vmem:[%s16450_s30 + $0xb0] sm:$0x7] }
 0x135   : > { %v4000_v11 = vsel %vm17354_vm9, %v3998_v39, %v3999_v41  ;;  %v4032_v39 = vsel %vm17354_vm9, %v13131_v2, %v4031_v1  ;;  %v3749_v2 = vld [vmem:[%s16450_s30 + $0x3a4] sm:$0x7]  ;;  %v3842_v13 = vrot.slane %v3668_v31, 7 }
 0x136   : > { %v13143_v17 = vcombine.low %v3997_v23, %v4000_v11  ;;  %v16301_v23 = vld [vmem:[%s16450_s30 + $0x2f4] sm:$0xff]   ;;  %v4040_v33 = vrot.slane %v4038_v42, 4 }
 0x138   : > { %14688 = vmatmul.mubr.msk.bf16.gmra.mrb[28].mxu1 %vm609_vm5, %v21733_v36  ;;  %v16297_v36 = vld [vmem:[%s16450_s30 + $0x284] sm:$0xff]  }
 0x139   : > { %14824 = vmatmul.mubr.msk.bf16.gmra.mrb[28].mxu0 %vm609_vm5, %v13058_v34  ;;  %14829 = vmatprep.mubr.msk.bf16.mxu1 %vm609_vm5, %v17375_v30  ;;  %v3727_v34 = vld [vmem:[%s16450_s30 + $0x2dc] sm:$0xf] }
 0x13a   : > { %15135 = vmatprep.mubr.msk.bf16.mxu0 %vm609_vm5, %v16292_v10  ;;  %v3723_v10 = vld [vmem:[%s16450_s30 + $0x2bc] sm:$0x8]  ;;  %v4017_v44 = vrot.slane %v3727_v34, 7 }
 0x13b   : > { %v13128_v51 = vrot.slane %v3723_v10, 11  ;;  %v16302_v10 = vld [vmem:[%s16450_s30 + $0x310] sm:$0xff]  }
 0x13c   : > { %v4019_v0 = vrot.slane %v4017_v44, 4  ;;  %v4018_v9 = vsel %vm17354_vm9, %v13129_v59, %v4017_v44  ;;  %v4047_v44 = vrot.slane %v4045_v12, 4  ;;  %v3743_v59 = vld [vmem:[%s16450_s30 + $0x36c] sm:$0x7] }
 0x13e   : > { %v4021_v54 = vsel %vm17354_vm9, %v4019_v0, %v4020_v25  ;;  %v3744_v25 = vld [vmem:[%s16450_s30 + $0x380] sm:$0x8] }
 0x13f   : > { %v13146_v58 = vcombine.low %v4018_v9, %v4021_v54  ;;  %v4055_v54 = vrot.slane %v3743_v59, 7  ;;  %v13135_v37 = vrot.slane %v3744_v25, 11  ;;  %v3676_v59 = vld [vmem:[%s16450_s30 + $0x100] sm:$0xf] }
 0x140   : > { %14830 = vmatmul.mubr.msk.bf16.vlgmr.msra.gmra.mrb[32].mxu1 %vm609_vm5, %v17398_v22 }
 0x141   : > { %14862 = vmatpush3.bf16.msra.mxu1 %v4406_v56  ;;  %15136 = vmatmul.mubr.msk.bf16.vlgmr.msra.gmra.mrb[32].mxu0 %vm609_vm5, %v16293_v57  ;;  %v4011_v56 = vsel %vm17354_vm9, %v13128_v51, %v4010_v60  ;;  %v4014_v57 = vsel %vm17354_vm9, %v4012_v24, %v4013_v61  ;;  %v4052_v51 = vrot.slane %v3742_v32, 7  ;;  %v4046_v24 = vsel %vm17354_vm9, %v13133_v19, %v4045_v12  ;;  %v3671_v19 = vld [vmem:[%s16450_s30 + $0xcc] sm:$0x7]  ;;  %v3672_v32 = vld [vmem:[%s16450_s30 + $0xe0] sm:$0x8] }
 0x142   : > { %15168 = vmatpush3.bf16.msra.mxu0 %v8655_v26  ;;  %14833 = vmatprep.mubr.msk.bf16.mxu1 %vm609_vm5, %v17403_v29  ;;  %v3734_v26 = vld [vmem:[%s16450_s30 + $0x318] sm:$0x7]  ;;  %v4049_v61 = vsel %vm17354_vm9, %v4047_v44, %v4048_v35 }
 0x143   : > { %15139 = vmatprep.mubr.msk.bf16.mxu0 %vm609_vm5, %v16294_v48  ;;  %16221 = vmatprep.subr.msk.bf16.mxu1 %vm383_vm0, %v17415_v27  ;;  %v13145_v48 = vcombine.low %v4011_v56, %v4014_v57  ;;  %v4034_v49 = vrot.slane %v3734_v26, 7  ;;  %v16303_v56 = vld [vmem:[%s16450_s30 + $0x32c] sm:$0xff]   ;;  %v17526_v57 = vcombine.low %v4046_v24, %v4049_v61  ;;  %v4054_v9 = vrot.slane %v4052_v51, 4  ;;  %v3748_v26 = vld [vmem:[%s16450_s30 + $0x3a0] sm:$0xf] }
 0x144   : > { %16230 = vmatprep.subr.msk.bf16.mxu0 %vm383_vm0, %v17425_v63  ;;  %v3849_v61 = vrot.slane %v3671_v19, 7 }
 0x145   : > { %v4035_v41 = vsel %vm17354_vm9, %v4033_v15, %v4034_v49  ;;  %v3666_v49 = vld [vmem:[%s16450_s30 + $0xa8] sm:$0x8] }
 0x146   : > { %v13148_v11 = vcombine.low %v4032_v39, %v4035_v41  ;;  %v4069_v41 = vrot.slane %v3749_v2, 7  ;;  %v13108_v47 = vrot.slane %v3666_v49, 11  ;;  %v3682_v2 = vld [vmem:[%s16450_s30 + $0x138] sm:$0xf] }
 0x148   : > { %14834 = vmatmul.mubr.msk.bf16.gmra.mrb[36].mxu1 %vm609_vm5, %v17440_v7 }
 0x149   : > { %15140 = vmatmul.mubr.msk.bf16.gmra.mrb[36].mxu0 %vm609_vm5, %v16295_v55  ;;  %14837 = vmatprep.mubr.msk.bf16.mxu1 %vm609_vm5, %v13142_v46  ;;  %v4025_v55 = vsel %vm17354_vm9, %v13130_v45, %v4024_v53  ;;  %v4028_v46 = vsel %vm17354_vm9, %v4026_v21, %v4027_v18  ;;  %v4066_v45 = vrot.slane %v3748_v26, 7  ;;  %v3678_v26 = vld [vmem:[%s16450_s30 + $0x118] sm:$0x8] }
 0x14a   : > { %15143 = vmatprep.mubr.msk.bf16.mxu0 %vm609_vm5, %v16296_v3  ;;  %v3735_v3 = vld [vmem:[%s16450_s30 + $0x32c] sm:$0x8]  ;;  %v13147_v34 = vcombine.low %v4025_v55, %v4028_v46  ;;  %v16305_v55 = vld [vmem:[%s16450_s30 + $0x364] sm:$0xff]   ;;  %v13112_v49 = vrot.slane %v3678_v26, 11 }
 0x14b   : > { %v13132_v60 = vrot.slane %v3735_v3, 11  ;;  %v4068_v39 = vrot.slane %v4066_v45, 4  ;;  %v16306_v3 = vld [vmem:[%s16450_s30 + $0x380] sm:$0xff]   ;;  %v16313_v26 = vld [vmem:[%s16450_s30 + $0x8c] sm:$0xff]  }
 0x150   : > { %14838 = vmatmul.mubr.msk.bf16.gmra.mrb[40].mxu1 %vm609_vm5, %v13143_v17  ;;  %v3745_v17 = vld [vmem:[%s16450_s30 + $0x384] sm:$0xf] }
 0x151   : > { %15144 = vmatmul.mubr.msk.bf16.gmra.mrb[40].mxu0 %vm609_vm5, %v16297_v36  ;;  %14841 = vmatprep.mubr.msk.bf16.mxu1 %vm609_vm5, %v13144_v5  ;;  %v4039_v36 = vsel %vm17354_vm9, %v13132_v60, %v4038_v42  ;;  %v4042_v5 = vsel %vm17354_vm9, %v4040_v33, %v4041_v52  ;;  %v4059_v0 = vrot.slane %v3745_v17, 7  ;;  %v3846_v60 = vrot.slane %v3670_v20, 7  ;;  %v3674_v17 = vld [vmem:[%s16450_s30 + $0xe8] sm:$0x7]  ;;  %v17621_v20 = vld [vmem:[%s21612_s1 + $0x26] sm:$0x3] }
 0x152   : > { %15147 = vmatprep.mubr.msk.bf16.mxu0 %vm609_vm5, %v16298_v62  ;;  %v3741_v62 = vld [vmem:[%s16450_s30 + $0x364] sm:$0x8]  ;;  %v13149_v8 = vcombine.low %v4039_v36, %v4042_v5  ;;  %v16307_v36 = vld [vmem:[%s16450_s30 + $0x39c] sm:$0xff]   ;;  %v3856_v43 = vrot.slane %v3674_v17, 7 }
 0x153   : > { %v13134_v53 = vrot.slane %v3741_v62, 11  ;;  %v4061_v1 = vrot.slane %v4059_v0, 4  ;;  %v4060_v21 = vsel %vm17354_vm9, %v13135_v37, %v4059_v0  ;;  %v3848_v24 = vrot.slane %v3846_v60, 4  ;;  %v16308_v62 = vld [vmem:[%s16450_s30] sm:$0xff]  }
 0x154   : > { %v13110_v0 = vrot.slane %v3672_v32, 11  ;;  %v16311_v32 = vld [vmem:[%s16450_s30 + $0x54] sm:$0xff]  }
 0x155   : > { %v4063_v18 = vsel %vm17354_vm9, %v4061_v1, %v4062_v40 }
 0x156   : > { %v17551_v46 = vcombine.low %v4060_v21, %v4063_v18 }
 0x158   : > { %14842 = vmatmul.mubr.msk.bf16.gmra.mrb[44].mxu1 %vm609_vm5, %v13145_v48  ;;  %v3667_v48 = vld [vmem:[%s16450_s30 + $0xac] sm:$0xf] }
 0x159   : > { %15148 = vmatmul.mubr.msk.bf16.gmra.mrb[44].mxu0 %vm609_vm5, %v16299_v38  ;;  %14845 = vmatprep.mubr.msk.bf16.mxu1 %vm609_vm5, %v13146_v58  ;;  %v4053_v38 = vsel %vm17354_vm9, %v13134_v53, %v4052_v51  ;;  %v4056_v58 = vsel %vm17354_vm9, %v4054_v9, %v4055_v54  ;;  %v3839_v15 = vrot.slane %v3667_v48, 7  ;;  %v3850_v53 = vsel %vm17354_vm9, %v3848_v24, %v3849_v61  ;;  %v3675_v54 = vld [vmem:[%s16450_s30 + $0xfc] sm:$0x8]  ;;  %v3680_v48 = vld [vmem:[%s16450_s30 + $0x120] sm:$0x7] }
 0x15a   : > { %15151 = vmatprep.mubr.msk.bf16.mxu0 %vm609_vm5, %v16300_v4  ;;  %v3747_v4 = vld [vmem:[%s16450_s30 + $0x39c] sm:$0x8]  ;;  %v17548_v50 = vcombine.low %v4053_v38, %v4056_v58  ;;  %v3860_v9 = vrot.slane %v3676_v59, 7  ;;  %v13111_v21 = vrot.slane %v3675_v54, 11  ;;  %v3687_v59 = vld [vmem:[%s16450_s30 + $0x16c] sm:$0x8] }
 0x15b   : > { %v13136_v42 = vrot.slane %v3747_v4, 11  ;;  %v3841_v12 = vrot.slane %v3839_v15, 4  ;;  %v3840_v33 = vsel %vm17354_vm9, %v13108_v47, %v3839_v15  ;;  %v16309_v58 = vld [vmem:[%s16450_s30 + $0x1c] sm:$0xff]   ;;  %v17651_v54 = vld [vmem:[%s16450_s30 + $0x1a8] sm:$0xf] }
 0x15c   : > { %v3862_v18 = vrot.slane %v3860_v9, 4  ;;  %v3861_v47 = vsel %vm17354_vm9, %v13111_v21, %v3860_v9 }
 0x15d   : > { %v3843_v52 = vsel %vm17354_vm9, %v3841_v12, %v3842_v13  ;;  %v3681_v12 = vld [vmem:[%s16450_s30 + $0x134] sm:$0x8]  ;;  %v3683_v13 = vld [vmem:[%s16450_s30 + $0x13c] sm:$0x7] }
 0x15e   : > { %v13170_v5 = vcombine.low %v3840_v33, %v3843_v52  ;;  %v3686_v33 = vld [vmem:[%s16450_s30 + $0x158] sm:$0x7] }
 0x15f   : > { %v3884_v61 = vrot.slane %v3686_v33, 7  ;;  %v17700_v33 = vld [vmem:[%s16450_s30 + $0x1e4] sm:$0x7] }
 0x160   : > { %14846 = vmatmul.mubr.msk.bf16.gmra.mrb[48].mxu1 %vm609_vm5, %v13147_v34  ;;  %v3673_v34 = vld [vmem:[%s16450_s30 + $0xe4] sm:$0xf] }
 0x161   : > { %15152 = vmatmul.mubr.msk.bf16.gmra.mrb[48].mxu0 %vm609_vm5, %v16301_v23  ;;  %14849 = vmatprep.mubr.msk.bf16.mxu1 %vm609_vm5, %v13148_v11  ;;  %v4067_v23 = vsel %vm17354_vm9, %v13136_v42, %v4066_v45  ;;  %v4070_v11 = vsel %vm17354_vm9, %v4068_v39, %v4069_v41  ;;  %v3853_v44 = vrot.slane %v3673_v34, 7  ;;  %v4764_v45 = vsel %vm383_vm0, %v17415_v27, 0  ;;  %v16310_v39 = vld [vmem:[%s16450_s30 + $0x38] sm:$0xff]   ;;  %v3685_v41 = vld [vmem:[%s16450_s30 + $0x154] sm:$0xf] }
 0x162   : > { %15155 = vmatprep.mubr.msk.bf16.mxu0 %vm609_vm5, %v16302_v10  ;;  %v3669_v10 = vld [vmem:[%s16450_s30 + $0xc4] sm:$0x8]  ;;  %v17572_v35 = vcombine.low %v4067_v23, %v4070_v11  ;;  %v8949_v42 = vsel %vm383_vm0, %v17425_v63, 0  ;;  %v17609_v27 = vld [vmem:[%s21612_s1 + $0x14] sm:$0x3]  ;;  %v3881_v11 = vrot.slane %v3685_v41, 7 }
 0x163   : > { %v13109_v51 = vrot.slane %v3669_v10, 11  ;;  %v3855_v25 = vrot.slane %v3853_v44, 4  ;;  %v3854_v1 = vsel %vm17354_vm9, %v13110_v0, %v3853_v44  ;;  %v13113_v10 = vrot.slane %v3681_v12, 11  ;;  %v17678_v41 = vld [vmem:[%s16450_s30 + $0x1c8] sm:$0x7] }
 0x164   : > { %21734 = vst [vmem:[#allocation4_spill] sm:$0xff] %v17572_v35  ;;  %v3877_v44 = vrot.slane %v3683_v13, 7  ;;  %v3883_v24 = vrot.slane %v3881_v11, 4  ;;  %v17687_v12 = vld [vmem:[%s16450_s30 + $0x3bc] sm:$0xf] }
 0x165   : > { %v3857_v40 = vsel %vm17354_vm9, %v3855_v25, %v3856_v43  ;;  %v3689_v43 = vld [vmem:[%s16450_s30 + $0x174] sm:$0x7]  ;;  %v17690_v13 = vld [vmem:[%s16450_s30 + $0x3d8] sm:$0xf] }
 0x166   : > { %v13172_v15 = vcombine.low %v3854_v1, %v3857_v40  ;;  %v17659_v1 = vld [vmem:[%s16450_s30 + $0x1c4] sm:$0xf] }
 0x168   : > { %14850 = vmatmul.mubr.msk.bf16.gmra.mrb[52].mxu1 %vm609_vm5, %v13149_v8  ;;  %v3679_v8 = vld [vmem:[%s16450_s30 + $0x11c] sm:$0xf] }
 0x169   : > { %15156 = vmatmul.mubr.msk.bf16.gmra.mrb[52].mxu0 %vm609_vm5, %v16303_v56  ;;  %14853 = vmatprep.mubr.msk.bf16.mxu1 %vm609_vm5, %v17526_v57  ;;  %v3847_v56 = vsel %vm17354_vm9, %v13109_v51, %v3846_v60  ;;  %v3867_v37 = vrot.slane %v3679_v8, 7  ;;  %v3684_v60 = vld [vmem:[%s16450_s30 + $0x150] sm:$0x8] }
 0x16a   : > { %15159 = vmatprep.mubr.msk.bf16.mxu0 %vm609_vm5, %v16304_v28  ;;  %v3677_v28 = vld [vmem:[%s16450_s30 + $0x104] sm:$0x7]  ;;  %v13171_v38 = vcombine.low %v3847_v56, %v3850_v53  ;;  %v13114_v51 = vrot.slane %v3684_v60, 11  ;;  %v3690_v56 = vld [vmem:[%s16450_s30 + $0x188] sm:$0x8] }
 0x16b   : > { %v3863_v4 = vrot.slane %v3677_v28, 7  ;;  %v3869_v31 = vrot.slane %v3867_v37, 4  ;;  %v3868_v34 = vsel %vm17354_vm9, %v13112_v49, %v3867_v37  ;;  %v3692_v53 = vld [vmem:[%s16450_s30 + $0x190] sm:$0x7]  ;;  %v3885_v37 = vsel %vm17354_vm9, %v3883_v24, %v3884_v61  ;;  %v17720_v24 = vld [vmem:[%s16450_s30 + $0x3f4] sm:$0xf] }
 0x16c   : > { %v3882_v28 = vsel %vm17354_vm9, %v13114_v51, %v3881_v11  ;;  %v13116_v21 = vrot.slane %v3690_v56, 11  ;;  %v21634_v51 = vrot.slane %v17690_v13, 7  ;;  %v16315_v61 = vld [vmem:[%s16450_s30 + $0xc4] sm:$0xff]   ;;  %v17737_v56 = vsel %vm383_vm0, %v17609_v27, 0 }
 0x16d   : > { %v3864_v63 = vsel %vm17354_vm9, %v3862_v18, %v3863_v4  ;;  %v3898_v18 = vrot.slane %v3692_v53, 7  ;;  %v3902_v4 = vrot.slane %v17651_v54, 7  ;;  %v17741_v53 = vsel %vm383_vm0, %v17621_v20, 0 }
 0x16e   : > { %v13173_v52 = vcombine.low %v3861_v47, %v3864_v63 }
 0x16f   : > { %v3904_v11 = vrot.slane %v3902_v4, 4 }
 0x170   : > { %14854 = vmatmul.mubr.msk.bf16.gmra.mrb[56].mxu1 %vm609_vm5, %v17548_v50 }
 0x171   : > { %15160 = vmatmul.mubr.msk.bf16.gmra.mrb[56].mxu0 %vm609_vm5, %v16305_v55  ;;  %14857 = vmatprep.mubr.msk.bf16.mxu1 %vm609_vm5, %v17551_v46  ;;  %v3870_v55 = vrot.slane %v3680_v48, 7  ;;  %v13115_v48 = vrot.slane %v3687_v59, 11  ;;  %v3919_v59 = vrot.slane %v17700_v33, 7 }
 0x172   : > { %15163 = vmatprep.mubr.msk.bf16.mxu0 %vm609_vm5, %v16306_v3  ;;  %v3874_v3 = vrot.slane %v3682_v2, 7  ;;  %v17665_v2 = vld [vmem:[%s16450_s30 + $0x1e0] sm:$0xf] }
 0x173   : > { %v3871_v23 = vsel %vm17354_vm9, %v3869_v31, %v3870_v55  ;;  %v17668_v31 = vld [vmem:[%s16450_s30 + $0x1a4] sm:$0x8]  ;;  %v17671_v55 = vld [vmem:[%s16450_s30 + $0x1ac] sm:$0x7]  ;;  %v3916_v63 = vrot.slane %v17665_v2, 7 }
 0x174   : > { %v3876_v19 = vrot.slane %v3874_v3, 4  ;;  %v13174_v17 = vcombine.low %v3868_v34, %v3871_v23  ;;  %v3875_v0 = vsel %vm17354_vm9, %v13113_v10, %v3874_v3  ;;  %v17681_v3 = vld [vmem:[%s16450_s30 + $0x1dc] sm:$0x8]  ;;  %v13117_v23 = vrot.slane %v17668_v31, 11  ;;  %v17776_v31 = vld [vmem:[%s16450_s30 + $0x448] sm:$0xf] }
 0x175   : > { %v3905_v60 = vrot.slane %v17671_v55, 7  ;;  %v17868_v2 = vld [vmem:[%s16450_s30 + $0x4b8] sm:$0xf] }
 0x176   : > { %v3878_v25 = vsel %vm17354_vm9, %v3876_v19, %v3877_v44  ;;  %v3912_v19 = vrot.slane %v17678_v41, 7  ;;  %v13119_v44 = vrot.slane %v17681_v3, 11  ;;  %v17782_v41 = vld [vmem:[%s16450_s30 + $0x414] sm:$0x7]  ;;  %v21638_v55 = vrot.slane %v17868_v2, 7 }
 0x177   : > { %v13175_v40 = vcombine.low %v3875_v0, %v3878_v25  ;;  %v17729_v0 = vld [vmem:[%s16450_s30 + $0x3c0] sm:$0x7]  ;;  %v17732_v25 = vld [vmem:[%s16450_s30 + $0x3d4] sm:$0x8]  ;;  %v3906_v33 = vsel %vm17354_vm9, %v3904_v11, %v3905_v60  ;;  %v17815_v11 = vld [vmem:[%s16450_s30 + $0x430] sm:$0x7] }
 0x178   : > { %14858 = vmatmul.mubr.msk.bf16.gmra.mrb[60].mxu1 %vm609_vm5, %v17572_v35  ;;  %v17818_v60 = vld [vmem:[%s16450_s30 + $0x444] sm:$0x8] }
 0x179   : > { %15164 = vmatmul.mubr.msk.bf16.gmra.mrb[60].mxu0 %vm609_vm5, %v16307_v36  ;;  %14863 = vmatprep.mubr.msk.bf16.mxu1 %vm609_vm5, %v13170_v5  ;;  %v3688_v36 = vld [vmem:[%s16450_s30 + $0x170] sm:$0xf] }
 0x17a   : > { %15169 = vmatprep.mubr.msk.bf16.mxu0 %vm609_vm5, %v16308_v62  ;;  %v16312_v5 = vld [vmem:[%s16450_s30 + $0x70] sm:$0xff]   ;;  %v3691_v62 = vld [vmem:[%s16450_s30 + $0x18c] sm:$0xf]  ;;  %v3888_v8 = vrot.slane %v3688_v36, 7  ;;  %v17715_v36 = vld [vmem:[%s16450_s30 + $0x3b8] sm:$0x8] }
 0x17b   : > { %v3895_v9 = vrot.slane %v3691_v62, 7  ;;  %v17725_v62 = vrot.slane %v3916_v63, 4 }
 0x17c   : > { %v3889_v47 = vsel %vm17354_vm9, %v13115_v48, %v3888_v8  ;;  %v17754_v48 = vld [vmem:[%s16450_s30 + $0x3f0] sm:$0x8] }
 0x17d   : > { %v3897_v49 = vrot.slane %v3895_v9, 4 }
 0x180   : > { %14864 = vmatmul.mubr.msk.bf16.vlgmr.msra.gmra.mrb[32].mxu1 %vm609_vm5, %v13171_v38  ;;  %v3891_v38 = vrot.slane %v3689_v43, 7 }
 0x181   : > { %14896 = vmatpush3.bf16.msra.mxu1 %v4764_v45  ;;  %15170 = vmatmul.mubr.msk.bf16.vlgmr.msra.gmra.mrb[32].mxu0 %vm609_vm5, %v16309_v58  ;;  %v16314_v58 = vld [vmem:[%s16450_s30 + $0xa8] sm:$0xff]   ;;  %v3890_v45 = vrot.slane %v3888_v8, 4  ;;  %v16316_v8 = vld [vmem:[%s16450_s30 + $0xe0] sm:$0xff]  }
 0x182   : > { %15202 = vmatpush3.bf16.msra.mxu0 %v8949_v42  ;;  %14867 = vmatprep.mubr.msk.bf16.mxu1 %vm609_vm5, %v13172_v15  ;;  %v13176_v15 = vcombine.low %v3882_v28, %v3885_v37  ;;  %v3909_v42 = vrot.slane %v17659_v1, 7  ;;  %v17747_v28 = vld [vmem:[%s16450_s30 + $0x42c] sm:$0xf] }
 0x183   : > { %15173 = vmatprep.mubr.msk.bf16.mxu0 %vm609_vm5, %v16310_v39  ;;  %16222 = vmatprep.subr.msk.bf16.mxu1 %vm383_vm0, %v17609_v27  ;;  %v17675_v39 = vld [vmem:[%s16450_s30 + $0x1c0] sm:$0x8]  ;;  %v3892_v34 = vsel %vm17354_vm9, %v3890_v45, %v3891_v38  ;;  %v21631_v27 = vrot.slane %v17720_v24, 7  ;;  %v4610_v38 = vrot.slane %v17729_v0, 7  ;;  %v17765_v45 = vrot.slane %v21634_v51, 4 }
 0x184   : > { %16231 = vmatprep.subr.msk.bf16.mxu0 %vm383_vm0, %v17621_v20  ;;  %v3911_v10 = vrot.slane %v3909_v42, 4  ;;  %v13177_v43 = vcombine.low %v3889_v47, %v3892_v34  ;;  %v17785_v47 = vld [vmem:[%s16450_s30 + $0x428] sm:$0x8]  ;;  %v3903_v34 = vsel %vm17354_vm9, %v13117_v23, %v3902_v4  ;;  %v17872_v51 = vld [vmem:[%s16450_s30 + $0x498] sm:$0x8]  ;;  %v21736_v0 = vrot.slane %v17732_v25, 11 }
 0x185   : > { %v21739_v25 = vrot.slane %v17720_v24, 7 }
 0x186   : > { %v3913_v4 = vsel %vm17354_vm9, %v3911_v10, %v3912_v19  ;;  %v17831_v19 = vld [vmem:[%s16450_s30 + $0x44c] sm:$0x7] }
 0x188   : > { %14868 = vmatmul.mubr.msk.bf16.gmra.mrb[36].mxu1 %vm609_vm5, %v13173_v52  ;;  %v13118_v52 = vrot.slane %v17675_v39, 11  ;;  %v17835_v39 = vld [vmem:[%s16450_s30 + $0x460] sm:$0x8] }
 0x189   : > { %15174 = vmatmul.mubr.msk.bf16.gmra.mrb[36].mxu0 %vm609_vm5, %v16311_v32  ;;  %14871 = vmatprep.mubr.msk.bf16.mxu1 %vm609_vm5, %v13174_v17  ;;  %v3896_v32 = vsel %vm17354_vm9, %v13116_v21, %v3895_v9  ;;  %v3899_v17 = vsel %vm17354_vm9, %v3897_v49, %v3898_v18  ;;  %v17744_v9 = vld [vmem:[%s16450_s30 + $0x410] sm:$0xf]  ;;  %v17768_v21 = vld [vmem:[%s16450_s30 + $0x3f8] sm:$0x7]  ;;  %v17771_v18 = vld [vmem:[%s16450_s30 + $0x40c] sm:$0x8] }
 0x18a   : > { %15177 = vmatprep.mubr.msk.bf16.mxu0 %vm609_vm5, %v16312_v5  ;;  %v4607_v5 = vrot.slane %v17687_v12, 7  ;;  %v13178_v37 = vcombine.low %v3896_v32, %v3899_v17  ;;  %v21633_v49 = vrot.slane %v17747_v28, 7  ;;  %v17797_v32 = vrot.slane %v21631_v27, 4  ;;  %v16317_v17 = vld [vmem:[%s16450_s30 + $0xfc] sm:$0xff]  }
 0x18b   : > { %v3910_v54 = vsel %vm17354_vm9, %v13118_v52, %v3909_v42  ;;  %v13201_v23 = vrot.slane %v17771_v18, 11  ;;  %v4631_v42 = vrot.slane %v17782_v41, 7  ;;  %v16318_v18 = vld [vmem:[%s16450_s30 + $0x118] sm:$0xff]  }
 0x18c   : > { %v17759_v20 = vrot.slane %v4607_v5, 4  ;;  %v17828_v10 = vrot.slane %v21633_v49, 4  ;;  %v17840_v41 = vld [vmem:[%s16450_s30 + $0x49c] sm:$0xf]  ;;  %v13180_v52 = vcombine.low %v3910_v54, %v3913_v4  ;;  %v3920_v54 = vsel %vm17354_vm9, %v17725_v62, %v3919_v59  ;;  %v17865_v49 = vld [vmem:[%s16450_s30 + $0x484] sm:$0x7] }
 0x18d   : > { %v17899_v59 = vld [vmem:[%s16450_s30 + $0x4b4] sm:$0x8] }
 0x190   : > { %14872 = vmatmul.mubr.msk.bf16.gmra.mrb[40].mxu1 %vm609_vm5, %v13175_v40  ;;  %v13198_v40 = vrot.slane %v17715_v36, 11  ;;  %v17924_v36 = vld [vmem:[%s16450_s30 + $0xb4] sm:$0xf] }
 0x191   : > { %15178 = vmatmul.mubr.msk.bf16.gmra.mrb[40].mxu0 %vm609_vm5, %v16313_v26  ;;  %14875 = vmatprep.mubr.msk.bf16.mxu1 %vm609_vm5, %v13176_v15  ;;  %v17751_v26 = vld [vmem:[%s16450_s30 + $0x3dc] sm:$0x7]  ;;  %v21632_v15 = vrot.slane %v17744_v9, 7 }
 0x192   : > { %15181 = vmatprep.mubr.msk.bf16.mxu0 %vm609_vm5, %v16314_v58  ;;  %v17845_v58 = vld [vmem:[%s16450_s30 + $0x468] sm:$0x7] }
 0x193   : > { %v4630_v1 = vrot.slane %v21632_v15, 4 }
 0x195   : > { %v17973_v24 = vsel %vm17354_vm9, %v4630_v1, %v4631_v42  ;;  %v18023_v1 = vld [vmem:[%s16450_s30 + $0xd0] sm:$0xf]  ;;  %v18026_v42 = vld [vmem:[%s16450_s30 + $0x28] sm:$0xf] }
 0x196   : > { %21744 = vst [vmem:[#allocation6_spill] sm:$0xff] %v17973_v24  ;;  %v21751_v24 = vrot.slane %v17924_v36, 5 }
 0x198   : > { %14876 = vmatmul.mubr.msk.bf16.gmra.mrb[44].mxu1 %vm609_vm5, %v13177_v43  ;;  %v17801_v43 = vld [vmem:[%s16450_s30 + $0x464] sm:$0xf] }
 0x199   : > { %15182 = vmatmul.mubr.msk.bf16.gmra.mrb[44].mxu0 %vm609_vm5, %v16315_v61  ;;  %14879 = vmatprep.mubr.msk.bf16.mxu1 %vm609_vm5, %v13178_v37  ;;  %v17804_v61 = vld [vmem:[%s16450_s30 + $0x480] sm:$0xf]  ;;  %v21635_v37 = vrot.slane %v17776_v31, 7  ;;  %v21636_v27 = vrot.slane %v17801_v43, 7 }
 0x19a   : > { %15185 = vmatprep.mubr.msk.bf16.mxu0 %vm609_vm5, %v16316_v8  ;;  %v13179_v8 = vcombine.low %v3903_v34, %v3906_v33  ;;  %v21637_v15 = vrot.slane %v17804_v61, 7  ;;  %v17848_v34 = vld [vmem:[%s16450_s30 + $0x47c] sm:$0x8]  ;;  %v3917_v33 = vsel %vm17354_vm9, %v13119_v44, %v3916_v63  ;;  %v17876_v44 = vld [vmem:[%s16450_s30 + $0x4d4] sm:$0xf] }
 0x19b   : > { %v17861_v4 = vrot.slane %v21635_v37, 4  ;;  %v17881_v62 = vrot.slane %v21636_v27, 4  ;;  %v17890_v37 = vld [vmem:[%s16450_s30 + $0x4f0] sm:$0xf]  ;;  %v17896_v63 = vld [vmem:[%s16450_s30 + $0x4a0] sm:$0x7] }
 0x19c   : > { %v17887_v3 = vrot.slane %v21637_v15, 4  ;;  %v21642_v12 = vrot.slane %v17876_v44, 7  ;;  %v17944_v27 = vld [vmem:[%s16450_s30 + $0x4d0] sm:$0x8]  ;;  %v17947_v15 = vld [vmem:[%s16450_s30 + $0x4d8] sm:$0x7] }
 0x19d   : > { %v21745_v6 = vrot.slane %v17890_v37, 7 }
 0x19f   : > { %v18006_v35 = vrot.slane %v21745_v6, 4 }
 0x1a0   : > { %14880 = vmatmul.mubr.msk.bf16.gmra.mrb[48].mxu1 %vm609_vm5, %v13179_v8  ;;  %v13181_v8 = vcombine.low %v3917_v33, %v3920_v54  ;;  %v13206_v33 = vrot.slane %v17872_v51, 11 }
 0x1a1   : > { %15186 = vmatmul.mubr.msk.bf16.gmra.mrb[48].mxu0 %vm609_vm5, %v16317_v17  ;;  %14883 = vmatprep.mubr.msk.bf16.mxu1 %vm609_vm5, %v13180_v52  ;;  %v17909_v17 = vsel %vm17354_vm9, %v13198_v40, %v4607_v5  ;;  %v17916_v52 = vsel %vm17354_vm9, %v17759_v20, %v4610_v38  ;;  %v21735_v5 = vrot.slane %v17690_v13, 7  ;;  %v21737_v20 = vrot.slane %v17751_v26, 7 }
 0x1a2   : > { %15189 = vmatprep.mubr.msk.bf16.mxu0 %vm609_vm5, %v16318_v18  ;;  %v17920_v18 = vld [vmem:[%s16450_s30 + $0x4bc] sm:$0x7]  ;;  %v21738_v38 = vrot.slane %v17840_v41, 7  ;;  %v17997_v13 = vrot.slane %v21642_v12, 4  ;;  %v18020_v12 = vld [vmem:[%s16450_s30 + $0xb8] sm:$0x1] }
 0x1a3   : > { %v17932_v40 = vsel %vm17354_vm9, %v21736_v0, %v21735_v5  ;;  %v17939_v51 = vsel %vm17354_vm9, %v17765_v45, %v21737_v20  ;;  %v21740_v5 = vrot.slane %v17754_v48, 11  ;;  %v21741_v45 = vrot.slane %v17768_v21, 7  ;;  %v17976_v48 = vld [vmem:[%s16450_s30 + $0x4ec] sm:$0x8] }
 0x1a4   : > { %v4665_v54 = vrot.slane %v21738_v38, 4  ;;  %v21742_v20 = vrot.slane %v17744_v9, 7  ;;  %v17982_v21 = vld [vmem:[%s16450_s30 + $0xc] sm:$0xf]  ;;  %v18001_v9 = vld [vmem:[%s16450_s30 + $0xb0] sm:$0xe] }
 0x1a5   : > { %v17956_v26 = vsel %vm17354_vm9, %v21740_v5, %v21739_v25  ;;  %v17963_v0 = vsel %vm17354_vm9, %v17797_v32, %v21741_v45  ;;  %v17979_v25 = vld [vmem:[%s16450_s30 + $0x4f4] sm:$0x7]  ;;  %v4666_v45 = vrot.slane %v17896_v63, 7  ;;  %v21749_v63 = vrot.slane %v17815_v11, 7 }
 0x1a6   : > { %v17969_v38 = vsel %vm17354_vm9, %v13201_v23, %v21742_v20  ;;  %v16319_v5 = vld [vmem:[%s16450_s30 + $0x134] sm:$0xff]   ;;  %v17990_v23 = vrot.slane %v21638_v55, 4  ;;  %v21747_v55 = vrot.slane %v17785_v47, 11  ;;  %v21752_v47 = vrot.slane %v17776_v31, 7 }
 0x1a7   : > { %21743 = vst [vmem:[#allocation5_spill] sm:$0xff] %v17969_v38  ;;  %v16320_v32 = vld [vmem:[%s16450_s30 + $0x150] sm:$0xff]   ;;  %v18044_v20 = vsel %vm17354_vm9, %v17828_v10, %v21749_v63  ;;  %v21753_v11 = vrot.slane %v17818_v60, 11  ;;  %v21755_v63 = vrot.slane %v17831_v19, 7  ;;  %v21760_v60 = vrot.slane %v17845_v58, 7 }
 0x1a8   : > { %14884 = vmatmul.mubr.msk.bf16.gmra.mrb[52].mxu1 %vm609_vm5, %v13181_v8  ;;  %v21746_v8 = vrot.slane %v17747_v28, 7  ;;  %21750 = vst [vmem:[#allocation12_spill] sm:$0xff] %v18044_v20  ;;  %v18052_v28 = vld [vmem:[%s16450_s30 + $0x8] sm:$0xe]  ;;  %v21765_v58 = vrot.slane %v17865_v49, 7  ;;  %v21773_v38 = vrot.slane %v18023_v1, 5 }
 0x1a9   : > { %15190 = vmatmul.mubr.msk.bf16.gmra.mrb[52].mxu0 %vm609_vm5, %v16319_v5  ;;  %14887 = vmatprep.mubr.msk.bf16.mxu1 %vm609_vm5, %v17375_v30  ;;  %v18049_v30 = vrot.slane %v21751_v24, 4  ;;  %v18064_v10 = vsel %vm17354_vm9, %v21753_v11, %v21752_v47  ;;  %v18071_v24 = vsel %vm17354_vm9, %v17861_v4, %v21755_v63  ;;  %v21758_v5 = vrot.slane %v17835_v39, 11  ;;  %v18092_v4 = vld [vmem:[%s16450_s30 + $0xd4] sm:$0x1]  ;;  %v18095_v47 = vld [vmem:[%s16450_s30 + $0x24] sm:$0xe] }
 0x1aa   : > { %v18037_v6 = vsel %vm17354_vm9, %v21747_v55, %v21746_v8  ;;  %v18055_v55 = vld [vmem:[%s16450_s30 + $0x10] sm:$0x1]  ;;  %15193 = vmatprep.mubr.msk.bf16.mxu0 %vm609_vm5, %v16320_v32  ;;  %21754 = vst [vmem:[#allocation8_spill] sm:$0xff] %v18064_v10  ;;  %21756 = vst [vmem:[#allocation14_spill] sm:$0xff] %v18071_v24  ;;  %v21757_v8 = vrot.slane %v17801_v43, 7  ;;  %v18086_v19 = vsel %vm17354_vm9, %v17881_v62, %v21760_v60  ;;  %v21762_v39 = vrot.slane %v17804_v61, 7 }
 0x1ab   : > { %21748 = vst [vmem:[#allocation7_spill] sm:$0xff] %v18037_v6  ;;  %21761 = vst [vmem:[#allocation10_spill] sm:$0xff] %v18086_v19  ;;  %v18089_v32 = vld [vmem:[%s16450_s30 + $0xcc] sm:$0xe]  ;;  %v21763_v43 = vrot.slane %v17848_v34, 11  ;;  %v18110_v62 = vsel %vm17354_vm9, %v17887_v3, %v21765_v58  ;;  %v21767_v11 = vrot.slane %v17840_v41, 7  ;;  %v18120_v61 = vsel %vm17354_vm9, %v4665_v54, %v4666_v45 }
 0x1ac   : > { %v18079_v31 = vsel %vm17354_vm9, %v21758_v5, %v21757_v8  ;;  %21766 = vst [vmem:[#allocation13_spill] sm:$0xff] %v18110_v62  ;;  %21769 = vst [vmem:[#allocation16_spill] sm:$0xff] %v18120_v61  ;;  %v18123_v34 = vld [vmem:[%s16450_s30 + $0x2c] sm:$0x1]  ;;  %v18129_v49 = vld [vmem:[%s16450_s30 + $0x44] sm:$0xf] }
 0x1ad   : > { %21759 = vst [vmem:[#allocation9_spill] sm:$0xff] %v18079_v31  ;;  %v18103_v5 = vsel %vm17354_vm9, %v21763_v43, %v21762_v39  ;;  %v18116_v63 = vsel %vm17354_vm9, %v13206_v33, %v21767_v11  ;;  %v18126_v8 = vld [vmem:[%s16450_s30 + $0xec] sm:$0xf]  ;;  %v5132_v60 = vrot.slane %v18020_v12, 5  ;;  %v13634_v3 = vrot.slane %v18052_v28, 9 }
 0x1ae   : > { %21764 = vst [vmem:[#allocation11_spill] sm:$0xff] %v18103_v5  ;;  %21768 = vst [vmem:[#allocation15_spill] sm:$0xff] %v18116_v63  ;;  %v16321_v39 = vld [vmem:[%s16450_s30 + $0x16c] sm:$0xff]   ;;  %v21770_v54 = vrot.slane %v17982_v21, 5  ;;  %v9341_v43 = vrot.slane %v18055_v55, 5  ;;  %v13240_v58 = vrot.slane %v18089_v32, 9 }
 0x1af   : > { %v16322_v12 = vld [vmem:[%s16450_s30 + $0x188] sm:$0xff]   ;;  %v13635_v28 = vrot.slane %v18095_v47, 9  ;;  %v9348_v41 = vrot.slane %v18123_v34, 5  ;;  %v5143_v33 = vrot.slane %v18126_v8, 5  ;;  %v4967_v34 = vld [vmem:[%s16450_s30 + $0xf0] sm:$0x1] }
 0x1b0   : > { %v9340_v45 = vrot.slane %v21770_v54, 4  ;;  %v4965_v11 = vld [vmem:[%s16450_s30 + $0xe8] sm:$0xe]  ;;  %v18157_v8 = vld [vmem:[%s16450_s30 + $0x40] sm:$0xe]  ;;  %14888 = vmatmul.mubr.msk.bf16.gmra.mrb[56].mxu1 %vm609_vm5, %v17398_v22  ;;  %v21771_v55 = vrot.slane %v17868_v2, 7 }
 0x1b1   : > { %v21772_v32 = vrot.slane %v17899_v59, 11  ;;  %v5138_v62 = vrot.slane %v21773_v38, 4  ;;  %v21774_v5 = vrot.slane %v18026_v42, 5  ;;  %v18176_v31 = vld [vmem:[%s16450_s30 + $0x48] sm:$0x1]  ;;  %15194 = vmatmul.mubr.msk.bf16.gmra.mrb[56].mxu0 %vm609_vm5, %v16321_v39  ;;  %14891 = vmatprep.mubr.msk.bf16.mxu1 %vm609_vm5, %v17403_v29  ;;  %v21775_v2 = vrot.slane %v17920_v18, 7 }
 0x1b2   : > { %v18179_v22 = vld [vmem:[%s16450_s30 + $0x104] sm:$0xe]  ;;  %v21776_v38 = vrot.slane %v17876_v44, 7  ;;  %v21778_v39 = vrot.slane %v17947_v15, 7  ;;  %v18207_v18 = vld [vmem:[%s16450_s30 + $0x108] sm:$0xf]  ;;  %15197 = vmatprep.mubr.msk.bf16.mxu0 %vm609_vm5, %v16322_v12 }
 0x1b3   : > { %v18169_v47 = vsel %vm17354_vm9, %v21772_v32, %v21771_v55  ;;  %v9347_v19 = vrot.slane %v21774_v5, 4  ;;  %v18189_v59 = vsel %vm17354_vm9, %v17990_v23, %v21775_v2  ;;  %v21777_v5 = vrot.slane %v17944_v27, 11  ;;  %v18210_v23 = vld [vmem:[%s16450_s30 + $0x10c] sm:$0x1]  ;;  %v18213_v44 = vld [vmem:[%s16450_s30 + $0x60] sm:$0xf] }
 0x1b4   : > { %v18204_v29 = vsel %vm17354_vm9, %v17997_v13, %v21778_v39  ;;  %v13241_v27 = vrot.slane %v4965_v11, 9  ;;  %v5145_v32 = vrot.slane %v5143_v33, 4  ;;  %v5146_v2 = vrot.slane %v4967_v34, 5  ;;  %v18220_v13 = vpop.f32.mrb[0].mxu1  ;;  %v18238_v63 = vld [vmem:[%s16450_s30 + $0x7c] sm:$0xf] }
 0x1b5   : > { %v18197_v55 = vsel %vm17354_vm9, %v21777_v5, %v21776_v38  ;;  %21779 = vst [vmem:[#allocation17_spill] sm:$0xff] %v18204_v29  ;;  %v18218_v38 = vld [vmem:[%s16450_s30 + $0x124] sm:$0xf]  ;;  %v21780_v39 = vrot.slane %v17890_v37, 7  ;;  %v21781_v54 = vrot.slane %v17976_v48, 11  ;;  %v21783_v11 = vrot.slane %v18129_v49, 5 }
 0x1b6   : > { %v16323_v5 = vld [vmem:[%s16450_s30 + $0x1a4] sm:$0xff]   ;;  %v18240_v24 = vpop.f32.mrb[1].mxu1  ;;  %v16324_v37 = vld [vmem:[%s16450_s30 + $0x3f0] sm:$0xff]   ;;  %v21784_v48 = vrot.slane %v17979_v25, 7  ;;  %v18253_v34 = vld [vmem:[%s16450_s30 + $0x5c] sm:$0xe] }
 0x1b7   : > { %v18229_v61 = vsel %vm17354_vm9, %v21781_v54, %v21780_v39  ;;  %v18233_v12 = vrot.slane %v21783_v11, 4  ;;  %v18256_v10 = vpop.f32.mrb[2].mxu1  ;;  %v21786_v20 = vrot.slane %v17924_v36, 5  ;;  %v21787_v25 = vrot.slane %v18001_v9, 9  ;;  %v18278_v36 = vld [vmem:[%s16450_s30 + $0x64] sm:$0x1] }
 0x1b8   : > { %21782 = vst [vmem:[#allocation18_spill] sm:$0xff] %v18229_v61  ;;  %v18248_v54 = vsel %vm17354_vm9, %v18006_v35, %v21784_v48  ;;  %v18269_v35 = vsel %vm16463_vm6, %v18049_v30, %v5132_v60  ;;  %v21788_v48 = vrot.slane %v17982_v21, 5  ;;  %v18289_v30 = vld [vmem:[%s21612_s1 + $0x1a] sm:$0x3]  ;;  %v18293_v21 = vsel %vm16463_vm6, %v9340_v45, %v9341_v43  ;;  %v18308_v15 = vld [vmem:[%s16450_s30 + $0x120] sm:$0xe]  ;;  %14892 = vmatmul.mubr.msk.bf16.gmra.mrb[60].mxu1 %vm609_vm5, %v17440_v7 }
 0x1b9   : > { %21785 = vst [vmem:[#allocation19_spill] sm:$0xff] %v18248_v54  ;;  %v18264_v14 = vsel %vm16463_vm6, %v21787_v25, %v21786_v20  ;;  %v18282_v20 = vld [vmem:[%s16450_s30 + $0x140] sm:$0xf]  ;;  %v18284_v25 = vpop.f32.mrb[3].mxu1  ;;  %21791 = vst [vmem:[#allocation22_spill] sm:$0xff] %v18293_v21  ;;  %v21792_v60 = vrot.slane %v18023_v1, 5  ;;  %v18319_v43 = vsel %vm16463_vm6, %v9347_v19, %v9348_v41  ;;  %15198 = vmatmul.mubr.msk.bf16.gmra.mrb[60].mxu0 %vm609_vm5, %v16323_v5  ;;  %14897 = vmatprep.mubr.msk.bf16.mxu1 %vm609_vm5, %v17526_v57 }
 0x1ba   : > { %v18275_v11 = vsel %vm16463_vm6, %v13634_v3, %v21788_v48  ;;  %21790 = vst [vmem:[#allocation21_spill] sm:$0xff] %v18284_v25  ;;  %v21794_v48 = vrot.slane %v18026_v42, 5  ;;  %v21656_v39 = vrot.slane %v18238_v63, 5  ;;  %v21795_v45 = vrot.slane %v18092_v4, 5  ;;  %21797 = vst [vmem:[#allocation25_spill] sm:$0xff] %v18319_v43  ;;  %15203 = vmatprep.mubr.msk.bf16.mxu0 %vm609_vm5, %v16324_v37  ;;  %v16326_v29 = vld [vmem:[%s16450_s30 + $0x428] sm:$0xff]  }
 0x1bb   : > { %21789 = vst [vmem:[#allocation20_spill] sm:$0xff] %v18275_v11  ;;  %v18299_v3 = vsel %vm16463_vm6, %v13240_v58, %v21792_v60  ;;  %v18323_v42 = vsel %vm16463_vm6, %v13241_v27, %v5143_v33  ;;  %v18327_v58 = vsel %vm16463_vm6, %v5145_v32, %v5146_v2  ;;  %v18333_v4 = vld [vmem:[%s16450_s30 + $0x78] sm:$0xe]  ;;  %v18336_v60 = vld [vmem:[%s16450_s30 + $0x80] sm:$0x1]  ;;  %v21800_v19 = vrot.slane %v18207_v18, 5 }
 0x1bc   : > { %21793 = vst [vmem:[#allocation23_spill] sm:$0xff] %v18299_v3  ;;  %v18305_v9 = vsel %vm16463_vm6, %v13635_v28, %v21794_v48  ;;  %v18315_v1 = vsel %vm16463_vm6, %v5138_v62, %v21795_v45  ;;  %21798 = vst [vmem:[#allocation26_spill] sm:$0xff] %v18323_v42  ;;  %v18330_v28 = vld [vmem:[%s16450_s30 + $0x128] sm:$0x1]  ;;  %v13637_v41 = vrot.slane %v18253_v34, 9  ;;  %v21801_v33 = vrot.slane %v18213_v44, 5 }
 0x1bd   : > { %21796 = vst [vmem:[#allocation24_spill] sm:$0xff] %v18315_v1  ;;  %21799 = vst [vmem:[#allocation27_spill] sm:$0xff] %v18327_v58  ;;  %v5152_v62 = vrot.slane %v21800_v19, 4  ;;  %v9362_v32 = vrot.slane %v18278_v36, 5  ;;  %v18347_v2 = vld [vmem:[%s16450_s30 + $0x13c] sm:$0xe] }
 0x1be   : > { %v9361_v27 = vrot.slane %v21801_v33, 4  ;;  %v18354_v7 = vsel %vm383_vm0, %v18289_v30, 0  ;;  %v21803_v48 = vrot.slane %v18218_v38, 5  ;;  %v18363_v19 = vld [vmem:[%s16450_s30 + $0x98] sm:$0xf]  ;;  %v18370_v33 = vrot.slane %v21656_v39, 4 }
 0x1bf   : > { %21802 = vst [vmem:[#allocation28_spill] sm:$0xff] %v18354_v7  ;;  %v18376_v7 = vpop.f32.mrb[4].mxu1  ;;  %v16325_v36 = vld [vmem:[%s16450_s30 + $0x40c] sm:$0xff]   ;;  %v18386_v39 = vld [vmem:[%s16450_s30 + $0x144] sm:$0x1]  ;;  %v21805_v5 = vrot.slane %v18129_v49, 5 }
 0x1c0   : > { %v18359_v45 = vrot.slane %v21803_v48, 4  ;;  %v18374_v48 = vld [vmem:[%s16450_s30 + $0x15c] sm:$0xf]  ;;  %21804 = vst [vmem:[#allocation29_spill] sm:$0xff] %v18376_v7  ;;  %v18390_v6 = vld [vmem:[%s16450_s30 + $0x94] sm:$0xe]  ;;  %14898 = vmatmul.mubr.msk.bf16.vlgmr.msra.gmra.mrb[32].mxu1 %vm609_vm5, %v17548_v50 }
 0x1c1   : > { %v18392_v7 = vpop.f32.mrb[5].mxu1  ;;  %v18401_v57 = vld [vmem:[%s16450_s30 + $0x9c] sm:$0x1]  ;;  %v18405_v34 = vld [vmem:[%s16450_s30 + $0xb4] sm:$0xf]  ;;  %v21806_v1 = vrot.slane %v18157_v8, 9  ;;  %14930 = vmatpush3.bf16.msra.mxu1 %v17737_v56  ;;  %15204 = vmatmul.mubr.msk.bf16.vlgmr.msra.gmra.mrb[32].mxu0 %vm609_vm5, %v16325_v36 }
 0x1c2   : > { %v18407_v61 = vpop.f32.mrb[6].mxu1  ;;  %v18423_v3 = vld [vmem:[%s16450_s30 + $0x158] sm:$0xe]  ;;  %v21807_v43 = vrot.slane %v18176_v31, 5  ;;  %v21808_v8 = vrot.slane %v18207_v18, 5  ;;  %v21810_v37 = vrot.slane %v18210_v23, 5  ;;  %v18464_v18 = vsel %vm16463_vm6, %v9361_v27, %v9362_v32  ;;  %15236 = vmatpush3.bf16.msra.mxu0 %v17741_v53  ;;  %14901 = vmatprep.mubr.msk.bf16.mxu1 %vm609_vm5, %v17551_v46 }
 0x1c3   : > { %v18420_v54 = vsel %vm16463_vm6, %v21806_v1, %v21805_v5  ;;  %v18427_v11 = vld [vmem:[%s16450_s30 + $0x178] sm:$0xf]  ;;  %v18429_v25 = vpop.f32.mrb[7].mxu1  ;;  %v21809_v1 = vrot.slane %v18179_v22, 9  ;;  %v21812_v31 = vrot.slane %v18282_v20, 5  ;;  %21815 = vst [vmem:[#allocation32_spill] sm:$0xff] %v18464_v18  ;;  %15207 = vmatprep.mubr.msk.bf16.mxu0 %vm609_vm5, %v16326_v29  ;;  %16223 = vmatprep.subr.msk.bf16.mxu1 %vm383_vm0, %v18289_v30 }
 0x1c4   : > { %v18436_v49 = vsel %vm16463_vm6, %v18233_v12, %v21807_v43  ;;  %v18450_v21 = vsel %vm16463_vm6, %v5152_v62, %v21810_v37  ;;  %v4979_v42 = vld [vmem:[%s16450_s30 + $0x160] sm:$0x1]  ;;  %v9162_v12 = vld [vmem:[%s16450_s30 + $0xb0] sm:$0xe]  ;;  %v21813_v43 = vrot.slane %v18213_v44, 5  ;;  %v5167_v23 = vrot.slane %v18386_v39, 5 }
 0x1c5   : > { %v18444_v5 = vsel %vm16463_vm6, %v21809_v1, %v21808_v8  ;;  %21811 = vst [vmem:[#allocation30_spill] sm:$0xff] %v18450_v21  ;;  %v5166_v58 = vrot.slane %v21812_v31, 4  ;;  %v18468_v62 = vld [vmem:[%s16450_s30 + $0xb8] sm:$0x1]  ;;  %v9380_v37 = vrot.slane %v18405_v34, 5  ;;  %v21816_v27 = vrot.slane %v18363_v19, 5 }
 0x1c6   : > { %v18460_v22 = vsel %vm16463_vm6, %v13637_v41, %v21813_v43  ;;  %v4980_v8 = vld [vmem:[%s16450_s30 + $0x174] sm:$0xe]  ;;  %v18477_v44 = vld [vmem:[%s21612_s1 + $0x2c] sm:$0x3]  ;;  %v13639_v41 = vrot.slane %v18390_v6, 9  ;;  %v9376_v32 = vrot.slane %v18401_v57, 5 }
 0x1c7   : > { %21814 = vst [vmem:[#allocation31_spill] sm:$0xff] %v18460_v22  ;;  %v9375_v39 = vrot.slane %v21816_v27, 4  ;;  %v5178_v1 = vrot.slane %v18427_v11, 5  ;;  %v13245_v6 = vrot.slane %v18423_v3, 9  ;;  %v21817_v31 = vrot.slane %v18374_v48, 5  ;;  %v18504_v3 = vpop.f32.mrb[8].mxu1  ;;  %16232 = vmatprep.subr.msk.bf16.mxu0 %vm383_vm0, %v18477_v44 }
 0x1c8   : > { %v4982_v57 = vld [vmem:[%s16450_s30 + $0x17c] sm:$0x1]  ;;  %v18495_v27 = vld [vmem:[%s16450_s30 + $0xd0] sm:$0xf]  ;;  %v5174_v56 = vrot.slane %v4979_v42, 5  ;;  %v13640_v11 = vrot.slane %v9162_v12, 9 }
 0x1c9   : > { %v5173_v43 = vrot.slane %v21817_v31, 4  ;;  %v9383_v36 = vrot.slane %v18468_v62, 5  ;;  %v13246_v34 = vrot.slane %v4980_v8, 9  ;;  %v18502_v50 = vld [vmem:[%s16450_s30 + $0x194] sm:$0xf]  ;;  %v16327_v31 = vld [vmem:[%s16450_s30 + $0x444] sm:$0xff]  }
 0x1ca   : > { %v21818_v46 = vrot.slane %v18218_v38, 5  ;;  %v21819_v42 = vrot.slane %v18308_v15, 9  ;;  %v21821_v62 = vrot.slane %v18330_v28, 5  ;;  %v9382_v30 = vrot.slane %v9380_v37, 4  ;;  %v18528_v8 = vld [vmem:[%s16450_s30 + $0xcc] sm:$0xe]  ;;  %15208 = vmatmul.mubr.msk.bf16.gmra.mrb[36].mxu0 %vm609_vm5, %v16327_v31 }
 0x1cb   : > { %v18531_v53 = vld [vmem:[%s16450_s30 + $0xd4] sm:$0x1]  ;;  %v18533_v15 = vpop.f32.mrb[9].mxu1  ;;  %v21823_v38 = vrot.slane %v18238_v63, 5  ;;  %v21824_v28 = vrot.slane %v18333_v4, 9  ;;  %v21826_v21 = vrot.slane %v18336_v60, 5 }
 0x1cc   : > { %v18518_v12 = vsel %vm16463_vm6, %v21819_v42, %v21818_v46  ;;  %v18525_v29 = vsel %vm16463_vm6, %v18359_v45, %v21821_v62  ;;  %v5180_v46 = vrot.slane %v5178_v1, 4  ;;  %v5181_v42 = vrot.slane %v4982_v57, 5  ;;  %v18547_v18 = vld [vmem:[%s16450_s30 + $0xec] sm:$0xf]  ;;  %v18549_v22 = vpop.f32.mrb[10].mxu1 }
 0x1cd   : > { %21820 = vst [vmem:[#allocation33_spill] sm:$0xff] %v18518_v12  ;;  %21822 = vst [vmem:[#allocation34_spill] sm:$0xff] %v18525_v29  ;;  %v18543_v45 = vsel %vm16463_vm6, %v21824_v28, %v21823_v38  ;;  %v9387_v62 = vrot.slane %v18495_v27, 5  ;;  %v18556_v63 = vsel %vm16463_vm6, %v18370_v33, %v21826_v21  ;;  %v21828_v4 = vrot.slane %v18282_v20, 5  ;;  %v18571_v60 = vld [vmem:[%s16450_s30 + $0x190] sm:$0xe] }
 0x1ce   : > { %21825 = vst [vmem:[#allocation35_spill] sm:$0xff] %v18543_v45  ;;  %21827 = vst [vmem:[#allocation36_spill] sm:$0xff] %v18556_v63  ;;  %v21829_v38 = vrot.slane %v18347_v2, 9  ;;  %v18568_v27 = vsel %vm16463_vm6, %v5166_v58, %v5167_v23  ;;  %v18574_v28 = vld [vmem:[%s16450_s30 + $0x198] sm:$0x1]  ;;  %v18577_v33 = vpop.f32.mrb[11].mxu1  ;;  %v18588_v58 = vsel %vm16463_vm6, %v9375_v39, %v9376_v32  ;;  %v18598_v21 = vsel %vm16463_vm6, %v5173_v43, %v5174_v56 }
 0x1cf   : > { %21831 = vst [vmem:[#allocation38_spill] sm:$0xff] %v18568_v27  ;;  %v16328_v20 = vld [vmem:[%s16450_s30 + $0x460] sm:$0xff]   ;;  %v21832_v2 = vrot.slane %v18363_v19, 5  ;;  %21834 = vst [vmem:[#allocation40_spill] sm:$0xff] %v18588_v58  ;;  %v21835_v23 = vrot.slane %v18374_v48, 5  ;;  %v18609_v39 = vsel %vm16463_vm6, %v13246_v34, %v5178_v1  ;;  %v13641_v48 = vrot.slane %v18528_v8, 9 }
 0x1d0   : > { %v18564_v57 = vsel %vm16463_vm6, %v21829_v38, %v21828_v4  ;;  %21837 = vst [vmem:[#allocation42_spill] sm:$0xff] %v18598_v21  ;;  %v18601_v19 = vld [vmem:[%s16450_s30 + $0xe8] sm:$0xe]  ;;  %21839 = vst [vmem:[#allocation44_spill] sm:$0xff] %v18609_v39  ;;  %v9390_v32 = vrot.slane %v18531_v53, 5  ;;  %v21840_v56 = vld [vmem:[#allocation4_spill] sm:$0xff]  ;;  %v21841_v53 = vcombine.low %v17909_v17, %v17916_v52  ;;  %v18634_v8 = vsel %vm16463_vm6, %v9382_v30, %v9383_v36 }
 0x1d1   : > { %21830 = vst [vmem:[#allocation37_spill] sm:$0xff] %v18564_v57  ;;  %v18584_v4 = vsel %vm16463_vm6, %v13639_v41, %v21832_v2  ;;  %v18594_v38 = vsel %vm16463_vm6, %v13245_v6, %v21835_v23  ;;  %v18605_v41 = vsel %vm16463_vm6, %v13640_v11, %v9380_v37  ;;  %v18614_v6 = vld [vmem:[%s16450_s30 + $0x1b0] sm:$0xf]  ;;  %v18617_v43 = vld [vmem:[%s16450_s30 + $0x108] sm:$0xf]  ;;  %14902 = vmatmul.mubr.msk.bf16.gmra.mrb[36].mxu1 %vm609_vm5, %v21840_v56  ;;  %v9389_v2 = vrot.slane %v9387_v62, 4 }
 0x1d2   : > { %21833 = vst [vmem:[#allocation39_spill] sm:$0xff] %v18584_v4  ;;  %21836 = vst [vmem:[#allocation41_spill] sm:$0xff] %v18594_v38  ;;  %v13247_v37 = vrot.slane %v18571_v60, 9  ;;  %v5188_v1 = vrot.slane %v18574_v28, 5  ;;  %v9394_v34 = vrot.slane %v18547_v18, 5  ;;  %14905 = vmatprep.mubr.msk.bf16.mxu1 %vm609_vm5, %v21841_v53  ;;  %v18638_v60 = vsel %vm16463_vm6, %v5180_v46, %v5181_v42  ;;  %15211 = vmatprep.mubr.msk.bf16.mxu0 %vm609_vm5, %v16328_v20  ;;  %v18654_v53 = vpop.f32.mrb[12].mxu1 }
 0x1d3   : > { %21838 = vst [vmem:[#allocation43_spill] sm:$0xff] %v18605_v41  ;;  %v18625_v11 = vld [vmem:[%s16450_s30 + $0x1cc] sm:$0xf]  ;;  %21842 = vst [vmem:[#allocation4_spill] sm:$0xff] %v18634_v8  ;;  %v21844_v18 = vrot.slane %v18502_v50, 5  ;;  %v13642_v31 = vrot.slane %v18601_v19, 9  ;;  %v18684_v21 = vsel %vm16463_vm6, %v9389_v2, %v9390_v32 }
 0x1d4   : > { %21843 = vst [vmem:[#allocation45_spill] sm:$0xff] %v18638_v60  ;;  %v9170_v23 = vld [vmem:[%s16450_s30 + $0xf0] sm:$0x1]  ;;  %v4986_v17 = vld [vmem:[%s16450_s30 + $0x1ac] sm:$0xe]  ;;  %v5192_v46 = vrot.slane %v18614_v6, 5 }
 0x1d5   : > { %v5187_v28 = vrot.slane %v21844_v18, 4  ;;  %v4988_v30 = vld [vmem:[%s16450_s30 + $0x1b4] sm:$0x1]  ;;  %v9171_v42 = vld [vmem:[%s16450_s30 + $0x104] sm:$0xe]  ;;  %v9401_v56 = vrot.slane %v18617_v43, 5  ;;  %v18676_v18 = vsel %vm16463_vm6, %v13641_v48, %v9387_v62 }
 0x1d6   : > { %v16329_v19 = vld [vmem:[%s16450_s30 + $0x47c] sm:$0xff]   ;;  %v9173_v52 = vld [vmem:[%s16450_s30 + $0x10c] sm:$0x1]  ;;  %v5199_v6 = vrot.slane %v18625_v11, 5  ;;  %v18666_v63 = vld [vmem:[%s16450_s30 + $0x124] sm:$0xf] }
 0x1d7   : > { %v18668_v43 = vpop.f32.mrb[13].mxu1  ;;  %v9396_v36 = vrot.slane %v9394_v34, 4  ;;  %v4989_v58 = vld [vmem:[%s16450_s30 + $0x1c8] sm:$0xe]  ;;  %v4991_v4 = vld [vmem:[%s16450_s30 + $0x1d0] sm:$0x1]  ;;  %15212 = vmatmul.mubr.msk.bf16.gmra.mrb[40].mxu0 %vm609_vm5, %v16329_v19 }
 0x1d8   : > { %v18680_v11 = vpop.f32.mrb[14].mxu1  ;;  %v9397_v38 = vrot.slane %v9170_v23, 5  ;;  %v13248_v27 = vrot.slane %v4986_v17, 9  ;;  %v5195_v45 = vrot.slane %v4988_v30, 5  ;;  %v18687_v8 = vld [vmem:[%s16450_s30 + $0x1e8] sm:$0xf]  ;;  %v21845_v23 = vcombine.low %v17932_v40, %v17939_v51 }
 0x1d9   : > { %v18689_v20 = vpop.f32.mrb[15].mxu1  ;;  %v16330_v62 = vld [vmem:[%s16450_s30 + $0x498] sm:$0xff]   ;;  %v5194_v48 = vrot.slane %v5192_v46, 4  ;;  %v13643_v60 = vrot.slane %v9171_v42, 9  ;;  %v9403_v39 = vrot.slane %v9401_v56, 4  ;;  %v9404_v41 = vrot.slane %v9173_v52, 5 }
 0x1da   : > { %v13249_v57 = vrot.slane %v4989_v58, 9  ;;  %v5201_v29 = vrot.slane %v5199_v6, 4  ;;  %v5202_v12 = vrot.slane %v4991_v4, 5  ;;  %v9174_v32 = vld [vmem:[%s16450_s30 + $0x120] sm:$0xe]  ;;  %v9408_v2 = vrot.slane %v18666_v63, 5  ;;  %14906 = vmatmul.mubr.msk.bf16.gmra.mrb[40].mxu1 %vm609_vm5, %v21845_v23  ;;  %15215 = vmatprep.mubr.msk.bf16.mxu0 %vm609_vm5, %v16330_v62 }
 0x1db   : > { %v21846_v30 = vrot.slane %v18502_v50, 5  ;;  %v18708_v4 = vsel %vm16463_vm6, %v5187_v28, %v5188_v1  ;;  %v9176_v52 = vld [vmem:[%s16450_s30 + $0x128] sm:$0x1]  ;;  %v5206_v63 = vrot.slane %v18687_v8, 5  ;;  %v21847_v40 = vcombine.low %v17956_v26, %v17963_v0  ;;  %v4992_v26 = vld [vmem:[%s16450_s30 + $0x1e4] sm:$0xe] }
 0x1dc   : > { %v18719_v51 = vsel %vm383_vm0, %v18477_v44, 0  ;;  %v18723_v50 = vsel %vm16463_vm6, %v13642_v31, %v9394_v34  ;;  %v18731_v1 = vsel %vm16463_vm6, %v13248_v27, %v5192_v46  ;;  %v4994_v0 = vld [vmem:[%s16450_s30 + $0x1ec] sm:$0x1]  ;;  %v18738_v44 = vsel %vm16463_vm6, %v5194_v48, %v5195_v45  ;;  %v18751_v8 = vld [vmem:[%s21613_s2] ss:$0 sm:$0xff]  ;;  %v16331_v62 = vld [vmem:[%s16450_s30 + $0x4b4] sm:$0xff]  }
 0x1dd   : > { %v18704_v58 = vsel %vm16463_vm6, %v13247_v37, %v21846_v30  ;;  %14909 = vmatprep.mubr.msk.bf16.mxu1 %vm609_vm5, %v21847_v40  ;;  %v18727_v37 = vsel %vm16463_vm6, %v9396_v36, %v9397_v38  ;;  %v18742_v34 = vsel %vm16463_vm6, %v13643_v60, %v9401_v56  ;;  %v18746_v38 = vsel %vm16463_vm6, %v9403_v39, %v9404_v41  ;;  %v9177_v41 = vld [vmem:[%s16450_s30 + $0x13c] sm:$0xe]  ;;  %v14797_v39 = vpop.f32.mrb[0].mxu0  ;;  %v9178_v19 = vld [vmem:[%s16450_s30 + $0x140] sm:$0xf]  ;;  %v16332_v30 = vld [vmem:[%s16450_s30 + $0x4d0] sm:$0xff]  }
 0x1de   : > { %21848 = vst [vmem:[#allocation46_spill] sm:$0xff] %v18742_v34  ;;  %21849 = vst [vmem:[#allocation47_spill] sm:$0xff] %v18746_v38  ;;  %v13644_v27 = vrot.slane %v9174_v32, 9  ;;  %v18755_v28 = vsel %vm16463_vm6, %v13249_v57, %v5199_v6  ;;  %v18759_v45 = vsel %vm16463_vm6, %v5201_v29, %v5202_v12  ;;  %v9410_v60 = vrot.slane %v9408_v2, 4  ;;  %v3105_v6 = vpop.f32.mrb[1].mxu0  ;;  %v21853_v29 = vld [vmem:[#allocation21_spill] sm:$0xff] }
 0x1df   : > { %21850 = vst [vmem:[#allocation48_spill] sm:$0xff] %v18759_v45  ;;  %v9411_v31 = vrot.slane %v9176_v52, 5  ;;  %v13250_v46 = vrot.slane %v4992_v26, 9  ;;  %v5208_v42 = vrot.slane %v5206_v63, 4  ;;  %v5209_v56 = vrot.slane %v4994_v0, 5  ;;  %v14798_v23 = vpop.f32.mrb[2].mxu0  ;;  %15216 = vmatmul.mubr.msk.bf16.gmra.mrb[44].mxu0 %vm609_vm5, %v16331_v62 }
 0x1e0   : > { %v15441_v57 = vadd.f32 %v14797_v39, %v18220_v13  ;;  %v15442_v32 = vadd.f32 %v3105_v6, %v18240_v24  ;;  %v18779_v13 = vsel %vm16463_vm6, %v13644_v27, %v9408_v2  ;;  %v18782_v40 = vld [vmem:[%s16450_s30 + $0x144] sm:$0x1]  ;;  %v13645_v26 = vrot.slane %v9177_v41, 9  ;;  %v3108_v48 = vpop.f32.mrb[3].mxu0  ;;  %v21854_v27 = vld [vmem:[#allocation5_spill] sm:$0xff]  ;;  %15219 = vmatprep.mubr.msk.bf16.mxu0 %vm609_vm5, %v16332_v30  ;;  %v21863_v34 = vld [vmem:[#allocation8_spill] sm:$0xff] }
 0x1e1   : > { %21851 = vst [vmem:[#allocation49_spill] sm:$0xff] %v18779_v13  ;;  %v15443_v39 = vadd.f32 %v14798_v23, %v18256_v10  ;;  %v18788_v24 = vsel %vm16463_vm6, %v9410_v60, %v9411_v31  ;;  %v9415_v6 = vrot.slane %v9178_v19, 5  ;;  %v15444_v2 = vadd.f32 %v3108_v48, %v21853_v29  ;;  %v21855_v12 = vld [vmem:[#allocation6_spill] sm:$0xff]  ;;  %v21859_v19 = vld [vmem:[#allocation7_spill] sm:$0xff] }
 0x1e2   : > { %v3273_v0 = vadd.f32 %v15441_v57, %v18751_v8  ;;  %21852 = vst [vmem:[#allocation50_spill] sm:$0xff] %v18788_v24  ;;  %v3271_v52 = vadd.f32 %v15442_v32, %v18751_v8  ;;  %v21856_v17 = vcombine.low %v21854_v27, %v21855_v12  ;;  %v18799_v10 = vsel %vm16463_vm6, %v13250_v46, %v5206_v63  ;;  %v21860_v57 = vld [vmem:[#allocation12_spill] sm:$0xff]  ;;  %v18813_v12 = vld [vmem:[%s16450_s30 + $0x200] sm:$0xe]  ;;  %v18824_v62 = vld [vmem:[%s16450_s30 + $0x204] sm:$0xf] }
 0x1e3   : > { %21857 = vst [vmem:[#allocation21_spill] sm:$0xff] %v18799_v10  ;;  %v18803_v60 = vsel %vm16463_vm6, %v5208_v42, %v5209_v56  ;;  %v3274_v41 = vadd.f32 %v15443_v39, %v18751_v8  ;;  %v21861_v29 = vcombine.low %v21859_v19, %v21860_v57  ;;  %v3272_v46 = vadd.f32 %v15444_v2, %v18751_v8  ;;  %v14801_v39 = vpop.f32.mrb[4].mxu0  ;;  %v16333_v42 = vld [vmem:[%s16450_s30 + $0x4ec] sm:$0xff]   ;;  %v21862_v10 = vld [vmem:[#allocation29_spill] sm:$0xff] }
 0x1e4   : > { %14910 = vmatmul.mubr.msk.bf16.gmra.mrb[44].mxu1 %vm609_vm5, %v21856_v17  ;;  %21858 = vst [vmem:[#allocation5_spill] sm:$0xff] %v18803_v60  ;;  %v3305_v31 = vmax.f32 %v3273_v0, 0.0  ;;  %v3303_v63 = vmax.f32 %v3271_v52, 0.0  ;;  %v18821_v56 = vsel %vm16463_vm6, %v13645_v26, %v9415_v6  ;;  %v9417_v30 = vrot.slane %v9415_v6, 4  ;;  %v16334_v2 = vld [vmem:[%s16450_s30 + $0x508] sm:$0xff]  }
 0x1e5   : > { %14913 = vmatprep.mubr.msk.bf16.mxu1 %vm609_vm5, %v21861_v29  ;;  %v3306_v32 = vmax.f32 %v3274_v41, 0.0  ;;  %v3304_v26 = vmax.f32 %v3272_v46, 0.0  ;;  %v3121_v29 = vpop.f32.mrb[5].mxu0  ;;  %v15445_v24 = vadd.f32 %v14801_v39, %v21862_v10 }
 0x1e6   : > { %v13968_v48 = vpack.c.bf16 %v3305_v31, %v3305_v31  ;;  %v13966_v52 = vpack.c.bf16 %v3303_v63, %v3303_v63  ;;  %v3565_v0 = vmul.f32 %v3303_v63, %v3303_v63  ;;  %v3499_v27 = vsel %vm609_vm5, %v3305_v31, 0.0  ;;  %v14802_v17 = vpop.f32.mrb[6].mxu0 }
 0x1e7   : > { %v3567_v19 = vmul.f32 %v3305_v31, %v3305_v31  ;;  %v13969_v57 = vpack.c.bf16 %v3306_v32, %v3306_v32  ;;  %v3496_v6 = vsel %vm609_vm5, %v3303_v63, 0.0  ;;  %v13967_v23 = vpack.c.bf16 %v3304_v26, %v3304_v26  ;;  %v3124_v13 = vpop.f32.mrb[7].mxu0  ;;  %15220 = vmatmul.mubr.msk.bf16.gmra.mrb[48].mxu0 %vm609_vm5, %v16333_v42 }
 0x1e8   : > { %3466 = vst.msk [vmem:[%s18829_s25 + $0x8] sm:$0xf] %vm3463_vm10, %v13968_v48  ;;  %v3497_v46 = vsel %vm609_vm5, %v3304_v26, 0.0  ;;  %v3566_v36 = vmul.f32 %v3304_v26, %v3304_v26  ;;  %3464 = vst.msk [vmem:[%s18829_s25] sm:$0xf] %vm3463_vm10, %v13966_v52  ;;  %v3568_v31 = vmul.f32 %v3306_v32, %v3306_v32  ;;  %v15446_v41 = vadd.f32 %v3121_v29, %v18392_v7  ;;  %v21864_v52 = vld [vmem:[#allocation14_spill] sm:$0xff] }
 0x1e9   : > { %v3498_v60 = vadd.f32 %v3497_v46, %v3496_v6  ;;  %3467 = vst.msk [vmem:[%s18829_s25 + $0xc] sm:$0xf] %vm3463_vm10, %v13969_v57  ;;  %v3597_v63 = vsel %vm609_vm5, %v3565_v0, 0.0  ;;  %v15447_v26 = vadd.f32 %v14802_v17, %v18407_v61  ;;  %v15448_v38 = vadd.f32 %v3124_v13, %v18429_v25  ;;  %3465 = vst.msk [vmem:[%s18829_s25 + $0x4] sm:$0xf] %vm3463_vm10, %v13967_v23  ;;  %v21866_v13 = vld [vmem:[#allocation9_spill] sm:$0xff] }
 0x1ea   : > { %v3598_v48 = vsel %vm609_vm5, %v3566_v36, 0.0  ;;  %v21865_v45 = vcombine.low %v21863_v34, %v21864_v52  ;;  %v3277_v39 = vadd.f32 %v15445_v24, %v18751_v8  ;;  %v3275_v57 = vadd.f32 %v15446_v41, %v18751_v8  ;;  %v18862_v36 = vld [vmem:[%s16450_s30 + $0x208] sm:$0x1]  ;;  %15223 = vmatprep.mubr.msk.bf16.mxu0 %vm609_vm5, %v16334_v2  ;;  %v18881_v6 = vld [vmem:[%s16450_s30 + $0x158] sm:$0xe] }
 0x1eb   : > { %v3500_v10 = vadd.f32 %v3499_v27, %v3498_v60  ;;  %v3599_v7 = vadd.f32 %v3598_v48, %v3597_v63  ;;  %v3600_v61 = vsel %vm609_vm5, %v3567_v19, 0.0  ;;  %v3501_v25 = vsel %vm609_vm5, %v3306_v32, 0.0  ;;  %v21867_v60 = vld [vmem:[#allocation10_spill] sm:$0xff]  ;;  %v14805_v32 = vpop.f32.mrb[8].mxu0 }
 0x1ec   : > { %14914 = vmatmul.mubr.msk.bf16.gmra.mrb[48].mxu1 %vm609_vm5, %v21865_v45  ;;  %v3278_v34 = vadd.f32 %v15447_v26, %v18751_v8  ;;  %v3276_v45 = vadd.f32 %v15448_v38, %v18751_v8  ;;  %v21868_v17 = vcombine.low %v21866_v13, %v21867_v60  ;;  %v3309_v42 = vmax.f32 %v3277_v39, 0.0  ;;  %v3137_v26 = vpop.f32.mrb[9].mxu0  ;;  %v16335_v52 = vld [vmem:[%s16450_s30 + $0x524] sm:$0xff]  }
 0x1ed   : > { %v3601_v24 = vadd.f32 %v3600_v61, %v3599_v7  ;;  %v3307_v23 = vmax.f32 %v3275_v57, 0.0  ;;  %v3502_v0 = vadd.f32 %v3501_v25, %v3500_v10  ;;  %v21869_v29 = vrot.slane %v18782_v40, 5  ;;  %v14806_v39 = vpop.f32.mrb[10].mxu0  ;;  %v16336_v57 = vld [vmem:[%s16450_s30 + $0x540] sm:$0xff]  }
 0x1ee   : > { %14917 = vmatprep.mubr.msk.bf16.mxu1 %vm609_vm5, %v21868_v17  ;;  %v3310_v27 = vmax.f32 %v3278_v34, 0.0  ;;  %v3308_v19 = vmax.f32 %v3276_v45, 0.0  ;;  %v3602_v2 = vsel %vm609_vm5, %v3568_v31, 0.0  ;;  %v13972_v46 = vpack.c.bf16 %v3309_v42, %v3309_v42  ;;  %v3140_v31 = vpop.f32.mrb[11].mxu0 }
 0x1ef   : > { %v18877_v38 = vsel %vm16463_vm6, %v9417_v30, %v21869_v29  ;;  %v3571_v63 = vmul.f32 %v3309_v42, %v3309_v42  ;;  %v13970_v48 = vpack.c.bf16 %v3307_v23, %v3307_v23  ;;  %v3503_v10 = vsel %vm609_vm5, %v3307_v23, 0.0  ;;  %v21871_v29 = vld [vmem:[#allocation13_spill] sm:$0xff]  ;;  %15224 = vmatmul.mubr.msk.bf16.gmra.mrb[52].mxu0 %vm609_vm5, %v16335_v52 }
 0x1f0   : > { %v3569_v40 = vmul.f32 %v3307_v23, %v3307_v23  ;;  %v3603_v7 = vadd.f32 %v3602_v2, %v3601_v24  ;;  %v13973_v30 = vpack.c.bf16 %v3310_v27, %v3310_v27  ;;  %v3507_v61 = vsel %vm609_vm5, %v3309_v42, 0.0  ;;  %3470 = vst.msk [vmem:[%s18829_s25 + $0x18] sm:$0xf] %vm3463_vm10, %v13972_v46  ;;  %v21870_v23 = vld [vmem:[#allocation11_spill] sm:$0xff]  ;;  %15227 = vmatprep.mubr.msk.bf16.mxu0 %vm609_vm5, %v16336_v57 }
 0x1f1   : > { %v3504_v25 = vadd.f32 %v3503_v10, %v3502_v0  ;;  %v3572_v34 = vmul.f32 %v3310_v27, %v3310_v27  ;;  %v13646_v45 = vrot.slane %v18881_v6, 9  ;;  %3468 = vst.msk [vmem:[%s18829_s25 + $0x10] sm:$0xf] %vm3463_vm10, %v13970_v48  ;;  %v13971_v60 = vpack.c.bf16 %v3308_v19, %v3308_v19  ;;  %v21873_v10 = vld [vmem:[#allocation15_spill] sm:$0xff] }
 0x1f2   : > { %v3604_v13 = vsel %vm609_vm5, %v3569_v40, 0.0  ;;  %v3505_v17 = vsel %vm609_vm5, %v3308_v19, 0.0  ;;  %v3570_v24 = vmul.f32 %v3308_v19, %v3308_v19  ;;  %v21872_v2 = vcombine.low %v21870_v23, %v21871_v29  ;;  %3471 = vst.msk [vmem:[%s18829_s25 + $0x1c] sm:$0xf] %vm3463_vm10, %v13973_v30  ;;  %v21874_v40 = vld [vmem:[#allocation16_spill] sm:$0xff] }
 0x1f3   : > { %v3608_v42 = vsel %vm609_vm5, %v3571_v63, 0.0  ;;  %v3605_v0 = vadd.f32 %v3604_v13, %v3603_v7  ;;  %v3506_v48 = vadd.f32 %v3505_v17, %v3504_v25  ;;  %v15449_v46 = vadd.f32 %v14805_v32, %v18504_v3  ;;  %3469 = vst.msk [vmem:[%s18829_s25 + $0x14] sm:$0xf] %vm3463_vm10, %v13971_v60  ;;  %v16337_v13 = vld [vmem:[%s16450_s30 + $0x55c] sm:$0xff]  }
 0x1f4   : > { %14918 = vmatmul.mubr.msk.bf16.gmra.mrb[52].mxu1 %vm609_vm5, %v21872_v2  ;;  %v21875_v41 = vcombine.low %v21873_v10, %v21874_v40  ;;  %v3606_v19 = vsel %vm609_vm5, %v3570_v24, 0.0  ;;  %v15450_v23 = vadd.f32 %v3137_v26, %v18533_v15  ;;  %v15451_v30 = vadd.f32 %v14806_v39, %v18549_v22  ;;  %v18922_v26 = vld [vmem:[%s16450_s30 + $0x15c] sm:$0xf] }
 0x1f5   : > { %v15452_v63 = vadd.f32 %v3140_v31, %v18577_v33  ;;  %v3509_v3 = vsel %vm609_vm5, %v3310_v27, 0.0  ;;  %v3508_v32 = vadd.f32 %v3507_v61, %v3506_v48  ;;  %v3607_v52 = vadd.f32 %v3606_v19, %v3605_v0  ;;  %v14809_v33 = vpop.f32.mrb[12].mxu0  ;;  %v16338_v2 = vld [vmem:[%s16450_s30 + $0x578] sm:$0xff]  }
 0x1f6   : > { %14921 = vmatprep.mubr.msk.bf16.mxu1 %vm609_vm5, %v21875_v41  ;;  %v3281_v41 = vadd.f32 %v15449_v46, %v18751_v8  ;;  %v3610_v7 = vsel %vm609_vm5, %v3572_v34, 0.0  ;;  %v3279_v25 = vadd.f32 %v15450_v23, %v18751_v8  ;;  %v3282_v22 = vadd.f32 %v15451_v30, %v18751_v8  ;;  %v3153_v61 = vpop.f32.mrb[13].mxu0 }
 0x1f7   : > { %v3280_v15 = vadd.f32 %v15452_v63, %v18751_v8  ;;  %v3609_v39 = vadd.f32 %v3608_v42, %v3607_v52  ;;  %v3510_v31 = vadd.f32 %v3509_v3, %v3508_v32  ;;  %v15453_v27 = vadd.f32 %v14809_v33, %v18654_v53  ;;  %v14810_v29 = vpop.f32.mrb[14].mxu0  ;;  %15228 = vmatmul.mubr.msk.bf16.gmra.mrb[56].mxu0 %vm609_vm5, %v16337_v13  ;;  %v21877_v32 = vld [vmem:[#allocation17_spill] sm:$0xff] }
 0x1f8   : > { %v3313_v57 = vmax.f32 %v3281_v41, 0.0  ;;  %v3311_v60 = vmax.f32 %v3279_v25, 0.0  ;;  %v3314_v17 = vmax.f32 %v3282_v22, 0.0  ;;  %v15454_v24 = vadd.f32 %v3153_v61, %v18668_v43  ;;  %v3156_v10 = vpop.f32.mrb[15].mxu0  ;;  %15231 = vmatprep.mubr.msk.bf16.mxu0 %vm609_vm5, %v16338_v2 }
 0x1f9   : > { %v3312_v34 = vmax.f32 %v3280_v15, 0.0  ;;  %v3611_v46 = vadd.f32 %v3610_v7, %v3609_v39  ;;  %v9422_v42 = vrot.slane %v18922_v26, 5  ;;  %v21876_v30 = vcombine.low %v18169_v47, %v18189_v59  ;;  %v14677_v39 = vpop.f32.mrb[16].mxu1 }
 0x1fa   : > { %v13976_v0 = vpack.c.bf16 %v3313_v57, %v3313_v57  ;;  %v3575_v48 = vmul.f32 %v3313_v57, %v3313_v57  ;;  %v13974_v40 = vpack.c.bf16 %v3311_v60, %v3311_v60  ;;  %v3511_v19 = vsel %vm609_vm5, %v3311_v60, 0.0 }
 0x1fb   : > { %v3573_v53 = vmul.f32 %v3311_v60, %v3311_v60  ;;  %v13977_v23 = vpack.c.bf16 %v3314_v17, %v3314_v17  ;;  %v3515_v43 = vsel %vm609_vm5, %v3313_v57, 0.0  ;;  %v3512_v3 = vadd.f32 %v3511_v19, %v3510_v31  ;;  %v14813_v60 = vpop.f32.mrb[16].mxu0 }
 0x1fc   : > { %14922 = vmatmul.mubr.msk.bf16.gmra.mrb[56].mxu1 %vm609_vm5, %v21876_v30  ;;  %v3616_v63 = vsel %vm609_vm5, %v3575_v48, 0.0  ;;  %v21878_v52 = vcombine.low %v18197_v55, %v21877_v32  ;;  %v13662_v41 = vcombine.low %v18821_v56, %v18877_v38  ;;  %3474 = vst.msk [vmem:[%s18829_s25 + $0x28] sm:$0xf] %vm3463_vm10, %v13976_v0  ;;  %v13975_v59 = vpack.c.bf16 %v3312_v34, %v3312_v34 }
 0x1fd   : > { %v3612_v47 = vsel %vm609_vm5, %v3573_v53, 0.0  ;;  %v3513_v7 = vsel %vm609_vm5, %v3312_v34, 0.0  ;;  %v3574_v25 = vmul.f32 %v3312_v34, %v3312_v34  ;;  %3472 = vst.msk [vmem:[%s18829_s25 + $0x20] sm:$0xf] %vm3463_vm10, %v13974_v40  ;;  %3475 = vst.msk [vmem:[%s18829_s25 + $0x2c] sm:$0xf] %vm3463_vm10, %v13977_v23  ;;  %v3576_v22 = vmul.f32 %v3314_v17, %v3314_v17 }
 0x1fe   : > { %14925 = vmatprep.mubr.msk.bf16.mxu1 %vm609_vm5, %v21878_v52  ;;  %v3613_v55 = vadd.f32 %v3612_v47, %v3611_v46  ;;  %v3514_v15 = vadd.f32 %v3513_v7, %v3512_v3  ;;  %v3285_v33 = vadd.f32 %v15453_v27, %v18751_v8  ;;  %v3283_v31 = vadd.f32 %v15454_v24, %v18751_v8  ;;  %v2057_v34 = vpop.f32.mrb[17].mxu1  ;;  %v3169_v40 = vpop.f32.mrb[17].mxu0  ;;  %v16339_v27 = vld [vmem:[%s16450_s30 + $0x594] sm:$0xff]  }
 0x1ff   : > { %v3614_v57 = vsel %vm609_vm5, %v3574_v25, 0.0  ;;  %v15455_v61 = vadd.f32 %v14810_v29, %v18680_v11  ;;  %v15456_v13 = vadd.f32 %v3156_v10, %v18689_v20  ;;  %3473 = vst.msk [vmem:[%s18829_s25 + $0x24] sm:$0xf] %vm3463_vm10, %v13975_v59  ;;  %v15457_v46 = vadd.f32 %v14813_v60, %v14677_v39  ;;  %v14678_v19 = vpop.f32.mrb[18].mxu1  ;;  %v14814_v11 = vpop.f32.mrb[18].mxu0  ;;  %v21879_v25 = vld [vmem:[#allocation18_spill] sm:$0xff]  ;;  %15232 = vmatmul.mubr.msk.bf16.gmra.mrb[60].mxu0 %vm609_vm5, %v16339_v27 }
 0x200   : > { %v3516_v2 = vadd.f32 %v3515_v43, %v3514_v15  ;;  %v3615_v0 = vadd.f32 %v3614_v57, %v3613_v55  ;;  %v3317_v48 = vmax.f32 %v3285_v33, 0.0  ;;  %v3315_v53 = vmax.f32 %v3283_v31, 0.0  ;;  %v2060_v29 = vpop.f32.mrb[19].mxu1  ;;  %v3172_v32 = vpop.f32.mrb[19].mxu0  ;;  %v21880_v55 = vld [vmem:[#allocation19_spill] sm:$0xff]  ;;  %v21883_v60 = vld [vmem:[#allocation20_spill] sm:$0xff] }
 0x201   : > { %v3286_v23 = vadd.f32 %v15455_v61, %v18751_v8  ;;  %v3284_v24 = vadd.f32 %v15456_v13, %v18751_v8  ;;  %v15458_v30 = vadd.f32 %v3169_v40, %v2057_v34  ;;  %v3517_v20 = vsel %vm609_vm5, %v3314_v17, 0.0  ;;  %v21884_v34 = vld [vmem:[#allocation22_spill] sm:$0xff]  ;;  %v14681_v27 = vpop.f32.mrb[20].mxu1 }
 0x202   : > { %v3618_v10 = vsel %vm609_vm5, %v3576_v22, 0.0  ;;  %v3617_v43 = vadd.f32 %v3616_v63, %v3615_v0  ;;  %v13980_v3 = vpack.c.bf16 %v3317_v48, %v3317_v48  ;;  %v13978_v52 = vpack.c.bf16 %v3315_v53, %v3315_v53 }
 0x203   : > { %v3518_v47 = vadd.f32 %v3517_v20, %v3516_v2  ;;  %v3519_v59 = vsel %vm609_vm5, %v3315_v53, 0.0  ;;  %v3577_v7 = vmul.f32 %v3315_v53, %v3315_v53  ;;  %v21881_v15 = vcombine.low %v21879_v25, %v21880_v55  ;;  %v2073_v20 = vpop.f32.mrb[21].mxu1 }
 0x204   : > { %v3579_v33 = vmul.f32 %v3317_v48, %v3317_v48  ;;  %v3619_v39 = vadd.f32 %v3618_v10, %v3617_v43  ;;  %v3318_v17 = vmax.f32 %v3286_v23, 0.0  ;;  %v3316_v57 = vmax.f32 %v3284_v24, 0.0  ;;  %3478 = vst.msk [vmem:[%s18829_s25 + $0x38] sm:$0xf] %vm3463_vm10, %v13980_v3  ;;  %3476 = vst.msk [vmem:[%s18829_s25 + $0x30] sm:$0xf] %vm3463_vm10, %v13978_v52 }
 0x205   : > { %14926 = vmatmul.mubr.msk.bf16.gmra.mrb[60].mxu1 %vm609_vm5, %v21881_v15  ;;  %v21882_v63 = vcombine.low %v18264_v14, %v18269_v35  ;;  %v3520_v22 = vadd.f32 %v3519_v59, %v3518_v47  ;;  %v3620_v31 = vsel %vm609_vm5, %v3577_v7, 0.0  ;;  %v3289_v61 = vadd.f32 %v15457_v46, %v18751_v8  ;;  %v14682_v47 = vpop.f32.mrb[22].mxu1 }
 0x206   : > { %v3287_v13 = vadd.f32 %v15458_v30, %v18751_v8  ;;  %v21885_v2 = vcombine.low %v21883_v60, %v21884_v34  ;;  %v3523_v14 = vsel %vm609_vm5, %v3317_v48, 0.0  ;;  %v3621_v35 = vadd.f32 %v3620_v31, %v3619_v39  ;;  %v14817_v30 = vpop.f32.mrb[20].mxu0  ;;  %v18997_v39 = vpop.f32.mrb[23].mxu1  ;;  %v21887_v60 = vld [vmem:[#allocation24_spill] sm:$0xff] }
 0x207   : > { %14931 = vmatprep.mubr.msk.bf16.mxu1 %vm609_vm5, %v21882_v63  ;;  %v13981_v0 = vpack.c.bf16 %v3318_v17, %v3318_v17  ;;  %v3580_v40 = vmul.f32 %v3318_v17, %v3318_v17  ;;  %v13979_v53 = vpack.c.bf16 %v3316_v57, %v3316_v57  ;;  %v3521_v23 = vsel %vm609_vm5, %v3316_v57, 0.0  ;;  %v3185_v48 = vpop.f32.mrb[21].mxu0 }
 0x208   : > { %15237 = vmatprep.mubr.msk.bf16.mxu0 %vm609_vm5, %v21885_v2  ;;  %v3578_v46 = vmul.f32 %v3316_v57, %v3316_v57  ;;  %v18987_v24 = vmax.f32 %v3289_v61, 0.0  ;;  %v3624_v10 = vsel %vm609_vm5, %v3579_v33, 0.0  ;;  %v3522_v43 = vadd.f32 %v3521_v23, %v3520_v22  ;;  %v14818_v15 = vpop.f32.mrb[22].mxu0 }
 0x209   : > { %v3319_v3 = vmax.f32 %v3287_v13, 0.0  ;;  %v15459_v52 = vadd.f32 %v14814_v11, %v14678_v19  ;;  %3479 = vst.msk [vmem:[%s18829_s25 + $0x3c] sm:$0xf] %vm3463_vm10, %v13981_v0  ;;  %v3525_v59 = vsel %vm609_vm5, %v3318_v17, 0.0  ;;  %v3626_v7 = vsel %vm609_vm5, %v3580_v40, 0.0  ;;  %v19003_v57 = vpop.f32.mrb[23].mxu0 }
 0x20a   : > { %v3622_v25 = vsel %vm609_vm5, %v3578_v46, 0.0  ;;  %v13984_v55 = vpack.c.bf16 %v18987_v24, %v18987_v24  ;;  %3477 = vst.msk [vmem:[%s18829_s25 + $0x34] sm:$0xf] %vm3463_vm10, %v13979_v53  ;;  %v3524_v19 = vadd.f32 %v3523_v14, %v3522_v43  ;;  %v3583_v33 = vmul.f32 %v18987_v24, %v18987_v24  ;;  %v21886_v13 = vld [vmem:[#allocation23_spill] sm:$0xff]  ;;  %v21889_v40 = vld [vmem:[#allocation28_spill] sm:$0xff] }
 0x20b   : > { %v3623_v11 = vadd.f32 %v3622_v25, %v3621_v35  ;;  %v13982_v17 = vpack.c.bf16 %v3319_v3, %v3319_v3  ;;  %v3527_v63 = vsel %vm609_vm5, %v3319_v3, 0.0  ;;  %v3581_v22 = vmul.f32 %v3319_v3, %v3319_v3  ;;  %v19017_v53 = vld [vmem:[%s21612_s1 + $0x20] sm:$0x3]  ;;  %v19034_v3 = vld [vmem:[%s21612_s1 + $0x32] sm:$0x3] }
 0x20c   : > { %v3290_v31 = vadd.f32 %v15459_v52, %v18751_v8  ;;  %v15460_v61 = vadd.f32 %v3172_v32, %v2060_v29  ;;  %v21888_v34 = vcombine.low %v21886_v13, %v21887_v60  ;;  %3482 = vst.msk [vmem:[%s18829_s25 + $0x48] sm:$0xf] %vm3463_vm10, %v13984_v55  ;;  %v3526_v14 = vadd.f32 %v3525_v59, %v3524_v19  ;;  %v14821_v19 = vpop.f32.mrb[24].mxu0 }
 0x20d   : > { %v3625_v2 = vadd.f32 %v3624_v10, %v3623_v11  ;;  %v15461_v35 = vadd.f32 %v14817_v30, %v14681_v27  ;;  %v15462_v0 = vadd.f32 %v3185_v48, %v2073_v20  ;;  %3480 = vst.msk [vmem:[%s18829_s25 + $0x40] sm:$0xf] %vm3463_vm10, %v13982_v17  ;;  %v3628_v29 = vsel %vm609_vm5, %v3581_v22, 0.0  ;;  %v21890_v10 = vld [vmem:[#allocation25_spill] sm:$0xff]  ;;  %v21892_v27 = vld [vmem:[#allocation26_spill] sm:$0xff]  ;;  %v21893_v30 = vld [vmem:[#allocation27_spill] sm:$0xff] }
 0x20e   : > { %14932 = vmatmul.mubr.msk.bf16.vlgmr.msra.gmra.mrb[32].mxu1 %vm609_vm5, %v21888_v34  ;;  %v3322_v32 = vmax.f32 %v3290_v31, 0.0  ;;  %v3288_v23 = vadd.f32 %v15460_v61, %v18751_v8  ;;  %v15463_v46 = vadd.f32 %v14818_v15, %v14682_v47  ;;  %v21891_v43 = vcombine.low %v18305_v9, %v21890_v10  ;;  %v14685_v9 = vpop.f32.mrb[24].mxu1 }
 0x20f   : > { %14964 = vmatpush3.bf16.msra.mxu1 %v21889_v40  ;;  %v21894_v20 = vcombine.low %v21892_v27, %v21893_v30  ;;  %v3528_v52 = vadd.f32 %v3527_v63, %v3526_v14  ;;  %v3627_v48 = vadd.f32 %v3626_v7, %v3625_v2  ;;  %v3293_v59 = vadd.f32 %v15461_v35, %v18751_v8  ;;  %v2089_v11 = vpop.f32.mrb[25].mxu1 }
 0x210   : > { %15238 = vmatmul.mubr.msk.bf16.vlgmr.msra.gmra.mrb[32].mxu0 %vm609_vm5, %v21891_v43  ;;  %v3291_v47 = vadd.f32 %v15462_v0, %v18751_v8  ;;  %v13985_v25 = vpack.c.bf16 %v3322_v32, %v3322_v32  ;;  %v3584_v55 = vmul.f32 %v3322_v32, %v3322_v32  ;;  %v3320_v15 = vmax.f32 %v3288_v23, 0.0  ;;  %16224 = vmatprep.subr.msk.bf16.mxu1 %vm383_vm0, %v19017_v53  ;;  %v14686_v13 = vpop.f32.mrb[26].mxu1 }
 0x211   : > { %14935 = vmatprep.mubr.msk.bf16.mxu1 %vm609_vm5, %v21894_v20  ;;  %15270 = vmatpush3.bf16.msra.mxu0 %v18719_v51  ;;  %v21895_v17 = vcombine.low %v18420_v54, %v18436_v49  ;;  %v21896_v63 = vrot.slane %v18824_v62, 5  ;;  %v21897_v7 = vrot.slane %v18813_v12, 9  ;;  %v3629_v51 = vadd.f32 %v3628_v29, %v3627_v48  ;;  %v3201_v49 = vpop.f32.mrb[25].mxu0  ;;  %v2092_v14 = vpop.f32.mrb[27].mxu1  ;;  %v21899_v20 = vld [vmem:[#allocation30_spill] sm:$0xff] }
 0x212   : > { %v19053_v31 = vmax.f32 %v3293_v59, 0.0  ;;  %v3323_v61 = vmax.f32 %v3291_v47, 0.0  ;;  %v3294_v54 = vadd.f32 %v15463_v46, %v18751_v8  ;;  %16233 = vmatprep.subr.msk.bf16.mxu0 %vm383_vm0, %v19034_v3  ;;  %v13983_v12 = vpack.c.bf16 %v3320_v15, %v3320_v15  ;;  %v14822_v2 = vpop.f32.mrb[26].mxu0  ;;  %3483 = vst.msk [vmem:[%s18829_s25 + $0x4c] sm:$0xf] %vm3463_vm10, %v13985_v25  ;;  %v21901_v47 = vld [vmem:[#allocation33_spill] sm:$0xff] }
 0x213   : > { %15241 = vmatprep.mubr.msk.bf16.mxu0 %vm609_vm5, %v21895_v17  ;;  %v19049_v22 = vsel %vm16463_vm6, %v21897_v7, %v21896_v63  ;;  %v3529_v60 = vsel %vm609_vm5, %v3320_v15, 0.0  ;;  %v3582_v34 = vmul.f32 %v3320_v15, %v3320_v15  ;;  %v21898_v35 = vmov %v21896_v63  ;;  %v3204_v10 = vpop.f32.mrb[27].mxu0  ;;  %v21902_v25 = vld [vmem:[#allocation34_spill] sm:$0xff]  ;;  %v21904_v7 = vld [vmem:[#allocation31_spill] sm:$0xff] }
 0x214   : > { %v19061_v0 = vrot.slane %v21898_v35, 4  ;;  %v3531_v40 = vsel %vm609_vm5, %v18987_v24, 0.0  ;;  %v3632_v29 = vsel %vm609_vm5, %v3583_v33, 0.0  ;;  %v3530_v23 = vadd.f32 %v3529_v60, %v3528_v52  ;;  %3481 = vst.msk [vmem:[%s18829_s25 + $0x44] sm:$0xf] %vm3463_vm10, %v13983_v12  ;;  %v21905_v12 = vld [vmem:[#allocation32_spill] sm:$0xff] }
 0x215   : > { %v13988_v46 = vpack.c.bf16 %v19053_v31, %v19053_v31  ;;  %v3533_v43 = vsel %vm609_vm5, %v3322_v32, 0.0  ;;  %v3630_v27 = vsel %vm609_vm5, %v3582_v34, 0.0  ;;  %v13986_v62 = vpack.c.bf16 %v3323_v61, %v3323_v61  ;;  %v21907_v35 = vld [vmem:[#allocation35_spill] sm:$0xff] }
 0x216   : > { %v3585_v30 = vmul.f32 %v3323_v61, %v3323_v61  ;;  %v21900_v48 = vcombine.low %v18444_v5, %v21899_v20  ;;  %v3634_v24 = vsel %vm609_vm5, %v3584_v55, 0.0  ;;  %v3532_v33 = vadd.f32 %v3531_v40, %v3530_v23  ;;  %v14825_v40 = vpop.f32.mrb[28].mxu0 }
 0x217   : > { %v3631_v52 = vadd.f32 %v3630_v27, %v3629_v51  ;;  %v3326_v59 = vmax.f32 %v3294_v54, 0.0  ;;  %v21903_v32 = vcombine.low %v21901_v47, %v21902_v25  ;;  %3486 = vst.msk [vmem:[%s18829_s25 + $0x58] sm:$0xf] %vm3463_vm10, %v13988_v46  ;;  %v3535_v15 = vsel %vm609_vm5, %v3323_v61, 0.0  ;;  %3484 = vst.msk [vmem:[%s18829_s25 + $0x50] sm:$0xf] %vm3463_vm10, %v13986_v62 }
 0x218   : > { %14936 = vmatmul.mubr.msk.bf16.gmra.mrb[36].mxu1 %vm609_vm5, %v21900_v48  ;;  %v15464_v5 = vadd.f32 %v19003_v57, %v18997_v39  ;;  %v15465_v17 = vadd.f32 %v14821_v19, %v14685_v9  ;;  %v15466_v63 = vadd.f32 %v3201_v49, %v2089_v11  ;;  %v21906_v55 = vcombine.low %v21904_v7, %v21905_v12  ;;  %v14689_v61 = vpop.f32.mrb[28].mxu1  ;;  %v21908_v39 = vld [vmem:[#allocation36_spill] sm:$0xff]  ;;  %v3217_v62 = vpop.f32.mrb[29].mxu0  ;;  %v19105_v48 = vld [vmem:[%s16450_s30 + $0x160] sm:$0x1]  ;;  %v21910_v7 = vld [vmem:[#allocation37_spill] sm:$0xff] }
 0x219   : > { %14939 = vmatprep.mubr.msk.bf16.mxu1 %vm609_vm5, %v21903_v32  ;;  %v3633_v51 = vadd.f32 %v3632_v29, %v3631_v52  ;;  %v3587_v54 = vmul.f32 %v19053_v31, %v19053_v31  ;;  %v3534_v60 = vadd.f32 %v3533_v43, %v3532_v33  ;;  %v13989_v34 = vpack.c.bf16 %v3326_v59, %v3326_v59  ;;  %v2105_v29 = vpop.f32.mrb[29].mxu1  ;;  %v14826_v25 = vpop.f32.mrb[30].mxu0  ;;  %v21911_v12 = vld [vmem:[#allocation38_spill] sm:$0xff] }
 0x21a   : > { %15242 = vmatmul.mubr.msk.bf16.gmra.mrb[36].mxu0 %vm609_vm5, %v21906_v55  ;;  %v21909_v57 = vcombine.low %v21907_v35, %v21908_v39  ;;  %v3636_v9 = vsel %vm609_vm5, %v3585_v30, 0.0  ;;  %v3292_v19 = vadd.f32 %v15464_v5, %v18751_v8  ;;  %v3297_v11 = vadd.f32 %v15465_v17, %v18751_v8  ;;  %v14690_v20 = vpop.f32.mrb[30].mxu1  ;;  %v21914_v35 = vld [vmem:[#allocation42_spill] sm:$0xff] }
 0x21b   : > { %v3295_v49 = vadd.f32 %v15466_v63, %v18751_v8  ;;  %v3536_v23 = vadd.f32 %v3535_v15, %v3534_v60  ;;  %v3635_v46 = vadd.f32 %v3634_v24, %v3633_v51  ;;  %v15467_v43 = vadd.f32 %v14822_v2, %v14686_v13  ;;  %3487 = vst.msk [vmem:[%s18829_s25 + $0x5c] sm:$0xf] %vm3463_vm10, %v13989_v34  ;;  %v2108_v32 = vpop.f32.mrb[31].mxu1  ;;  %v3220_v13 = vpop.f32.mrb[31].mxu0 }
 0x21c   : > { %15245 = vmatprep.mubr.msk.bf16.mxu0 %vm609_vm5, %v21909_v57  ;;  %v15468_v27 = vadd.f32 %v3204_v10, %v2092_v14  ;;  %v3588_v33 = vmul.f32 %v3326_v59, %v3326_v59  ;;  %v3324_v30 = vmax.f32 %v3292_v19, 0.0  ;;  %v3329_v52 = vmax.f32 %v3297_v11, 0.0 }
 0x21d   : > { %v3327_v47 = vmax.f32 %v3295_v49, 0.0  ;;  %v3637_v5 = vadd.f32 %v3636_v9, %v3635_v46  ;;  %v3298_v17 = vadd.f32 %v15467_v43, %v18751_v8  ;;  %v15469_v24 = vadd.f32 %v14825_v40, %v14689_v61  ;;  %v21913_v61 = vld [vmem:[#allocation41_spill] sm:$0xff]  ;;  %v21916_v40 = vld [vmem:[#allocation39_spill] sm:$0xff]  ;;  %v21917_v46 = vld [vmem:[#allocation40_spill] sm:$0xff] }
 0x21e   : > { %v3296_v15 = vadd.f32 %v15468_v27, %v18751_v8  ;;  %v13987_v2 = vpack.c.bf16 %v3324_v30, %v3324_v30  ;;  %v3537_v14 = vsel %vm609_vm5, %v3324_v30, 0.0  ;;  %v3586_v10 = vmul.f32 %v3324_v30, %v3324_v30 }
 0x21f   : > { %v13992_v63 = vpack.c.bf16 %v3329_v52, %v3329_v52  ;;  %v21912_v55 = vcombine.low %v21910_v7, %v21911_v12  ;;  %v3539_v51 = vsel %vm609_vm5, %v19053_v31, 0.0  ;;  %v3538_v60 = vadd.f32 %v3537_v14, %v3536_v23  ;;  %v21920_v14 = vld [vmem:[#allocation4_spill] sm:$0xff] }
 0x220   : > { %v13990_v34 = vpack.c.bf16 %v3327_v47, %v3327_v47  ;;  %v21915_v39 = vcombine.low %v21913_v61, %v21914_v35  ;;  %v9425_v57 = vrot.slane %v19105_v48, 5  ;;  %v3640_v9 = vsel %vm609_vm5, %v3587_v54, 0.0  ;;  %3485 = vst.msk [vmem:[%s18829_s25 + $0x54] sm:$0xf] %vm3463_vm10, %v13987_v2  ;;  %v21919_v54 = vld [vmem:[#allocation43_spill] sm:$0xff] }
 0x221   : > { %14940 = vmatmul.mubr.msk.bf16.gmra.mrb[40].mxu1 %vm609_vm5, %v21912_v55  ;;  %v3638_v19 = vsel %vm609_vm5, %v3586_v10, 0.0  ;;  %v3589_v11 = vmul.f32 %v3327_v47, %v3327_v47  ;;  %v3330_v49 = vmax.f32 %v3298_v17, 0.0  ;;  %v21918_v43 = vcombine.low %v21916_v40, %v21917_v46  ;;  %3490 = vst.msk [vmem:[%s18829_s25 + $0x68] sm:$0xf] %vm3463_vm10, %v13992_v63  ;;  %v21922_v40 = vld [vmem:[#allocation44_spill] sm:$0xff]  ;;  %v21923_v46 = vld [vmem:[#allocation45_spill] sm:$0xff] }
 0x222   : > { %14943 = vmatprep.mubr.msk.bf16.mxu1 %vm609_vm5, %v21915_v39  ;;  %v3541_v31 = vsel %vm609_vm5, %v3326_v59, 0.0  ;;  %v3540_v23 = vadd.f32 %v3539_v51, %v3538_v60  ;;  %v3639_v27 = vadd.f32 %v3638_v19, %v3637_v5  ;;  %v3328_v30 = vmax.f32 %v3296_v15, 0.0  ;;  %3488 = vst.msk [vmem:[%s18829_s25 + $0x60] sm:$0xf] %vm3463_vm10, %v13990_v34  ;;  %v5003_v48 = vld [vmem:[%s16450_s30 + $0x240] sm:$0x1] }
 0x223   : > { %15246 = vmatmul.mubr.msk.bf16.gmra.mrb[40].mxu0 %vm609_vm5, %v21918_v43  ;;  %v21921_v10 = vcombine.low %v21919_v54, %v21920_v14  ;;  %v3642_v17 = vsel %vm609_vm5, %v3588_v33, 0.0  ;;  %v3591_v7 = vmul.f32 %v3329_v52, %v3329_v52  ;;  %v3543_v2 = vsel %vm609_vm5, %v3327_v47, 0.0 }
 0x224   : > { %v13993_v63 = vpack.c.bf16 %v3330_v49, %v3330_v49  ;;  %v3641_v12 = vadd.f32 %v3640_v9, %v3639_v27  ;;  %v3542_v59 = vadd.f32 %v3541_v31, %v3540_v23  ;;  %v3644_v5 = vsel %vm609_vm5, %v3589_v11, 0.0 }
 0x225   : > { %15249 = vmatprep.mubr.msk.bf16.mxu0 %vm609_vm5, %v21921_v10  ;;  %v13991_v55 = vpack.c.bf16 %v3328_v30, %v3328_v30  ;;  %v3545_v15 = vsel %vm609_vm5, %v3328_v30, 0.0  ;;  %v3590_v51 = vmul.f32 %v3328_v30, %v3328_v30  ;;  %v3301_v60 = vadd.f32 %v15469_v24, %v18751_v8 }
 0x226   : > { %v15470_v61 = vadd.f32 %v3217_v62, %v2105_v29  ;;  %3491 = vst.msk [vmem:[%s18829_s25 + $0x6c] sm:$0xf] %vm3463_vm10, %v13993_v63  ;;  %v3544_v34 = vadd.f32 %v3543_v2, %v3542_v59  ;;  %v3643_v33 = vadd.f32 %v3642_v17, %v3641_v12  ;;  %v15471_v35 = vadd.f32 %v14826_v25, %v14690_v20  ;;  %v4999_v2 = vld [vmem:[%s16450_s30 + $0x220] sm:$0xf] }
 0x227   : > { %v15472_v39 = vadd.f32 %v3220_v13, %v2108_v32  ;;  %3489 = vst.msk [vmem:[%s18829_s25 + $0x64] sm:$0xf] %vm3463_vm10, %v13991_v55  ;;  %v3547_v47 = vsel %vm609_vm5, %v3329_v52, 0.0  ;;  %v3646_v9 = vsel %vm609_vm5, %v3590_v51, 0.0  ;;  %v3333_v19 = vmax.f32 %v3301_v60, 0.0 }
 0x228   : > { %v3299_v11 = vadd.f32 %v15470_v61, %v18751_v8  ;;  %v21924_v43 = vcombine.low %v21922_v40, %v21923_v46  ;;  %v3645_v29 = vadd.f32 %v3644_v5, %v3643_v33  ;;  %v3546_v62 = vadd.f32 %v3545_v15, %v3544_v34  ;;  %v5000_v5 = vld [vmem:[%s16450_s30 + $0x224] sm:$0x1]  ;;  %v5002_v61 = vld [vmem:[%s16450_s30 + $0x23c] sm:$0xf] }
 0x229   : > { %v3302_v24 = vadd.f32 %v15471_v35, %v18751_v8  ;;  %v3300_v20 = vadd.f32 %v15472_v39, %v18751_v8  ;;  %v21925_v25 = vcombine.low %v18704_v58, %v18708_v4  ;;  %v3648_v52 = vsel %vm609_vm5, %v3591_v7, 0.0  ;;  %v21932_v46 = vld [vmem:[#allocation46_spill] sm:$0xff] }
 0x22a   : > { %14944 = vmatmul.mubr.msk.bf16.gmra.mrb[44].mxu1 %vm609_vm5, %v21924_v43  ;;  %v3592_v32 = vmul.f32 %v3330_v49, %v3330_v49  ;;  %v13996_v13 = vpack.c.bf16 %v3333_v19, %v3333_v19  ;;  %v3331_v31 = vmax.f32 %v3299_v11, 0.0  ;;  %v21926_v23 = vcombine.low %v18676_v18, %v18684_v21  ;;  %v9187_v11 = vld [vmem:[%s16450_s30 + $0x194] sm:$0xf]  ;;  %v21933_v43 = vld [vmem:[#allocation47_spill] sm:$0xff] }
 0x22b   : > { %14947 = vmatprep.mubr.msk.bf16.mxu1 %vm609_vm5, %v21925_v25  ;;  %v3548_v27 = vadd.f32 %v3547_v47, %v3546_v62  ;;  %v3647_v8 = vadd.f32 %v3646_v9, %v3645_v29  ;;  %v3334_v30 = vmax.f32 %v3302_v24, 0.0  ;;  %v3332_v54 = vmax.f32 %v3300_v20, 0.0 }
 0x22c   : > { %15250 = vmatmul.mubr.msk.bf16.gmra.mrb[44].mxu0 %vm609_vm5, %v21926_v23  ;;  %v21927_v58 = vcombine.low %v18723_v50, %v18727_v37  ;;  %v3549_v4 = vsel %vm609_vm5, %v3330_v49, 0.0  ;;  %v13994_v14 = vpack.c.bf16 %v3331_v31, %v3331_v31  ;;  %v3551_v21 = vsel %vm609_vm5, %v3331_v31, 0.0  ;;  %3494 = vst.msk [vmem:[%s18829_s25 + $0x78] sm:$0xf] %vm3463_vm10, %v13996_v13  ;;  %v4998_v37 = vld [vmem:[%s16450_s30 + $0x21c] sm:$0xe] }
 0x22d   : > { %v3593_v18 = vmul.f32 %v3331_v31, %v3331_v31  ;;  %v3649_v10 = vadd.f32 %v3648_v52, %v3647_v8  ;;  %v3550_v17 = vadd.f32 %v3549_v4, %v3548_v27  ;;  %v13997_v7 = vpack.c.bf16 %v3334_v30, %v3334_v30  ;;  %v21935_v52 = vld [vmem:[#allocation49_spill] sm:$0xff] }
 0x22e   : > { %15253 = vmatprep.mubr.msk.bf16.mxu0 %vm609_vm5, %v21927_v58  ;;  %v9424_v50 = vrot.slane %v9422_v42, 4  ;;  %v3650_v63 = vsel %vm609_vm5, %v3592_v32, 0.0  ;;  %v13995_v12 = vpack.c.bf16 %v3332_v54, %v3332_v54  ;;  %v3553_v59 = vsel %vm609_vm5, %v3332_v54, 0.0  ;;  %3492 = vst.msk [vmem:[%s18829_s25 + $0x70] sm:$0xf] %vm3463_vm10, %v13994_v14  ;;  %v21936_v32 = vld [vmem:[#allocation50_spill] sm:$0xff] }
 0x22f   : > { %v3652_v49 = vsel %vm609_vm5, %v3593_v18, 0.0  ;;  %v3552_v55 = vadd.f32 %v3551_v21, %v3550_v17  ;;  %v3651_v15 = vadd.f32 %v3650_v63, %v3649_v10  ;;  %v3594_v51 = vmul.f32 %v3332_v54, %v3332_v54  ;;  %3495 = vst.msk [vmem:[%s18829_s25 + $0x7c] sm:$0xf] %vm3463_vm10, %v13997_v7  ;;  %v5001_v23 = vld [vmem:[%s16450_s30 + $0x238] sm:$0xe] }
 0x230   : > { %v19191_v60 = vsel %vm16463_vm6, %v13646_v45, %v9422_v42  ;;  %v3595_v34 = vmul.f32 %v3333_v19, %v3333_v19  ;;  %v21928_v33 = vcombine.low %v18731_v1, %v18738_v44  ;;  %v21929_v35 = vrot.slane %v18862_v36, 5  ;;  %v9184_v45 = vld [vmem:[%s16450_s30 + $0x178] sm:$0xf]  ;;  %3493 = vst.msk [vmem:[%s18829_s25 + $0x74] sm:$0xf] %vm3463_vm10, %v13995_v12  ;;  %v21930_v1 = vld [vmem:[#allocation48_spill] sm:$0xff] }
 0x231   : > { %v13252_v26 = vrot.slane %v4998_v37, 9  ;;  %v5220_v39 = vrot.slane %v4999_v2, 5  ;;  %v3653_v42 = vadd.f32 %v3652_v49, %v3651_v15  ;;  %v3554_v47 = vadd.f32 %v3553_v59, %v3552_v55  ;;  %v9185_v54 = vld [vmem:[%s16450_s30 + $0x17c] sm:$0x1]  ;;  %v9186_v10 = vld [vmem:[%s16450_s30 + $0x190] sm:$0xe] }
 0x232   : > { %14948 = vmatmul.mubr.msk.bf16.gmra.mrb[48].mxu1 %vm609_vm5, %v21928_v33  ;;  %v5217_v6 = vsel %vm16463_vm6, %v19061_v0, %v21929_v35  ;;  %v3654_v9 = vsel %vm609_vm5, %v3594_v51, 0.0  ;;  %v21931_v44 = vcombine.low %v18755_v28, %v21930_v1  ;;  %v5223_v36 = vrot.slane %v5000_v5, 5  ;;  %v9183_v28 = vld [vmem:[%s16450_s30 + $0x174] sm:$0xe]  ;;  %v21939_v59 = vld [vmem:[#allocation21_spill] sm:$0xff] }
 0x233   : > { %v3555_v0 = vsel %vm609_vm5, %v3333_v19, 0.0  ;;  %v3596_v40 = vmul.f32 %v3334_v30, %v3334_v30  ;;  %v21934_v29 = vcombine.low %v21932_v46, %v21933_v43  ;;  %v9426_v62 = vsel %vm16463_vm6, %v9424_v50, %v9425_v57  ;;  %v21940_v5 = vld [vmem:[#allocation5_spill] sm:$0xff]  ;;  %v5004_v33 = vld [vmem:[%s16450_s30 + $0x254] sm:$0xe]  ;;  %v9192_v43 = vld [vmem:[%s16450_s30 + $0x200] sm:$0xe] }
 0x234   : > { %14951 = vmatprep.mubr.msk.bf16.mxu1 %vm609_vm5, %v21931_v44  ;;  %v5227_v24 = vrot.slane %v5002_v61, 5  ;;  %v3556_v20 = vadd.f32 %v3555_v0, %v3554_v47  ;;  %v3655_v25 = vadd.f32 %v3654_v9, %v3653_v42  ;;  %v21937_v19 = vcombine.low %v21935_v52, %v21936_v32  ;;  %v9189_v44 = vld [vmem:[%s16450_s30 + $0x1ac] sm:$0xe]  ;;  %v9196_v52 = vld [vmem:[%s16450_s30 + $0x220] sm:$0xf] }
 0x235   : > { %15254 = vmatmul.mubr.msk.bf16.gmra.mrb[48].mxu0 %vm609_vm5, %v21934_v29  ;;  %v19229_v13 = vcombine.low %v19049_v22, %v5217_v6  ;;  %v9429_v31 = vrot.slane %v9184_v45, 5  ;;  %v3656_v57 = vsel %vm609_vm5, %v3595_v34, 0.0  ;;  %v3557_v27 = vsel %vm609_vm5, %v3334_v30, 0.0  ;;  %v9188_v22 = vld [vmem:[%s16450_s30 + $0x198] sm:$0x1] }
 0x236   : > { %15257 = vmatprep.mubr.msk.bf16.mxu0 %vm609_vm5, %v21937_v19  ;;  %v5222_v8 = vrot.slane %v5220_v39, 4  ;;  %v9436_v58 = vrot.slane %v9187_v11, 5  ;;  %v19236_v4 = vadd.f32 %v3557_v27, %v3556_v20  ;;  %v3657_v14 = vadd.f32 %v3656_v57, %v3655_v25  ;;  %v5005_v30 = vld [vmem:[%s16450_s30 + $0x258] sm:$0xf]  ;;  %v9190_v34 = vld [vmem:[%s16450_s30 + $0x1b0] sm:$0xf] }
 0x237   : > { %v13663_v21 = vcombine.low %v19191_v60, %v9426_v62  ;;  %v13647_v18 = vrot.slane %v9183_v28, 9  ;;  %v3658_v17 = vsel %vm609_vm5, %v3596_v40, 0.0  ;;  %v13253_v7 = vrot.slane %v5001_v23, 9  ;;  %v9193_v6 = vld [vmem:[%s16450_s30 + $0x204] sm:$0xf] }
 0x238   : > { %v5229_v50 = vrot.slane %v5227_v24, 4  ;;  %v5230_v37 = vrot.slane %v5003_v48, 5  ;;  %v19243_v2 = vadd.f32 %v3658_v17, %v3657_v14  ;;  %v5221_v63 = vsel %vm16463_vm6, %v13252_v26, %v5220_v39  ;;  %v5006_v45 = vld [vmem:[%s16450_s30 + $0x25c] sm:$0x1]  ;;  %v9194_v29 = vld [vmem:[%s16450_s30 + $0x208] sm:$0x1] }
 0x239   : > { %v9431_v49 = vrot.slane %v9429_v31, 4  ;;  %v9432_v12 = vrot.slane %v9185_v54, 5  ;;  %v21941_v55 = vcombine.low %v21939_v59, %v21940_v5  ;;  %v5224_v15 = vsel %vm16463_vm6, %v5222_v8, %v5223_v36  ;;  %v9191_v36 = vld [vmem:[%s16450_s30 + $0x1b4] sm:$0x1]  ;;  %v9199_v57 = vld [vmem:[%s16450_s30 + $0x23c] sm:$0xf] }
 0x23a   : > { %21938 = vst [vmem:[#allocation6_spill] sm:$0xff] %v19243_v2  ;;  %v13648_v51 = vrot.slane %v9186_v10, 9  ;;  %v9438_v60 = vrot.slane %v9436_v58, 4  ;;  %v9439_v61 = vrot.slane %v9188_v22, 5  ;;  %v5234_v35 = vrot.slane %v5005_v30, 5 }
 0x23b   : > { %14952 = vmatmul.mubr.msk.bf16.gmra.mrb[52].mxu1 %vm609_vm5, %v21941_v55  ;;  %v5228_v26 = vsel %vm16463_vm6, %v13253_v7, %v5227_v24  ;;  %v5231_v39 = vsel %vm16463_vm6, %v5229_v50, %v5230_v37  ;;  %v19268_v42 = vcombine.low %v5221_v63, %v5224_v15  ;;  %v9430_v47 = vsel %vm16463_vm6, %v13647_v18, %v9429_v31  ;;  %v9197_v14 = vld [vmem:[%s16450_s30 + $0x224] sm:$0x1]  ;;  %v9198_v17 = vld [vmem:[%s16450_s30 + $0x238] sm:$0xe]  ;;  %v9200_v7 = vld [vmem:[%s16450_s30 + $0x240] sm:$0x1] }
 0x23c   : > { %14955 = vmatprep.mubr.msk.bf16.mxu1 %vm609_vm5, %v19229_v13  ;;  %v9433_v56 = vsel %vm16463_vm6, %v9431_v49, %v9432_v12  ;;  %v9443_v38 = vrot.slane %v9190_v34, 5  ;;  %v9440_v9 = vsel %vm16463_vm6, %v9438_v60, %v9439_v61  ;;  %v13254_v1 = vrot.slane %v5004_v33, 9  ;;  %v9202_v12 = vld [vmem:[%s16450_s30 + $0x258] sm:$0xf]  ;;  %v5008_v59 = vld [vmem:[%s16450_s30 + $0x274] sm:$0xf] }
 0x23d   : > { %15258 = vmatmul.mubr.msk.bf16.gmra.mrb[52].mxu0 %vm609_vm5, %v13662_v41  ;;  %v9437_v41 = vsel %vm16463_vm6, %v13648_v51, %v9436_v58  ;;  %v9792_v11 = vrot.slane %v9193_v6, 5  ;;  %v19280_v0 = vcombine.low %v5228_v26, %v5231_v39  ;;  %v5236_v40 = vrot.slane %v5234_v35, 4  ;;  %v9195_v58 = vld [vmem:[%s16450_s30 + $0x21c] sm:$0xe]  ;;  %v9205_v51 = vld [vmem:[%s16450_s30 + $0x274] sm:$0xf] }
 0x23e   : > { %15261 = vmatprep.mubr.msk.bf16.mxu0 %vm609_vm5, %v13663_v21  ;;  %v5237_v46 = vrot.slane %v5006_v45, 5  ;;  %v13664_v62 = vcombine.low %v9430_v47, %v9433_v56  ;;  %v13665_v28 = vcombine.low %v9437_v41, %v9440_v9  ;;  %v13649_v24 = vrot.slane %v9189_v44, 9  ;;  %v9201_v34 = vld [vmem:[%s16450_s30 + $0x254] sm:$0xe]  ;;  %v9203_v33 = vld [vmem:[%s16450_s30 + $0x25c] sm:$0x1] }
 0x23f   : > { %v9445_v20 = vrot.slane %v9443_v38, 4  ;;  %v9446_v25 = vrot.slane %v9191_v36, 5  ;;  %v13683_v32 = vrot.slane %v9192_v43, 9  ;;  %v9794_v19 = vrot.slane %v9792_v11, 4  ;;  %v5007_v26 = vld [vmem:[%s16450_s30 + $0x270] sm:$0xe] }
 0x240   : > { %v9795_v31 = vrot.slane %v9194_v29, 5  ;;  %v5235_v23 = vsel %vm16463_vm6, %v13254_v1, %v5234_v35  ;;  %v5238_v48 = vsel %vm16463_vm6, %v5236_v40, %v5237_v46  ;;  %v9799_v27 = vrot.slane %v9196_v52, 5  ;;  %v5009_v39 = vld [vmem:[%s16450_s30 + $0x278] sm:$0x1]  ;;  %v9204_v56 = vld [vmem:[%s16450_s30 + $0x270] sm:$0xe] }
 0x241   : > { %v9444_v8 = vsel %vm16463_vm6, %v13649_v24, %v9443_v38  ;;  %v9447_v54 = vsel %vm16463_vm6, %v9445_v20, %v9446_v25  ;;  %v19302_v21 = vcombine.low %v5235_v23, %v5238_v48  ;;  %v9793_v18 = vsel %vm16463_vm6, %v13683_v32, %v9792_v11  ;;  %v9206_v38 = vld [vmem:[%s16450_s30 + $0x278] sm:$0x1]  ;;  %v5011_v11 = vld [vmem:[%s16450_s30 + $0x290] sm:$0xf]  ;;  %v5014_v24 = vld [vmem:[%s16450_s30 + $0x2ac] sm:$0xf] }
 0x242   : > { %v9796_v10 = vsel %vm16463_vm6, %v9794_v19, %v9795_v31  ;;  %v9806_v22 = vrot.slane %v9199_v57, 5  ;;  %v13666_v50 = vcombine.low %v9444_v8, %v9447_v54  ;;  %v13684_v37 = vrot.slane %v9195_v58, 9  ;;  %v19342_v20 = vld [vmem:[%s21612_s1 + $0x16] sm:$0x3]  ;;  %v5010_v25 = vld [vmem:[%s16450_s30 + $0x28c] sm:$0xe] }
 0x243   : > { %14956 = vmatmul.mubr.msk.bf16.gmra.mrb[56].mxu1 %vm609_vm5, %v19268_v42  ;;  %v9801_v30 = vrot.slane %v9799_v27, 4  ;;  %v9802_v63 = vrot.slane %v9197_v14, 5  ;;  %v13700_v49 = vcombine.low %v9793_v18, %v9796_v10  ;;  %v13685_v5 = vrot.slane %v9198_v17, 9  ;;  %v9208_v32 = vld [vmem:[%s16450_s30 + $0x290] sm:$0xf] }
 0x244   : > { %14959 = vmatprep.mubr.msk.bf16.mxu1 %vm609_vm5, %v19280_v0  ;;  %v9808_v55 = vrot.slane %v9806_v22, 4  ;;  %v9809_v15 = vrot.slane %v9200_v7, 5  ;;  %v9800_v60 = vsel %vm16463_vm6, %v13684_v37, %v9799_v27  ;;  %v9813_v35 = vrot.slane %v9202_v12, 5  ;;  %v5012_v31 = vld [vmem:[%s16450_s30 + $0x294] sm:$0x1] }
 0x245   : > { %15262 = vmatmul.mubr.msk.bf16.gmra.mrb[56].mxu0 %vm609_vm5, %v13664_v62  ;;  %v9803_v61 = vsel %vm16463_vm6, %v9801_v30, %v9802_v63  ;;  %v5571_v6 = vrot.slane %v5008_v59, 5  ;;  %v9807_v45 = vsel %vm16463_vm6, %v13685_v5, %v9806_v22  ;;  %v9820_v41 = vrot.slane %v9205_v51, 5  ;;  %v9211_v23 = vld [vmem:[%s16450_s30 + $0x2ac] sm:$0xf]  ;;  %v19357_v48 = vld [vmem:[%s21612_s1 + $0x28] sm:$0x3] }
 0x246   : > { %15265 = vmatprep.mubr.msk.bf16.mxu0 %vm609_vm5, %v13665_v28  ;;  %v9810_v47 = vsel %vm16463_vm6, %v9808_v55, %v9809_v15  ;;  %v13701_v9 = vcombine.low %v9800_v60, %v9803_v61  ;;  %v10455_v1 = vsel %vm383_vm0, %v19034_v3, 0  ;;  %v13686_v44 = vrot.slane %v9201_v34, 9  ;;  %v9207_v27 = vld [vmem:[%s16450_s30 + $0x28c] sm:$0xe]  ;;  %v5013_v18 = vld [vmem:[%s16450_s30 + $0x2a8] sm:$0xe] }
 0x247   : > { %v9816_v36 = vrot.slane %v9203_v33, 5  ;;  %v13288_v40 = vrot.slane %v5007_v26, 9  ;;  %v5573_v46 = vrot.slane %v5571_v6, 4  ;;  %v5574_v43 = vrot.slane %v5009_v39, 5  ;;  %v5015_v10 = vld [vmem:[%s16450_s30 + $0x2b0] sm:$0x1] }
 0x248   : > { %v13702_v29 = vcombine.low %v9807_v45, %v9810_v47  ;;  %v13687_v62 = vrot.slane %v9204_v56, 9  ;;  %v9823_v28 = vrot.slane %v9206_v38, 5  ;;  %v9822_v3 = vrot.slane %v9820_v41, 4  ;;  %v9212_v12 = vld [vmem:[%s16450_s30 + $0x2b0] sm:$0x1] }
 0x249   : > { %v5578_v52 = vrot.slane %v5011_v11, 5  ;;  %v9814_v19 = vsel %vm16463_vm6, %v13686_v44, %v9813_v35  ;;  %v5575_v57 = vsel %vm16463_vm6, %v5573_v46, %v5574_v43  ;;  %v5585_v8 = vrot.slane %v5014_v24, 5  ;;  %v5017_v51 = vld [vmem:[%s16450_s30 + $0x2c8] sm:$0xf]  ;;  %v5016_v47 = vld [vmem:[%s16450_s30 + $0x2c4] sm:$0xe] }
 0x24a   : > { %v9821_v54 = vsel %vm16463_vm6, %v13687_v62, %v9820_v41  ;;  %v13289_v58 = vrot.slane %v5010_v25, 9  ;;  %v9827_v14 = vrot.slane %v9208_v32, 5  ;;  %v9824_v22 = vsel %vm16463_vm6, %v9822_v3, %v9823_v28  ;;  %v9214_v45 = vld [vmem:[%s16450_s30 + $0x2c8] sm:$0xf]  ;;  %v9217_v38 = vld [vmem:[%s16450_s30 + $0x2e4] sm:$0xf] }
 0x24b   : > { %14960 = vmatmul.mubr.msk.bf16.gmra.mrb[60].mxu1 %vm609_vm5, %v19302_v21  ;;  %v5580_v17 = vrot.slane %v5578_v52, 4  ;;  %v5581_v7 = vrot.slane %v5012_v31, 5  ;;  %v9834_v37 = vrot.slane %v9211_v23, 5  ;;  %v13688_v59 = vrot.slane %v9207_v27, 9  ;;  %v5021_v46 = vld [vmem:[%s16450_s30 + $0x2e8] sm:$0x1] }
 0x24c   : > { %14965 = vmatprep.mubr.msk.bf16.mxu1 %vm609_vm5, %v19229_v13  ;;  %v6118_v13 = vsel %vm383_vm0, %v19017_v53, 0  ;;  %v9815_v53 = vrot.slane %v9813_v35, 4  ;;  %v13290_v5 = vrot.slane %v5013_v18, 9  ;;  %v5587_v55 = vrot.slane %v5585_v8, 4  ;;  %v5020_v35 = vld [vmem:[%s16450_s30 + $0x2e4] sm:$0xf] }
 0x24d   : > { %15266 = vmatmul.mubr.msk.bf16.gmra.mrb[60].mxu0 %vm609_vm5, %v13666_v50  ;;  %v9209_v50 = vld [vmem:[%s16450_s30 + $0x294] sm:$0x1]  ;;  %v5588_v15 = vrot.slane %v5015_v10, 5  ;;  %v13704_v60 = vcombine.low %v9821_v54, %v9824_v22  ;;  %v5579_v61 = vsel %vm16463_vm6, %v13289_v58, %v5578_v52  ;;  %v9829_v34 = vrot.slane %v9827_v14, 4  ;;  %v9213_v28 = vld [vmem:[%s16450_s30 + $0x2c4] sm:$0xe] }
 0x24e   : > { %15271 = vmatprep.mubr.msk.bf16.mxu0 %vm609_vm5, %v13700_v49  ;;  %v9210_v49 = vld [vmem:[%s16450_s30 + $0x2a8] sm:$0xe]  ;;  %v9830_v33 = vrot.slane %v9209_v50, 5  ;;  %v9836_v39 = vrot.slane %v9834_v37, 4  ;;  %v5592_v56 = vrot.slane %v5017_v51, 5  ;;  %v13291_v62 = vrot.slane %v5016_v47, 9 }
 0x24f   : > { %v13689_v26 = vrot.slane %v9210_v49, 9  ;;  %v5589_v41 = vsel %vm16463_vm6, %v5587_v55, %v5588_v15  ;;  %v9215_v24 = vld [vmem:[%s16450_s30 + $0x2cc] sm:$0x1]  ;;  %v9848_v3 = vrot.slane %v9217_v38, 5  ;;  %v9218_v31 = vld [vmem:[%s16450_s30 + $0x2e8] sm:$0x1] }
 0x250   : > { %v9831_v11 = vsel %vm16463_vm6, %v9829_v34, %v9830_v33  ;;  %v5594_v52 = vrot.slane %v5592_v56, 4  ;;  %v5023_v27 = vld [vmem:[%s16450_s30 + $0x300] sm:$0xf]  ;;  %v13690_v54 = vrot.slane %v9213_v28, 9  ;;  %v5026_v18 = vld [vmem:[%s16450_s30 + $0x31c] sm:$0xf]  ;;  %v5593_v50 = vsel %vm16463_vm6, %v13291_v62, %v5592_v56 }
 0x251   : > { %v9835_v43 = vsel %vm16463_vm6, %v13689_v26, %v9834_v37  ;;  %v9850_v22 = vrot.slane %v9848_v3, 4  ;;  %v9223_v49 = vld [vmem:[%s16450_s30 + $0x31c] sm:$0xf]  ;;  %v5613_v15 = vrot.slane %v5026_v18, 5  ;;  %v5025_v34 = vld [vmem:[%s16450_s30 + $0x318] sm:$0xe] }
 0x252   : > { %v9219_v55 = vld [vmem:[%s16450_s30 + $0x2fc] sm:$0xe]  ;;  %v5027_v33 = vld [vmem:[%s16450_s30 + $0x320] sm:$0x1]  ;;  %v5033_v18 = vld [vmem:[%s16450_s30 + $0x358] sm:$0x1] }
 0x253   : > { %14966 = vmatmul.mubr.msk.bf16.vlgmr.msra.gmra.mrb[32].mxu1 %vm609_vm5, %v19268_v42  ;;  %v9817_v42 = vsel %vm16463_vm6, %v9815_v53, %v9816_v36  ;;  %v9828_v36 = vsel %vm16463_vm6, %v13688_v59, %v9827_v14  ;;  %v9841_v53 = vrot.slane %v9214_v45, 5  ;;  %v9844_v14 = vrot.slane %v9215_v24, 5 }
 0x254   : > { %14998 = vmatpush3.bf16.msra.mxu1 %v6118_v13  ;;  %14969 = vmatprep.mubr.msk.bf16.mxu1 %vm609_vm5, %v19280_v0  ;;  %v5572_v0 = vsel %vm16463_vm6, %v13288_v40, %v5571_v6  ;;  %v13703_v30 = vcombine.low %v9814_v19, %v9817_v42  ;;  %v5582_v6 = vsel %vm16463_vm6, %v5580_v17, %v5581_v7  ;;  %v9837_v13 = vrot.slane %v9212_v12, 5  ;;  %v5019_v40 = vld [vmem:[%s16450_s30 + $0x2e0] sm:$0xe] }
 0x255   : > { %15272 = vmatmul.mubr.msk.bf16.vlgmr.msra.gmra.mrb[32].mxu0 %vm609_vm5, %v13701_v9  ;;  %16225 = vmatprep.subr.msk.bf16.mxu1 %vm383_vm0, %v19342_v20  ;;  %v13301_v63 = vcombine.low %v5572_v0, %v5575_v57  ;;  %v5018_v9 = vld [vmem:[%s16450_s30 + $0x2cc] sm:$0x1]  ;;  %v13302_v44 = vcombine.low %v5579_v61, %v5582_v6  ;;  %v9216_v19 = vld [vmem:[%s16450_s30 + $0x2e0] sm:$0xe]  ;;  %v13705_v23 = vcombine.low %v9828_v36, %v9831_v11  ;;  %v13292_v42 = vrot.slane %v5019_v40, 9 }
 0x256   : > { %15304 = vmatpush3.bf16.msra.mxu0 %v10455_v1  ;;  %15275 = vmatprep.mubr.msk.bf16.mxu0 %vm609_vm5, %v13702_v29  ;;  %v5599_v1 = vrot.slane %v5020_v35, 5  ;;  %v9838_v29 = vsel %vm16463_vm6, %v9836_v39, %v9837_v13  ;;  %v5595_v32 = vrot.slane %v5018_v9, 5  ;;  %v5602_v57 = vrot.slane %v5021_v46, 5  ;;  %v9220_v7 = vld [vmem:[%s16450_s30 + $0x300] sm:$0xf] }
 0x257   : > { %16234 = vmatprep.subr.msk.bf16.mxu0 %vm383_vm0, %v19357_v48  ;;  %v9843_v58 = vrot.slane %v9841_v53, 4  ;;  %v13691_v10 = vrot.slane %v9216_v19, 9  ;;  %v9851_v17 = vrot.slane %v9218_v31, 5  ;;  %v9842_v51 = vsel %vm16463_vm6, %v13690_v54, %v9841_v53  ;;  %v9221_v39 = vld [vmem:[%s16450_s30 + $0x304] sm:$0x1] }
 0x258   : > { %v5601_v0 = vrot.slane %v5599_v1, 4  ;;  %v5596_v37 = vsel %vm16463_vm6, %v5594_v52, %v5595_v32  ;;  %v5600_v12 = vsel %vm16463_vm6, %v13292_v42, %v5599_v1  ;;  %v9855_v61 = vrot.slane %v9220_v7, 5  ;;  %v9222_v13 = vld [vmem:[%s16450_s30 + $0x318] sm:$0xe]  ;;  %v5028_v32 = vld [vmem:[%s16450_s30 + $0x334] sm:$0xe] }
 0x259   : > { %v13304_v35 = vcombine.low %v5593_v50, %v5596_v37  ;;  %v9849_v6 = vsel %vm16463_vm6, %v13691_v10, %v9848_v3  ;;  %v9852_v26 = vsel %vm16463_vm6, %v9850_v22, %v9851_v17  ;;  %v9862_v45 = vrot.slane %v9223_v49, 5  ;;  %v5029_v11 = vld [vmem:[%s16450_s30 + $0x338] sm:$0xf]  ;;  %v9229_v31 = vld [vmem:[%s16450_s30 + $0x354] sm:$0xf] }
 0x25a   : > { %v5603_v59 = vsel %vm16463_vm6, %v5601_v0, %v5602_v57  ;;  %v13294_v1 = vrot.slane %v5025_v34, 9  ;;  %v5616_v36 = vrot.slane %v5027_v33, 5  ;;  %v13708_v53 = vcombine.low %v9849_v6, %v9852_v26  ;;  %v9226_v3 = vld [vmem:[%s16450_s30 + $0x338] sm:$0xf]  ;;  %v5030_v0 = vld [vmem:[%s16450_s30 + $0x33c] sm:$0x1] }
 0x25b   : > { %14970 = vmatmul.mubr.msk.bf16.gmra.mrb[36].mxu1 %vm609_vm5, %v19302_v21  ;;  %v5586_v21 = vsel %vm16463_vm6, %v13290_v5, %v5585_v8  ;;  %v13706_v8 = vcombine.low %v9835_v43, %v9838_v29  ;;  %v5024_v5 = vld [vmem:[%s16450_s30 + $0x304] sm:$0x1]  ;;  %v13305_v47 = vcombine.low %v5600_v12, %v5603_v59  ;;  %v13692_v40 = vrot.slane %v9219_v55, 9  ;;  %v5032_v29 = vld [vmem:[%s16450_s30 + $0x354] sm:$0xf] }
 0x25c   : > { %14973 = vmatprep.mubr.msk.bf16.mxu1 %vm609_vm5, %v13301_v63  ;;  %v13303_v25 = vcombine.low %v5586_v21, %v5589_v41  ;;  %v5606_v63 = vrot.slane %v5023_v27, 5  ;;  %v5609_v21 = vrot.slane %v5024_v5, 5  ;;  %v9224_v41 = vld [vmem:[%s16450_s30 + $0x320] sm:$0x1]  ;;  %v9857_v46 = vrot.slane %v9855_v61, 4 }
 0x25d   : > { %15276 = vmatmul.mubr.msk.bf16.gmra.mrb[36].mxu0 %vm609_vm5, %v13703_v30  ;;  %v5022_v30 = vld [vmem:[%s16450_s30 + $0x2fc] sm:$0xe]  ;;  %v9858_v43 = vrot.slane %v9221_v39, 5  ;;  %v13693_v62 = vrot.slane %v9222_v13, 9  ;;  %v9864_v28 = vrot.slane %v9862_v45, 4  ;;  %v9865_v24 = vrot.slane %v9224_v41, 5 }
 0x25e   : > { %15279 = vmatprep.mubr.msk.bf16.mxu0 %vm609_vm5, %v13704_v60  ;;  %v9845_v60 = vsel %vm16463_vm6, %v9843_v58, %v9844_v14  ;;  %v13293_v56 = vrot.slane %v5022_v30, 9  ;;  %v5608_v38 = vrot.slane %v5606_v63, 4  ;;  %v5620_v19 = vrot.slane %v5029_v11, 5  ;;  %v9225_v57 = vld [vmem:[%s16450_s30 + $0x334] sm:$0xe] }
 0x25f   : > { %v13707_v9 = vcombine.low %v9842_v51, %v9845_v60  ;;  %v5627_v27 = vrot.slane %v5032_v29, 5  ;;  %v9859_v54 = vsel %vm16463_vm6, %v9857_v46, %v9858_v43  ;;  %v9869_v58 = vrot.slane %v9226_v3, 5  ;;  %v5031_v14 = vld [vmem:[%s16450_s30 + $0x350] sm:$0xe]  ;;  %v9227_v7 = vld [vmem:[%s16450_s30 + $0x33c] sm:$0x1] }
 0x260   : > { %v5610_v52 = vsel %vm16463_vm6, %v5608_v38, %v5609_v21  ;;  %v9863_v22 = vsel %vm16463_vm6, %v13693_v62, %v9862_v45  ;;  %v9866_v17 = vsel %vm16463_vm6, %v9864_v28, %v9865_v24  ;;  %v9228_v50 = vld [vmem:[%s16450_s30 + $0x350] sm:$0xe]  ;;  %v9876_v37 = vrot.slane %v9229_v31, 5  ;;  %v9230_v59 = vld [vmem:[%s16450_s30 + $0x358] sm:$0x1] }
 0x261   : > { %v5622_v49 = vrot.slane %v5620_v19, 4  ;;  %v5623_v12 = vrot.slane %v5030_v0, 5  ;;  %v13296_v55 = vrot.slane %v5031_v14, 9  ;;  %v5630_v51 = vrot.slane %v5033_v18, 5  ;;  %v5035_v60 = vld [vmem:[%s16450_s30 + $0x370] sm:$0xf] }
 0x262   : > { %v13694_v34 = vrot.slane %v9225_v57, 9  ;;  %v9871_v33 = vrot.slane %v9869_v58, 4  ;;  %v5038_v6 = vld [vmem:[%s16450_s30 + $0x38c] sm:$0xf]  ;;  %v13695_v26 = vrot.slane %v9228_v50, 9  ;;  %v9878_v39 = vrot.slane %v9876_v37, 4 }
 0x263   : > { %14974 = vmatmul.mubr.msk.bf16.gmra.mrb[40].mxu1 %vm609_vm5, %v13302_v44  ;;  %v5615_v44 = vrot.slane %v5613_v15, 4  ;;  %v9879_v13 = vrot.slane %v9230_v59, 5  ;;  %v9232_v45 = vld [vmem:[%s16450_s30 + $0x370] sm:$0xf]  ;;  %v5034_v38 = vld [vmem:[%s16450_s30 + $0x36c] sm:$0xe] }
 0x264   : > { %14977 = vmatprep.mubr.msk.bf16.mxu1 %vm609_vm5, %v13303_v25  ;;  %v5607_v25 = vsel %vm16463_vm6, %v13293_v56, %v5606_v63  ;;  %v13295_v63 = vrot.slane %v5028_v32, 9  ;;  %v5624_v56 = vsel %vm16463_vm6, %v5622_v49, %v5623_v12  ;;  %v5634_v21 = vrot.slane %v5035_v60, 5  ;;  %v9235_v41 = vld [vmem:[%s16450_s30 + $0x38c] sm:$0xf]  ;;  %v5037_v43 = vld [vmem:[%s16450_s30 + $0x388] sm:$0xe] }
 0x265   : > { %15280 = vmatmul.mubr.msk.bf16.gmra.mrb[40].mxu0 %vm609_vm5, %v13705_v23  ;;  %v5614_v23 = vsel %vm16463_vm6, %v13294_v1, %v5613_v15  ;;  %v5617_v42 = vsel %vm16463_vm6, %v5615_v44, %v5616_v36  ;;  %v13306_v10 = vcombine.low %v5607_v25, %v5610_v52  ;;  %v5629_v15 = vrot.slane %v5627_v27, 4  ;;  %v5036_v44 = vld [vmem:[%s16450_s30 + $0x374] sm:$0x1]  ;;  %v9231_v36 = vld [vmem:[%s16450_s30 + $0x36c] sm:$0xe] }
 0x266   : > { %15283 = vmatprep.mubr.msk.bf16.mxu0 %vm609_vm5, %v13706_v8  ;;  %v9856_v8 = vsel %vm16463_vm6, %v13692_v40, %v9855_v61  ;;  %v13307_v30 = vcombine.low %v5614_v23, %v5617_v42  ;;  %v13710_v61 = vcombine.low %v9863_v22, %v9866_v17  ;;  %v5641_v11 = vrot.slane %v5038_v6, 5  ;;  %v5039_v29 = vld [vmem:[%s16450_s30 + $0x390] sm:$0x1]  ;;  %v9233_v3 = vld [vmem:[%s16450_s30 + $0x374] sm:$0x1] }
 0x267   : > { %v13709_v5 = vcombine.low %v9856_v8, %v9859_v54  ;;  %v5631_v1 = vsel %vm16463_vm6, %v5629_v15, %v5630_v51  ;;  %v9883_v46 = vrot.slane %v9232_v45, 5  ;;  %v9877_v28 = vsel %vm16463_vm6, %v13695_v26, %v9876_v37  ;;  %v9234_v25 = vld [vmem:[%s16450_s30 + $0x388] sm:$0xe]  ;;  %v9236_v42 = vld [vmem:[%s16450_s30 + $0x390] sm:$0x1] }
 0x268   : > { %v9880_v24 = vsel %vm16463_vm6, %v9878_v39, %v9879_v13  ;;  %v9890_v52 = vrot.slane %v9235_v41, 5  ;;  %v5636_v31 = vrot.slane %v5634_v21, 4  ;;  %v5637_v23 = vrot.slane %v5036_v44, 5  ;;  %v5041_v54 = vld [vmem:[%s16450_s30 + $0x3a8] sm:$0xf] }
 0x269   : > { %v13298_v57 = vrot.slane %v5037_v43, 9  ;;  %v5644_v8 = vrot.slane %v5039_v29, 5  ;;  %v13696_v14 = vrot.slane %v9231_v36, 9  ;;  %v9885_v18 = vrot.slane %v9883_v46, 4  ;;  %v9238_v50 = vld [vmem:[%s16450_s30 + $0x3a8] sm:$0xf] }
 0x26a   : > { %v13697_v22 = vrot.slane %v9234_v25, 9  ;;  %v9892_v17 = vrot.slane %v9890_v52, 4  ;;  %v9241_v49 = vld [vmem:[%s16450_s30 + $0x3fc] sm:$0xf]  ;;  %v9237_v60 = vld [vmem:[%s16450_s30 + $0x3a4] sm:$0xe] }
 0x26b   : > { %14978 = vmatmul.mubr.msk.bf16.gmra.mrb[44].mxu1 %vm609_vm5, %v13304_v35  ;;  %v9872_v35 = vrot.slane %v9227_v7, 5  ;;  %v9893_v7 = vrot.slane %v9236_v42, 5  ;;  %v5642_v12 = vsel %vm16463_vm6, %v13298_v57, %v5641_v11  ;;  %v9884_v15 = vsel %vm16463_vm6, %v13696_v14, %v9883_v46  ;;  %v9239_v6 = vld [vmem:[%s16450_s30 + $0x3ac] sm:$0x1]  ;;  %v9240_v26 = vld [vmem:[%s16450_s30 + $0x3f8] sm:$0xe] }
 0x26c   : > { %14981 = vmatprep.mubr.msk.bf16.mxu1 %vm609_vm5, %v13305_v47  ;;  %v5621_v47 = vsel %vm16463_vm6, %v13295_v63, %v5620_v19  ;;  %v13297_v19 = vrot.slane %v5034_v38, 9  ;;  %v5648_v63 = vrot.slane %v5041_v54, 5  ;;  %v10246_v39 = vrot.slane %v9241_v49, 5  ;;  %v9242_v38 = vld [vmem:[%s16450_s30 + $0x400] sm:$0x1] }
 0x26d   : > { %15284 = vmatmul.mubr.msk.bf16.gmra.mrb[44].mxu0 %vm609_vm5, %v13707_v9  ;;  %v5628_v9 = vsel %vm16463_vm6, %v13296_v55, %v5627_v27  ;;  %v9873_v40 = vsel %vm16463_vm6, %v9871_v33, %v9872_v35  ;;  %v13308_v62 = vcombine.low %v5621_v47, %v5624_v56  ;;  %v5643_v27 = vrot.slane %v5641_v11, 4  ;;  %v5042_v55 = vld [vmem:[%s16450_s30 + $0x3ac] sm:$0x1]  ;;  %v9247_v29 = vld [vmem:[%s16450_s30 + $0x434] sm:$0xf] }
 0x26e   : > { %15287 = vmatprep.mubr.msk.bf16.mxu0 %vm609_vm5, %v13708_v53  ;;  %v9870_v53 = vsel %vm16463_vm6, %v13694_v34, %v9869_v58  ;;  %v19509_v32 = vcombine.low %v5628_v9, %v5631_v1  ;;  %v13712_v58 = vcombine.low %v9877_v28, %v9880_v24  ;;  %v5635_v37 = vsel %vm16463_vm6, %v13297_v19, %v5634_v21  ;;  %v9243_v19 = vld [vmem:[%s16450_s30 + $0x414] sm:$0xe]  ;;  %v9246_v42 = vld [vmem:[%s16450_s30 + $0x430] sm:$0xe]  ;;  %v5044_v14 = vld [vmem:[%s16450_s30 + $0x3c4] sm:$0xf] }
 0x26f   : > { %v13711_v0 = vcombine.low %v9870_v53, %v9873_v40  ;;  %v5645_v59 = vsel %vm16463_vm6, %v5643_v27, %v5644_v8  ;;  %v9891_v33 = vsel %vm16463_vm6, %v13697_v22, %v9890_v52  ;;  %v9894_v35 = vsel %vm16463_vm6, %v9892_v17, %v9893_v7  ;;  %v9244_v40 = vld [vmem:[%s16450_s30 + $0x418] sm:$0xf]  ;;  %v9250_v17 = vld [vmem:[%s16450_s30 + $0x450] sm:$0xf]  ;;  %v9253_v7 = vld [vmem:[%s16450_s30 + $0x46c] sm:$0xf] }
 0x270   : > { %v19543_v13 = vcombine.low %v5642_v12, %v5645_v59  ;;  %v5650_v47 = vrot.slane %v5648_v63, 4  ;;  %v5651_v56 = vrot.slane %v5042_v55, 5  ;;  %v13714_v41 = vcombine.low %v9891_v33, %v9894_v35  ;;  %v5043_v12 = vld [vmem:[%s16450_s30 + $0x3c0] sm:$0xe]  ;;  %v5045_v59 = vld [vmem:[%s16450_s30 + $0x3c8] sm:$0x1] }
 0x271   : > { %v13698_v9 = vrot.slane %v9237_v60, 9  ;;  %v9900_v44 = vrot.slane %v9239_v6, 5  ;;  %v13732_v36 = vrot.slane %v9240_v26, 9  ;;  %v10248_v11 = vrot.slane %v10246_v39, 4  ;;  %v9251_v55 = vld [vmem:[%s16450_s30 + $0x454] sm:$0x1] }
 0x272   : > { %v10249_v53 = vrot.slane %v9242_v38, 5  ;;  %v5652_v43 = vsel %vm16463_vm6, %v5650_v47, %v5651_v56  ;;  %v10253_v24 = vrot.slane %v9244_v40, 5  ;;  %v13733_v8 = vrot.slane %v9243_v19, 9  ;;  %v19598_v33 = vld [vmem:[%s16450_s30 + $0x3e0] sm:$0xf] }
 0x273   : > { %14982 = vmatmul.mubr.msk.bf16.gmra.mrb[48].mxu1 %vm609_vm5, %v13306_v10  ;;  %v9886_v10 = vrot.slane %v9233_v3, 5  ;;  %v10247_v25 = vsel %vm16463_vm6, %v13732_v36, %v10246_v39  ;;  %v10267_v49 = vrot.slane %v9250_v17, 5  ;;  %v6692_v60 = vsel %vm383_vm0, %v19342_v20, 0  ;;  %v19606_v20 = vld [vmem:[%s21612_s1 + $0x1c] sm:$0x3] }
 0x274   : > { %14985 = vmatprep.mubr.msk.bf16.mxu1 %vm609_vm5, %v13307_v30  ;;  %v5638_v30 = vsel %vm16463_vm6, %v5636_v31, %v5637_v23  ;;  %v10250_v52 = vsel %vm16463_vm6, %v10248_v11, %v10249_v53  ;;  %v9245_v31 = vld [vmem:[%s16450_s30 + $0x41c] sm:$0x1]  ;;  %v10260_v23 = vrot.slane %v9247_v29, 5  ;;  %v10255_v54 = vrot.slane %v10253_v24, 4  ;;  %v5046_v36 = vld [vmem:[%s16450_s30 + $0x3dc] sm:$0xe] }
 0x275   : > { %15288 = vmatmul.mubr.msk.bf16.gmra.mrb[48].mxu0 %vm609_vm5, %v13709_v5  ;;  %v5040_v5 = vld [vmem:[%s16450_s30 + $0x3a4] sm:$0xe]  ;;  %v9887_v51 = vsel %vm16463_vm6, %v9885_v18, %v9886_v10  ;;  %v19535_v34 = vcombine.low %v5635_v37, %v5638_v30  ;;  %v13749_v27 = vcombine.low %v10247_v25, %v10250_v52  ;;  %v13734_v18 = vrot.slane %v9246_v42, 9  ;;  %v9256_v11 = vld [vmem:[%s16450_s30 + $0x488] sm:$0xf] }
 0x276   : > { %15291 = vmatprep.mubr.msk.bf16.mxu0 %vm609_vm5, %v13710_v61  ;;  %v9897_v61 = vrot.slane %v9238_v50, 5  ;;  %v13299_v45 = vrot.slane %v5040_v5, 9  ;;  %v13713_v21 = vcombine.low %v9884_v15, %v9887_v51  ;;  %v10262_v10 = vrot.slane %v10260_v23, 4  ;;  %v9249_v50 = vld [vmem:[%s16450_s30 + $0x44c] sm:$0xe] }
 0x277   : > { %v5961_v37 = vrot.slane %v5044_v14, 5  ;;  %v10254_v30 = vsel %vm16463_vm6, %v13733_v8, %v10253_v24  ;;  %v9252_v15 = vld [vmem:[%s16450_s30 + $0x468] sm:$0xe]  ;;  %v10274_v51 = vrot.slane %v9253_v7, 5  ;;  %v13329_v6 = vrot.slane %v5043_v12, 9 }
 0x278   : > { %v9899_v1 = vrot.slane %v9897_v61, 4  ;;  %v5649_v46 = vsel %vm16463_vm6, %v13299_v45, %v5648_v63  ;;  %v5964_v39 = vrot.slane %v5045_v59, 5  ;;  %v19601_v45 = vld [vmem:[%s16450_s30 + $0x3fc] sm:$0xf]  ;;  %v13735_v56 = vrot.slane %v9249_v50, 9 }
 0x279   : > { %v19562_v3 = vcombine.low %v5649_v46, %v5652_v43  ;;  %v5963_v26 = vrot.slane %v5961_v37, 4  ;;  %v10269_v38 = vrot.slane %v10267_v49, 4  ;;  %v5968_v53 = vrot.slane %v19598_v33, 5  ;;  %v19618_v40 = vld [vmem:[%s16450_s30 + $0x4a4] sm:$0xf] }
 0x27a   : > { %v9901_v28 = vsel %vm16463_vm6, %v9899_v1, %v9900_v44  ;;  %v10276_v1 = vrot.slane %v10274_v51, 4  ;;  %v5048_v46 = vld [vmem:[%s16450_s30 + $0x3e4] sm:$0x1]  ;;  %v9255_v43 = vld [vmem:[%s16450_s30 + $0x484] sm:$0xe]  ;;  %v5975_v29 = vrot.slane %v19601_v45, 5 }
 0x27b   : > { %14986 = vmatmul.mubr.msk.bf16.gmra.mrb[52].mxu1 %vm609_vm5, %v13308_v62  ;;  %v9898_v62 = vsel %vm16463_vm6, %v13698_v9, %v9897_v61  ;;  %v9254_v61 = vld [vmem:[%s16450_s30 + $0x470] sm:$0x1]  ;;  %v13736_v9 = vrot.slane %v9252_v15, 9  ;;  %v10281_v24 = vrot.slane %v9256_v11, 5  ;;  %v5049_v25 = vld [vmem:[%s16450_s30 + $0x3f8] sm:$0xe] }
 0x27c   : > { %14989 = vmatprep.mubr.msk.bf16.mxu1 %vm609_vm5, %v19509_v32  ;;  %v13715_v57 = vcombine.low %v9898_v62, %v9901_v28  ;;  %v10277_v44 = vrot.slane %v9254_v61, 5  ;;  %v10268_v62 = vsel %vm16463_vm6, %v13735_v56, %v10267_v49  ;;  %v5051_v52 = vld [vmem:[%s16450_s30 + $0x400] sm:$0x1]  ;;  %v9258_v42 = vld [vmem:[%s16450_s30 + $0x4a0] sm:$0xe]  ;;  %v5970_v8 = vrot.slane %v5968_v53, 4 }
 0x27d   : > { %15292 = vmatmul.mubr.msk.bf16.gmra.mrb[52].mxu0 %vm609_vm5, %v13711_v0  ;;  %v9248_v0 = vld [vmem:[%s16450_s30 + $0x438] sm:$0x1]  ;;  %v10275_v19 = vsel %vm16463_vm6, %v13736_v9, %v10274_v51  ;;  %v13737_v50 = vrot.slane %v9255_v43, 9  ;;  %v13738_v49 = vrot.slane %v9258_v42, 9  ;;  %v5052_v15 = vld [vmem:[%s16450_s30 + $0x414] sm:$0xe] }
 0x27e   : > { %15295 = vmatprep.mubr.msk.bf16.mxu0 %vm609_vm5, %v13712_v58  ;;  %v10256_v58 = vrot.slane %v9245_v31, 5  ;;  %v10263_v22 = vrot.slane %v9248_v0, 5  ;;  %v10278_v31 = vsel %vm16463_vm6, %v10276_v1, %v10277_v44  ;;  %v10288_v0 = vrot.slane %v19618_v40, 5  ;;  %v5053_v17 = vld [vmem:[%s16450_s30 + $0x418] sm:$0xf] }
 0x27f   : > { %v13753_v7 = vcombine.low %v10275_v19, %v10278_v31  ;;  %v5982_v51 = vrot.slane %v5053_v17, 5  ;;  %v5054_v33 = vld [vmem:[%s16450_s30 + $0x41c] sm:$0x1]  ;;  %v5057_v56 = vld [vmem:[%s16450_s30 + $0x438] sm:$0x1]  ;;  %v13332_v11 = vrot.slane %v5052_v15, 9 }
 0x280   : > { %v10257_v63 = vsel %vm16463_vm6, %v10255_v54, %v10256_v58  ;;  %v10264_v5 = vsel %vm16463_vm6, %v10262_v10, %v10263_v22  ;;  %v5971_v54 = vrot.slane %v5048_v46, 5  ;;  %v9260_v58 = vld [vmem:[%s16450_s30 + $0x4a8] sm:$0x1]  ;;  %v5977_v10 = vrot.slane %v5975_v29, 4  ;;  %v9263_v9 = vld [vmem:[%s16450_s30 + $0x4c4] sm:$0x1] }
 0x281   : > { %v13750_v35 = vcombine.low %v10254_v30, %v10257_v63  ;;  %v5978_v22 = vrot.slane %v5051_v52, 5  ;;  %v5056_v63 = vld [vmem:[%s16450_s30 + $0x434] sm:$0xf]  ;;  %v10290_v12 = vrot.slane %v10288_v0, 4  ;;  %v10291_v59 = vrot.slane %v9260_v58, 5 }
 0x282   : > { %v9264_v1 = vld [vmem:[%s16450_s30 + $0x4d8] sm:$0xe]  ;;  %v5985_v40 = vrot.slane %v5054_v33, 5  ;;  %v10298_v52 = vrot.slane %v9263_v9, 5  ;;  %v5062_v19 = vld [vmem:[%s16450_s30 + $0x46c] sm:$0xf] }
 0x283   : > { %14990 = vmatmul.mubr.msk.bf16.gmra.mrb[56].mxu1 %vm609_vm5, %v19535_v34  ;;  %v5979_v61 = vsel %vm16463_vm6, %v5977_v10, %v5978_v22  ;;  %v13740_v31 = vrot.slane %v9264_v1, 9  ;;  %v9271_v58 = vld [vmem:[%s16450_s30 + $0x514] sm:$0xf]  ;;  %v6003_v17 = vrot.slane %v5062_v19, 5  ;;  %v5069_v19 = vld [vmem:[%s16450_s30 + $0x4a8] sm:$0x1] }
 0x284   : > { %14993 = vmatprep.mubr.msk.bf16.mxu1 %vm609_vm5, %v19543_v13  ;;  %v5060_v10 = vld [vmem:[%s16450_s30 + $0x454] sm:$0x1]  ;;  %v9267_v22 = vld [vmem:[%s16450_s30 + $0x4f4] sm:$0xe] }
 0x285   : > { %15296 = vmatmul.mubr.msk.bf16.gmra.mrb[56].mxu0 %vm609_vm5, %v13713_v21  ;;  %v10270_v21 = vrot.slane %v9251_v55, 5  ;;  %v5972_v55 = vsel %vm16463_vm6, %v5970_v8, %v5971_v54  ;;  %v5058_v8 = vld [vmem:[%s16450_s30 + $0x44c] sm:$0xe] }
 0x286   : > { %15299 = vmatprep.mubr.msk.bf16.mxu0 %vm609_vm5, %v13714_v41  ;;  %v11053_v41 = vsel %vm383_vm0, %v19357_v48, 0  ;;  %v5962_v48 = vsel %vm16463_vm6, %v13329_v6, %v5961_v37  ;;  %v10283_v37 = vrot.slane %v10281_v24, 4  ;;  %v5989_v6 = vrot.slane %v5056_v63, 5  ;;  %v5063_v63 = vld [vmem:[%s16450_s30 + $0x470] sm:$0x1] }
 0x287   : > { %v10271_v28 = vsel %vm16463_vm6, %v10269_v38, %v10270_v21  ;;  %v10289_v21 = vsel %vm16463_vm6, %v13738_v49, %v10288_v0  ;;  %v9268_v0 = vld [vmem:[%s16450_s30 + $0x4f8] sm:$0xf] }
 0x288   : > { %v13752_v14 = vcombine.low %v10268_v62, %v10271_v28  ;;  %v5991_v43 = vrot.slane %v5989_v6, 4  ;;  %v5059_v62 = vld [vmem:[%s16450_s30 + $0x450] sm:$0xf] }
 0x289   : > { %v5996_v54 = vrot.slane %v5059_v62, 5 }
 0x28b   : > { %14994 = vmatmul.mubr.msk.bf16.gmra.mrb[60].mxu1 %vm609_vm5, %v19562_v3 }
 0x28c   : > { %14999 = vmatprep.mubr.msk.bf16.mxu1 %vm609_vm5, %v19509_v32  ;;  %v10261_v32 = vsel %vm16463_vm6, %v13734_v18, %v10260_v23  ;;  %v9257_v23 = vld [vmem:[%s16450_s30 + $0x48c] sm:$0x1]  ;;  %v13331_v18 = vrot.slane %v5049_v25, 9 }
 0x28d   : > { %15300 = vmatmul.mubr.msk.bf16.gmra.mrb[60].mxu0 %vm609_vm5, %v13715_v57  ;;  %v13751_v47 = vcombine.low %v10261_v32, %v10264_v5  ;;  %v10284_v30 = vrot.slane %v9257_v23, 5  ;;  %v9262_v32 = vld [vmem:[%s16450_s30 + $0x4c0] sm:$0xf] }
 0x28e   : > { %15305 = vmatprep.mubr.msk.bf16.mxu0 %vm609_vm5, %v13749_v27  ;;  %v13330_v27 = vrot.slane %v5046_v36, 9  ;;  %v10295_v45 = vrot.slane %v9262_v32, 5  ;;  %v9269_v32 = vld [vmem:[%s16450_s30 + $0x4fc] sm:$0x1] }
 0x290   : > { %v5969_v5 = vsel %vm16463_vm6, %v13330_v27, %v5968_v53  ;;  %v5984_v53 = vrot.slane %v5982_v51, 4  ;;  %v10297_v25 = vrot.slane %v10295_v45, 4 }
 0x291   : > { %v13343_v38 = vcombine.low %v5969_v5, %v5972_v55  ;;  %v9270_v5 = vld [vmem:[%s16450_s30 + $0x510] sm:$0xe]  ;;  %v10316_v55 = vrot.slane %v9271_v58, 5 }
 0x292   : > { %v5986_v27 = vsel %vm16463_vm6, %v5984_v53, %v5985_v40  ;;  %v5064_v53 = vld [vmem:[%s16450_s30 + $0x484] sm:$0xe] }
 0x293   : > { %15000 = vmatmul.mubr.msk.bf16.vlgmr.msra.gmra.mrb[32].mxu1 %vm609_vm5, %v19535_v34  ;;  %v19623_v34 = vld [vmem:[%s21612_s1 + $0x2e] sm:$0x3]  ;;  %v10318_v9 = vrot.slane %v10316_v55, 4 }
 0x294   : > { %15032 = vmatpush3.bf16.msra.mxu1 %v6692_v60  ;;  %15003 = vmatprep.mubr.msk.bf16.mxu1 %vm609_vm5, %v19543_v13  ;;  %v5965_v13 = vsel %vm16463_vm6, %v5963_v26, %v5964_v39  ;;  %v9265_v60 = vld [vmem:[%s16450_s30 + $0x4dc] sm:$0xf]  ;;  %v10282_v26 = vsel %vm16463_vm6, %v13737_v50, %v10281_v24  ;;  %v10285_v39 = vsel %vm16463_vm6, %v10283_v37, %v10284_v30  ;;  %v10309_v37 = vrot.slane %v9268_v0, 5  ;;  %v5061_v30 = vld [vmem:[%s16450_s30 + $0x468] sm:$0xe] }
 0x295   : > { %15306 = vmatmul.mubr.msk.bf16.vlgmr.msra.gmra.mrb[32].mxu0 %vm609_vm5, %v13750_v35  ;;  %16226 = vmatprep.subr.msk.bf16.mxu1 %vm383_vm0, %v19606_v20  ;;  %v13342_v57 = vcombine.low %v5962_v48, %v5965_v13  ;;  %v9261_v35 = vld [vmem:[%s16450_s30 + $0x4bc] sm:$0xe]  ;;  %v10302_v44 = vrot.slane %v9265_v60, 5  ;;  %v9266_v48 = vld [vmem:[%s16450_s30 + $0x4e0] sm:$0x1]  ;;  %v13754_v13 = vcombine.low %v10282_v26, %v10285_v39  ;;  %v10299_v50 = vsel %vm16463_vm6, %v10297_v25, %v10298_v52 }
 0x296   : > { %15338 = vmatpush3.bf16.msra.mxu0 %v11053_v41  ;;  %15309 = vmatprep.mubr.msk.bf16.mxu0 %vm609_vm5, %v13751_v47  ;;  %v5055_v47 = vld [vmem:[%s16450_s30 + $0x430] sm:$0xe]  ;;  %v10292_v41 = vsel %vm16463_vm6, %v10290_v12, %v10291_v59  ;;  %v13739_v24 = vrot.slane %v9261_v35, 9  ;;  %v10305_v42 = vrot.slane %v9266_v48, 5  ;;  %v5998_v60 = vrot.slane %v5996_v54, 4 }
 0x297   : > { %16235 = vmatprep.subr.msk.bf16.mxu0 %vm383_vm0, %v19623_v34  ;;  %v13333_v46 = vrot.slane %v5055_v47, 9  ;;  %v13755_v28 = vcombine.low %v10289_v21, %v10292_v41  ;;  %v10304_v23 = vrot.slane %v10302_v44, 4  ;;  %v10303_v12 = vsel %vm16463_vm6, %v13740_v31, %v10302_v44  ;;  %v5065_v39 = vld [vmem:[%s16450_s30 + $0x488] sm:$0xf]  ;;  %v5068_v21 = vld [vmem:[%s16450_s30 + $0x4a4] sm:$0xf] }
 0x298   : > { %v13335_v35 = vrot.slane %v5061_v30, 9  ;;  %v6006_v26 = vrot.slane %v5063_v63, 5  ;;  %v13741_v47 = vrot.slane %v9267_v22, 9  ;;  %v13742_v41 = vrot.slane %v9270_v5, 9  ;;  %v9274_v44 = vld [vmem:[%s16450_s30 + $0x530] sm:$0xf] }
 0x299   : > { %v10306_v59 = vsel %vm16463_vm6, %v10304_v23, %v10305_v42  ;;  %v6010_v40 = vrot.slane %v5065_v39, 5  ;;  %v9277_v48 = vld [vmem:[%s16450_s30 + $0x54c] sm:$0xf]  ;;  %v6017_v62 = vrot.slane %v5068_v21, 5  ;;  %v10323_v25 = vrot.slane %v9274_v44, 5 }
 0x29a   : > { %v5067_v52 = vld [vmem:[%s16450_s30 + $0x4a0] sm:$0xe]  ;;  %v10317_v23 = vsel %vm16463_vm6, %v13742_v41, %v10316_v55  ;;  %v9275_v0 = vld [vmem:[%s16450_s30 + $0x534] sm:$0x1]  ;;  %v9280_v55 = vld [vmem:[%s16450_s30 + $0x568] sm:$0xf] }
 0x29b   : > { %15004 = vmatmul.mubr.msk.bf16.gmra.mrb[36].mxu1 %vm609_vm5, %v19562_v3  ;;  %v5976_v3 = vsel %vm16463_vm6, %v13331_v18, %v5975_v29  ;;  %v5992_v29 = vrot.slane %v5057_v56, 5  ;;  %v10311_v56 = vrot.slane %v10309_v37, 4  ;;  %v6012_v58 = vrot.slane %v6010_v40, 4  ;;  %v5075_v21 = vld [vmem:[%s16450_s30 + $0x4e0] sm:$0x1] }
 0x29c   : > { %15007 = vmatprep.mubr.msk.bf16.mxu1 %vm609_vm5, %v13342_v57  ;;  %v13344_v36 = vcombine.low %v5976_v3, %v5979_v61  ;;  %v5983_v57 = vsel %vm16463_vm6, %v13332_v11, %v5982_v51  ;;  %v13334_v51 = vrot.slane %v5058_v8, 9  ;;  %v5999_v3 = vrot.slane %v5060_v10, 5  ;;  %v9272_v61 = vld [vmem:[%s16450_s30 + $0x518] sm:$0x1]  ;;  %v9281_v44 = vld [vmem:[%s16450_s30 + $0x56c] sm:$0x1] }
 0x29d   : > { %15310 = vmatmul.mubr.msk.bf16.gmra.mrb[36].mxu0 %vm609_vm5, %v13752_v14  ;;  %v5990_v14 = vsel %vm16463_vm6, %v13333_v46, %v5989_v6  ;;  %v5993_v18 = vsel %vm16463_vm6, %v5991_v43, %v5992_v29  ;;  %v13345_v49 = vcombine.low %v5983_v57, %v5986_v27  ;;  %v6005_v6 = vrot.slane %v6003_v17, 4  ;;  %v5066_v43 = vld [vmem:[%s16450_s30 + $0x48c] sm:$0x1]  ;;  %v9273_v29 = vld [vmem:[%s16450_s30 + $0x52c] sm:$0xe] }
 0x29e   : > { %15313 = vmatprep.mubr.msk.bf16.mxu0 %vm609_vm5, %v13753_v7  ;;  %v10296_v7 = vsel %vm16463_vm6, %v13739_v24, %v10295_v45  ;;  %v13346_v15 = vcombine.low %v5990_v14, %v5993_v18  ;;  %v13757_v45 = vcombine.low %v10303_v12, %v10306_v59  ;;  %v10319_v1 = vrot.slane %v9272_v61, 5  ;;  %v9276_v57 = vld [vmem:[%s16450_s30 + $0x548] sm:$0xe]  ;;  %v9278_v18 = vld [vmem:[%s16450_s30 + $0x550] sm:$0x1] }
 0x29f   : > { %v13756_v33 = vcombine.low %v10296_v7, %v10299_v50  ;;  %v6000_v11 = vsel %vm16463_vm6, %v5998_v60, %v5999_v3  ;;  %v6007_v46 = vsel %vm16463_vm6, %v6005_v6, %v6006_v26  ;;  %v10330_v27 = vrot.slane %v9277_v48, 5  ;;  %v5071_v50 = vld [vmem:[%s16450_s30 + $0x4c0] sm:$0xf]  ;;  %v5074_v12 = vld [vmem:[%s16450_s30 + $0x4dc] sm:$0xf] }
 0x2a0   : > { %v10320_v42 = vsel %vm16463_vm6, %v10318_v9, %v10319_v1  ;;  %v6013_v14 = vrot.slane %v5066_v43, 5  ;;  %v13337_v22 = vrot.slane %v5067_v52, 9  ;;  %v6020_v7 = vrot.slane %v5069_v19, 5  ;;  %v5070_v60 = vld [vmem:[%s16450_s30 + $0x4bc] sm:$0xe] }
 0x2a1   : > { %v13743_v30 = vrot.slane %v9273_v29, 9  ;;  %v10325_v63 = vrot.slane %v10323_v25, 4  ;;  %v13744_v59 = vrot.slane %v9276_v57, 9  ;;  %v10333_v5 = vrot.slane %v9278_v18, 5  ;;  %v9283_v61 = vld [vmem:[%s16450_s30 + $0x584] sm:$0xf] }
 0x2a2   : > { %v6024_v3 = vrot.slane %v5071_v50, 5  ;;  %v5072_v6 = vld [vmem:[%s16450_s30 + $0x4c4] sm:$0x1]  ;;  %v9279_v26 = vld [vmem:[%s16450_s30 + $0x564] sm:$0xe]  ;;  %v6031_v39 = vrot.slane %v5074_v12, 5 }
 0x2a3   : > { %15008 = vmatmul.mubr.msk.bf16.gmra.mrb[40].mxu1 %vm609_vm5, %v13343_v38  ;;  %v10312_v38 = vrot.slane %v9269_v32, 5  ;;  %v10332_v32 = vrot.slane %v10330_v27, 4  ;;  %v10331_v9 = vsel %vm16463_vm6, %v13744_v59, %v10330_v27  ;;  %v13745_v52 = vrot.slane %v9279_v26, 9  ;;  %v9286_v27 = vld [vmem:[%s16450_s30 + $0x5a0] sm:$0xf] }
 0x2a4   : > { %15011 = vmatprep.mubr.msk.bf16.mxu1 %vm609_vm5, %v13344_v36  ;;  %v5997_v36 = vsel %vm16463_vm6, %v13334_v51, %v5996_v54  ;;  %v13336_v54 = vrot.slane %v5064_v53, 9  ;;  %v6014_v51 = vsel %vm16463_vm6, %v6012_v58, %v6013_v14  ;;  %v6026_v48 = vrot.slane %v6024_v3, 4  ;;  %v5076_v58 = vld [vmem:[%s16450_s30 + $0x4f4] sm:$0xe]  ;;  %v6315_v12 = vld [vmem:[%s16450_s30 + $0xbc] sm:$0x7] }
 0x2a5   : > { %15314 = vmatmul.mubr.msk.bf16.gmra.mrb[40].mxu0 %vm609_vm5, %v13754_v13  ;;  %v6004_v13 = vsel %vm16463_vm6, %v13335_v35, %v6003_v17  ;;  %v10313_v24 = vsel %vm16463_vm6, %v10311_v56, %v10312_v38  ;;  %v13347_v31 = vcombine.low %v5997_v36, %v6000_v11  ;;  %v6019_v17 = vrot.slane %v6017_v62, 4  ;;  %v5073_v38 = vld [vmem:[%s16450_s30 + $0x4d8] sm:$0xe]  ;;  %v9282_v36 = vld [vmem:[%s16450_s30 + $0x580] sm:$0xe] }
 0x2a6   : > { %15317 = vmatprep.mubr.msk.bf16.mxu0 %vm609_vm5, %v13755_v28  ;;  %v10310_v28 = vsel %vm16463_vm6, %v13741_v47, %v10309_v37  ;;  %v13348_v8 = vcombine.low %v6004_v13, %v6007_v46  ;;  %v13759_v37 = vcombine.low %v10317_v23, %v10320_v42  ;;  %v10337_v56 = vrot.slane %v9280_v55, 5  ;;  %v9284_v46 = vld [vmem:[%s16450_s30 + $0x588] sm:$0x1]  ;;  %v6314_v23 = vld [vmem:[%s16450_s30 + $0xb8] sm:$0xf] }
 0x2a7   : > { %v13758_v10 = vcombine.low %v10310_v28, %v10313_v24  ;;  %v6021_v35 = vsel %vm16463_vm6, %v6019_v17, %v6020_v7  ;;  %v10334_v1 = vsel %vm16463_vm6, %v10332_v32, %v10333_v5  ;;  %v10344_v11 = vrot.slane %v9283_v61, 5  ;;  %v5077_v24 = vld [vmem:[%s16450_s30 + $0x4f8] sm:$0xf]  ;;  %v10651_v18 = vld [vmem:[%s16450_s30 + $0x14] sm:$0xf] }
 0x2a8   : > { %v6027_v13 = vrot.slane %v5072_v6, 5  ;;  %v13339_v29 = vrot.slane %v5073_v38, 9  ;;  %v6034_v28 = vrot.slane %v5075_v21, 5  ;;  %v10339_v19 = vrot.slane %v10337_v56, 4  ;;  %v5078_v17 = vld [vmem:[%s16450_s30 + $0x4fc] sm:$0x1] }
 0x2a9   : > { %v13746_v42 = vrot.slane %v9282_v36, 9  ;;  %v10347_v57 = vrot.slane %v9284_v46, 5  ;;  %v6038_v14 = vrot.slane %v5077_v24, 5  ;;  %v9285_v7 = vld [vmem:[%s16450_s30 + $0x59c] sm:$0xe]  ;;  %v6483_v50 = vrot.slane %v6314_v23, 7 }
 0x2aa   : > { %v9287_v55 = vld [vmem:[%s16450_s30 + $0x5a4] sm:$0x1]  ;;  %v13747_v38 = vrot.slane %v9285_v7, 9  ;;  %v10657_v46 = vld [vmem:[%s16450_s30 + $0x4c] sm:$0xf] }
 0x2ab   : > { %15012 = vmatmul.mubr.msk.bf16.gmra.mrb[44].mxu1 %vm609_vm5, %v13345_v49  ;;  %v10326_v49 = vrot.slane %v9275_v0, 5  ;;  %v10346_v0 = vrot.slane %v10344_v11, 4  ;;  %v10345_v32 = vsel %vm16463_vm6, %v13746_v42, %v10344_v11  ;;  %v6040_v61 = vrot.slane %v6038_v14, 4  ;;  %v10654_v11 = vld [vmem:[%s16450_s30 + $0x30] sm:$0xf] }
 0x2ac   : > { %15015 = vmatprep.mubr.msk.bf16.mxu1 %vm609_vm5, %v13346_v15  ;;  %v6011_v15 = vsel %vm16463_vm6, %v13336_v54, %v6010_v40  ;;  %v13338_v40 = vrot.slane %v5070_v60, 9  ;;  %v6028_v54 = vsel %vm16463_vm6, %v6026_v48, %v6027_v13  ;;  %v6316_v48 = vld [vmem:[%s16450_s30 + $0xd0] sm:$0x8]  ;;  %v10653_v24 = vld [vmem:[%s16450_s30 + $0x2c] sm:$0xc] }
 0x2ad   : > { %15318 = vmatmul.mubr.msk.bf16.gmra.mrb[44].mxu0 %vm609_vm5, %v13756_v33  ;;  %v6018_v33 = vsel %vm16463_vm6, %v13337_v22, %v6017_v62  ;;  %v10327_v47 = vsel %vm16463_vm6, %v10325_v63, %v10326_v49  ;;  %v13349_v41 = vcombine.low %v6011_v15, %v6014_v51  ;;  %v6033_v62 = vrot.slane %v6031_v39, 4  ;;  %v6313_v49 = vld [vmem:[%s16450_s30 + $0xb4] sm:$0x8]  ;;  %v10650_v15 = vld [vmem:[%s16450_s30 + $0x10] sm:$0xc] }
 0x2ae   : > { %15321 = vmatprep.mubr.msk.bf16.mxu0 %vm609_vm5, %v13757_v45  ;;  %v10324_v45 = vsel %vm16463_vm6, %v13743_v30, %v10323_v25  ;;  %v13350_v53 = vcombine.low %v6018_v33, %v6021_v35  ;;  %v13761_v25 = vcombine.low %v10331_v9, %v10334_v1  ;;  %v10351_v63 = vrot.slane %v9286_v27, 5  ;;  %v10652_v35 = vld [vmem:[%s16450_s30 + $0x18] sm:$0x3]  ;;  %v6320_v9 = vld [vmem:[%s16450_s30 + $0xf0] sm:$0xf] }
 0x2af   : > { %v13760_v43 = vcombine.low %v10324_v45, %v10327_v47  ;;  %v6035_v22 = vsel %vm16463_vm6, %v6033_v62, %v6034_v28  ;;  %v10348_v5 = vsel %vm16463_vm6, %v10346_v0, %v10347_v57  ;;  %v10844_v51 = vrot.slane %v10651_v18, 6  ;;  %v6317_v47 = vld [vmem:[%s16450_s30 + $0xd4] sm:$0xf]  ;;  %v6318_v28 = vld [vmem:[%s16450_s30 + $0xd8] sm:$0x7] }
 0x2b0   : > { %v6041_v33 = vrot.slane %v5078_v17, 5  ;;  %v13370_v26 = vrot.slane %v6313_v49, 11  ;;  %v6486_v45 = vrot.slane %v6315_v12, 7  ;;  %v10353_v21 = vrot.slane %v10351_v63, 4  ;;  %v6319_v23 = vld [vmem:[%s16450_s30 + $0xec] sm:$0x8] }
 0x2b1   : > { %v13781_v1 = vrot.slane %v10650_v15, 10  ;;  %v10847_v36 = vrot.slane %v10652_v35, 6  ;;  %v6490_v13 = vrot.slane %v6317_v47, 7  ;;  %v6321_v42 = vld [vmem:[%s16450_s30 + $0xf4] sm:$0x7]  ;;  %v6493_v16 = vrot.slane %v6318_v28, 7 }
 0x2b2   : > { %v10658_v17 = vld [vmem:[%s16450_s30 + $0x50] sm:$0x3]  ;;  %v13782_v12 = vrot.slane %v10653_v24, 10  ;;  %v10659_v47 = vld [vmem:[%s16450_s30 + $0x64] sm:$0xc] }
 0x2b3   : > { %15016 = vmatmul.mubr.msk.bf16.gmra.mrb[48].mxu1 %vm609_vm5, %v13347_v31  ;;  %v10340_v31 = vrot.slane %v9281_v44, 5  ;;  %v10846_v44 = vrot.slane %v10844_v51, 4  ;;  %v10845_v27 = vsel %vm16453_vm2, %v13781_v1, %v10844_v51  ;;  %v10861_v51 = vrot.slane %v10658_v17, 6  ;;  %v6324_v35 = vld [vmem:[%s16450_s30 + $0x110] sm:$0x7] }
 0x2b4   : > { %15019 = vmatprep.mubr.msk.bf16.mxu1 %vm609_vm5, %v13348_v8  ;;  %v6025_v8 = vsel %vm16463_vm6, %v13338_v40, %v6024_v3  ;;  %v13340_v3 = vrot.slane %v5076_v58, 9  ;;  %v6042_v40 = vsel %vm16463_vm6, %v6040_v61, %v6041_v33  ;;  %v10656_v58 = vld [vmem:[%s16450_s30 + $0x48] sm:$0xc]  ;;  %v6507_v28 = vrot.slane %v6324_v35, 7  ;;  %v19892_v24 = vld [vmem:[%s16450_s30 + $0x144] sm:$0xf] }
 0x2b5   : > { %15322 = vmatmul.mubr.msk.bf16.gmra.mrb[48].mxu0 %vm609_vm5, %v13758_v10  ;;  %v6032_v10 = vsel %vm16463_vm6, %v13339_v29, %v6031_v39  ;;  %v10341_v30 = vsel %vm16463_vm6, %v10339_v19, %v10340_v31  ;;  %v13351_v59 = vcombine.low %v6025_v8, %v6028_v54  ;;  %v6485_v39 = vrot.slane %v6483_v50, 4  ;;  %v10655_v54 = vld [vmem:[%s16450_s30 + $0x34] sm:$0x3]  ;;  %v10668_v35 = vld [vmem:[%s16450_s30 + $0xb8] sm:$0xc] }
 0x2b6   : > { %15325 = vmatprep.mubr.msk.bf16.mxu0 %vm609_vm5, %v13759_v37  ;;  %v10338_v37 = vsel %vm16463_vm6, %v13745_v52, %v10337_v56  ;;  %v13352_v60 = vcombine.low %v6032_v10, %v6035_v22  ;;  %v13763_v56 = vcombine.low %v10345_v32, %v10348_v5  ;;  %v6484_v29 = vsel %vm17354_vm9, %v13370_v26, %v6483_v50  ;;  %v19849_v5 = vld [vmem:[%s16450_s30 + $0x128] sm:$0xf]  ;;  %v19864_v26 = vld [vmem:[%s16450_s30 + $0x84] sm:$0xf] }
 0x2b7   : > { %v13762_v6 = vcombine.low %v10338_v37, %v10341_v30  ;;  %v6487_v62 = vsel %vm17354_vm9, %v6485_v39, %v6486_v45  ;;  %v10352_v52 = vsel %vm16463_vm6, %v13747_v38, %v10351_v63  ;;  %v10851_v31 = vrot.slane %v10654_v11, 6  ;;  %v19846_v63 = vld [vmem:[%s16450_s30 + $0x10c] sm:$0xf] }
 0x2b8   : > { %v10848_v8 = vsel %vm16453_vm2, %v10846_v44, %v10847_v36  ;;  %v13387_v18 = vcombine.low %v6484_v29, %v6487_v62  ;;  %v13371_v10 = vrot.slane %v6316_v48, 11  ;;  %v6492_v22 = vrot.slane %v6490_v13, 4  ;;  %v6325_v44 = vld [vmem:[%s16450_s30 + $0x124] sm:$0x8]  ;;  %v6327_v36 = vld [vmem:[%s16450_s30 + $0x12c] sm:$0x7] }
 0x2b9   : > { %v13372_v50 = vrot.slane %v6319_v23, 11  ;;  %v6500_v30 = vrot.slane %v6321_v42, 7  ;;  %v13798_v49 = vcombine.low %v10845_v27, %v10848_v8  ;;  %v10854_v32 = vrot.slane %v10655_v54, 6  ;;  %v10664_v48 = vld [vmem:[%s16450_s30 + $0x88] sm:$0x3] }
 0x2ba   : > { %v6491_v61 = vsel %vm17354_vm9, %v13371_v10, %v6490_v13  ;;  %v6494_v33 = vsel %vm17354_vm9, %v6492_v22, %v6493_v16  ;;  %v6511_v38 = vrot.slane %v19849_v5, 7  ;;  %v10872_v13 = vrot.slane %v19864_v26, 6  ;;  %v19895_v23 = vld [vmem:[%s16450_s30 + $0x160] sm:$0xf] }
 0x2bb   : > { %15020 = vmatmul.mubr.msk.bf16.gmra.mrb[52].mxu1 %vm609_vm5, %v13349_v41  ;;  %v10354_v41 = vrot.slane %v9287_v55, 5  ;;  %v13783_v55 = vrot.slane %v10656_v58, 10  ;;  %v13388_v11 = vcombine.low %v6491_v61, %v6494_v33  ;;  %v19900_v54 = vld [vmem:[%s21612_s1 + $0x22] sm:$0x3]  ;;  %v11507_v58 = vsel %vm383_vm0, %v19623_v34, 0 }
 0x2bc   : > { %15023 = vmatprep.mubr.msk.bf16.mxu1 %vm609_vm5, %v13350_v53  ;;  %v6039_v53 = vsel %vm16463_vm6, %v13340_v3, %v6038_v14  ;;  %v10858_v14 = vrot.slane %v10657_v46, 6  ;;  %v19854_v3 = vld [vmem:[%s16450_s30 + $0x68] sm:$0xf]  ;;  %v10875_v10 = vrot.slane %v10664_v48, 6  ;;  %v6328_v22 = vld [vmem:[%s16450_s30 + $0x140] sm:$0x8] }
 0x2bd   : > { %15326 = vmatmul.mubr.msk.bf16.gmra.mrb[52].mxu0 %vm609_vm5, %v13760_v43  ;;  %v10355_v19 = vsel %vm16463_vm6, %v10353_v21, %v10354_v41  ;;  %v13353_v0 = vcombine.low %v6039_v53, %v6042_v40  ;;  %v7082_v21 = vsel %vm383_vm0, %v19606_v20, 0  ;;  %v10852_v41 = vsel %vm16453_vm2, %v13782_v12, %v10851_v31  ;;  %v10662_v20 = vld [vmem:[%s16450_s30 + $0x80] sm:$0xc]  ;;  %v10665_v12 = vld [vmem:[%s16450_s30 + $0x9c] sm:$0xc] }
 0x2be   : > { %15329 = vmatprep.mubr.msk.bf16.mxu0 %vm609_vm5, %v13761_v25  ;;  %v6497_v25 = vrot.slane %v6320_v9, 7  ;;  %v13764_v7 = vcombine.low %v10352_v52, %v10355_v19  ;;  %v10860_v15 = vrot.slane %v10858_v14, 4  ;;  %v10865_v1 = vrot.slane %v19854_v3, 6  ;;  %v19907_v16 = vld [vmem:[%s16450_s30 + $0xa0] sm:$0xf] }
 0x2bf   : > { %v10859_v53 = vsel %vm16453_vm2, %v13783_v55, %v10858_v14  ;;  %v13374_v52 = vrot.slane %v6325_v44, 11  ;;  %v6513_v19 = vrot.slane %v6511_v38, 4  ;;  %v13785_v14 = vrot.slane %v10662_v20, 10  ;;  %v10667_v33 = vld [vmem:[%s16450_s30 + $0xa4] sm:$0x3] }
 0x2c0   : > { %v6499_v37 = vrot.slane %v6497_v25, 4  ;;  %v6498_v39 = vsel %vm17354_vm9, %v13372_v50, %v6497_v25  ;;  %v10862_v40 = vsel %vm16453_vm2, %v10860_v15, %v10861_v51  ;;  %v10867_v27 = vrot.slane %v10865_v1, 4  ;;  %v19916_v50 = vld [vmem:[%s16450_s30 + $0xbc] sm:$0xf]  ;;  %v6333_v51 = vld [vmem:[%s16450_s30 + $0x164] sm:$0x7] }
 0x2c1   : > { %v13800_v42 = vcombine.low %v10859_v53, %v10862_v40  ;;  %v6518_v34 = vrot.slane %v19892_v24, 7  ;;  %v10879_v55 = vrot.slane %v19907_v16, 6  ;;  %v6331_v15 = vld [vmem:[%s16450_s30 + $0x15c] sm:$0x8]  ;;  %v10873_v3 = vsel %vm16453_vm2, %v13785_v14, %v10872_v13  ;;  %v6338_v40 = vld [vmem:[%s16450_s30 + $0x198] sm:$0xf] }
 0x2c2   : > { %v6501_v45 = vsel %vm17354_vm9, %v6499_v37, %v6500_v30  ;;  %v19921_v37 = vld [vmem:[%s21612_s1 + $0x34] sm:$0x3]  ;;  %v6512_v30 = vsel %vm17354_vm9, %v13374_v52, %v6511_v38  ;;  %v10882_v53 = vrot.slane %v10667_v33, 6  ;;  %v13787_v20 = vrot.slane %v10668_v35, 10  ;;  %v6339_v14 = vld [vmem:[%s16450_s30 + $0x19c] sm:$0x7] }
 0x2c3   : > { %15024 = vmatmul.mubr.msk.bf16.gmra.mrb[56].mxu1 %vm609_vm5, %v13351_v59  ;;  %v10853_v59 = vrot.slane %v10851_v31, 4  ;;  %v13389_v46 = vcombine.low %v6498_v39, %v6501_v45  ;;  %v6514_v31 = vrot.slane %v6327_v36, 7  ;;  %v13375_v39 = vrot.slane %v6328_v22, 11  ;;  %v10673_v16 = vld [vmem:[%s16450_s30 + $0xdc] sm:$0x3] }
 0x2c4   : > { %15027 = vmatprep.mubr.msk.bf16.mxu1 %vm609_vm5, %v13352_v60  ;;  %v6322_v60 = vld [vmem:[%s16450_s30 + $0x108] sm:$0x8]  ;;  %v6520_v45 = vrot.slane %v6518_v34, 4  ;;  %v13786_v36 = vrot.slane %v10665_v12, 10  ;;  %v20614_v43 = vld [vmem:[%s21613_s2 + $0x1] ss:$0 sm:$0xff] }
 0x2c5   : > { %15330 = vmatmul.mubr.msk.bf16.gmra.mrb[56].mxu0 %vm609_vm5, %v13762_v6  ;;  %v6504_v6 = vrot.slane %v19846_v63, 7  ;;  %v10855_v9 = vsel %vm16453_vm2, %v10853_v59, %v10854_v32  ;;  %v13373_v29 = vrot.slane %v6322_v60, 11  ;;  %v6515_v63 = vsel %vm17354_vm9, %v6513_v19, %v6514_v31  ;;  %v6336_v31 = vld [vmem:[%s16450_s30 + $0x180] sm:$0x7] }
 0x2c6   : > { %15333 = vmatprep.mubr.msk.bf16.mxu0 %vm609_vm5, %v13763_v56  ;;  %v10661_v56 = vld [vmem:[%s16450_s30 + $0x6c] sm:$0x3]  ;;  %v13799_v25 = vcombine.low %v10852_v41, %v10855_v9  ;;  %v6525_v59 = vrot.slane %v19895_v23, 7  ;;  %v13391_v26 = vcombine.low %v6512_v30, %v6515_v63  ;;  %v6528_v9 = vrot.slane %v6333_v51, 7  ;;  %v10671_v23 = vld [vmem:[%s16450_s30 + $0xd4] sm:$0xc] }
 0x2c7   : > { %v6506_v62 = vrot.slane %v6504_v6, 4  ;;  %v10868_v8 = vrot.slane %v10661_v56, 6  ;;  %v6505_v17 = vsel %vm17354_vm9, %v13373_v29, %v6504_v6  ;;  %v10886_v6 = vrot.slane %v19916_v50, 6  ;;  %v10670_v56 = vld [vmem:[%s16450_s30 + $0xc0] sm:$0x3] }
 0x2c8   : > { %v6527_v41 = vrot.slane %v6525_v59, 4  ;;  %v6519_v29 = vsel %vm17354_vm9, %v13375_v39, %v6518_v34  ;;  %v6535_v63 = vrot.slane %v6336_v31, 7  ;;  %v13788_v51 = vrot.slane %v10671_v23, 10  ;;  %v10682_v31 = vld [vmem:[%s16450_s30 + $0x130] sm:$0x3] }
 0x2c9   : > { %v10869_v5 = vsel %vm16453_vm2, %v10867_v27, %v10868_v8  ;;  %v10888_v48 = vrot.slane %v10886_v6, 4 }
 0x2ca   : > { %v6529_v19 = vsel %vm17354_vm9, %v6527_v41, %v6528_v9  ;;  %v6342_v9 = vld [vmem:[%s16450_s30 + $0x1b8] sm:$0x7] }
 0x2cb   : > { %15028 = vmatmul.mubr.msk.bf16.gmra.mrb[60].mxu1 %vm609_vm5, %v13353_v0  ;;  %v13784_v0 = vrot.slane %v10659_v47, 10 }
 0x2cc   : > { %15033 = vmatprep.mubr.msk.bf16.mxu1 %vm609_vm5, %v13387_v18  ;;  %v10874_v18 = vrot.slane %v10872_v13, 4  ;;  %v10889_v13 = vrot.slane %v10670_v56, 6 }
 0x2cd   : > { %15334 = vmatmul.mubr.msk.bf16.gmra.mrb[60].mxu0 %vm609_vm5, %v13764_v7  ;;  %v6508_v7 = vsel %vm17354_vm9, %v6506_v62, %v6507_v28  ;;  %v10866_v32 = vsel %vm16453_vm2, %v13784_v0, %v10865_v1  ;;  %v6335_v1 = vld [vmem:[%s16450_s30 + $0x17c] sm:$0xf]  ;;  %v6334_v28 = vld [vmem:[%s16450_s30 + $0x178] sm:$0x8]  ;;  %v10880_v0 = vsel %vm16453_vm2, %v13786_v36, %v10879_v55 }
 0x2ce   : > { %15339 = vmatprep.mubr.msk.bf16.mxu0 %vm609_vm5, %v13798_v49  ;;  %v6330_v49 = vld [vmem:[%s16450_s30 + $0x148] sm:$0x7]  ;;  %v13390_v60 = vcombine.low %v6505_v17, %v6508_v7  ;;  %v10876_v61 = vsel %vm16453_vm2, %v10874_v18, %v10875_v10  ;;  %v13801_v38 = vcombine.low %v10866_v32, %v10869_v5  ;;  %v6532_v24 = vrot.slane %v6335_v1, 7  ;;  %v10674_v17 = vld [vmem:[%s16450_s30 + $0xf0] sm:$0xc] }
 0x2cf   : > { %v6521_v47 = vrot.slane %v6330_v49, 7  ;;  %v13802_v44 = vcombine.low %v10873_v3, %v10876_v61  ;;  %v10887_v10 = vsel %vm16453_vm2, %v13787_v20, %v10886_v6  ;;  %v10890_v22 = vsel %vm16453_vm2, %v10888_v48, %v10889_v13  ;;  %v10676_v49 = vld [vmem:[%s16450_s30 + $0xf8] sm:$0x3]  ;;  %v6344_v61 = vld [vmem:[%s16450_s30 + $0x1d0] sm:$0xf] }
 0x2d0   : > { %v13377_v50 = vrot.slane %v6334_v28, 11  ;;  %v6534_v30 = vrot.slane %v6532_v24, 4  ;;  %v6542_v5 = vrot.slane %v6339_v14, 7  ;;  %v10896_v3 = vrot.slane %v10673_v16, 6  ;;  %v10677_v1 = vld [vmem:[%s16450_s30 + $0x10c] sm:$0xc] }
 0x2d1   : > { %v6522_v62 = vsel %vm17354_vm9, %v6520_v45, %v6521_v47  ;;  %v13789_v33 = vrot.slane %v10674_v17, 10  ;;  %v10903_v6 = vrot.slane %v10676_v49, 6  ;;  %v6340_v47 = vld [vmem:[%s16450_s30 + $0x1b0] sm:$0x8]  ;;  %v6345_v20 = vld [vmem:[%s16450_s30 + $0x1d4] sm:$0x7] }
 0x2d2   : > { %v13392_v18 = vcombine.low %v6519_v29, %v6522_v62  ;;  %v6533_v39 = vsel %vm17354_vm9, %v13377_v50, %v6532_v24  ;;  %v6536_v45 = vsel %vm17354_vm9, %v6534_v30, %v6535_v63  ;;  %v10679_v29 = vld [vmem:[%s16450_s30 + $0x114] sm:$0x3]  ;;  %v10680_v62 = vld [vmem:[%s16450_s30 + $0x128] sm:$0xc]  ;;  %v13790_v14 = vrot.slane %v10677_v1, 10 }
 0x2d3   : > { %15034 = vmatmul.mubr.msk.bf16.vlgmr.msra.gmra.mrb[32].mxu1 %vm609_vm5, %v13388_v11  ;;  %v10881_v11 = vrot.slane %v10879_v55, 4  ;;  %v6341_v55 = vld [vmem:[%s16450_s30 + $0x1b4] sm:$0xf]  ;;  %v13394_v48 = vcombine.low %v6533_v39, %v6536_v45  ;;  %v13791_v16 = vrot.slane %v10680_v62, 10  ;;  %v6346_v63 = vld [vmem:[%s16450_s30 + $0x1e8] sm:$0x8] }
 0x2d4   : > { %15066 = vmatpush3.bf16.msra.mxu1 %v7082_v21  ;;  %15037 = vmatprep.mubr.msk.bf16.mxu1 %vm609_vm5, %v13389_v46  ;;  %v13376_v21 = vrot.slane %v6331_v15, 11  ;;  %v10672_v46 = vld [vmem:[%s16450_s30 + $0xd8] sm:$0xf]  ;;  %v13804_v15 = vcombine.low %v10887_v10, %v10890_v22  ;;  %v6546_v56 = vrot.slane %v6341_v55, 7  ;;  %v10910_v10 = vrot.slane %v10679_v29, 6 }
 0x2d5   : > { %15340 = vmatmul.mubr.msk.bf16.vlgmr.msra.gmra.mrb[32].mxu0 %vm609_vm5, %v13799_v25  ;;  %16227 = vmatprep.subr.msk.bf16.mxu1 %vm383_vm0, %v19900_v54  ;;  %v10675_v25 = vld [vmem:[%s16450_s30 + $0xf4] sm:$0xf]  ;;  %v10883_v27 = vsel %vm16453_vm2, %v10881_v11, %v10882_v53  ;;  %v10893_v8 = vrot.slane %v10672_v46, 6  ;;  %v6350_v22 = vld [vmem:[%s16450_s30 + $0x208] sm:$0xf] }
 0x2d6   : > { %15372 = vmatpush3.bf16.msra.mxu0 %v11507_v58  ;;  %15343 = vmatprep.mubr.msk.bf16.mxu0 %vm609_vm5, %v13800_v42  ;;  %v6526_v52 = vsel %vm17354_vm9, %v13376_v21, %v6525_v59  ;;  %v6539_v42 = vrot.slane %v6338_v40, 7  ;;  %v6337_v58 = vld [vmem:[%s16450_s30 + $0x194] sm:$0x8]  ;;  %v10900_v7 = vrot.slane %v10675_v25, 6  ;;  %v13803_v12 = vcombine.low %v10880_v0, %v10883_v27  ;;  %v6343_v40 = vld [vmem:[%s16450_s30 + $0x1cc] sm:$0x8] }
 0x2d7   : > { %16236 = vmatprep.subr.msk.bf16.mxu0 %vm383_vm0, %v19921_v37  ;;  %v13393_v34 = vcombine.low %v6526_v52, %v6529_v19  ;;  %v13378_v59 = vrot.slane %v6337_v58, 11  ;;  %v10894_v36 = vsel %vm16453_vm2, %v13788_v51, %v10893_v8  ;;  %v13379_v25 = vrot.slane %v6340_v47, 11  ;;  %v10683_v55 = vld [vmem:[%s16450_s30 + $0x144] sm:$0xc]  ;;  %v10685_v39 = vld [vmem:[%s16450_s30 + $0x14c] sm:$0x3] }
 0x2d8   : > { %v6541_v32 = vrot.slane %v6539_v42, 4  ;;  %v10902_v35 = vrot.slane %v10900_v7, 4  ;;  %v10901_v13 = vsel %vm16453_vm2, %v13789_v33, %v10900_v7  ;;  %v6548_v52 = vrot.slane %v6546_v56, 4  ;;  %v6351_v33 = vld [vmem:[%s16450_s30 + $0x20c] sm:$0x7] }
 0x2d9   : > { %v6540_v21 = vsel %vm17354_vm9, %v13378_v59, %v6539_v42  ;;  %v6549_v19 = vrot.slane %v6342_v9, 7  ;;  %v13380_v42 = vrot.slane %v6343_v40, 11  ;;  %v6556_v27 = vrot.slane %v6345_v20, 7  ;;  %v10686_v45 = vld [vmem:[%s16450_s30 + $0x160] sm:$0xc] }
 0x2da   : > { %v6543_v41 = vsel %vm17354_vm9, %v6541_v32, %v6542_v5  ;;  %v10904_v46 = vsel %vm16453_vm2, %v10902_v35, %v10903_v6  ;;  %v10917_v7 = vrot.slane %v10682_v31, 6  ;;  %v6547_v50 = vsel %vm17354_vm9, %v13379_v25, %v6546_v56  ;;  %v6348_v5 = vld [vmem:[%s16450_s30 + $0x1f0] sm:$0x7]  ;;  %v10688_v9 = vld [vmem:[%s16450_s30 + $0x168] sm:$0x3] }
 0x2db   : > { %15038 = vmatmul.mubr.msk.bf16.gmra.mrb[36].mxu1 %vm609_vm5, %v13390_v60  ;;  %v10895_v60 = vrot.slane %v10893_v8, 4  ;;  %v13395_v24 = vcombine.low %v6540_v21, %v6543_v41  ;;  %v6347_v8 = vld [vmem:[%s16450_s30 + $0x1ec] sm:$0xf]  ;;  %v13806_v58 = vcombine.low %v10901_v13, %v10904_v46  ;;  %v6550_v30 = vsel %vm17354_vm9, %v6548_v52, %v6549_v19  ;;  %v6356_v46 = vld [vmem:[%s16450_s30 + $0x240] sm:$0xf] }
 0x2dc   : > { %15041 = vmatprep.mubr.msk.bf16.mxu1 %vm609_vm5, %v13391_v26  ;;  %v10678_v26 = vld [vmem:[%s16450_s30 + $0x110] sm:$0xf]  ;;  %v6560_v49 = vrot.slane %v6347_v8, 7  ;;  %v13396_v35 = vcombine.low %v6547_v50, %v6550_v30  ;;  %v6563_v41 = vrot.slane %v6348_v5, 7  ;;  %v13792_v20 = vrot.slane %v10683_v55, 10 }
 0x2dd   : > { %15344 = vmatmul.mubr.msk.bf16.gmra.mrb[36].mxu0 %vm609_vm5, %v13801_v38  ;;  %v10681_v38 = vld [vmem:[%s16450_s30 + $0x12c] sm:$0xf]  ;;  %v10897_v11 = vsel %vm16453_vm2, %v10895_v60, %v10896_v3  ;;  %v10907_v53 = vrot.slane %v10678_v26, 6  ;;  %v10924_v13 = vrot.slane %v10685_v39, 6  ;;  %v13793_v29 = vrot.slane %v10686_v45, 10 }
 0x2de   : > { %15347 = vmatprep.mubr.msk.bf16.mxu0 %vm609_vm5, %v13802_v44  ;;  %v6553_v44 = vrot.slane %v6344_v61, 7  ;;  %v10914_v28 = vrot.slane %v10681_v38, 6  ;;  %v13805_v23 = vcombine.low %v10894_v36, %v10897_v11  ;;  %v6349_v61 = vld [vmem:[%s16450_s30 + $0x204] sm:$0x8]  ;;  %v13381_v38 = vrot.slane %v6346_v63, 11 }
 0x2df   : > { %v10908_v51 = vsel %vm16453_vm2, %v13790_v14, %v10907_v53  ;;  %v6562_v21 = vrot.slane %v6560_v49, 4  ;;  %v6570_v11 = vrot.slane %v6351_v33, 7  ;;  %v6352_v19 = vld [vmem:[%s16450_s30 + $0x220] sm:$0x8]  ;;  %v10689_v8 = vld [vmem:[%s16450_s30 + $0x17c] sm:$0xc] }
 0x2e0   : > { %v6555_v0 = vrot.slane %v6553_v44, 4  ;;  %v10916_v17 = vrot.slane %v10914_v28, 4  ;;  %v6554_v59 = vsel %vm17354_vm9, %v13380_v42, %v6553_v44  ;;  %v10915_v6 = vsel %vm16453_vm2, %v13791_v16, %v10914_v28  ;;  %v6357_v16 = vld [vmem:[%s16450_s30 + $0x244] sm:$0x7]  ;;  %v10692_v30 = vld [vmem:[%s16450_s30 + $0x198] sm:$0xc] }
 0x2e1   : > { %v13382_v44 = vrot.slane %v6349_v61, 11  ;;  %v10931_v28 = vrot.slane %v10688_v9, 6  ;;  %v6561_v25 = vsel %vm17354_vm9, %v13381_v38, %v6560_v49  ;;  %v6564_v52 = vsel %vm17354_vm9, %v6562_v21, %v6563_v41  ;;  %v10691_v50 = vld [vmem:[%s16450_s30 + $0x184] sm:$0x3]  ;;  %v10694_v5 = vld [vmem:[%s16450_s30 + $0x1a0] sm:$0x3] }
 0x2e2   : > { %v6557_v32 = vsel %vm17354_vm9, %v6555_v0, %v6556_v27  ;;  %v10918_v26 = vsel %vm16453_vm2, %v10916_v17, %v10917_v7  ;;  %v6354_v27 = vld [vmem:[%s16450_s30 + $0x228] sm:$0x7]  ;;  %v13398_v17 = vcombine.low %v6561_v25, %v6564_v52  ;;  %v13794_v33 = vrot.slane %v10689_v8, 10  ;;  %v10699_v41 = vld [vmem:[%s16450_s30 + $0x20c] sm:$0xf] }
 0x2e3   : > { %15042 = vmatmul.mubr.msk.bf16.gmra.mrb[40].mxu1 %vm609_vm5, %v13392_v18  ;;  %v10909_v18 = vrot.slane %v10907_v53, 4  ;;  %v13397_v56 = vcombine.low %v6554_v59, %v6557_v32  ;;  %v6353_v53 = vld [vmem:[%s16450_s30 + $0x224] sm:$0xf]  ;;  %v13808_v40 = vcombine.low %v10915_v6, %v10918_v26  ;;  %v6577_v32 = vrot.slane %v6354_v27, 7 }
 0x2e4   : > { %15045 = vmatprep.mubr.msk.bf16.mxu1 %vm609_vm5, %v13393_v34  ;;  %v10684_v34 = vld [vmem:[%s16450_s30 + $0x148] sm:$0xf]  ;;  %v6574_v31 = vrot.slane %v6353_v53, 7  ;;  %v10938_v6 = vrot.slane %v10691_v50, 6  ;;  %v13795_v26 = vrot.slane %v10692_v30, 10  ;;  %v10945_v45 = vrot.slane %v10694_v5, 6 }
 0x2e5   : > { %15348 = vmatmul.mubr.msk.bf16.gmra.mrb[40].mxu0 %vm609_vm5, %v13803_v12  ;;  %v10687_v12 = vld [vmem:[%s16450_s30 + $0x164] sm:$0xf]  ;;  %v10911_v60 = vsel %vm16453_vm2, %v10909_v18, %v10910_v10  ;;  %v10921_v3 = vrot.slane %v10684_v34, 6 }
 0x2e6   : > { %15351 = vmatprep.mubr.msk.bf16.mxu0 %vm609_vm5, %v13804_v15  ;;  %v6567_v15 = vrot.slane %v6350_v22, 7  ;;  %v10928_v47 = vrot.slane %v10687_v12, 6  ;;  %v13807_v1 = vcombine.low %v10908_v51, %v10911_v60  ;;  %v6355_v22 = vld [vmem:[%s16450_s30 + $0x23c] sm:$0x8]  ;;  %v13383_v12 = vrot.slane %v6352_v19, 11 }
 0x2e7   : > { %v10922_v14 = vsel %vm16453_vm2, %v13792_v20, %v10921_v3  ;;  %v6576_v59 = vrot.slane %v6574_v31, 4  ;;  %v6584_v60 = vrot.slane %v6357_v16, 7 }
 0x2e8   : > { %v6569_v36 = vrot.slane %v6567_v15, 4  ;;  %v10930_v62 = vrot.slane %v10928_v47, 4  ;;  %v6568_v42 = vsel %vm17354_vm9, %v13382_v44, %v6567_v15  ;;  %v10929_v7 = vsel %vm16453_vm2, %v13793_v29, %v10928_v47  ;;  %v10696_v47 = vld [vmem:[%s16450_s30 + $0x1b8] sm:$0xf]  ;;  %v10697_v29 = vld [vmem:[%s16450_s30 + $0x1bc] sm:$0x3] }
 0x2e9   : > { %v13384_v15 = vrot.slane %v6355_v22, 11  ;;  %v6578_v38 = vsel %vm17354_vm9, %v6576_v59, %v6577_v32  ;;  %v6358_v44 = vld [vmem:[%s16450_s30 + $0x258] sm:$0x8]  ;;  %v10949_v20 = vrot.slane %v10696_v47, 6  ;;  %v10952_v8 = vrot.slane %v10697_v29, 6 }
 0x2ea   : > { %v6571_v0 = vsel %vm17354_vm9, %v6569_v36, %v6570_v11  ;;  %v10932_v34 = vsel %vm16453_vm2, %v10930_v62, %v10931_v28  ;;  %v6360_v36 = vld [vmem:[%s16450_s30 + $0x260] sm:$0x7]  ;;  %v10698_v62 = vld [vmem:[%s16450_s30 + $0x208] sm:$0xc]  ;;  %v11298_v28 = vrot.slane %v10699_v41, 6  ;;  %v13385_v25 = vrot.slane %v6358_v44, 11 }
 0x2eb   : > { %15046 = vmatmul.mubr.msk.bf16.gmra.mrb[44].mxu1 %vm609_vm5, %v13394_v48  ;;  %v10923_v48 = vrot.slane %v10921_v3, 4  ;;  %v20078_v49 = vcombine.low %v6568_v42, %v6571_v0  ;;  %v6359_v3 = vld [vmem:[%s16450_s30 + $0x25c] sm:$0xf]  ;;  %v13810_v61 = vcombine.low %v10929_v7, %v10932_v34  ;;  %v6591_v19 = vrot.slane %v6360_v36, 7  ;;  %v10701_v59 = vld [vmem:[%s16450_s30 + $0x224] sm:$0xc] }
 0x2ec   : > { %15049 = vmatprep.mubr.msk.bf16.mxu1 %vm609_vm5, %v13395_v24  ;;  %v10690_v24 = vld [vmem:[%s16450_s30 + $0x180] sm:$0xf]  ;;  %v6588_v21 = vrot.slane %v6359_v3, 7  ;;  %v10951_v27 = vrot.slane %v10949_v20, 4  ;;  %v10703_v32 = vld [vmem:[%s16450_s30 + $0x22c] sm:$0x3] }
 0x2ed   : > { %15352 = vmatmul.mubr.msk.bf16.gmra.mrb[44].mxu0 %vm609_vm5, %v13805_v23  ;;  %v10693_v23 = vld [vmem:[%s16450_s30 + $0x19c] sm:$0xf]  ;;  %v10925_v18 = vsel %vm16453_vm2, %v10923_v48, %v10924_v13  ;;  %v10935_v10 = vrot.slane %v10690_v24, 6  ;;  %v13831_v3 = vrot.slane %v10701_v59, 10 }
 0x2ee   : > { %15355 = vmatprep.mubr.msk.bf16.mxu0 %vm609_vm5, %v13806_v58  ;;  %v6581_v58 = vrot.slane %v6356_v46, 7  ;;  %v10942_v63 = vrot.slane %v10693_v23, 6  ;;  %v13809_v55 = vcombine.low %v10922_v14, %v10925_v18  ;;  %v6590_v52 = vrot.slane %v6588_v21, 4  ;;  %v10711_v47 = vld [vmem:[%s16450_s30 + $0x27c] sm:$0xf] }
 0x2ef   : > { %v10936_v11 = vsel %vm16453_vm2, %v13794_v33, %v10935_v10  ;;  %v11300_v14 = vrot.slane %v11298_v28, 4  ;;  %v6589_v22 = vsel %vm17354_vm9, %v13385_v25, %v6588_v21  ;;  %v10953_v34 = vsel %vm16453_vm2, %v10951_v27, %v10952_v8  ;;  %v10707_v36 = vld [vmem:[%s16450_s30 + $0x25c] sm:$0xc]  ;;  %v6365_v25 = vld [vmem:[%s16450_s30 + $0x294] sm:$0xf] }
 0x2f0   : > { %v6583_v51 = vrot.slane %v6581_v58, 4  ;;  %v10944_v39 = vrot.slane %v10942_v63, 4  ;;  %v6582_v9 = vsel %vm17354_vm9, %v13384_v15, %v6581_v58  ;;  %v10943_v13 = vsel %vm16453_vm2, %v13795_v26, %v10942_v63  ;;  %v10706_v15 = vld [vmem:[%s16450_s30 + $0x248] sm:$0x3] }
 0x2f1   : > { %v13830_v58 = vrot.slane %v10698_v62, 10  ;;  %v6592_v16 = vsel %vm17354_vm9, %v6590_v52, %v6591_v19  ;;  %v11308_v33 = vrot.slane %v10703_v32, 6  ;;  %v13833_v19 = vrot.slane %v10707_v36, 10  ;;  %v10715_v32 = vld [vmem:[%s16450_s30 + $0x29c] sm:$0x3] }
 0x2f2   : > { %v10946_v46 = vsel %vm16453_vm2, %v10944_v39, %v10945_v45  ;;  %v20131_v30 = vcombine.low %v6589_v22, %v6592_v16  ;;  %v11315_v39 = vrot.slane %v10706_v15, 6  ;;  %v10708_v45 = vld [vmem:[%s16450_s30 + $0x260] sm:$0xf]  ;;  %v6366_v22 = vld [vmem:[%s16450_s30 + $0x298] sm:$0x7] }
 0x2f3   : > { %15050 = vmatmul.mubr.msk.bf16.gmra.mrb[48].mxu1 %vm609_vm5, %v13396_v35  ;;  %v10937_v35 = vrot.slane %v10935_v10, 4  ;;  %v13812_v42 = vcombine.low %v10943_v13, %v10946_v46  ;;  %v10702_v10 = vld [vmem:[%s16450_s30 + $0x228] sm:$0xf]  ;;  %v11299_v63 = vsel %vm16453_vm2, %v13830_v58, %v11298_v28  ;;  %v11319_v41 = vrot.slane %v10708_v45, 6  ;;  %v10712_v13 = vld [vmem:[%s16450_s30 + $0x280] sm:$0x3] }
 0x2f4   : > { %15053 = vmatprep.mubr.msk.bf16.mxu1 %vm609_vm5, %v13397_v56  ;;  %v6575_v56 = vsel %vm17354_vm9, %v13383_v12, %v6574_v31  ;;  %v10700_v31 = vld [vmem:[%s16450_s30 + $0x210] sm:$0x3]  ;;  %v11305_v50 = vrot.slane %v10702_v10, 6  ;;  %v11329_v8 = vrot.slane %v10712_v13, 6  ;;  %v10714_v58 = vld [vmem:[%s16450_s30 + $0x298] sm:$0xf] }
 0x2f5   : > { %15356 = vmatmul.mubr.msk.bf16.gmra.mrb[48].mxu0 %vm609_vm5, %v13807_v1  ;;  %v6585_v1 = vsel %vm17354_vm9, %v6583_v51, %v6584_v60  ;;  %v10939_v53 = vsel %vm16453_vm2, %v10937_v35, %v10938_v6  ;;  %v20104_v48 = vcombine.low %v6575_v56, %v6578_v38  ;;  %v11301_v18 = vrot.slane %v10700_v31, 6  ;;  %v6362_v35 = vld [vmem:[%s16450_s30 + $0x278] sm:$0xf]  ;;  %v10717_v10 = vld [vmem:[%s16450_s30 + $0x2b4] sm:$0xf] }
 0x2f6   : > { %15359 = vmatprep.mubr.msk.bf16.mxu0 %vm609_vm5, %v13808_v40  ;;  %v10695_v40 = vld [vmem:[%s16450_s30 + $0x1b4] sm:$0xc]  ;;  %v20112_v24 = vcombine.low %v6582_v9, %v6585_v1  ;;  %v13811_v23 = vcombine.low %v10936_v11, %v10939_v53  ;;  %v6925_v56 = vrot.slane %v6362_v35, 7  ;;  %v11306_v38 = vsel %vm16453_vm2, %v13831_v3, %v11305_v50  ;;  %v6363_v1 = vld [vmem:[%s16450_s30 + $0x27c] sm:$0x7] }
 0x2f7   : > { %v13796_v0 = vrot.slane %v10695_v40, 10  ;;  %v11302_v12 = vsel %vm16453_vm2, %v11300_v14, %v11301_v18  ;;  %v6361_v9 = vld [vmem:[%s16450_s30 + $0x274] sm:$0x8]  ;;  %v10709_v11 = vld [vmem:[%s16450_s30 + $0x264] sm:$0x3]  ;;  %v11326_v53 = vrot.slane %v10711_v47, 6 }
 0x2f8   : > { %v13847_v60 = vcombine.low %v11299_v63, %v11302_v12  ;;  %v7472_v40 = vsel %vm383_vm0, %v19900_v54, 0  ;;  %v13419_v29 = vrot.slane %v6361_v9, 11  ;;  %v6927_v62 = vrot.slane %v6925_v56, 4  ;;  %v6364_v14 = vld [vmem:[%s16450_s30 + $0x290] sm:$0x8] }
 0x2f9   : > { %v10950_v7 = vsel %vm16453_vm2, %v13796_v0, %v10949_v20  ;;  %v10710_v20 = vld [vmem:[%s16450_s30 + $0x278] sm:$0xc]  ;;  %v6928_v28 = vrot.slane %v6363_v1, 7  ;;  %v11321_v31 = vrot.slane %v11319_v41, 4  ;;  %v11961_v54 = vsel %vm383_vm0, %v19921_v37, 0 }
 0x2fa   : > { %v13813_v51 = vcombine.low %v10950_v7, %v10953_v34  ;;  %v13834_v0 = vrot.slane %v10710_v20, 10  ;;  %v11328_v27 = vrot.slane %v11326_v53, 4  ;;  %v6932_v18 = vrot.slane %v6365_v25, 7  ;;  %v10713_v16 = vld [vmem:[%s16450_s30 + $0x294] sm:$0xc] }
 0x2fb   : > { %15054 = vmatmul.mubr.msk.bf16.gmra.mrb[52].mxu1 %vm609_vm5, %v13398_v17  ;;  %v10705_v17 = vld [vmem:[%s16450_s30 + $0x244] sm:$0xf]  ;;  %v6926_v37 = vsel %vm17354_vm9, %v13419_v29, %v6925_v56  ;;  %v11333_v34 = vrot.slane %v10714_v58, 6  ;;  %v6369_v63 = vld [vmem:[%s16450_s30 + $0x2b4] sm:$0x7]  ;;  %v6935_v3 = vrot.slane %v6366_v22, 7 }
 0x2fc   : > { %15057 = vmatprep.mubr.msk.bf16.mxu1 %vm609_vm5, %v20078_v49  ;;  %v11312_v5 = vrot.slane %v10705_v17, 6  ;;  %v11327_v12 = vsel %vm16453_vm2, %v13834_v0, %v11326_v53  ;;  %v11330_v59 = vsel %vm16453_vm2, %v11328_v27, %v11329_v8  ;;  %v13835_v47 = vrot.slane %v10713_v16, 10  ;;  %v6372_v13 = vld [vmem:[%s16450_s30 + $0x2d0] sm:$0x7]  ;;  %v10722_v0 = vld [vmem:[%s16450_s30 + $0x2e8] sm:$0xc] }
 0x2fd   : > { %15360 = vmatmul.mubr.msk.bf16.gmra.mrb[52].mxu0 %vm609_vm5, %v13809_v55  ;;  %v10704_v55 = vld [vmem:[%s16450_s30 + $0x240] sm:$0xc]  ;;  %v13851_v45 = vcombine.low %v11327_v12, %v11330_v59  ;;  %v11335_v56 = vrot.slane %v11333_v34, 4  ;;  %v13838_v12 = vrot.slane %v10722_v0, 10 }
 0x2fe   : > { %15363 = vmatprep.mubr.msk.bf16.mxu0 %vm609_vm5, %v13810_v61  ;;  %v11307_v61 = vrot.slane %v11305_v50, 4  ;;  %v13832_v6 = vrot.slane %v10704_v55, 10  ;;  %v11314_v26 = vrot.slane %v11312_v5, 4  ;;  %v6367_v50 = vld [vmem:[%s16450_s30 + $0x2ac] sm:$0x8]  ;;  %v11340_v55 = vrot.slane %v10717_v10, 6 }
 0x2ff   : > { %v13421_v35 = vrot.slane %v6367_v50, 11  ;;  %v10724_v10 = vld [vmem:[%s16450_s30 + $0x2f0] sm:$0x3]  ;;  %v10732_v0 = vld [vmem:[%s16450_s30 + $0x340] sm:$0xf] }
 0x300   : > { %v11309_v21 = vsel %vm16453_vm2, %v11307_v61, %v11308_v33  ;;  %v11316_v44 = vsel %vm16453_vm2, %v11314_v26, %v11315_v39  ;;  %v10718_v61 = vld [vmem:[%s16450_s30 + $0x2b8] sm:$0x3]  ;;  %v6942_v26 = vrot.slane %v6369_v63, 7  ;;  %v6371_v39 = vld [vmem:[%s16450_s30 + $0x2cc] sm:$0xf]  ;;  %v11342_v9 = vrot.slane %v11340_v55, 4 }
 0x301   : > { %v13848_v46 = vcombine.low %v11306_v38, %v11309_v21  ;;  %v11336_v38 = vrot.slane %v10715_v32, 6  ;;  %v6374_v21 = vld [vmem:[%s16450_s30 + $0x2e8] sm:$0xf]  ;;  %v11343_v1 = vrot.slane %v10718_v61, 6  ;;  %v6946_v53 = vrot.slane %v6371_v39, 7 }
 0x302   : > { %v6953_v29 = vrot.slane %v6374_v21, 7  ;;  %v6380_v63 = vld [vmem:[%s16450_s30 + $0x320] sm:$0xf]  ;;  %v11357_v32 = vrot.slane %v10724_v10, 6 }
 0x303   : > { %15058 = vmatmul.mubr.msk.bf16.gmra.mrb[56].mxu1 %vm609_vm5, %v20104_v48 }
 0x304   : > { %15061 = vmatprep.mubr.msk.bf16.mxu1 %vm609_vm5, %v20112_v24  ;;  %v6955_v22 = vrot.slane %v6953_v29, 4 }
 0x305   : > { %15364 = vmatmul.mubr.msk.bf16.gmra.mrb[56].mxu0 %vm609_vm5, %v13811_v23  ;;  %v11322_v23 = vrot.slane %v10709_v11, 6  ;;  %v6370_v11 = vld [vmem:[%s16450_s30 + $0x2c8] sm:$0x8] }
 0x306   : > { %15367 = vmatprep.mubr.msk.bf16.mxu0 %vm609_vm5, %v13812_v42  ;;  %v6368_v42 = vld [vmem:[%s16450_s30 + $0x2b0] sm:$0xf]  ;;  %v13422_v58 = vrot.slane %v6370_v11, 11 }
 0x307   : > { %v6939_v17 = vrot.slane %v6368_v42, 7  ;;  %v11323_v7 = vsel %vm16453_vm2, %v11321_v31, %v11322_v23  ;;  %v11344_v42 = vsel %vm16453_vm2, %v11342_v9, %v11343_v1  ;;  %v10727_v1 = vld [vmem:[%s16450_s30 + $0x30c] sm:$0x3] }
 0x30b   : > { %15062 = vmatmul.mubr.msk.bf16.gmra.mrb[60].mxu1 %vm609_vm5, %v20131_v30 }
 0x30c   : > { %15067 = vmatprep.mubr.msk.bf16.mxu1 %vm609_vm5, %v20078_v49  ;;  %v11313_v49 = vsel %vm16453_vm2, %v13832_v6, %v11312_v5  ;;  %v10716_v5 = vld [vmem:[%s16450_s30 + $0x2b0] sm:$0xc]  ;;  %v6941_v6 = vrot.slane %v6939_v17, 4 }
 0x30d   : > { %15368 = vmatmul.mubr.msk.bf16.gmra.mrb[60].mxu0 %vm609_vm5, %v13813_v51  ;;  %v13849_v52 = vcombine.low %v11313_v49, %v11316_v44  ;;  %v13420_v51 = vrot.slane %v6364_v14, 11  ;;  %v10720_v49 = vld [vmem:[%s16450_s30 + $0x2d0] sm:$0xf]  ;;  %v6948_v14 = vrot.slane %v6946_v53, 4 }
 0x30e   : > { %15373 = vmatprep.mubr.msk.bf16.mxu0 %vm609_vm5, %v13847_v60  ;;  %v6934_v60 = vrot.slane %v6932_v18, 4  ;;  %v6943_v20 = vsel %vm17354_vm9, %v6941_v6, %v6942_v26  ;;  %v11347_v25 = vrot.slane %v10720_v49, 6  ;;  %v10725_v6 = vld [vmem:[%s16450_s30 + $0x304] sm:$0xc]  ;;  %v6967_v26 = vrot.slane %v6380_v63, 7 }
 0x30f   : > { %v6933_v44 = vsel %vm17354_vm9, %v13420_v51, %v6932_v18  ;;  %v6949_v18 = vrot.slane %v6372_v13, 7  ;;  %v6376_v51 = vld [vmem:[%s16450_s30 + $0x300] sm:$0x8] }
 0x310   : > { %v6936_v36 = vsel %vm17354_vm9, %v6934_v60, %v6935_v3  ;;  %v10729_v3 = vld [vmem:[%s16450_s30 + $0x324] sm:$0xf]  ;;  %v10728_v49 = vld [vmem:[%s16450_s30 + $0x320] sm:$0xc]  ;;  %v13424_v11 = vrot.slane %v6376_v51, 11 }
 0x311   : > { %v13433_v31 = vcombine.low %v6933_v44, %v6936_v36  ;;  %v11368_v44 = vrot.slane %v10729_v3, 6 }
 0x313   : > { %15068 = vmatmul.mubr.msk.bf16.vlgmr.msra.gmra.mrb[32].mxu1 %vm609_vm5, %v20104_v48  ;;  %v6929_v48 = vsel %vm17354_vm9, %v6927_v62, %v6928_v28  ;;  %v11334_v62 = vsel %vm16453_vm2, %v13835_v47, %v11333_v34  ;;  %v11337_v28 = vsel %vm16453_vm2, %v11335_v56, %v11336_v38  ;;  %v11349_v34 = vrot.slane %v11347_v25, 4  ;;  %v6379_v56 = vld [vmem:[%s16450_s30 + $0x31c] sm:$0x8]  ;;  %v6381_v38 = vld [vmem:[%s16450_s30 + $0x324] sm:$0x7] }
 0x314   : > { %15100 = vmatpush3.bf16.msra.mxu1 %v7472_v40  ;;  %15071 = vmatprep.mubr.msk.bf16.mxu1 %vm609_vm5, %v20112_v24  ;;  %v11320_v24 = vsel %vm16453_vm2, %v13833_v19, %v11319_v41  ;;  %v13432_v15 = vcombine.low %v6926_v37, %v6929_v48  ;;  %v13836_v41 = vrot.slane %v10716_v5, 10  ;;  %v10723_v40 = vld [vmem:[%s16450_s30 + $0x2ec] sm:$0xf]  ;;  %v13852_v37 = vcombine.low %v11334_v62, %v11337_v28  ;;  %v10726_v5 = vld [vmem:[%s16450_s30 + $0x308] sm:$0xf] }
 0x315   : > { %15374 = vmatmul.mubr.msk.bf16.vlgmr.msra.gmra.mrb[32].mxu0 %vm609_vm5, %v13848_v46  ;;  %v13850_v33 = vcombine.low %v11320_v24, %v11323_v7  ;;  %v10719_v46 = vld [vmem:[%s16450_s30 + $0x2cc] sm:$0xc]  ;;  %v11354_v27 = vrot.slane %v10723_v40, 6  ;;  %v11361_v47 = vrot.slane %v10726_v5, 6  ;;  %v13425_v13 = vrot.slane %v6379_v56, 11 }
 0x316   : > { %15406 = vmatpush3.bf16.msra.mxu0 %v11961_v54  ;;  %15377 = vmatprep.mubr.msk.bf16.mxu0 %vm609_vm5, %v13849_v52  ;;  %v6373_v52 = vld [vmem:[%s16450_s30 + $0x2e4] sm:$0x8]  ;;  %v6375_v19 = vld [vmem:[%s16450_s30 + $0x2ec] sm:$0x7]  ;;  %v11341_v23 = vsel %vm16453_vm2, %v13836_v41, %v11340_v55  ;;  %v10721_v54 = vld [vmem:[%s16450_s30 + $0x2d4] sm:$0x3]  ;;  %v6947_v55 = vsel %vm17354_vm9, %v13422_v58, %v6946_v53 }
 0x317   : > { %v13423_v48 = vrot.slane %v6373_v52, 11  ;;  %v6956_v16 = vrot.slane %v6375_v19, 7  ;;  %v13853_v24 = vcombine.low %v11341_v23, %v11344_v42  ;;  %v13837_v7 = vrot.slane %v10719_v46, 10  ;;  %v6383_v62 = vld [vmem:[%s16450_s30 + $0x33c] sm:$0xf] }
 0x318   : > { %v11350_v50 = vrot.slane %v10721_v54, 6  ;;  %v11356_v59 = vrot.slane %v11354_v27, 4  ;;  %v11355_v41 = vsel %vm16453_vm2, %v13838_v12, %v11354_v27  ;;  %v6969_v46 = vrot.slane %v6967_v26, 4  ;;  %v6382_v58 = vld [vmem:[%s16450_s30 + $0x338] sm:$0x8] }
 0x319   : > { %v6954_v61 = vsel %vm17354_vm9, %v13423_v48, %v6953_v29  ;;  %v11348_v39 = vsel %vm16453_vm2, %v13837_v7, %v11347_v25  ;;  %v6970_v29 = vrot.slane %v6381_v38, 7  ;;  %v13839_v25 = vrot.slane %v10725_v6, 10  ;;  %v6384_v48 = vld [vmem:[%s16450_s30 + $0x340] sm:$0x7]  ;;  %v10734_v5 = vld [vmem:[%s16450_s30 + $0x358] sm:$0xc] }
 0x31a   : > { %v11358_v9 = vsel %vm16453_vm2, %v11356_v59, %v11357_v32  ;;  %v11363_v52 = vrot.slane %v11361_v47, 4  ;;  %v11364_v19 = vrot.slane %v10727_v1, 6  ;;  %v13840_v23 = vrot.slane %v10728_v49, 10  ;;  %v10733_v32 = vld [vmem:[%s16450_s30 + $0x344] sm:$0x3] }
 0x31b   : > { %15072 = vmatmul.mubr.msk.bf16.gmra.mrb[36].mxu1 %vm609_vm5, %v20131_v30  ;;  %v6940_v30 = vsel %vm17354_vm9, %v13421_v35, %v6939_v17  ;;  %v6377_v17 = vld [vmem:[%s16450_s30 + $0x304] sm:$0xf]  ;;  %v6378_v35 = vld [vmem:[%s16450_s30 + $0x308] sm:$0x7]  ;;  %v13855_v28 = vcombine.low %v11355_v41, %v11358_v9  ;;  %v11370_v42 = vrot.slane %v11368_v44, 4  ;;  %v6968_v10 = vsel %vm17354_vm9, %v13425_v13, %v6967_v26 }
 0x31c   : > { %15075 = vmatprep.mubr.msk.bf16.mxu1 %vm609_vm5, %v13432_v15  ;;  %v13434_v8 = vcombine.low %v6940_v30, %v6943_v20  ;;  %v6950_v15 = vsel %vm17354_vm9, %v6948_v14, %v6949_v18  ;;  %v6960_v60 = vrot.slane %v6377_v17, 7  ;;  %v6963_v40 = vrot.slane %v6378_v35, 7  ;;  %v10730_v30 = vld [vmem:[%s16450_s30 + $0x328] sm:$0x3]  ;;  %v10735_v18 = vld [vmem:[%s16450_s30 + $0x35c] sm:$0xf] }
 0x31d   : > { %15378 = vmatmul.mubr.msk.bf16.gmra.mrb[36].mxu0 %vm609_vm5, %v13850_v33  ;;  %v6957_v33 = vsel %vm17354_vm9, %v6955_v22, %v6956_v16  ;;  %v13435_v21 = vcombine.low %v6947_v55, %v6950_v15  ;;  %v11371_v54 = vrot.slane %v10730_v30, 6  ;;  %v6974_v14 = vrot.slane %v6383_v62, 7  ;;  %v10731_v22 = vld [vmem:[%s16450_s30 + $0x33c] sm:$0xc]  ;;  %v10738_v49 = vld [vmem:[%s16450_s30 + $0x378] sm:$0xf] }
 0x31e   : > { %15381 = vmatprep.mubr.msk.bf16.mxu0 %vm609_vm5, %v13851_v45  ;;  %v11351_v45 = vsel %vm16453_vm2, %v11349_v34, %v11350_v50  ;;  %v13436_v36 = vcombine.low %v6954_v61, %v6957_v33  ;;  %v6962_v53 = vrot.slane %v6960_v60, 4  ;;  %v6961_v27 = vsel %vm17354_vm9, %v13424_v11, %v6960_v60  ;;  %v6385_v34 = vld [vmem:[%s16450_s30 + $0x354] sm:$0x8]  ;;  %v6387_v50 = vld [vmem:[%s16450_s30 + $0x35c] sm:$0x7] }
 0x31f   : > { %v13854_v20 = vcombine.low %v11348_v39, %v11351_v45  ;;  %v11362_v17 = vsel %vm16453_vm2, %v13839_v25, %v11361_v47  ;;  %v11375_v7 = vrot.slane %v10732_v0, 6  ;;  %v11369_v12 = vsel %vm16453_vm2, %v13840_v23, %v11368_v44  ;;  %v10736_v61 = vld [vmem:[%s16450_s30 + $0x360] sm:$0x3]  ;;  %v6389_v39 = vld [vmem:[%s16450_s30 + $0x374] sm:$0xf] }
 0x320   : > { %v11372_v59 = vsel %vm16453_vm2, %v11370_v42, %v11371_v54  ;;  %v11382_v55 = vrot.slane %v10735_v18, 6  ;;  %v13426_v51 = vrot.slane %v6382_v58, 11  ;;  %v6976_v60 = vrot.slane %v6974_v14, 4  ;;  %v6388_v11 = vld [vmem:[%s16450_s30 + $0x370] sm:$0x8] }
 0x321   : > { %v6977_v3 = vrot.slane %v6384_v48, 7  ;;  %v13427_v35 = vrot.slane %v6385_v34, 11  ;;  %v6984_v26 = vrot.slane %v6387_v50, 7  ;;  %v13857_v45 = vcombine.low %v11369_v12, %v11372_v59  ;;  %v6390_v13 = vld [vmem:[%s16450_s30 + $0x378] sm:$0x7] }
 0x322   : > { %v13841_v47 = vrot.slane %v10731_v22, 10  ;;  %v11377_v56 = vrot.slane %v11375_v7, 4  ;;  %v11378_v38 = vrot.slane %v10733_v32, 6  ;;  %v13842_v41 = vrot.slane %v10734_v5, 10  ;;  %v10739_v54 = vld [vmem:[%s16450_s30 + $0x37c] sm:$0x3] }
 0x323   : > { %15076 = vmatmul.mubr.msk.bf16.gmra.mrb[40].mxu1 %vm609_vm5, %v13433_v31  ;;  %v6386_v31 = vld [vmem:[%s16450_s30 + $0x358] sm:$0xf]  ;;  %v11384_v9 = vrot.slane %v11382_v55, 4  ;;  %v11385_v1 = vrot.slane %v10736_v61, 6  ;;  %v6975_v44 = vsel %vm17354_vm9, %v13426_v51, %v6974_v14  ;;  %v11389_v25 = vrot.slane %v10738_v49, 6 }
 0x324   : > { %15079 = vmatprep.mubr.msk.bf16.mxu1 %vm609_vm5, %v13434_v8  ;;  %v6964_v8 = vsel %vm17354_vm9, %v6962_v53, %v6963_v40  ;;  %v6981_v16 = vrot.slane %v6386_v31, 7  ;;  %v6988_v53 = vrot.slane %v6389_v39, 7  ;;  %v10741_v40 = vld [vmem:[%s16450_s30 + $0x394] sm:$0xf]  ;;  %v11376_v62 = vsel %vm16453_vm2, %v13841_v47, %v11375_v7  ;;  %v10740_v0 = vld [vmem:[%s16450_s30 + $0x390] sm:$0xc] }
 0x325   : > { %15382 = vmatmul.mubr.msk.bf16.gmra.mrb[40].mxu0 %vm609_vm5, %v13852_v37  ;;  %v6971_v37 = vsel %vm17354_vm9, %v6969_v46, %v6970_v29  ;;  %v13437_v63 = vcombine.low %v6961_v27, %v6964_v8  ;;  %v10737_v46 = vld [vmem:[%s16450_s30 + $0x374] sm:$0xc]  ;;  %v11383_v23 = vsel %vm16453_vm2, %v13842_v41, %v11382_v55  ;;  %v11386_v42 = vsel %vm16453_vm2, %v11384_v9, %v11385_v1  ;;  %v10744_v32 = vld [vmem:[%s16450_s30 + $0x3b0] sm:$0xf]  ;;  %v10747_v51 = vld [vmem:[%s16450_s30 + $0x404] sm:$0xf] }
 0x326   : > { %15385 = vmatprep.mubr.msk.bf16.mxu0 %vm609_vm5, %v13853_v24  ;;  %v11365_v24 = vsel %vm16453_vm2, %v11363_v52, %v11364_v19  ;;  %v13438_v15 = vcombine.low %v6968_v10, %v6971_v37  ;;  %v6983_v6 = vrot.slane %v6981_v16, 4  ;;  %v6982_v30 = vsel %vm17354_vm9, %v13427_v35, %v6981_v16  ;;  %v6391_v52 = vld [vmem:[%s16450_s30 + $0x38c] sm:$0x8]  ;;  %v6393_v19 = vld [vmem:[%s16450_s30 + $0x394] sm:$0x7] }
 0x327   : > { %v13856_v33 = vcombine.low %v11362_v17, %v11365_v24  ;;  %v11396_v27 = vrot.slane %v10741_v40, 6  ;;  %v13428_v58 = vrot.slane %v6388_v11, 11  ;;  %v6990_v14 = vrot.slane %v6988_v53, 4  ;;  %v10742_v10 = vld [vmem:[%s16450_s30 + $0x398] sm:$0x3] }
 0x328   : > { %v6991_v18 = vrot.slane %v6390_v13, 7  ;;  %v13429_v48 = vrot.slane %v6391_v52, 11  ;;  %v6998_v16 = vrot.slane %v6393_v19, 7  ;;  %v6395_v17 = vld [vmem:[%s16450_s30 + $0x3ac] sm:$0xf]  ;;  %v13859_v24 = vcombine.low %v11383_v23, %v11386_v42 }
 0x329   : > { %v13843_v7 = vrot.slane %v10737_v46, 10  ;;  %v11391_v34 = vrot.slane %v11389_v25, 4  ;;  %v11392_v50 = vrot.slane %v10739_v54, 6  ;;  %v11398_v12 = vrot.slane %v11396_v27, 4  ;;  %v6394_v61 = vld [vmem:[%s16450_s30 + $0x3a8] sm:$0x8] }
 0x32a   : > { %v11399_v59 = vrot.slane %v10742_v10, 6  ;;  %v6989_v5 = vsel %vm17354_vm9, %v13428_v58, %v6988_v53  ;;  %v6992_v55 = vsel %vm17354_vm9, %v6990_v14, %v6991_v18  ;;  %v11403_v39 = vrot.slane %v10744_v32, 6  ;;  %v10753_v52 = vld [vmem:[%s16450_s30 + $0x43c] sm:$0xf]  ;;  %v10751_v58 = vld [vmem:[%s16450_s30 + $0x424] sm:$0x3] }
 0x32b   : > { %15080 = vmatmul.mubr.msk.bf16.gmra.mrb[44].mxu1 %vm609_vm5, %v13435_v21  ;;  %v6392_v21 = vld [vmem:[%s16450_s30 + $0x390] sm:$0xf]  ;;  %v11390_v35 = vsel %vm16453_vm2, %v13843_v7, %v11389_v25  ;;  %v11752_v41 = vrot.slane %v10747_v51, 6  ;;  %v13430_v1 = vrot.slane %v6394_v61, 11  ;;  %v11766_v14 = vrot.slane %v10753_v52, 6 }
 0x32c   : > { %15083 = vmatprep.mubr.msk.bf16.mxu1 %vm609_vm5, %v13436_v36  ;;  %v6978_v36 = vsel %vm17354_vm9, %v6976_v60, %v6977_v3  ;;  %v6995_v29 = vrot.slane %v6392_v21, 7  ;;  %v10746_v21 = vld [vmem:[%s16450_s30 + $0x400] sm:$0xc]  ;;  %v10752_v18 = vld [vmem:[%s16450_s30 + $0x438] sm:$0xc] }
 0x32d   : > { %15386 = vmatmul.mubr.msk.bf16.gmra.mrb[44].mxu0 %vm609_vm5, %v13854_v20  ;;  %v6985_v20 = vsel %vm17354_vm9, %v6983_v6, %v6984_v26  ;;  %v13439_v31 = vcombine.low %v6975_v44, %v6978_v36  ;;  %v11393_v6 = vsel %vm16453_vm2, %v11391_v34, %v11392_v50  ;;  %v10743_v26 = vld [vmem:[%s16450_s30 + $0x3ac] sm:$0xc]  ;;  %v10748_v36 = vld [vmem:[%s16450_s30 + $0x408] sm:$0x3]  ;;  %v13879_v13 = vrot.slane %v10746_v21, 10 }
 0x32e   : > { %15389 = vmatprep.mubr.msk.bf16.mxu0 %vm609_vm5, %v13855_v28  ;;  %v11379_v28 = vsel %vm16453_vm2, %v11377_v56, %v11378_v38  ;;  %v20326_v8 = vcombine.low %v6982_v30, %v6985_v20  ;;  %v6997_v22 = vrot.slane %v6995_v29, 4  ;;  %v6996_v60 = vsel %vm17354_vm9, %v13429_v48, %v6995_v29  ;;  %v10745_v38 = vld [vmem:[%s16450_s30 + $0x3b4] sm:$0x3]  ;;  %v10754_v10 = vld [vmem:[%s16450_s30 + $0x440] sm:$0x3] }
 0x32f   : > { %v13858_v37 = vcombine.low %v11376_v62, %v11379_v28  ;;  %v11400_v56 = vsel %vm16453_vm2, %v11398_v12, %v11399_v59  ;;  %v13860_v11 = vcombine.low %v11390_v35, %v11393_v6  ;;  %v13845_v40 = vrot.slane %v10743_v26, 10  ;;  %v10750_v62 = vld [vmem:[%s16450_s30 + $0x420] sm:$0xf]  ;;  %v10759_v12 = vld [vmem:[%s16450_s30 + $0x474] sm:$0xf] }
 0x330   : > { %v6999_v3 = vsel %vm17354_vm9, %v6997_v22, %v6998_v16  ;;  %v11405_v30 = vrot.slane %v11403_v39, 4  ;;  %v11406_v20 = vrot.slane %v10745_v38, 6  ;;  %v11754_v46 = vrot.slane %v11752_v41, 4  ;;  %v6399_v51 = vld [vmem:[%s16450_s30 + $0x3cc] sm:$0x7] }
 0x331   : > { %v20360_v9 = vcombine.low %v6996_v60, %v6999_v3  ;;  %v11755_v29 = vrot.slane %v10748_v36, 6  ;;  %v11404_v19 = vsel %vm16453_vm2, %v13845_v40, %v11403_v39  ;;  %v11759_v23 = vrot.slane %v10750_v62, 6  ;;  %v10755_v3 = vld [vmem:[%s16450_s30 + $0x454] sm:$0xc]  ;;  %v10757_v61 = vld [vmem:[%s16450_s30 + $0x45c] sm:$0x3] }
 0x332   : > { %v11753_v54 = vsel %vm16453_vm2, %v13879_v13, %v11752_v41  ;;  %v13881_v7 = vrot.slane %v10752_v18, 10  ;;  %v11768_v34 = vrot.slane %v11766_v14, 4  ;;  %v11769_v50 = vrot.slane %v10754_v10, 6  ;;  %v10758_v35 = vld [vmem:[%s16450_s30 + $0x470] sm:$0xc] }
 0x333   : > { %15084 = vmatmul.mubr.msk.bf16.gmra.mrb[48].mxu1 %vm609_vm5, %v13437_v63  ;;  %v13844_v63 = vrot.slane %v10740_v0, 10  ;;  %v11756_v0 = vsel %vm16453_vm2, %v11754_v46, %v11755_v29  ;;  %v11761_v16 = vrot.slane %v11759_v23, 4  ;;  %v10760_v6 = vld [vmem:[%s16450_s30 + $0x478] sm:$0x3]  ;;  %v6401_v38 = vld [vmem:[%s16450_s30 + $0x3e4] sm:$0xf] }
 0x334   : > { %15087 = vmatprep.mubr.msk.bf16.mxu1 %vm609_vm5, %v13438_v15  ;;  %v7002_v15 = vrot.slane %v6395_v17, 7  ;;  %v13896_v48 = vcombine.low %v11753_v54, %v11756_v0  ;;  %v11762_v17 = vrot.slane %v10751_v58, 6  ;;  %v11770_v60 = vsel %vm16453_vm2, %v11768_v34, %v11769_v50  ;;  %v10762_v40 = vld [vmem:[%s16450_s30 + $0x490] sm:$0xf]  ;;  %v10765_v13 = vld [vmem:[%s16450_s30 + $0x4ac] sm:$0xf] }
 0x335   : > { %15390 = vmatmul.mubr.msk.bf16.gmra.mrb[48].mxu0 %vm609_vm5, %v13856_v33  ;;  %v6396_v33 = vld [vmem:[%s16450_s30 + $0x3b0] sm:$0x7]  ;;  %v11397_v47 = vsel %vm16453_vm2, %v13844_v63, %v11396_v27  ;;  %v10749_v27 = vld [vmem:[%s16450_s30 + $0x41c] sm:$0xc]  ;;  %v10756_v63 = vld [vmem:[%s16450_s30 + $0x458] sm:$0xf] }
 0x336   : > { %15393 = vmatprep.mubr.msk.bf16.mxu0 %vm609_vm5, %v13857_v45  ;;  %v20352_v45 = vcombine.low %v6989_v5, %v6992_v55  ;;  %v7004_v49 = vrot.slane %v7002_v15, 4  ;;  %v7005_v44 = vrot.slane %v6396_v33, 7  ;;  %v13861_v53 = vcombine.low %v11397_v47, %v11400_v56  ;;  %v6402_v29 = vld [vmem:[%s16450_s30 + $0x3e8] sm:$0x7]  ;;  %v10761_v62 = vld [vmem:[%s16450_s30 + $0x48c] sm:$0xc] }
 0x337   : > { %v7003_v28 = vsel %vm17354_vm9, %v13430_v1, %v7002_v15  ;;  %v13880_v22 = vrot.slane %v10749_v27, 10  ;;  %v11763_v5 = vsel %vm16453_vm2, %v11761_v16, %v11762_v17  ;;  %v11773_v55 = vrot.slane %v10756_v63, 6  ;;  %v6397_v15 = vld [vmem:[%s16450_s30 + $0x3c4] sm:$0x8]  ;;  %v10763_v0 = vld [vmem:[%s16450_s30 + $0x494] sm:$0x3] }
 0x338   : > { %v7006_v25 = vsel %vm17354_vm9, %v7004_v49, %v7005_v44  ;;  %v11780_v33 = vrot.slane %v10759_v12, 6  ;;  %v13460_v39 = vrot.slane %v6397_v15, 11  ;;  %v7318_v56 = vrot.slane %v6399_v51, 7  ;;  %v6404_v44 = vld [vmem:[%s16450_s30 + $0x400] sm:$0xf] }
 0x339   : > { %v20379_v42 = vcombine.low %v7003_v28, %v7006_v25  ;;  %v11760_v32 = vsel %vm16453_vm2, %v13880_v22, %v11759_v23  ;;  %v13882_v41 = vrot.slane %v10755_v3, 10  ;;  %v11775_v1 = vrot.slane %v11773_v55, 4  ;;  %v10764_v27 = vld [vmem:[%s16450_s30 + $0x4a8] sm:$0xc] }
 0x33a   : > { %v13897_v26 = vcombine.low %v11760_v32, %v11763_v5  ;;  %v11776_v49 = vrot.slane %v10757_v61, 6  ;;  %v13883_v36 = vrot.slane %v10758_v35, 10  ;;  %v7329_v28 = vrot.slane %v6404_v44, 7  ;;  %v10768_v15 = vld [vmem:[%s16450_s30 + $0x4c8] sm:$0xf] }
 0x33b   : > { %15088 = vmatmul.mubr.msk.bf16.gmra.mrb[52].mxu1 %vm609_vm5, %v13439_v31  ;;  %v11407_v31 = vsel %vm16453_vm2, %v11405_v30, %v11406_v20  ;;  %v6400_v30 = vld [vmem:[%s16450_s30 + $0x3e0] sm:$0x8]  ;;  %v7322_v20 = vrot.slane %v6401_v38, 7  ;;  %v11787_v52 = vrot.slane %v10762_v40, 6  ;;  %v11794_v58 = vrot.slane %v10765_v13, 6 }
 0x33c   : > { %15091 = vmatprep.mubr.msk.bf16.mxu1 %vm609_vm5, %v20326_v8  ;;  %v11777_v25 = vsel %vm16453_vm2, %v11775_v1, %v11776_v49  ;;  %v11781_v23 = vsel %vm16453_vm2, %v13883_v36, %v11780_v33  ;;  %v13461_v18 = vrot.slane %v6400_v30, 11  ;;  %v7331_v17 = vrot.slane %v7329_v28, 4  ;;  %v10771_v61 = vld [vmem:[%s16450_s30 + $0x4e4] sm:$0xf]  ;;  %v6408_v35 = vld [vmem:[%s16450_s30 + $0x420] sm:$0x7] }
 0x33d   : > { %15394 = vmatmul.mubr.msk.bf16.gmra.mrb[52].mxu0 %vm609_vm5, %v13858_v37  ;;  %v13862_v37 = vcombine.low %v11404_v19, %v11407_v31  ;;  %v6403_v19 = vld [vmem:[%s16450_s30 + $0x3fc] sm:$0x8]  ;;  %v6405_v31 = vld [vmem:[%s16450_s30 + $0x404] sm:$0x7]  ;;  %v7324_v10 = vrot.slane %v7322_v20, 4  ;;  %v13884_v50 = vrot.slane %v10761_v62, 10 }
 0x33e   : > { %15397 = vmatprep.mubr.msk.bf16.mxu0 %vm609_vm5, %v13859_v24  ;;  %v6398_v24 = vld [vmem:[%s16450_s30 + $0x3c8] sm:$0xf]  ;;  %v13462_v16 = vrot.slane %v6403_v19, 11  ;;  %v11789_v63 = vrot.slane %v11787_v52, 4  ;;  %v11790_v12 = vrot.slane %v10763_v0, 6  ;;  %v13885_v32 = vrot.slane %v10764_v27, 10 }
 0x33f   : > { %v7315_v59 = vrot.slane %v6398_v24, 7  ;;  %v7332_v24 = vrot.slane %v6405_v31, 7  ;;  %v11796_v5 = vrot.slane %v11794_v58, 4  ;;  %v7323_v51 = vsel %vm17354_vm9, %v13461_v18, %v7322_v20  ;;  %v6409_v38 = vld [vmem:[%s16450_s30 + $0x434] sm:$0x8] }
 0x340   : > { %v11795_v1 = vsel %vm16453_vm2, %v13885_v32, %v11794_v58  ;;  %v10769_v44 = vld [vmem:[%s16450_s30 + $0x4cc] sm:$0x3]  ;;  %v10770_v36 = vld [vmem:[%s16450_s30 + $0x4e0] sm:$0xc]  ;;  %v7339_v20 = vrot.slane %v6408_v35, 7 }
 0x341   : > { %v7317_v47 = vrot.slane %v7315_v59, 4  ;;  %v7316_v46 = vsel %vm17354_vm9, %v13460_v39, %v7315_v59  ;;  %v6410_v59 = vld [vmem:[%s16450_s30 + $0x438] sm:$0xf]  ;;  %v11788_v39 = vsel %vm16453_vm2, %v13884_v50, %v11787_v52  ;;  %v10772_v13 = vld [vmem:[%s16450_s30 + $0x4e8] sm:$0x3]  ;;  %v11804_v19 = vrot.slane %v10769_v44, 6 }
 0x342   : > { %v6416_v31 = vld [vmem:[%s16450_s30 + $0x470] sm:$0xf]  ;;  %v11811_v0 = vrot.slane %v10772_v13, 6  ;;  %v10774_v27 = vld [vmem:[%s16450_s30 + $0x500] sm:$0xf] }
 0x343   : > { %15092 = vmatmul.mubr.msk.bf16.gmra.mrb[56].mxu1 %vm609_vm5, %v20352_v45  ;;  %v6412_v18 = vld [vmem:[%s16450_s30 + $0x450] sm:$0x8]  ;;  %v11815_v50 = vrot.slane %v10774_v27, 6 }
 0x344   : > { %15095 = vmatprep.mubr.msk.bf16.mxu1 %vm609_vm5, %v20360_v9  ;;  %v10782_v27 = vld [vmem:[%s16450_s30 + $0x550] sm:$0xc] }
 0x345   : > { %15398 = vmatmul.mubr.msk.bf16.gmra.mrb[56].mxu0 %vm609_vm5, %v13860_v11  ;;  %v11782_v11 = vrot.slane %v11780_v33, 4  ;;  %v7333_v33 = vsel %vm17354_vm9, %v7331_v17, %v7332_v24  ;;  %v10773_v17 = vld [vmem:[%s16450_s30 + $0x4fc] sm:$0xc]  ;;  %v7357_v24 = vrot.slane %v6416_v31, 7 }
 0x346   : > { %15401 = vmatprep.mubr.msk.bf16.mxu0 %vm609_vm5, %v13861_v53  ;;  %v11783_v53 = vrot.slane %v10760_v6, 6  ;;  %v10767_v6 = vld [vmem:[%s16450_s30 + $0x4c4] sm:$0xc] }
 0x348   : > { %v11784_v54 = vsel %vm16453_vm2, %v11782_v11, %v11783_v53  ;;  %v11808_v11 = vrot.slane %v10771_v61, 6 }
 0x349   : > { %v13900_v34 = vcombine.low %v11781_v23, %v11784_v54  ;;  %v13887_v23 = vrot.slane %v10770_v36, 10  ;;  %v10780_v36 = vld [vmem:[%s16450_s30 + $0x538] sm:$0xf] }
 0x34a   : > { %v11810_v54 = vrot.slane %v11808_v11, 4 }
 0x34b   : > { %15096 = vmatmul.mubr.msk.bf16.gmra.mrb[60].mxu1 %vm609_vm5, %v20379_v42  ;;  %v11809_v32 = vsel %vm16453_vm2, %v13887_v23, %v11808_v11 }
 0x34c   : > { %15101 = vmatprep.mubr.msk.bf16.mxu1 %vm609_vm5, %v20326_v8  ;;  %v11767_v8 = vsel %vm16453_vm2, %v13881_v7, %v11766_v14  ;;  %v6407_v7 = vld [vmem:[%s16450_s30 + $0x41c] sm:$0xf] }
 0x34d   : > { %15402 = vmatmul.mubr.msk.bf16.gmra.mrb[60].mxu0 %vm609_vm5, %v13862_v37  ;;  %v13898_v21 = vcombine.low %v11767_v8, %v11770_v60  ;;  %v7325_v37 = vrot.slane %v6402_v29, 7  ;;  %v6406_v60 = vld [vmem:[%s16450_s30 + $0x418] sm:$0x8]  ;;  %v7336_v3 = vrot.slane %v6407_v7, 7 }
 0x34e   : > { %15407 = vmatprep.mubr.msk.bf16.mxu0 %vm609_vm5, %v13896_v48  ;;  %v10766_v48 = vld [vmem:[%s16450_s30 + $0x4b0] sm:$0x3]  ;;  %v13463_v40 = vrot.slane %v6406_v60, 11  ;;  %v13465_v60 = vrot.slane %v6412_v18, 11 }
 0x34f   : > { %v7326_v8 = vsel %vm17354_vm9, %v7324_v10, %v7325_v37  ;;  %v7338_v30 = vrot.slane %v7336_v3, 4  ;;  %v10777_v37 = vld [vmem:[%s16450_s30 + $0x51c] sm:$0xf] }
 0x350   : > { %v7337_v58 = vsel %vm17354_vm9, %v13463_v40, %v7336_v3  ;;  %v6418_v40 = vld [vmem:[%s16450_s30 + $0x488] sm:$0x8] }
 0x351   : > { %v13467_v18 = vrot.slane %v6418_v40, 11 }
 0x353   : > { %15102 = vmatmul.mubr.msk.bf16.vlgmr.msra.gmra.mrb[32].mxu1 %vm609_vm5, %v20352_v45  ;;  %v7319_v45 = vsel %vm17354_vm9, %v7317_v47, %v7318_v56  ;;  %v11791_v47 = vsel %vm16453_vm2, %v11789_v63, %v11790_v12  ;;  %v11801_v56 = vrot.slane %v10768_v15, 6  ;;  %v6415_v63 = vld [vmem:[%s16450_s30 + $0x46c] sm:$0x8]  ;;  %v6417_v12 = vld [vmem:[%s16450_s30 + $0x474] sm:$0x7] }
 0x354   : > { %15105 = vmatprep.mubr.msk.bf16.mxu1 %vm609_vm5, %v20360_v9  ;;  %v11774_v9 = vsel %vm16453_vm2, %v13882_v41, %v11773_v55  ;;  %v13473_v14 = vcombine.low %v7316_v46, %v7319_v45  ;;  %v11797_v55 = vrot.slane %v10766_v48, 6  ;;  %v13474_v41 = vcombine.low %v7323_v51, %v7326_v8  ;;  %v10776_v15 = vld [vmem:[%s16450_s30 + $0x518] sm:$0xc] }
 0x355   : > { %15408 = vmatmul.mubr.msk.bf16.vlgmr.msra.gmra.mrb[32].mxu0 %vm609_vm5, %v13897_v26  ;;  %v13899_v22 = vcombine.low %v11774_v9, %v11777_v25  ;;  %v7343_v26 = vrot.slane %v6410_v59, 7  ;;  %v13901_v46 = vcombine.low %v11788_v39, %v11791_v47  ;;  %v13464_v45 = vrot.slane %v6409_v38, 11  ;;  %v6419_v39 = vld [vmem:[%s16450_s30 + $0x48c] sm:$0xf] }
 0x356   : > { %15411 = vmatprep.mubr.msk.bf16.mxu0 %vm609_vm5, %v13898_v21  ;;  %v6411_v21 = vld [vmem:[%s16450_s30 + $0x43c] sm:$0x7]  ;;  %v11798_v49 = vsel %vm16453_vm2, %v11796_v5, %v11797_v55  ;;  %v13886_v25 = vrot.slane %v10767_v6, 10  ;;  %v11803_v52 = vrot.slane %v11801_v56, 4  ;;  %v11812_v5 = vsel %vm16453_vm2, %v11810_v54, %v11811_v0  ;;  %v10775_v55 = vld [vmem:[%s16450_s30 + $0x504] sm:$0x3] }
 0x357   : > { %v7345_v29 = vrot.slane %v7343_v26, 4  ;;  %v7346_v62 = vrot.slane %v6411_v21, 7  ;;  %v13902_v9 = vcombine.low %v11795_v1, %v11798_v49  ;;  %v7344_v48 = vsel %vm17354_vm9, %v13464_v45, %v7343_v26  ;;  %v6420_v45 = vld [vmem:[%s16450_s30 + $0x490] sm:$0x7]  ;;  %v10781_v0 = vld [vmem:[%s16450_s30 + $0x53c] sm:$0x3] }
 0x358   : > { %v11802_v7 = vsel %vm16453_vm2, %v13886_v25, %v11801_v56  ;;  %v11822_v51 = vrot.slane %v10777_v37, 6  ;;  %v13466_v35 = vrot.slane %v6415_v63, 11  ;;  %v7359_v6 = vrot.slane %v7357_v24, 4 }
 0x359   : > { %v7360_v26 = vrot.slane %v6417_v12, 7  ;;  %v13904_v47 = vcombine.low %v11809_v32, %v11812_v5  ;;  %v13888_v56 = vrot.slane %v10773_v17, 10  ;;  %v11817_v38 = vrot.slane %v11815_v50, 4 }
 0x35a   : > { %v11818_v21 = vrot.slane %v10775_v55, 6  ;;  %v13889_v1 = vrot.slane %v10776_v15, 10  ;;  %v11824_v49 = vrot.slane %v11822_v51, 4  ;;  %v7358_v13 = vsel %vm17354_vm9, %v13466_v35, %v7357_v24  ;;  %v10786_v15 = vld [vmem:[%s16450_s30 + $0x570] sm:$0xf] }
 0x35b   : > { %15106 = vmatmul.mubr.msk.bf16.gmra.mrb[36].mxu1 %vm609_vm5, %v20379_v42  ;;  %v7330_v42 = vsel %vm17354_vm9, %v13462_v16, %v7329_v28  ;;  %v6413_v28 = vld [vmem:[%s16450_s30 + $0x454] sm:$0xf]  ;;  %v6414_v16 = vld [vmem:[%s16450_s30 + $0x458] sm:$0x7]  ;;  %v11829_v25 = vrot.slane %v10780_v36, 6  ;;  %v7367_v37 = vrot.slane %v6420_v45, 7 }
 0x35c   : > { %15109 = vmatprep.mubr.msk.bf16.mxu1 %vm609_vm5, %v13473_v14  ;;  %v13475_v53 = vcombine.low %v7330_v42, %v7333_v33  ;;  %v7340_v14 = vsel %vm17354_vm9, %v7338_v30, %v7339_v20  ;;  %v7350_v10 = vrot.slane %v6413_v28, 7  ;;  %v7353_v61 = vrot.slane %v6414_v16, 7  ;;  %v10778_v42 = vld [vmem:[%s16450_s30 + $0x520] sm:$0x3]  ;;  %v10783_v20 = vld [vmem:[%s16450_s30 + $0x554] sm:$0xf] }
 0x35d   : > { %15412 = vmatmul.mubr.msk.bf16.gmra.mrb[36].mxu0 %vm609_vm5, %v13899_v22  ;;  %v7347_v22 = vsel %vm17354_vm9, %v7345_v29, %v7346_v62  ;;  %v13476_v59 = vcombine.low %v7337_v58, %v7340_v14  ;;  %v11825_v44 = vrot.slane %v10778_v42, 6  ;;  %v7364_v30 = vrot.slane %v6419_v39, 7  ;;  %v10779_v29 = vld [vmem:[%s16450_s30 + $0x534] sm:$0xc]  ;;  %v6426_v35 = vld [vmem:[%s16450_s30 + $0x4c8] sm:$0x7] }
 0x35e   : > { %15415 = vmatprep.mubr.msk.bf16.mxu0 %vm609_vm5, %v13900_v34  ;;  %v11805_v34 = vsel %vm16453_vm2, %v11803_v52, %v11804_v19  ;;  %v13477_v8 = vcombine.low %v7344_v48, %v7347_v22  ;;  %v7352_v3 = vrot.slane %v7350_v10, 4  ;;  %v7351_v11 = vsel %vm17354_vm9, %v13465_v60, %v7350_v10  ;;  %v6421_v52 = vld [vmem:[%s16450_s30 + $0x4a4] sm:$0x8]  ;;  %v6423_v19 = vld [vmem:[%s16450_s30 + $0x4ac] sm:$0x7] }
 0x35f   : > { %v13903_v33 = vcombine.low %v11802_v7, %v11805_v34  ;;  %v11816_v28 = vsel %vm16453_vm2, %v13888_v56, %v11815_v50  ;;  %v11823_v23 = vsel %vm16453_vm2, %v13889_v1, %v11822_v51  ;;  %v11826_v54 = vsel %vm16453_vm2, %v11824_v49, %v11825_v44  ;;  %v10784_v48 = vld [vmem:[%s16450_s30 + $0x558] sm:$0x3]  ;;  %v6425_v7 = vld [vmem:[%s16450_s30 + $0x4c4] sm:$0xf]  ;;  %v6424_v60 = vld [vmem:[%s16450_s30 + $0x4c0] sm:$0x8] }
 0x360   : > { %v11836_v58 = vrot.slane %v10783_v20, 6  ;;  %v7366_v10 = vrot.slane %v7364_v30, 4  ;;  %v13468_v16 = vrot.slane %v6421_v52, 11  ;;  %v7374_v24 = vrot.slane %v6423_v19, 7  ;;  %v10787_v44 = vld [vmem:[%s16450_s30 + $0x574] sm:$0x3] }
 0x361   : > { %v13906_v34 = vcombine.low %v11823_v23, %v11826_v54  ;;  %v13890_v50 = vrot.slane %v10779_v29, 10  ;;  %v11831_v63 = vrot.slane %v11829_v25, 4  ;;  %v11832_v12 = vrot.slane %v10781_v0, 6  ;;  %v10788_v36 = vld [vmem:[%s16450_s30 + $0x588] sm:$0xc] }
 0x362   : > { %v13891_v32 = vrot.slane %v10782_v27, 10  ;;  %v11838_v5 = vrot.slane %v11836_v58, 4  ;;  %v11839_v55 = vrot.slane %v10784_v48, 6  ;;  %v7365_v51 = vsel %vm17354_vm9, %v13467_v18, %v7364_v30  ;;  %v10792_v0 = vld [vmem:[%s16450_s30 + $0x5a8] sm:$0xf] }
 0x363   : > { %15110 = vmatmul.mubr.msk.bf16.gmra.mrb[40].mxu1 %vm609_vm5, %v13474_v41  ;;  %v6422_v41 = vld [vmem:[%s16450_s30 + $0x4a8] sm:$0xf]  ;;  %v11830_v39 = vsel %vm16453_vm2, %v13890_v50, %v11829_v25  ;;  %v11843_v56 = vrot.slane %v10786_v15, 6  ;;  %v13469_v40 = vrot.slane %v6424_v60, 11  ;;  %v7381_v20 = vrot.slane %v6426_v35, 7 }
 0x364   : > { %15113 = vmatprep.mubr.msk.bf16.mxu1 %vm609_vm5, %v13475_v53  ;;  %v7354_v53 = vsel %vm17354_vm9, %v7352_v3, %v7353_v61  ;;  %v7371_v62 = vrot.slane %v6422_v41, 7  ;;  %v7378_v3 = vrot.slane %v6425_v7, 7  ;;  %v10789_v61 = vld [vmem:[%s16450_s30 + $0x58c] sm:$0xf]  ;;  %v11837_v1 = vsel %vm16453_vm2, %v13891_v32, %v11836_v58  ;;  %v6432_v48 = vld [vmem:[%s16450_s30 + $0x500] sm:$0x7] }
 0x365   : > { %15416 = vmatmul.mubr.msk.bf16.gmra.mrb[40].mxu0 %vm609_vm5, %v13901_v46  ;;  %v7361_v46 = vsel %vm17354_vm9, %v7359_v6, %v7360_v26  ;;  %v13478_v31 = vcombine.low %v7351_v11, %v7354_v53  ;;  %v10785_v6 = vld [vmem:[%s16450_s30 + $0x56c] sm:$0xc]  ;;  %v11840_v49 = vsel %vm16453_vm2, %v11838_v5, %v11839_v55  ;;  %v11850_v11 = vrot.slane %v10789_v61, 6  ;;  %v10791_v50 = vld [vmem:[%s16450_s30 + $0x5a4] sm:$0xc] }
 0x366   : > { %15419 = vmatprep.mubr.msk.bf16.mxu0 %vm609_vm5, %v13902_v9  ;;  %v11819_v9 = vsel %vm16453_vm2, %v11817_v38, %v11818_v21  ;;  %v13479_v14 = vcombine.low %v7358_v13, %v7361_v46  ;;  %v7373_v17 = vrot.slane %v7371_v62, 4  ;;  %v7372_v42 = vsel %vm17354_vm9, %v13468_v16, %v7371_v62  ;;  %v6427_v38 = vld [vmem:[%s16450_s30 + $0x4dc] sm:$0x8]  ;;  %v6429_v21 = vld [vmem:[%s16450_s30 + $0x4e4] sm:$0x7] }
 0x367   : > { %v13905_v22 = vcombine.low %v11816_v28, %v11819_v9  ;;  %v7380_v30 = vrot.slane %v7378_v3, 4  ;;  %v10790_v13 = vld [vmem:[%s16450_s30 + $0x590] sm:$0x3]  ;;  %v13470_v45 = vrot.slane %v6427_v38, 11  ;;  %v7388_v62 = vrot.slane %v6429_v21, 7 }
 0x368   : > { %v6431_v28 = vld [vmem:[%s16450_s30 + $0x4fc] sm:$0xf]  ;;  %v13908_v9 = vcombine.low %v11837_v1, %v11840_v49  ;;  %v13892_v25 = vrot.slane %v10785_v6, 10  ;;  %v11845_v52 = vrot.slane %v11843_v56, 4  ;;  %v11846_v19 = vrot.slane %v10787_v44, 6 }
 0x369   : > { %v11852_v23 = vrot.slane %v11850_v11, 4  ;;  %v11853_v54 = vrot.slane %v10790_v13, 6  ;;  %v7379_v27 = vsel %vm17354_vm9, %v13469_v40, %v7378_v3  ;;  %v7382_v58 = vsel %vm17354_vm9, %v7380_v30, %v7381_v20 }
 0x36a   : > { %v11847_v16 = vsel %vm16453_vm2, %v11845_v52, %v11846_v19  ;;  %v7395_v5 = vrot.slane %v6432_v48, 7 }
 0x36b   : > { %15114 = vmatmul.mubr.msk.bf16.gmra.mrb[44].mxu1 %vm609_vm5, %v13476_v59  ;;  %v6428_v59 = vld [vmem:[%s16450_s30 + $0x4e0] sm:$0xf] }
 0x36c   : > { %15117 = vmatprep.mubr.msk.bf16.mxu1 %vm609_vm5, %v13477_v8  ;;  %v7368_v8 = vsel %vm17354_vm9, %v7366_v10, %v7367_v37  ;;  %v7385_v26 = vrot.slane %v6428_v59, 7  ;;  %v6430_v37 = vld [vmem:[%s16450_s30 + $0x4f8] sm:$0x8] }
 0x36d   : > { %15420 = vmatmul.mubr.msk.bf16.gmra.mrb[44].mxu0 %vm609_vm5, %v13903_v33  ;;  %v7375_v33 = vsel %vm17354_vm9, %v7373_v17, %v7374_v24  ;;  %v13480_v41 = vcombine.low %v7365_v51, %v7368_v8  ;;  %v11857_v17 = vrot.slane %v10792_v0, 6  ;;  %v13482_v24 = vcombine.low %v7379_v27, %v7382_v58 }
 0x36e   : > { %15423 = vmatprep.mubr.msk.bf16.mxu0 %vm609_vm5, %v13904_v47  ;;  %v11833_v47 = vsel %vm16453_vm2, %v11831_v63, %v11832_v12  ;;  %v13481_v53 = vcombine.low %v7372_v42, %v7375_v33  ;;  %v7387_v29 = vrot.slane %v7385_v26, 4  ;;  %v7386_v18 = vsel %vm17354_vm9, %v13470_v45, %v7385_v26  ;;  %v10793_v63 = vld [vmem:[%s16450_s30 + $0x5ac] sm:$0x3] }
 0x36f   : > { %v13907_v46 = vcombine.low %v11830_v39, %v11833_v47  ;;  %v13471_v59 = vrot.slane %v6430_v37, 11  ;;  %v13894_v51 = vrot.slane %v10791_v50, 10  ;;  %v11859_v8 = vrot.slane %v11857_v17, 4  ;;  %v20619_v39 = vld [vmem:[%s21613_s2 + $0x2] ss:$0 sm:$0xff] }
 0x370   : > { %v7389_v10 = vsel %vm17354_vm9, %v7387_v29, %v7388_v62  ;;  %v11860_v60 = vrot.slane %v10793_v63, 6 }
 0x371   : > { %v13483_v12 = vcombine.low %v7386_v18, %v7389_v10  ;;  %v11858_v42 = vsel %vm16453_vm2, %v13894_v51, %v11857_v17 }
 0x372   : > { %v11861_v33 = vsel %vm16453_vm2, %v11859_v8, %v11860_v60 }
 0x373   : > { %15118 = vmatmul.mubr.msk.bf16.gmra.mrb[48].mxu1 %vm609_vm5, %v13478_v31  ;;  %v13893_v31 = vrot.slane %v10788_v36, 10  ;;  %v13911_v6 = vcombine.low %v11858_v42, %v11861_v33 }
 0x374   : > { %15121 = vmatprep.mubr.msk.bf16.mxu1 %vm609_vm5, %v13479_v14  ;;  %v7392_v14 = vrot.slane %v6431_v28, 7 }
 0x375   : > { %15424 = vmatmul.mubr.msk.bf16.gmra.mrb[48].mxu0 %vm609_vm5, %v13905_v22  ;;  %v11844_v22 = vsel %vm16453_vm2, %v13892_v25, %v11843_v56  ;;  %v11851_v7 = vsel %vm16453_vm2, %v13893_v31, %v11850_v11 }
 0x376   : > { %15427 = vmatprep.mubr.msk.bf16.mxu0 %vm609_vm5, %v13906_v34  ;;  %v11854_v34 = vsel %vm16453_vm2, %v11852_v23, %v11853_v54  ;;  %v7394_v32 = vrot.slane %v7392_v14, 4  ;;  %v13909_v55 = vcombine.low %v11844_v22, %v11847_v16  ;;  %v7393_v3 = vsel %vm17354_vm9, %v13471_v59, %v7392_v14 }
 0x377   : > { %v13910_v15 = vcombine.low %v11851_v7, %v11854_v34 }
 0x378   : > { %v7396_v61 = vsel %vm17354_vm9, %v7394_v32, %v7395_v5 }
 0x379   : > { %v13484_v35 = vcombine.low %v7393_v3, %v7396_v61 }
 0x37b   : > { %15122 = vmatmul.mubr.msk.bf16.gmra.mrb[52].mxu1 %vm609_vm5, %v13480_v41 }
 0x37c   : > { %15125 = vmatprep.mubr.msk.bf16.mxu1 %vm609_vm5, %v13481_v53 }
 0x37d   : > { %15428 = vmatmul.mubr.msk.bf16.gmra.mrb[52].mxu0 %vm609_vm5, %v13907_v46 }
 0x37e   : > { %15431 = vmatprep.mubr.msk.bf16.mxu0 %vm609_vm5, %v13908_v9 }
 0x383   : > { %15126 = vmatmul.mubr.msk.bf16.gmra.mrb[56].mxu1 %vm609_vm5, %v13482_v24 }
 0x384   : > { %15129 = vmatprep.mubr.msk.bf16.mxu1 %vm609_vm5, %v13483_v12 }
 0x385   : > { %15432 = vmatmul.mubr.msk.bf16.gmra.mrb[56].mxu0 %vm609_vm5, %v13909_v55 }
 0x386   : > { %15435 = vmatprep.mubr.msk.bf16.mxu0 %vm609_vm5, %v13910_v15 }
 0x38b   : > { %15130 = vmatmul.mubr.msk.bf16.gmra.mrb[60].mxu1 %vm609_vm5, %v13484_v35 }
 0x38d   : > { %15436 = vmatmul.mubr.msk.bf16.gmra.mrb[60].mxu0 %vm609_vm5, %v13911_v6 }
 0x426   : > { %v15103_v26 = vpop.f32.mrb[32].mxu1 }
 0x427   : > { %v7677_v57 = vadd.f32 %v15103_v26, %v20614_v43  ;;  %v7508_v47 = vpop.f32.mrb[33].mxu1 }
 0x428   : > { %v15409_v56 = vpop.f32.mrb[32].mxu0  ;;  %v7675_v38 = vadd.f32 %v20614_v43, %v7508_v47  ;;  %v15104_v21 = vpop.f32.mrb[34].mxu1 }
 0x429   : > { %v7709_v41 = vmax.f32 %v7677_v57, 0.0  ;;  %v12166_v1 = vadd.f32 %v15409_v56, %v20619_v39  ;;  %v11997_v49 = vpop.f32.mrb[33].mxu0  ;;  %v7678_v44 = vadd.f32 %v15104_v21, %v20614_v43  ;;  %v7511_v36 = vpop.f32.mrb[35].mxu1 }
 0x42a   : > { %v20625_v11 = vmax.f32 %v7675_v38, 0.0  ;;  %v12164_v53 = vadd.f32 %v20619_v39, %v11997_v49  ;;  %v15410_v40 = vpop.f32.mrb[34].mxu0  ;;  %v7676_v46 = vadd.f32 %v20614_v43, %v7511_v36 }
 0x42b   : > { %v8035_v30 = vmul.f32 %v7709_v41, %v7709_v41  ;;  %v12198_v20 = vmax.f32 %v12166_v1, 0.0  ;;  %v20628_v13 = vmax.f32 %v7678_v44, 0.0  ;;  %v12000_v45 = vpop.f32.mrb[35].mxu0  ;;  %v12167_v28 = vadd.f32 %v15410_v40, %v20619_v39 }
 0x42c   : > { %v8033_v29 = vmul.f32 %v20625_v11, %v20625_v11  ;;  %v20633_v62 = vmax.f32 %v12164_v53, 0.0  ;;  %v7967_v9 = vsel %vm609_vm5, %v7709_v41, 0.0  ;;  %v7964_v52 = vsel %vm609_vm5, %v20625_v11, 0.0 }
 0x42d   : > { %v12524_v25 = vmul.f32 %v12198_v20, %v12198_v20  ;;  %v8068_v19 = vsel %vm609_vm5, %v8035_v30, 0.0  ;;  %v12456_v31 = vsel %vm609_vm5, %v12198_v20, 0.0  ;;  %v7969_v54 = vsel %vm609_vm5, %v20628_v13, 0.0 }
 0x42e   : > { %v12522_v23 = vmul.f32 %v20633_v62, %v20633_v62  ;;  %v15107_v0 = vpop.f32.mrb[36].mxu1  ;;  %v8065_v27 = vsel %vm609_vm5, %v8033_v29, 0.0  ;;  %v20646_v58 = vmax.f32 %v12167_v28, 0.0  ;;  %v20648_v14 = vmax.f32 %v7676_v46, 0.0 }
 0x42f   : > { %v12165_v18 = vadd.f32 %v20619_v39, %v12000_v45  ;;  %v7524_v10 = vpop.f32.mrb[37].mxu1  ;;  %v12453_v37 = vsel %vm609_vm5, %v20633_v62, 0.0  ;;  %v8036_v48 = vmul.f32 %v20628_v13, %v20628_v13  ;;  %v14032_v22 = vpack.c.bf16 %v12198_v20, %v12198_v20 }
 0x430   : > { %v14000_v16 = vpack.c.bf16 %v7709_v41, %v7709_v41  ;;  %v15413_v17 = vpop.f32.mrb[36].mxu0  ;;  %v15108_v24 = vpop.f32.mrb[38].mxu1  ;;  %v12557_v7 = vsel %vm609_vm5, %v12524_v25, 0.0  ;;  %v12554_v34 = vsel %vm609_vm5, %v12522_v23, 0.0  ;;  %v7965_v50 = vsel %vm609_vm5, %v20648_v14, 0.0 }
 0x431   : > { %v8034_v63 = vmul.f32 %v20648_v14, %v20648_v14  ;;  %v12013_v12 = vpop.f32.mrb[37].mxu0  ;;  %v7527_v59 = vpop.f32.mrb[39].mxu1  ;;  %v7966_v32 = vadd.f32 %v7965_v50, %v7964_v52  ;;  %v20661_v5 = vmax.f32 %v12165_v18, 0.0  ;;  %12328 = vrot.lane.b32.xlu0 %v14032_v22, %s16378_s24  ;;  %v7681_v55 = vadd.f32 %v15107_v0, %v20614_v43 }
 0x432   : > { %7839 = vrot.lane.b32.xlu1 %v14000_v16, %s16379_s26  ;;  %v12170_v15 = vadd.f32 %v15413_v17, %v20619_v39  ;;  %v15414_v51 = vpop.f32.mrb[38].mxu0  ;;  %v12525_v8 = vmul.f32 %v20646_v58, %v20646_v58  ;;  %v7679_v3 = vadd.f32 %v20614_v43, %v7524_v10  ;;  %v12168_v61 = vadd.f32 %v20619_v39, %v12013_v12 }
 0x433   : > { %v8066_v60 = vsel %vm609_vm5, %v8034_v63, 0.0  ;;  %v12016_v42 = vpop.f32.mrb[39].mxu0  ;;  %v7968_v33 = vadd.f32 %v7967_v9, %v7966_v32  ;;  %v12454_v6 = vsel %vm609_vm5, %v20661_v5, 0.0  ;;  %v12523_v26 = vmul.f32 %v20661_v5, %v20661_v5 }
 0x434   : > { %v8067_v35 = vadd.f32 %v8066_v60, %v8065_v27  ;;  %v12455_v57 = vadd.f32 %v12454_v6, %v12453_v37  ;;  %v20676_v47 = vmax.f32 %v7681_v55, 0.0  ;;  %v20678_v56 = vmax.f32 %v12170_v15, 0.0 }
 0x435   : > { %v20680_v38 = vmax.f32 %v7679_v3, 0.0  ;;  %v12555_v41 = vsel %vm609_vm5, %v12523_v26, 0.0  ;;  %v7970_v1 = vadd.f32 %v7969_v54, %v7968_v33  ;;  %v20683_v49 = vmax.f32 %v12168_v61, 0.0 }
 0x436   : > { %v8069_v21 = vadd.f32 %v8068_v19, %v8067_v35  ;;  %v20685_v44 = vpop.f32.mrb[40].mxu1  ;;  %v8070_v36 = vsel %vm609_vm5, %v8036_v48, 0.0  ;;  %v12458_v53 = vsel %vm609_vm5, %v20646_v58, 0.0  ;;  %v12457_v40 = vadd.f32 %v12456_v31, %v12455_v57 }
 0x437   : > { %v12556_v30 = vadd.f32 %v12555_v41, %v12554_v34  ;;  %v20690_v20 = vpop.f32.mrb[41].mxu1  ;;  %v12559_v46 = vsel %vm609_vm5, %v12525_v8, 0.0  ;;  %v20695_v45 = vsel %vm609_vm5, %v20676_v47, 0.0  ;;  %v7971_v29 = vsel %vm609_vm5, %v20680_v38, 0.0 }
 0x438   : > { %v8037_v28 = vmul.f32 %v20680_v38, %v20680_v38  ;;  %v15417_v9 = vpop.f32.mrb[40].mxu0  ;;  %v20701_v25 = vpop.f32.mrb[42].mxu1  ;;  %v8039_v19 = vmul.f32 %v20676_v47, %v20676_v47  ;;  %v7972_v31 = vadd.f32 %v7971_v29, %v7970_v1  ;;  %v8071_v23 = vadd.f32 %v8070_v36, %v8069_v21 }
 0x439   : > { %v12558_v52 = vadd.f32 %v12557_v7, %v12556_v30  ;;  %v12029_v54 = vpop.f32.mrb[41].mxu0  ;;  %v20705_v0 = vpop.f32.mrb[43].mxu1  ;;  %v12528_v27 = vmul.f32 %v20678_v56, %v20678_v56  ;;  %v12459_v10 = vadd.f32 %v12458_v53, %v12457_v40  ;;  %v12460_v37 = vsel %vm609_vm5, %v20683_v49, 0.0 }
 0x43a   : > { %v8072_v18 = vsel %vm609_vm5, %v8037_v28, 0.0  ;;  %v20712_v48 = vpop.f32.mrb[42].mxu0  ;;  %v12526_v16 = vmul.f32 %v20683_v49, %v20683_v49  ;;  %v7682_v7 = vadd.f32 %v15108_v24, %v20614_v43  ;;  %v12171_v63 = vadd.f32 %v15414_v51, %v20619_v39 }
 0x43b   : > { %v8073_v22 = vadd.f32 %v8072_v18, %v8071_v23  ;;  %v12560_v17 = vadd.f32 %v12559_v46, %v12558_v52  ;;  %v20717_v34 = vpop.f32.mrb[43].mxu0  ;;  %v12461_v50 = vadd.f32 %v12460_v37, %v12459_v10  ;;  %v12169_v12 = vadd.f32 %v20619_v39, %v12016_v42 }
 0x43c   : > { %v13998_v32 = vpack.c.bf16 %v20625_v11, %v20625_v11  ;;  %v12561_v55 = vsel %vm609_vm5, %v12526_v16, 0.0  ;;  %v20724_v15 = vmax.f32 %v7682_v7, 0.0  ;;  %v14001_v8 = vpack.c.bf16 %v20628_v13, %v20628_v13 }
 0x43d   : > { %v7680_v60 = vadd.f32 %v20614_v43, %v7527_v59  ;;  %v12464_v24 = vsel %vm609_vm5, %v20678_v56, 0.0  ;;  %v12562_v3 = vadd.f32 %v12561_v55, %v12560_v17  ;;  %v20731_v61 = vmax.f32 %v12171_v63, 0.0 }
 0x43e   : > { %v20733_v51 = vmax.f32 %v12169_v12, 0.0  ;;  %7835 = vrot.lane.b32.xlu0 %v13998_v32, %s16379_s26  ;;  %v20736_v11 = vpop.f32.mrb[44].mxu1  ;;  %v8076_v42 = vsel %vm609_vm5, %v8039_v19, 0.0  ;;  %v12565_v33 = vsel %vm609_vm5, %v12528_v27, 0.0  ;;  %7841 = vrot.lane.b32.xlu1 %v14001_v8, %s16379_s26  ;;  %v14030_v59 = vpack.c.bf16 %v20633_v62, %v20633_v62 }
 0x43f   : > { %v20741_v13 = vmax.f32 %v7680_v60, 0.0  ;;  %v20745_v35 = vpop.f32.mrb[45].mxu1  ;;  %v8040_v6 = vmul.f32 %v20724_v15, %v20724_v15  ;;  %v14033_v21 = vpack.c.bf16 %v20646_v58, %v20646_v58  ;;  %v12466_v62 = vsel %vm609_vm5, %v20731_v61, 0.0 }
 0x440   : > { %v12462_v26 = vsel %vm609_vm5, %v20733_v51, 0.0  ;;  %v12527_v57 = vmul.f32 %v20733_v51, %v20733_v51  ;;  %v20755_v41 = vpop.f32.mrb[44].mxu0  ;;  %v20757_v1 = vpop.f32.mrb[46].mxu1  ;;  %v12529_v58 = vmul.f32 %v20731_v61, %v20731_v61  ;;  %v7685_v52 = vadd.f32 %v20685_v44, %v20614_v43 }
 0x441   : > { %v12463_v36 = vadd.f32 %v12462_v26, %v12461_v50  ;;  %v7973_v53 = vsel %vm609_vm5, %v20741_v13, 0.0  ;;  %v8038_v40 = vmul.f32 %v20741_v13, %v20741_v13  ;;  %v20765_v30 = vpop.f32.mrb[45].mxu0  ;;  %v20767_v46 = vpop.f32.mrb[47].mxu1  ;;  %v12174_v10 = vadd.f32 %v15417_v9, %v20619_v39 }
 0x442   : > { %v12563_v29 = vsel %vm609_vm5, %v12527_v57, 0.0  ;;  %v7974_v28 = vadd.f32 %v7973_v53, %v7972_v31  ;;  %12324 = vrot.lane.b32.xlu0 %v14030_v59, %s16378_s24  ;;  %v20775_v19 = vpop.f32.mrb[46].mxu0  ;;  %12330 = vrot.lane.b32.xlu1 %v14033_v21, %s16378_s24  ;;  %v20783_v17 = vmax.f32 %v7685_v52, 0.0  ;;  %v7683_v44 = vadd.f32 %v20614_v43, %v20690_v20 }
 0x443   : > { %v12465_v23 = vadd.f32 %v12464_v24, %v12463_v36  ;;  %v12564_v27 = vadd.f32 %v12563_v29, %v12562_v3  ;;  %v8074_v18 = vsel %vm609_vm5, %v8038_v40, 0.0  ;;  %v20780_v37 = vpop.f32.mrb[47].mxu0  ;;  %v20787_v50 = vmax.f32 %v12174_v10, 0.0 }
 0x444   : > { %v7976_v16 = vadd.f32 %v20695_v45, %v7974_v28  ;;  %v8075_v31 = vadd.f32 %v8074_v18, %v8073_v22  ;;  %v12172_v63 = vadd.f32 %v20619_v39, %v12029_v54  ;;  %v7977_v9 = vsel %vm609_vm5, %v20724_v15, 0.0 }
 0x445   : > { %v12566_v7 = vadd.f32 %v12565_v33, %v12564_v27  ;;  %v12467_v12 = vadd.f32 %v12466_v62, %v12465_v23  ;;  %v20793_v8 = vmax.f32 %v7683_v44, 0.0  ;;  %v8078_v22 = vsel %vm609_vm5, %v8040_v6, 0.0 }
 0x446   : > { %v8077_v55 = vadd.f32 %v8076_v42, %v8075_v31  ;;  %v20795_v45 = vpop.f32.mrb[48].mxu1  ;;  %v12567_v20 = vsel %vm609_vm5, %v12529_v58, 0.0  ;;  %v7978_v60 = vadd.f32 %v7977_v9, %v7976_v16  ;;  %v20799_v24 = vmax.f32 %v12172_v63, 0.0 }
 0x447   : > { %v20801_v3 = vpop.f32.mrb[49].mxu1  ;;  %v8043_v54 = vmul.f32 %v20783_v17, %v20783_v17  ;;  %v7979_v33 = vsel %vm609_vm5, %v20793_v8, 0.0  ;;  %v8041_v42 = vmul.f32 %v20793_v8, %v20793_v8  ;;  %v12532_v57 = vmul.f32 %v20787_v50, %v20787_v50 }
 0x448   : > { %v8079_v59 = vadd.f32 %v8078_v22, %v8077_v55  ;;  %v20809_v26 = vpop.f32.mrb[48].mxu0  ;;  %v20811_v6 = vpop.f32.mrb[50].mxu1  ;;  %v7980_v21 = vadd.f32 %v7979_v33, %v7978_v60  ;;  %v12468_v62 = vsel %vm609_vm5, %v20799_v24, 0.0  ;;  %v12530_v36 = vmul.f32 %v20799_v24, %v20799_v24 }
 0x449   : > { %v20819_v53 = vpop.f32.mrb[49].mxu0  ;;  %v20821_v40 = vpop.f32.mrb[51].mxu1  ;;  %v8080_v58 = vsel %vm609_vm5, %v8041_v42, 0.0  ;;  %v12469_v29 = vadd.f32 %v12468_v62, %v12467_v12  ;;  %v12568_v28 = vadd.f32 %v12567_v20, %v12566_v7  ;;  %v7686_v52 = vadd.f32 %v20701_v25, %v20614_v43 }
 0x44a   : > { %v20826_v23 = vpop.f32.mrb[50].mxu0  ;;  %v8081_v27 = vadd.f32 %v8080_v58, %v8079_v59  ;;  %v12569_v18 = vsel %vm609_vm5, %v12530_v36, 0.0  ;;  %v12175_v10 = vadd.f32 %v20712_v48, %v20619_v39  ;;  %v12173_v16 = vadd.f32 %v20619_v39, %v20717_v34 }
 0x44b   : > { %v20833_v31 = vpop.f32.mrb[51].mxu0  ;;  %v12570_v44 = vadd.f32 %v12569_v18, %v12568_v28  ;;  %v20835_v63 = vmax.f32 %v7686_v52, 0.0  ;;  %v14031_v7 = vpack.c.bf16 %v20661_v5, %v20661_v5  ;;  %v13999_v25 = vpack.c.bf16 %v20648_v14, %v20648_v14 }
 0x44c   : > { %v7983_v12 = vsel %vm609_vm5, %v20783_v17, 0.0  ;;  %v20843_v9 = vmax.f32 %v12175_v10, 0.0  ;;  %v20845_v48 = vmax.f32 %v12173_v16, 0.0  ;;  %v7684_v34 = vadd.f32 %v20614_v43, %v20705_v0 }
 0x44d   : > { %v8084_v55 = vsel %vm609_vm5, %v8043_v54, 0.0  ;;  %v12472_v22 = vsel %vm609_vm5, %v20787_v50, 0.0  ;;  %v12573_v5 = vsel %vm609_vm5, %v12532_v57, 0.0  ;;  %12326 = vrot.lane.b32.xlu1 %v14031_v7, %s16378_s24  ;;  %7837 = vrot.lane.b32.xlu0 %v13999_v25, %s16379_s26  ;;  %v7689_v14 = vadd.f32 %v20736_v11, %v20614_v43 }
 0x44e   : > { %v20857_v20 = vpop.f32.mrb[52].mxu1  ;;  %v8044_v60 = vmul.f32 %v20835_v63, %v20835_v63  ;;  %v12470_v0 = vsel %vm609_vm5, %v20845_v48, 0.0  ;;  %v12531_v54 = vmul.f32 %v20845_v48, %v20845_v48  ;;  %v14004_v33 = vpack.c.bf16 %v20676_v47, %v20676_v47 }
 0x44f   : > { %v20867_v42 = vpop.f32.mrb[53].mxu1  ;;  %v12533_v59 = vmul.f32 %v20843_v9, %v20843_v9  ;;  %v12471_v11 = vadd.f32 %v12470_v0, %v12469_v29  ;;  %v20871_v57 = vmax.f32 %v7684_v34, 0.0  ;;  %v14005_v62 = vpack.c.bf16 %v20724_v15, %v20724_v15 }
 0x450   : > { %v20875_v36 = vpop.f32.mrb[52].mxu0  ;;  %v20877_v58 = vpop.f32.mrb[54].mxu1  ;;  %v12571_v28 = vsel %vm609_vm5, %v12531_v54, 0.0  ;;  %v20880_v52 = vmax.f32 %v7689_v14, 0.0  ;;  %v12178_v47 = vadd.f32 %v20755_v41, %v20619_v39  ;;  %v7687_v18 = vadd.f32 %v20614_v43, %v20745_v35 }
 0x451   : > { %v20886_v29 = vpop.f32.mrb[53].mxu0  ;;  %v20888_v10 = vpop.f32.mrb[55].mxu1  ;;  %v12473_v16 = vadd.f32 %v12472_v22, %v12471_v11  ;;  %v12572_v15 = vadd.f32 %v12571_v28, %v12570_v44  ;;  %v7981_v7 = vsel %vm609_vm5, %v20871_v57, 0.0  ;;  %v8042_v25 = vmul.f32 %v20871_v57, %v20871_v57  ;;  %7847 = vrot.lane.b32.xlu0 %v14004_v33, %s16379_s26  ;;  %7849 = vrot.lane.b32.xlu1 %v14005_v62, %s16379_s26 }
 0x452   : > { %v20896_v41 = vpop.f32.mrb[54].mxu0  ;;  %v7985_v35 = vsel %vm609_vm5, %v20835_v63, 0.0  ;;  %v12474_v34 = vsel %vm609_vm5, %v20843_v9, 0.0  ;;  %v7982_v22 = vadd.f32 %v7981_v7, %v7980_v21  ;;  %v20902_v44 = vmax.f32 %v12178_v47, 0.0 }
 0x453   : > { %v20904_v14 = vpop.f32.mrb[55].mxu0  ;;  %v12574_v0 = vadd.f32 %v12573_v5, %v12572_v15  ;;  %v8082_v54 = vsel %vm609_vm5, %v8042_v25, 0.0  ;;  %v20907_v11 = vmax.f32 %v7687_v18, 0.0  ;;  %v12176_v33 = vadd.f32 %v20619_v39, %v20765_v30 }
 0x454   : > { %21944 = vst [vmem:[#allocation7_spill] sm:$0xff] %v20902_v44  ;;  %v8086_v62 = vsel %vm609_vm5, %v8044_v60, 0.0  ;;  %v12575_v28 = vsel %vm609_vm5, %v12533_v59, 0.0  ;;  %v7984_v32 = vadd.f32 %v7983_v12, %v7982_v22  ;;  %v8083_v2 = vadd.f32 %v8082_v54, %v8081_v27 }
 0x455   : > { %21945 = vst [vmem:[#allocation12_spill] sm:$0xff] %v20907_v11  ;;  %v8047_v21 = vmul.f32 %v20880_v52, %v20880_v52  ;;  %v7987_v47 = vsel %vm609_vm5, %v20907_v11, 0.0  ;;  %v8045_v5 = vmul.f32 %v20907_v11, %v20907_v11  ;;  %v20919_v18 = vmax.f32 %v12176_v33, 0.0 }
 0x456   : > { %v20921_v15 = vpop.f32.mrb[56].mxu1  ;;  %v8085_v30 = vadd.f32 %v8084_v55, %v8083_v2  ;;  %v7986_v7 = vadd.f32 %v7985_v35, %v7984_v32  ;;  %v12475_v60 = vadd.f32 %v12474_v34, %v12473_v16  ;;  %v12576_v25 = vadd.f32 %v12575_v28, %v12574_v0 }
 0x457   : > { %21946 = vst [vmem:[#allocation29_spill] sm:$0xff] %v20919_v18  ;;  %v20923_v59 = vpop.f32.mrb[57].mxu1  ;;  %v12536_v27 = vmul.f32 %v20902_v44, %v20902_v44  ;;  %v8088_v12 = vsel %vm609_vm5, %v8045_v5, 0.0  ;;  %v12476_v22 = vsel %vm609_vm5, %v20919_v18, 0.0  ;;  %v12534_v54 = vmul.f32 %v20919_v18, %v20919_v18 }
 0x458   : > { %v20932_v33 = vpop.f32.mrb[56].mxu0  ;;  %v20934_v11 = vpop.f32.mrb[58].mxu1  ;;  %v7988_v2 = vadd.f32 %v7987_v47, %v7986_v7  ;;  %v8087_v32 = vadd.f32 %v8086_v62, %v8085_v30  ;;  %v12477_v55 = vadd.f32 %v12476_v22, %v12475_v60  ;;  %v7690_v16 = vadd.f32 %v20757_v1, %v20614_v43 }
 0x459   : > { %v20938_v35 = vpop.f32.mrb[57].mxu0  ;;  %v20940_v34 = vpop.f32.mrb[59].mxu1  ;;  %v12577_v0 = vsel %vm609_vm5, %v12534_v54, 0.0  ;;  %v12179_v28 = vadd.f32 %v20775_v19, %v20619_v39  ;;  %v12177_v5 = vadd.f32 %v20619_v39, %v20780_v37  ;;  %v14036_v47 = vpack.c.bf16 %v20678_v56, %v20678_v56 }
 0x45a   : > { %v20949_v62 = vpop.f32.mrb[58].mxu0  ;;  %v8089_v30 = vadd.f32 %v8088_v12, %v8087_v32  ;;  %v12578_v7 = vadd.f32 %v12577_v0, %v12576_v25  ;;  %v20951_v1 = vmax.f32 %v7690_v16, 0.0  ;;  %v14037_v60 = vpack.c.bf16 %v20731_v61, %v20731_v61 }
 0x45b   : > { %v20955_v22 = vpop.f32.mrb[59].mxu0  ;;  %v7991_v19 = vsel %vm609_vm5, %v20880_v52, 0.0  ;;  %v20959_v54 = vmax.f32 %v12179_v28, 0.0  ;;  %v20961_v37 = vmax.f32 %v12177_v5, 0.0  ;;  %12336 = vrot.lane.b32.xlu0 %v14036_v47, %s16378_s24  ;;  %v7688_v56 = vadd.f32 %v20614_v43, %v20767_v46 }
 0x45c   : > { %v8092_v25 = vsel %vm609_vm5, %v8047_v21, 0.0  ;;  %v12480_v12 = vsel %vm609_vm5, %v20902_v44, 0.0  ;;  %v12581_v61 = vsel %vm609_vm5, %v12536_v27, 0.0  ;;  %12338 = vrot.lane.b32.xlu1 %v14037_v60, %s16378_s24  ;;  %v7693_v32 = vadd.f32 %v20795_v45, %v20614_v43 }
 0x45d   : > { %21947 = vst [vmem:[#allocation8_spill] sm:$0xff] %v20959_v54  ;;  %21948 = vst [vmem:[#allocation14_spill] sm:$0xff] %v20961_v37  ;;  %v8048_v16 = vmul.f32 %v20951_v1, %v20951_v1  ;;  %v12478_v0 = vsel %vm609_vm5, %v20961_v37, 0.0  ;;  %v12535_v46 = vmul.f32 %v20961_v37, %v20961_v37  ;;  %v14002_v21 = vpack.c.bf16 %v20680_v38, %v20680_v38 }
 0x45e   : > { %v20981_v28 = vpop.f32.mrb[60].mxu1  ;;  %v12537_v27 = vmul.f32 %v20959_v54, %v20959_v54  ;;  %v12479_v5 = vadd.f32 %v12478_v0, %v12477_v55  ;;  %v20985_v47 = vmax.f32 %v7688_v56, 0.0  ;;  %v14003_v45 = vpack.c.bf16 %v20741_v13, %v20741_v13 }
 0x45f   : > { %v20989_v60 = vpop.f32.mrb[61].mxu1  ;;  %v12579_v18 = vsel %vm609_vm5, %v12535_v46, 0.0  ;;  %7843 = vrot.lane.b32.xlu0 %v14002_v21, %s16379_s26  ;;  %v20993_v37 = vmax.f32 %v7693_v32, 0.0  ;;  %v12182_v38 = vadd.f32 %v20809_v26, %v20619_v39  ;;  %v7691_v44 = vadd.f32 %v20614_v43, %v20801_v3 }
 0x460   : > { %21949 = vst [vmem:[#allocation9_spill] sm:$0xff] %v20985_v47  ;;  %21950 = vst [vmem:[#allocation10_spill] sm:$0xff] %v20989_v60  ;;  %v20999_v55 = vpop.f32.mrb[60].mxu0  ;;  %v21001_v56 = vpop.f32.mrb[62].mxu1  ;;  %v12481_v0 = vadd.f32 %v12480_v12, %v12479_v5  ;;  %v12580_v13 = vadd.f32 %v12579_v18, %v12578_v7  ;;  %v7989_v60 = vsel %vm609_vm5, %v20985_v47, 0.0  ;;  %v8046_v46 = vmul.f32 %v20985_v47, %v20985_v47 }
 0x461   : > { %21951 = vst [vmem:[#allocation11_spill] sm:$0xff] %v20999_v55  ;;  %21952 = vst [vmem:[#allocation13_spill] sm:$0xff] %v21001_v56  ;;  %7845 = vrot.lane.b32.xlu1 %v14003_v45, %s16379_s26  ;;  %v21008_v32 = vpop.f32.mrb[61].mxu0  ;;  %v21010_v26 = vpop.f32.mrb[63].mxu1  ;;  %v7993_v3 = vsel %vm609_vm5, %v20951_v1, 0.0  ;;  %v12482_v21 = vsel %vm609_vm5, %v20959_v54, 0.0  ;;  %v7990_v12 = vadd.f32 %v7989_v60, %v7988_v2  ;;  %v12180_v45 = vadd.f32 %v20619_v39, %v20819_v53 }
 0x462   : > { %21953 = vst [vmem:[#allocation15_spill] sm:$0xff] %v21008_v32  ;;  %21954 = vst [vmem:[#allocation16_spill] sm:$0xff] %v21010_v26  ;;  %v21016_v18 = vmax.f32 %v12182_v38, 0.0  ;;  %v21018_v7 = vpop.f32.mrb[62].mxu0  ;;  %v12582_v5 = vadd.f32 %v12581_v61, %v12580_v13  ;;  %v8090_v47 = vsel %vm609_vm5, %v8046_v46, 0.0  ;;  %v21021_v56 = vmax.f32 %v7691_v44, 0.0 }
 0x463   : > { %v21025_v26 = vpop.f32.mrb[63].mxu0  ;;  %v8094_v32 = vsel %vm609_vm5, %v8048_v16, 0.0  ;;  %v12583_v55 = vsel %vm609_vm5, %v12537_v27, 0.0  ;;  %v7992_v54 = vadd.f32 %v7991_v19, %v7990_v12  ;;  %v8091_v2 = vadd.f32 %v8090_v47, %v8089_v30 }
 0x464   : > { %21955 = vst [vmem:[#allocation17_spill] sm:$0xff] %v21021_v56  ;;  %21956 = vst [vmem:[#allocation18_spill] sm:$0xff] %v21025_v26  ;;  %v8051_v60 = vmul.f32 %v20993_v37, %v20993_v37  ;;  %v7995_v61 = vsel %vm609_vm5, %v21021_v56, 0.0  ;;  %v8049_v44 = vmul.f32 %v21021_v56, %v21021_v56  ;;  %v21035_v38 = vmax.f32 %v12180_v45, 0.0 }
 0x465   : > { %v8093_v53 = vadd.f32 %v8092_v25, %v8091_v2  ;;  %v7994_v13 = vadd.f32 %v7993_v3, %v7992_v54  ;;  %v12483_v46 = vadd.f32 %v12482_v21, %v12481_v0  ;;  %v12584_v26 = vadd.f32 %v12583_v55, %v12582_v5 }
 0x466   : > { %v12540_v16 = vmul.f32 %v21016_v18, %v21016_v18  ;;  %v8096_v30 = vsel %vm609_vm5, %v8049_v44, 0.0  ;;  %v12484_v19 = vsel %vm609_vm5, %v21035_v38, 0.0  ;;  %v12538_v27 = vmul.f32 %v21035_v38, %v21035_v38 }
 0x467   : > { %v7996_v47 = vadd.f32 %v7995_v61, %v7994_v13  ;;  %v8095_v12 = vadd.f32 %v8094_v32, %v8093_v53  ;;  %v12485_v56 = vadd.f32 %v12484_v19, %v12483_v46  ;;  %v7694_v25 = vadd.f32 %v20811_v6, %v20614_v43 }
 0x468   : > { %v12585_v54 = vsel %vm609_vm5, %v12538_v27, 0.0  ;;  %v12183_v55 = vadd.f32 %v20826_v23, %v20619_v39  ;;  %v12181_v0 = vadd.f32 %v20619_v39, %v20833_v31  ;;  %v14034_v3 = vpack.c.bf16 %v20683_v49, %v20683_v49 }
 0x469   : > { %v8097_v21 = vadd.f32 %v8096_v30, %v8095_v12  ;;  %v12586_v5 = vadd.f32 %v12585_v54, %v12584_v26  ;;  %v21053_v45 = vmax.f32 %v7694_v25, 0.0  ;;  %v14035_v32 = vpack.c.bf16 %v20733_v51, %v20733_v51 }
 0x46a   : > { %v7999_v6 = vsel %vm609_vm5, %v20993_v37, 0.0  ;;  %v21059_v2 = vmax.f32 %v12183_v55, 0.0  ;;  %v21061_v61 = vmax.f32 %v12181_v0, 0.0  ;;  %12332 = vrot.lane.b32.xlu0 %v14034_v3, %s16378_s24  ;;  %v7692_v23 = vadd.f32 %v20614_v43, %v20821_v40 }
 0x46b   : > { %v8100_v49 = vsel %vm609_vm5, %v8051_v60, 0.0  ;;  %v12488_v31 = vsel %vm609_vm5, %v21016_v18, 0.0  ;;  %v12589_v26 = vsel %vm609_vm5, %v12540_v16, 0.0  ;;  %12334 = vrot.lane.b32.xlu1 %v14035_v32, %s16378_s24  ;;  %v7697_v51 = vadd.f32 %v20857_v20, %v20614_v43 }
 0x46c   : > { %v8052_v44 = vmul.f32 %v21053_v45, %v21053_v45  ;;  %v12486_v53 = vsel %vm609_vm5, %v21061_v61, 0.0  ;;  %v12539_v40 = vmul.f32 %v21061_v61, %v21061_v61  ;;  %v14008_v60 = vpack.c.bf16 %v20783_v17, %v20783_v17 }
 0x46d   : > { %v12541_v13 = vmul.f32 %v21059_v2, %v21059_v2  ;;  %v12487_v46 = vadd.f32 %v12486_v53, %v12485_v56  ;;  %v21083_v16 = vmax.f32 %v7692_v23, 0.0  ;;  %v14009_v20 = vpack.c.bf16 %v20835_v63, %v20835_v63 }
 0x46e   : > { %v12587_v30 = vsel %vm609_vm5, %v12539_v40, 0.0  ;;  %7855 = vrot.lane.b32.xlu0 %v14008_v60, %s16379_s26  ;;  %v21089_v19 = vmax.f32 %v7697_v51, 0.0  ;;  %v12186_v27 = vadd.f32 %v20875_v36, %v20619_v39  ;;  %v7695_v17 = vadd.f32 %v20614_v43, %v20867_v42 }
 0x46f   : > { %v12489_v12 = vadd.f32 %v12488_v31, %v12487_v46  ;;  %v12588_v25 = vadd.f32 %v12587_v30, %v12586_v5  ;;  %v7997_v56 = vsel %vm609_vm5, %v21083_v16, 0.0  ;;  %v8050_v63 = vmul.f32 %v21083_v16, %v21083_v16  ;;  %7857 = vrot.lane.b32.xlu1 %v14009_v20, %s16379_s26 }
 0x470   : > { %v8001_v54 = vsel %vm609_vm5, %v21053_v45, 0.0  ;;  %v12490_v55 = vsel %vm609_vm5, %v21059_v2, 0.0  ;;  %v7998_v36 = vadd.f32 %v7997_v56, %v7996_v47  ;;  %v21104_v0 = vmax.f32 %v12186_v27, 0.0 }
 0x471   : > { %v12590_v42 = vadd.f32 %v12589_v26, %v12588_v25  ;;  %v8098_v3 = vsel %vm609_vm5, %v8050_v63, 0.0  ;;  %v21107_v5 = vmax.f32 %v7695_v17, 0.0  ;;  %v12184_v32 = vadd.f32 %v20619_v39, %v20886_v29 }
 0x472   : > { %v8102_v23 = vsel %vm609_vm5, %v8052_v44, 0.0  ;;  %v12591_v31 = vsel %vm609_vm5, %v12541_v13, 0.0  ;;  %v8000_v51 = vadd.f32 %v7999_v6, %v7998_v36  ;;  %v8099_v53 = vadd.f32 %v8098_v3, %v8097_v21 }
 0x473   : > { %v8055_v40 = vmul.f32 %v21089_v19, %v21089_v19  ;;  %v8003_v47 = vsel %vm609_vm5, %v21107_v5, 0.0  ;;  %v8053_v26 = vmul.f32 %v21107_v5, %v21107_v5  ;;  %v21119_v60 = vmax.f32 %v12184_v32, 0.0 }
 0x474   : > { %v8101_v46 = vadd.f32 %v8100_v49, %v8099_v53  ;;  %v8002_v20 = vadd.f32 %v8001_v54, %v8000_v51  ;;  %v12491_v29 = vadd.f32 %v12490_v55, %v12489_v12  ;;  %v12592_v30 = vadd.f32 %v12591_v31, %v12590_v42 }
 0x475   : > { %v12544_v44 = vmul.f32 %v21104_v0, %v21104_v0  ;;  %v8104_v21 = vsel %vm609_vm5, %v8053_v26, 0.0  ;;  %v12492_v6 = vsel %vm609_vm5, %v21119_v60, 0.0  ;;  %v12542_v13 = vmul.f32 %v21119_v60, %v21119_v60 }
 0x476   : > { %v8004_v27 = vadd.f32 %v8003_v47, %v8002_v20  ;;  %v8103_v17 = vadd.f32 %v8102_v23, %v8101_v46  ;;  %v12493_v25 = vadd.f32 %v12492_v6, %v12491_v29  ;;  %v7698_v49 = vadd.f32 %v20877_v58, %v20614_v43 }
 0x477   : > { %v12593_v12 = vsel %vm609_vm5, %v12542_v13, 0.0  ;;  %v12187_v56 = vadd.f32 %v20896_v41, %v20619_v39  ;;  %v12185_v63 = vadd.f32 %v20619_v39, %v20904_v14  ;;  %v14040_v54 = vpack.c.bf16 %v20787_v50, %v20787_v50 }
 0x478   : > { %v8105_v55 = vadd.f32 %v8104_v21, %v8103_v17  ;;  %v12594_v36 = vadd.f32 %v12593_v12, %v12592_v30  ;;  %v21137_v42 = vmax.f32 %v7698_v49, 0.0  ;;  %v14041_v3 = vpack.c.bf16 %v20843_v9, %v20843_v9 }
 0x479   : > { %v8007_v58 = vsel %vm609_vm5, %v21089_v19, 0.0  ;;  %v21143_v32 = vmax.f32 %v12187_v56, 0.0  ;;  %v21145_v23 = vmax.f32 %v12185_v63, 0.0  ;;  %12344 = vrot.lane.b32.xlu0 %v14040_v54, %s16378_s24  ;;  %v7696_v41 = vadd.f32 %v20614_v43, %v20888_v10 }
 0x47a   : > { %v8108_v50 = vsel %vm609_vm5, %v8055_v40, 0.0  ;;  %v12496_v14 = vsel %vm609_vm5, %v21104_v0, 0.0  ;;  %v12597_v31 = vsel %vm609_vm5, %v12544_v44, 0.0  ;;  %12346 = vrot.lane.b32.xlu1 %v14041_v3, %s16378_s24  ;;  %v7701_v9 = vadd.f32 %v20921_v15, %v20614_v43 }
 0x47b   : > { %v8056_v51 = vmul.f32 %v21137_v42, %v21137_v42  ;;  %v12494_v53 = vsel %vm609_vm5, %v21145_v23, 0.0  ;;  %v12543_v10 = vmul.f32 %v21145_v23, %v21145_v23  ;;  %v14006_v40 = vpack.c.bf16 %v20793_v8, %v20793_v8 }
 0x47c   : > { %v12545_v47 = vmul.f32 %v21143_v32, %v21143_v32  ;;  %v12495_v26 = vadd.f32 %v12494_v53, %v12493_v25  ;;  %v21167_v46 = vmax.f32 %v7696_v41, 0.0  ;;  %v14007_v15 = vpack.c.bf16 %v20871_v57, %v20871_v57 }
 0x47d   : > { %v12595_v20 = vsel %vm609_vm5, %v12543_v10, 0.0  ;;  %7851 = vrot.lane.b32.xlu0 %v14006_v40, %s16379_s26  ;;  %v21173_v29 = vmax.f32 %v7701_v9, 0.0  ;;  %v12190_v30 = vadd.f32 %v20932_v33, %v20619_v39  ;;  %v7699_v8 = vadd.f32 %v20614_v43, %v20923_v59 }
 0x47e   : > { %v12497_v44 = vadd.f32 %v12496_v14, %v12495_v26  ;;  %v12596_v21 = vadd.f32 %v12595_v20, %v12594_v36  ;;  %v8005_v6 = vsel %vm609_vm5, %v21167_v46, 0.0  ;;  %v8054_v57 = vmul.f32 %v21167_v46, %v21167_v46  ;;  %7853 = vrot.lane.b32.xlu1 %v14007_v15, %s16379_s26 }
 0x47f   : > { %v8009_v13 = vsel %vm609_vm5, %v21137_v42, 0.0  ;;  %v12498_v17 = vsel %vm609_vm5, %v21143_v32, 0.0  ;;  %v8006_v33 = vadd.f32 %v8005_v6, %v8004_v27  ;;  %v21188_v25 = vmax.f32 %v12190_v30, 0.0 }
 0x480   : > { %v12598_v59 = vadd.f32 %v12597_v31, %v12596_v21  ;;  %v8106_v49 = vsel %vm609_vm5, %v8054_v57, 0.0  ;;  %v21191_v12 = vmax.f32 %v7699_v8, 0.0  ;;  %v12188_v56 = vadd.f32 %v20619_v39, %v20938_v35 }
 0x481   : > { %v8110_v63 = vsel %vm609_vm5, %v8056_v51, 0.0  ;;  %v12599_v54 = vsel %vm609_vm5, %v12545_v47, 0.0  ;;  %v8008_v36 = vadd.f32 %v8007_v58, %v8006_v33  ;;  %v8107_v3 = vadd.f32 %v8106_v49, %v8105_v55 }
 0x482   : > { %v8059_v41 = vmul.f32 %v21173_v29, %v21173_v29  ;;  %v8011_v27 = vsel %vm609_vm5, %v21191_v12, 0.0  ;;  %v8057_v14 = vmul.f32 %v21191_v12, %v21191_v12  ;;  %v21203_v31 = vmax.f32 %v12188_v56, 0.0 }
 0x483   : > { %v8109_v9 = vadd.f32 %v8108_v50, %v8107_v3  ;;  %v8010_v53 = vadd.f32 %v8009_v13, %v8008_v36  ;;  %v12499_v35 = vadd.f32 %v12498_v17, %v12497_v44  ;;  %v12600_v10 = vadd.f32 %v12599_v54, %v12598_v59 }
 0x484   : > { %v12548_v51 = vmul.f32 %v21188_v25, %v21188_v25  ;;  %v8112_v55 = vsel %vm609_vm5, %v8057_v14, 0.0  ;;  %v12500_v58 = vsel %vm609_vm5, %v21203_v31, 0.0  ;;  %v12546_v40 = vmul.f32 %v21203_v31, %v21203_v31 }
 0x485   : > { %v8012_v47 = vadd.f32 %v8011_v27, %v8010_v53  ;;  %v8111_v26 = vadd.f32 %v8110_v63, %v8109_v9  ;;  %v12501_v15 = vadd.f32 %v12500_v58, %v12499_v35  ;;  %v7702_v50 = vadd.f32 %v20934_v11, %v20614_v43  ;;  %v21959_v58 = vld [vmem:[#allocation11_spill] sm:$0xff] }
 0x486   : > { %v12601_v20 = vsel %vm609_vm5, %v12546_v40, 0.0  ;;  %v12191_v30 = vadd.f32 %v20949_v62, %v20619_v39  ;;  %v12189_v8 = vadd.f32 %v20619_v39, %v20955_v22  ;;  %v14038_v44 = vpack.c.bf16 %v20799_v24, %v20799_v24 }
 0x487   : > { %v8113_v21 = vadd.f32 %v8112_v55, %v8111_v26  ;;  %v12602_v6 = vadd.f32 %v12601_v20, %v12600_v10  ;;  %v21221_v57 = vmax.f32 %v7702_v50, 0.0  ;;  %v14039_v13 = vpack.c.bf16 %v20845_v48, %v20845_v48  ;;  %v21960_v50 = vld [vmem:[#allocation15_spill] sm:$0xff] }
 0x488   : > { %v21225_v17 = vmax.f32 %v12191_v30, 0.0  ;;  %v21227_v11 = vmax.f32 %v12189_v8, 0.0  ;;  %12340 = vrot.lane.b32.xlu0 %v14038_v44, %s16378_s24  ;;  %v7700_v62 = vadd.f32 %v20614_v43, %v20940_v34  ;;  %v21957_v22 = vrot.slane %v19236_v4, 4 }
 0x489   : > { %v8015_v33 = vsel %vm609_vm5, %v21173_v29, 0.0  ;;  %v8116_v59 = vsel %vm609_vm5, %v8059_v41, 0.0  ;;  %v12504_v48 = vsel %vm609_vm5, %v21188_v25, 0.0  ;;  %12342 = vrot.lane.b32.xlu1 %v14039_v13, %s16378_s24  ;;  %v12605_v49 = vsel %vm609_vm5, %v12548_v51, 0.0 }
 0x48a   : > { %v21235_v24 = vadd.f32 %v21957_v22, %v19236_v4  ;;  %v12502_v34 = vsel %vm609_vm5, %v21227_v11, 0.0  ;;  %v12547_v56 = vmul.f32 %v21227_v11, %v21227_v11  ;;  %v14012_v4 = vpack.c.bf16 %v20880_v52, %v20880_v52  ;;  %v21958_v52 = vld [vmem:[#allocation10_spill] sm:$0xff] }
 0x48b   : > { %v8060_v63 = vmul.f32 %v21221_v57, %v21221_v57  ;;  %v12503_v54 = vadd.f32 %v12502_v34, %v12501_v15  ;;  %v21252_v36 = vmax.f32 %v7700_v62, 0.0  ;;  %v14013_v3 = vpack.c.bf16 %v20951_v1, %v20951_v1 }
 0x48c   : > { %v12549_v41 = vmul.f32 %v21225_v17, %v21225_v17  ;;  %v12603_v27 = vsel %vm609_vm5, %v12547_v56, 0.0  ;;  %7863 = vrot.lane.b32.xlu0 %v14012_v4, %s16379_s26  ;;  %v7705_v14 = vadd.f32 %v20981_v28, %v20614_v43  ;;  %v7703_v9 = vadd.f32 %v20614_v43, %v21958_v52  ;;  %v16353_v52 = vld [vmem:[%s21613_s2 + $0x2] ss:$0 sm:$0xff] }
 0x48d   : > { %v12505_v53 = vadd.f32 %v12504_v48, %v12503_v54  ;;  %v12604_v35 = vadd.f32 %v12603_v27, %v12602_v6  ;;  %v8013_v10 = vsel %vm609_vm5, %v21252_v36, 0.0  ;;  %v8058_v1 = vmul.f32 %v21252_v36, %v21252_v36  ;;  %7865 = vrot.lane.b32.xlu1 %v14013_v3, %s16379_s26 }
 0x48e   : > { %v8017_v51 = vsel %vm609_vm5, %v21221_v57, 0.0  ;;  %v12506_v55 = vsel %vm609_vm5, %v21225_v17, 0.0  ;;  %v8014_v28 = vadd.f32 %v8013_v10, %v8012_v47  ;;  %v12194_v43 = vadd.f32 %v21959_v58, %v20619_v39  ;;  %v21963_v10 = vld [vmem:[#allocation7_spill] sm:$0xff] }
 0x48f   : > { %v12606_v40 = vadd.f32 %v12605_v49, %v12604_v35  ;;  %v8114_v26 = vsel %vm609_vm5, %v8058_v1, 0.0  ;;  %v21276_v15 = vmax.f32 %v7703_v9, 0.0  ;;  %v12192_v20 = vadd.f32 %v20619_v39, %v21960_v50 }
 0x490   : > { %v8118_v30 = vsel %vm609_vm5, %v8060_v63, 0.0  ;;  %v8016_v8 = vadd.f32 %v8015_v33, %v8014_v28  ;;  %v8115_v44 = vadd.f32 %v8114_v26, %v8113_v21  ;;  %v21281_v6 = vmax.f32 %v7705_v14, 0.0  ;;  %v21964_v28 = vld [vmem:[#allocation8_spill] sm:$0xff] }
 0x491   : > { %v12607_v13 = vsel %vm609_vm5, %v12549_v41, 0.0  ;;  %v8019_v47 = vsel %vm609_vm5, %v21276_v15, 0.0  ;;  %v8061_v62 = vmul.f32 %v21276_v15, %v21276_v15  ;;  %v21288_v22 = vmax.f32 %v12192_v20, 0.0  ;;  %v21961_v41 = vld [vmem:[#allocation13_spill] sm:$0xff] }
 0x492   : > { %v8117_v48 = vadd.f32 %v8116_v59, %v8115_v44  ;;  %v8018_v49 = vadd.f32 %v8017_v51, %v8016_v8  ;;  %v12507_v34 = vadd.f32 %v12506_v55, %v12505_v53  ;;  %v12608_v39 = vadd.f32 %v12607_v13, %v12606_v40  ;;  %v16352_v59 = vld [vmem:[%s21613_s2 + $0x1] ss:$0 sm:$0xff] }
 0x493   : > { %v21290_v56 = vmax.f32 %v12194_v43, 0.0  ;;  %v8120_v21 = vsel %vm609_vm5, %v8061_v62, 0.0  ;;  %v12508_v33 = vsel %vm609_vm5, %v21288_v22, 0.0  ;;  %v12550_v4 = vmul.f32 %v21288_v22, %v21288_v22  ;;  %v21962_v53 = vld [vmem:[#allocation18_spill] sm:$0xff] }
 0x494   : > { %v8020_v63 = vadd.f32 %v8019_v47, %v8018_v49  ;;  %v8119_v54 = vadd.f32 %v8118_v30, %v8117_v48  ;;  %v12509_v3 = vadd.f32 %v12508_v33, %v12507_v34  ;;  %v7706_v27 = vadd.f32 %v16352_v59, %v21961_v41  ;;  %v21966_v30 = vld [vmem:[#allocation6_spill] sm:$0xff]  ;;  %v21967_v48 = vld [vmem:[#allocation12_spill] sm:$0xff]  ;;  %v21968_v33 = vld [vmem:[#allocation9_spill] sm:$0xff] }
 0x495   : > { %v12609_v14 = vsel %vm609_vm5, %v12550_v4, 0.0  ;;  %v12195_v9 = vadd.f32 %v16353_v52, %v21018_v7  ;;  %v12193_v35 = vadd.f32 %v16353_v52, %v21962_v53  ;;  %v14044_v1 = vpack.c.bf16 %v21963_v10, %v21963_v10  ;;  %v21965_v7 = vld [vmem:[#allocation16_spill] sm:$0xff] }
 0x496   : > { %v8121_v51 = vadd.f32 %v8120_v21, %v8119_v54  ;;  %v12610_v55 = vadd.f32 %v12609_v14, %v12608_v39  ;;  %v14045_v58 = vpack.c.bf16 %v21964_v28, %v21964_v28  ;;  %v12552_v43 = vmul.f32 %v21290_v56, %v21290_v56 }
 0x497   : > { %v21313_v40 = vmax.f32 %v12195_v9, 0.0  ;;  %v21315_v26 = vmax.f32 %v12193_v35, 0.0  ;;  %12352 = vrot.lane.b32.xlu0 %v14044_v1, %s16378_s24  ;;  %v7704_v50 = vadd.f32 %v16352_v59, %v21965_v7  ;;  %v3561_v20 = vrot.slane %v21235_v24, 2  ;;  %v21969_v1 = vld [vmem:[#allocation29_spill] sm:$0xff]  ;;  %v21970_v7 = vld [vmem:[#allocation14_spill] sm:$0xff] }
 0x498   : > { %v3660_v8 = vrot.slane %v21966_v30, 4  ;;  %v8023_v44 = vsel %vm609_vm5, %v21281_v6, 0.0  ;;  %12354 = vrot.lane.b32.xlu1 %v14045_v58, %s16378_s24  ;;  %v21324_v13 = vmax.f32 %v7706_v27, 0.0  ;;  %v14010_v49 = vpack.c.bf16 %v21967_v48, %v21967_v48 }
 0x499   : > { %v12510_v47 = vsel %vm609_vm5, %v21315_v26, 0.0  ;;  %v12551_v62 = vmul.f32 %v21315_v26, %v21315_v26  ;;  %v8063_v34 = vmul.f32 %v21281_v6, %v21281_v6  ;;  %v21334_v21 = vmax.f32 %v7704_v50, 0.0 }
 0x49a   : > { %v12511_v39 = vadd.f32 %v12510_v47, %v12509_v3  ;;  %v14011_v4 = vpack.c.bf16 %v21968_v33, %v21968_v33  ;;  %v12512_v54 = vsel %vm609_vm5, %v21290_v56, 0.0  ;;  %v12613_v59 = vsel %vm609_vm5, %v12552_v43, 0.0 }
 0x49b   : > { %v12553_v41 = vmul.f32 %v21313_v40, %v21313_v40  ;;  %v12611_v27 = vsel %vm609_vm5, %v12551_v62, 0.0  ;;  %7859 = vrot.lane.b32.xlu0 %v14010_v49, %s16379_s26  ;;  %v8021_v3 = vsel %vm609_vm5, %v21334_v21, 0.0  ;;  %v8062_v9 = vmul.f32 %v21334_v21, %v21334_v21 }
 0x49c   : > { %v12513_v14 = vadd.f32 %v12512_v54, %v12511_v39  ;;  %v12612_v52 = vadd.f32 %v12611_v27, %v12610_v55  ;;  %7861 = vrot.lane.b32.xlu1 %v14011_v4, %s16379_s26  ;;  %v8064_v53 = vmul.f32 %v21324_v13, %v21324_v13  ;;  %v12514_v35 = vsel %vm609_vm5, %v21313_v40, 0.0 }
 0x49d   : > { %v8022_v10 = vadd.f32 %v8021_v3, %v8020_v63  ;;  %v14042_v28 = vpack.c.bf16 %v21969_v1, %v21969_v1  ;;  %v8122_v43 = vsel %vm609_vm5, %v8062_v9, 0.0  ;;  %v14043_v50 = vpack.c.bf16 %v21970_v7, %v21970_v7 }
 0x49e   : > { %v12515_v58 = vadd.f32 %v12514_v35, %v12513_v14  ;;  %v12614_v55 = vadd.f32 %v12613_v59, %v12612_v52  ;;  %v3661_v47 = vadd.f32 %v3660_v8, %v21966_v30  ;;  %v12615_v62 = vsel %vm609_vm5, %v12553_v41, 0.0 }
 0x49f   : > { %v8024_v48 = vadd.f32 %v8023_v44, %v8022_v10  ;;  %v8123_v49 = vadd.f32 %v8122_v43, %v8121_v51  ;;  %12348 = vrot.lane.b32.xlu0 %v14042_v28, %s16378_s24  ;;  %v8124_v63 = vsel %vm609_vm5, %v8063_v34, 0.0  ;;  %v8025_v39 = vsel %vm609_vm5, %v21324_v13, 0.0 }
 0x4a0   : > { %v12516_v33 = vrot.slane %v12515_v58, 4  ;;  %v12616_v4 = vadd.f32 %v12615_v62, %v12614_v55  ;;  %12350 = vrot.lane.b32.xlu1 %v14043_v50, %s16378_s24  ;;  %v14016_v30 = vpack.c.bf16 %v20993_v37, %v20993_v37  ;;  %v8126_v8 = vsel %vm609_vm5, %v8064_v53, 0.0 }
 0x4a1   : > { %v8026_v54 = vadd.f32 %v8025_v39, %v8024_v48  ;;  %v8125_v59 = vadd.f32 %v8124_v63, %v8123_v49  ;;  %v14017_v41 = vpack.c.bf16 %v21053_v45, %v21053_v45  ;;  %v3662_v34 = vrot.slane %v3661_v47, 2  ;;  %v21971_v48 = vld [vmem:[#allocation17_spill] sm:$0xff] }
 0x4a2   : > { %v12517_v44 = vadd.f32 %v12516_v33, %v12515_v58  ;;  %v12617_v51 = vrot.slane %v12616_v4, 4  ;;  %v3562_v52 = vadd.f32 %v3561_v20, %v21235_v24  ;;  %v14048_v53 = vpack.c.bf16 %v21016_v18, %v21016_v18 }
 0x4a3   : > { %v8027_v27 = vrot.slane %v8026_v54, 4  ;;  %v8127_v14 = vadd.f32 %v8126_v8, %v8125_v59  ;;  %7871 = vrot.lane.b32.xlu0 %v14016_v30, %s16379_s26  ;;  %v14049_v45 = vpack.c.bf16 %v21059_v2, %v21059_v2  ;;  %v3663_v28 = vadd.f32 %v3662_v34, %v3661_v47  ;;  %v12329_v18 = vpop.permute.xlu0 %12328 }
 0x4a4   : > { %v12518_v3 = vrot.slane %v12517_v44, 2  ;;  %v12618_v9 = vadd.f32 %v12617_v51, %v12616_v4  ;;  %7873 = vrot.lane.b32.xlu1 %v14017_v41, %s16379_s26  ;;  %v7840_v24 = vpop.permute.xlu1 %7839  ;;  %v3563_v20 = vrot.slane %v3562_v52, 1  ;;  %v14014_v2 = vpack.c.bf16 %v21971_v48, %v21971_v48 }
 0x4a5   : > { %v8028_v35 = vadd.f32 %v8027_v27, %v8026_v54  ;;  %v8128_v37 = vrot.slane %v8127_v14, 4  ;;  %v14015_v49 = vpack.c.bf16 %v21083_v16, %v21083_v16  ;;  %7934 = vst.msk [vmem:[%s18829_s25 + $0x8] sm:$0xf] %vm7931_vm11, %v7840_v24  ;;  %v3664_v63 = vrot.slane %v3663_v28, 1 }
 0x4a6   : > { %v12519_v10 = vadd.f32 %v12518_v3, %v12517_v44  ;;  %v12619_v1 = vrot.slane %v12618_v9, 2  ;;  %12423 = vst.msk [vmem:[%s18829_s25 + $0x8] sm:$0xf] %vm12420_vm12, %v12329_v18  ;;  %v3564_v54 = vadd.f32 %v3563_v20, %v3562_v52  ;;  %v14046_v16 = vpack.c.bf16 %v21035_v38, %v21035_v38 }
 0x4a7   : > { %v8029_v58 = vrot.slane %v8028_v35, 2  ;;  %v8129_v55 = vadd.f32 %v8128_v37, %v8127_v14  ;;  %12360 = vrot.lane.b32.xlu0 %v14048_v53, %s16378_s24  ;;  %v14047_v44 = vpack.c.bf16 %v21061_v61, %v21061_v61  ;;  %v3665_v51 = vadd.f32 %v3664_v63, %v3663_v28 }
 0x4a8   : > { %v12520_v43 = vrot.slane %v12519_v10, 1  ;;  %v12620_v7 = vadd.f32 %v12619_v1, %v12618_v9  ;;  %12362 = vrot.lane.b32.xlu1 %v14049_v45, %s16378_s24  ;;  %v14020_v61 = vpack.c.bf16 %v21089_v19, %v21089_v19  ;;  %v14021_v9 = vpack.c.bf16 %v21137_v42, %v21137_v42 }
 0x4a9   : > { %v8030_v50 = vadd.f32 %v8029_v58, %v8028_v35  ;;  %v8130_v62 = vrot.slane %v8129_v55, 2  ;;  %v14052_v19 = vpack.c.bf16 %v21104_v0, %v21104_v0  ;;  %v14053_v42 = vpack.c.bf16 %v21143_v32, %v21143_v32 }
 0x4aa   : > { %v12621_v47 = vrot.slane %v12620_v7, 1  ;;  %v12521_v4 = vadd.f32 %v12520_v43, %v12519_v10  ;;  %v14018_v53 = vpack.c.bf16 %v21107_v5, %v21107_v5  ;;  %v14019_v10 = vpack.c.bf16 %v21167_v46, %v21167_v46 }
 0x4ab   : > { %v8031_v39 = vrot.slane %v8030_v50, 1  ;;  %v8131_v33 = vadd.f32 %v8130_v62, %v8129_v55  ;;  %7867 = vrot.lane.b32.xlu0 %v14014_v2, %s16379_s26  ;;  %v14050_v0 = vpack.c.bf16 %v21119_v60, %v21119_v60  ;;  %v14051_v32 = vpack.c.bf16 %v21145_v23, %v21145_v23 }
 0x4ac   : > { %7869 = vrot.lane.b32.xlu1 %v14015_v49, %s16379_s26  ;;  %v12622_v8 = vadd.f32 %v12621_v47, %v12620_v7  ;;  %v14024_v5 = vpack.c.bf16 %v21173_v29, %v21173_v29  ;;  %v14025_v46 = vpack.c.bf16 %v21221_v57, %v21221_v57  ;;  %v14056_v29 = vpack.c.bf16 %v21188_v25, %v21188_v25 }
 0x4ad   : > { %v8032_v59 = vadd.f32 %v8031_v39, %v8030_v50  ;;  %v8132_v30 = vrot.slane %v8131_v33, 1  ;;  %v14057_v28 = vpack.c.bf16 %v21225_v17, %v21225_v17  ;;  %v14022_v57 = vpack.c.bf16 %v21191_v12, %v21191_v12 }
 0x4ae   : > { %v14023_v58 = vpack.c.bf16 %v21252_v36, %v21252_v36  ;;  %v14054_v25 = vpack.c.bf16 %v21203_v31, %v21203_v31  ;;  %v14055_v55 = vpack.c.bf16 %v21227_v11, %v21227_v11  ;;  %v14028_v12 = vpack.c.bf16 %v21281_v6, %v21281_v6 }
 0x4af   : > { %v8133_v41 = vadd.f32 %v8132_v30, %v8131_v33  ;;  %v12624_v34 = vsel %vm3834_vm7, %v3564_v54, %v8032_v59  ;;  %12356 = vrot.lane.b32.xlu0 %v14046_v16, %s16378_s24  ;;  %v14029_v31 = vpack.c.bf16 %v21324_v13, %v21324_v13  ;;  %v14026_v20 = vpack.c.bf16 %v21276_v15, %v21276_v15 }
 0x4b0   : > { %v7836_v27 = vpop.permute.xlu0 %7835  ;;  %v12625_v38 = vsel %vm383_vm0, %v12624_v34, %v12521_v4  ;;  %12358 = vrot.lane.b32.xlu1 %v14047_v44, %s16378_s24  ;;  %v7842_v14 = vpop.permute.xlu1 %7841  ;;  %v14027_v6 = vpack.c.bf16 %v21334_v21, %v21334_v21  ;;  %v14058_v13 = vpack.c.bf16 %v21288_v22, %v21288_v22  ;;  %v14059_v43 = vpack.c.bf16 %v21315_v26, %v21315_v26 }
 0x4b1   : > { %7932 = vst.msk [vmem:[%s18829_s25] sm:$0xf] %vm7931_vm11, %v7836_v27  ;;  %v12626_v52 = vsel %vm3834_vm7, %v3665_v51, %v8133_v41  ;;  %7935 = vst.msk [vmem:[%s18829_s25 + $0xc] sm:$0xf] %vm7931_vm11, %v7842_v14  ;;  %v14060_v21 = vpack.c.bf16 %v21290_v56, %v21290_v56  ;;  %v14061_v22 = vpack.c.bf16 %v21313_v40, %v21313_v40 }
 0x4b2   : > { %12629 = vst.msk [vmem:[%s245_s15] sm:$0x7] %vm12628_vm13, %v12625_v38  ;;  %v12627_v3 = vsel %vm383_vm0, %v12626_v52, %v12622_v8 }
 0x4b3   : > { %12630 = vst.msk [vmem:[%s245_s15 + $0x4] sm:$0x7] %vm12628_vm13, %v12627_v3  ;;  %7879 = vrot.lane.b32.xlu0 %v14020_v61, %s16379_s26 }
 0x4b4   : > { %v12325_v35 = vpop.permute.xlu0 %12324  ;;  %7881 = vrot.lane.b32.xlu1 %v14021_v9, %s16379_s26  ;;  %v12331_v37 = vpop.permute.xlu1 %12330 }
 0x4b5   : > { %12421 = vst.msk [vmem:[%s18829_s25] sm:$0xf] %vm12420_vm12, %v12325_v35  ;;  %12424 = vst.msk [vmem:[%s18829_s25 + $0xc] sm:$0xf] %vm12420_vm12, %v12331_v37 }
 0x4b7   : > { %12368 = vrot.lane.b32.xlu0 %v14052_v19, %s16378_s24 }
 0x4b8   : > { %12370 = vrot.lane.b32.xlu1 %v14053_v42, %s16378_s24 }
 0x4bb   : > { %7875 = vrot.lane.b32.xlu0 %v14018_v53, %s16379_s26 }
 0x4bc   : > { %7877 = vrot.lane.b32.xlu1 %v14019_v10, %s16379_s26 }
 0x4bf   : > { %12364 = vrot.lane.b32.xlu0 %v14050_v0, %s16378_s24  ;;  %v12327_v1 = vpop.permute.xlu1 %12326  ;;  %v7838_v45 = vpop.permute.xlu0 %7837 }
 0x4c0   : > { %12366 = vrot.lane.b32.xlu1 %v14051_v32, %s16378_s24  ;;  %7933 = vst.msk [vmem:[%s18829_s25 + $0x4] sm:$0xf] %vm7931_vm11, %v7838_v45 }
 0x4c1   : > { %12422 = vst.msk [vmem:[%s18829_s25 + $0x4] sm:$0xf] %vm12420_vm12, %v12327_v1 }
 0x4c3   : > { %7887 = vrot.lane.b32.xlu0 %v14024_v5, %s16379_s26  ;;  %v7848_v60 = vpop.permute.xlu0 %7847  ;;  %v7850_v23 = vpop.permute.xlu1 %7849 }
 0x4c4   : > { %7889 = vrot.lane.b32.xlu1 %v14025_v46, %s16379_s26  ;;  %7938 = vst.msk [vmem:[%s18829_s25 + $0x18] sm:$0xf] %vm7931_vm11, %v7848_v60  ;;  %7939 = vst.msk [vmem:[%s18829_s25 + $0x1c] sm:$0xf] %vm7931_vm11, %v7850_v23 }
 0x4c7   : > { %12376 = vrot.lane.b32.xlu0 %v14056_v29, %s16378_s24 }
 0x4c8   : > { %12378 = vrot.lane.b32.xlu1 %v14057_v28, %s16378_s24 }
 0x4cb   : > { %7883 = vrot.lane.b32.xlu0 %v14022_v57, %s16379_s26 }
 0x4cc   : > { %7885 = vrot.lane.b32.xlu1 %v14023_v58, %s16379_s26 }
 0x4cd   : > { %v12337_v17 = vpop.permute.xlu0 %12336 }
 0x4ce   : > { %12427 = vst.msk [vmem:[%s18829_s25 + $0x18] sm:$0xf] %vm12420_vm12, %v12337_v17  ;;  %v12339_v24 = vpop.permute.xlu1 %12338 }
 0x4cf   : > { %12372 = vrot.lane.b32.xlu0 %v14054_v25, %s16378_s24  ;;  %12428 = vst.msk [vmem:[%s18829_s25 + $0x1c] sm:$0xf] %vm12420_vm12, %v12339_v24 }
 0x4d0   : > { %12374 = vrot.lane.b32.xlu1 %v14055_v55, %s16378_s24 }
 0x4d1   : > { %v7844_v36 = vpop.permute.xlu0 %7843 }
 0x4d2   : > { %7936 = vst.msk [vmem:[%s18829_s25 + $0x10] sm:$0xf] %vm7931_vm11, %v7844_v36 }
 0x4d3   : > { %v7846_v11 = vpop.permute.xlu1 %7845  ;;  %7895 = vrot.lane.b32.xlu0 %v14028_v12, %s16379_s26 }
 0x4d4   : > { %7937 = vst.msk [vmem:[%s18829_s25 + $0x14] sm:$0xf] %vm7931_vm11, %v7846_v11  ;;  %7897 = vrot.lane.b32.xlu1 %v14029_v31, %s16379_s26 }
 0x4d7   : > { %7891 = vrot.lane.b32.xlu0 %v14026_v20, %s16379_s26 }
 0x4d8   : > { %7893 = vrot.lane.b32.xlu1 %v14027_v6, %s16379_s26 }
 0x4db   : > { %12380 = vrot.lane.b32.xlu0 %v14058_v13, %s16378_s24 }
 0x4dc   : > { %12382 = vrot.lane.b32.xlu1 %v14059_v43, %s16378_s24  ;;  %v12333_v15 = vpop.permute.xlu0 %12332 }
 0x4dd   : > { %12425 = vst.msk [vmem:[%s18829_s25 + $0x10] sm:$0xf] %vm12420_vm12, %v12333_v15  ;;  %v12335_v7 = vpop.permute.xlu1 %12334 }
 0x4de   : > { %12426 = vst.msk [vmem:[%s18829_s25 + $0x14] sm:$0xf] %vm12420_vm12, %v12335_v7 }
 0x4df   : > { %12384 = vrot.lane.b32.xlu0 %v14060_v21, %s16378_s24 }
 0x4e0   : > { %12386 = vrot.lane.b32.xlu1 %v14061_v22, %s16378_s24  ;;  %v7856_v26 = vpop.permute.xlu0 %7855 }
 0x4e1   : > { %7942 = vst.msk [vmem:[%s18829_s25 + $0x28] sm:$0xf] %vm7931_vm11, %v7856_v26  ;;  %v7858_v56 = vpop.permute.xlu1 %7857 }
 0x4e2   : > { %7943 = vst.msk [vmem:[%s18829_s25 + $0x2c] sm:$0xf] %vm7931_vm11, %v7858_v56 }
 0x4eb   : > { %v12345_v18 = vpop.permute.xlu0 %12344 }
 0x4ec   : > { %12431 = vst.msk [vmem:[%s18829_s25 + $0x28] sm:$0xf] %vm12420_vm12, %v12345_v18  ;;  %v12347_v40 = vpop.permute.xlu1 %12346 }
 0x4ed   : > { %12432 = vst.msk [vmem:[%s18829_s25 + $0x2c] sm:$0xf] %vm12420_vm12, %v12347_v40 }
 0x4ef   : > { %v7852_v50 = vpop.permute.xlu0 %7851 }
 0x4f0   : > { %7940 = vst.msk [vmem:[%s18829_s25 + $0x20] sm:$0xf] %vm7931_vm11, %v7852_v50  ;;  %v7854_v62 = vpop.permute.xlu1 %7853 }
 0x4f1   : > { %7941 = vst.msk [vmem:[%s18829_s25 + $0x24] sm:$0xf] %vm7931_vm11, %v7854_v62 }
 0x4fa   : > { %v12341_v48 = vpop.permute.xlu0 %12340 }
 0x4fb   : > { %12429 = vst.msk [vmem:[%s18829_s25 + $0x20] sm:$0xf] %vm12420_vm12, %v12341_v48  ;;  %v12343_v2 = vpop.permute.xlu1 %12342 }
 0x4fc   : > { %12430 = vst.msk [vmem:[%s18829_s25 + $0x24] sm:$0xf] %vm12420_vm12, %v12343_v2 }
 0x4fe   : > { %v7864_v47 = vpop.permute.xlu0 %7863 }
 0x4ff   : > { %7946 = vst.msk [vmem:[%s18829_s25 + $0x38] sm:$0xf] %vm7931_vm11, %v7864_v47  ;;  %v7866_v49 = vpop.permute.xlu1 %7865 }
 0x500   : > { %7947 = vst.msk [vmem:[%s18829_s25 + $0x3c] sm:$0xf] %vm7931_vm11, %v7866_v49 }
 0x509   : > { %v12353_v63 = vpop.permute.xlu0 %12352 }
 0x50a   : > { %12435 = vst.msk [vmem:[%s18829_s25 + $0x38] sm:$0xf] %vm12420_vm12, %v12353_v63  ;;  %v12355_v39 = vpop.permute.xlu1 %12354 }
 0x50b   : > { %12436 = vst.msk [vmem:[%s18829_s25 + $0x3c] sm:$0xf] %vm12420_vm12, %v12355_v39 }
 0x50d   : > { %v7860_v33 = vpop.permute.xlu0 %7859 }
 0x50e   : > { %7944 = vst.msk [vmem:[%s18829_s25 + $0x30] sm:$0xf] %vm7931_vm11, %v7860_v33  ;;  %v7862_v4 = vpop.permute.xlu1 %7861 }
 0x50f   : > { %7945 = vst.msk [vmem:[%s18829_s25 + $0x34] sm:$0xf] %vm7931_vm11, %v7862_v4 }
 0x511   : > { %v12349_v54 = vpop.permute.xlu0 %12348 }
 0x512   : > { %12433 = vst.msk [vmem:[%s18829_s25 + $0x30] sm:$0xf] %vm12420_vm12, %v12349_v54  ;;  %v12351_v59 = vpop.permute.xlu1 %12350 }
 0x513   : > { %12434 = vst.msk [vmem:[%s18829_s25 + $0x34] sm:$0xf] %vm12420_vm12, %v12351_v59 }
 0x515   : > { %v7872_v30 = vpop.permute.xlu0 %7871 }
 0x516   : > { %7950 = vst.msk [vmem:[%s18829_s25 + $0x48] sm:$0xf] %vm7931_vm11, %v7872_v30  ;;  %v7874_v16 = vpop.permute.xlu1 %7873 }
 0x517   : > { %7951 = vst.msk [vmem:[%s18829_s25 + $0x4c] sm:$0xf] %vm7931_vm11, %v7874_v16 }
 0x519   : > { %v12361_v8 = vpop.permute.xlu0 %12360 }
 0x51a   : > { %12439 = vst.msk [vmem:[%s18829_s25 + $0x48] sm:$0xf] %vm12420_vm12, %v12361_v8  ;;  %v12363_v44 = vpop.permute.xlu1 %12362 }
 0x51b   : > { %12440 = vst.msk [vmem:[%s18829_s25 + $0x4c] sm:$0xf] %vm12420_vm12, %v12363_v44 }
 0x51d   : > { %v7868_v51 = vpop.permute.xlu0 %7867 }
 0x51e   : > { %7948 = vst.msk [vmem:[%s18829_s25 + $0x40] sm:$0xf] %vm7931_vm11, %v7868_v51  ;;  %v7870_v41 = vpop.permute.xlu1 %7869 }
 0x51f   : > { %7949 = vst.msk [vmem:[%s18829_s25 + $0x44] sm:$0xf] %vm7931_vm11, %v7870_v41 }
 0x521   : > { %v12357_v34 = vpop.permute.xlu0 %12356 }
 0x522   : > { %12437 = vst.msk [vmem:[%s18829_s25 + $0x40] sm:$0xf] %vm12420_vm12, %v12357_v34  ;;  %v12359_v27 = vpop.permute.xlu1 %12358 }
 0x523   : > { %12438 = vst.msk [vmem:[%s18829_s25 + $0x44] sm:$0xf] %vm12420_vm12, %v12359_v27 }
 0x525   : > { %v7880_v38 = vpop.permute.xlu0 %7879 }
 0x526   : > { %7954 = vst.msk [vmem:[%s18829_s25 + $0x58] sm:$0xf] %vm7931_vm11, %v7880_v38  ;;  %v7882_v14 = vpop.permute.xlu1 %7881 }
 0x527   : > { %7955 = vst.msk [vmem:[%s18829_s25 + $0x5c] sm:$0xf] %vm7931_vm11, %v7882_v14 }
 0x529   : > { %v12369_v52 = vpop.permute.xlu0 %12368 }
 0x52a   : > { %12443 = vst.msk [vmem:[%s18829_s25 + $0x58] sm:$0xf] %vm12420_vm12, %v12369_v52  ;;  %v12371_v61 = vpop.permute.xlu1 %12370 }
 0x52b   : > { %12444 = vst.msk [vmem:[%s18829_s25 + $0x5c] sm:$0xf] %vm12420_vm12, %v12371_v61 }
 0x52d   : > { %v7876_v3 = vpop.permute.xlu0 %7875 }
 0x52e   : > { %7952 = vst.msk [vmem:[%s18829_s25 + $0x50] sm:$0xf] %vm7931_vm11, %v7876_v3  ;;  %v7878_v9 = vpop.permute.xlu1 %7877 }
 0x52f   : > { %7953 = vst.msk [vmem:[%s18829_s25 + $0x54] sm:$0xf] %vm7931_vm11, %v7878_v9 }
 0x531   : > { %v12365_v35 = vpop.permute.xlu0 %12364 }
 0x532   : > { %12441 = vst.msk [vmem:[%s18829_s25 + $0x50] sm:$0xf] %vm12420_vm12, %v12365_v35  ;;  %v12367_v37 = vpop.permute.xlu1 %12366 }
 0x533   : > { %12442 = vst.msk [vmem:[%s18829_s25 + $0x54] sm:$0xf] %vm12420_vm12, %v12367_v37 }
 0x535   : > { %v7888_v19 = vpop.permute.xlu0 %7887 }
 0x536   : > { %7958 = vst.msk [vmem:[%s18829_s25 + $0x68] sm:$0xf] %vm7931_vm11, %v7888_v19  ;;  %v7890_v42 = vpop.permute.xlu1 %7889 }
 0x537   : > { %7959 = vst.msk [vmem:[%s18829_s25 + $0x6c] sm:$0xf] %vm7931_vm11, %v7890_v42 }
 0x539   : > { %v12377_v53 = vpop.permute.xlu0 %12376 }
 0x53a   : > { %12447 = vst.msk [vmem:[%s18829_s25 + $0x68] sm:$0xf] %vm12420_vm12, %v12377_v53  ;;  %v12379_v10 = vpop.permute.xlu1 %12378 }
 0x53b   : > { %12448 = vst.msk [vmem:[%s18829_s25 + $0x6c] sm:$0xf] %vm12420_vm12, %v12379_v10 }
 0x53d   : > { %v7884_v0 = vpop.permute.xlu0 %7883 }
 0x53e   : > { %7956 = vst.msk [vmem:[%s18829_s25 + $0x60] sm:$0xf] %vm7931_vm11, %v7884_v0  ;;  %v7886_v32 = vpop.permute.xlu1 %7885 }
 0x53f   : > { %7957 = vst.msk [vmem:[%s18829_s25 + $0x64] sm:$0xf] %vm7931_vm11, %v7886_v32 }
 0x541   : > { %v12373_v1 = vpop.permute.xlu0 %12372 }
 0x542   : > { %12445 = vst.msk [vmem:[%s18829_s25 + $0x60] sm:$0xf] %vm12420_vm12, %v12373_v1  ;;  %v12375_v45 = vpop.permute.xlu1 %12374 }
 0x543   : > { %12446 = vst.msk [vmem:[%s18829_s25 + $0x64] sm:$0xf] %vm12420_vm12, %v12375_v45 }
 0x545   : > { %v7896_v5 = vpop.permute.xlu0 %7895 }
 0x546   : > { %7962 = vst.msk [vmem:[%s18829_s25 + $0x78] sm:$0xf] %vm7931_vm11, %v7896_v5  ;;  %v7898_v46 = vpop.permute.xlu1 %7897 }
 0x547   : > { %7963 = vst.msk [vmem:[%s18829_s25 + $0x7c] sm:$0xf] %vm7931_vm11, %v7898_v46 }
 0x549   : > { %v7892_v60 = vpop.permute.xlu0 %7891 }
 0x54a   : > { %7960 = vst.msk [vmem:[%s18829_s25 + $0x70] sm:$0xf] %vm7931_vm11, %v7892_v60  ;;  %v7894_v23 = vpop.permute.xlu1 %7893 }
 0x54b   : > { %7961 = vst.msk [vmem:[%s18829_s25 + $0x74] sm:$0xf] %vm7931_vm11, %v7894_v23 }
 0x54d   : > { %v12381_v29 = vpop.permute.xlu0 %12380 }
 0x54e   : > { %12449 = vst.msk [vmem:[%s18829_s25 + $0x70] sm:$0xf] %vm12420_vm12, %v12381_v29  ;;  %v12383_v28 = vpop.permute.xlu1 %12382 }
 0x54f   : > { %12450 = vst.msk [vmem:[%s18829_s25 + $0x74] sm:$0xf] %vm12420_vm12, %v12383_v28 }
 0x551   : > { %v12385_v57 = vpop.permute.xlu0 %12384 }
 0x552   : > { %12451 = vst.msk [vmem:[%s18829_s25 + $0x78] sm:$0xf] %vm12420_vm12, %v12385_v57  ;;  %v12387_v58 = vpop.permute.xlu1 %12386 }
 0x553   : > { %12452 = vst.msk [vmem:[%s18829_s25 + $0x7c] sm:$0xf] %vm12420_vm12, %v12387_v58 }
 0x554 PF: > { %s15_s17 = sadd.s32 1, %s16376_s17   ;;  %s21972_s15 = smov %s16372_s16 }
 0x555   : > { %p12_p5 = scmp.ge.s32.totalorder %s15_s17, 4   ;;  %s21973_s16 = smov %s21975_s18 }
 0x557   :  { %14 = sbr.rel (!%p12_p5) target bundleno = 2 (0x2), region = 103 }

</bundles_post_ra>
